<compile_context>
chip_gen: v6e
topology: v6e:2x2x1
jax: 0.10.0
libtpu: 0.0.40
codegen_flags: <defaults>
</compile_context>

<pallas_src>
import functools
import math

import numpy as np

import jax
import jax.numpy as jnp
from jax import lax
from jax.experimental import pallas as pl
from jax.experimental.pallas import tpu as pltpu

_LANE = 128  # TPU lane width; padded channel dims are multiples of this.


# ----------------------------------------------------------------------------
# Static helpers (trace-time only)
# ----------------------------------------------------------------------------
def _round_up(x, m):
    return ((x + m - 1) // m) * m


def _pick_tile_h(H, W):
    """Rows per output tile: target ~1024 output pixels per grid step (fills
    the 256-wide MXU on v6e/v7x, amortizes per-step overhead) while dividing H."""
    th = min(H, max(1, 1024 // max(W, 1)))
    while th > 1 and H % th != 0:
        th -= 1
    return max(th, 1)


def _align_corners_grid(out_size, in_size):
    """Static (lo, frac) pairs for 1-D align_corners=True linear interpolation."""
    los, fracs = [], []
    for p in range(out_size):
        if in_size == 1:
            los.append(0)
            fracs.append(0.0)
            continue
        pos = p * (in_size - 1) / (out_size - 1)
        lo = min(int(math.floor(pos)), in_size - 2)
        los.append(lo)
        fracs.append(float(pos - lo))
    return tuple(los), tuple(fracs)


def _align_corners_matrix(out_size, in_size):
    m = np.zeros((out_size, in_size), np.float32)
    los, fracs = _align_corners_grid(out_size, in_size)
    for p in range(out_size):
        if in_size == 1:
            m[p, 0] = 1.0
        else:
            m[p, los[p]] += 1.0 - fracs[p]
            m[p, los[p] + 1] += fracs[p]
    return jnp.asarray(m)


def _fold_bn(gamma, beta, mean, var, eps, c_pad):
    """Fold eval-mode BatchNorm into per-channel scale/bias, zero-padded to c_pad."""
    scale = (gamma / jnp.sqrt(var + eps)).astype(jnp.float32)
    bias = (beta - mean * scale).astype(jnp.float32)
    c = scale.shape[0]
    s = jnp.zeros((1, c_pad), jnp.float32).at[0, :c].set(scale)
    b = jnp.zeros((1, c_pad), jnp.float32).at[0, :c].set(bias)
    return s, b


def _resident_spec(block_shape, index_map):
    """BlockSpec for an input whose block is constant along the inner grid axis:
    single-buffered to halve its VMEM footprint vs. default double buffering.
    Falls back to a plain BlockSpec if pipeline_mode is unavailable."""
    try:
        return pl.BlockSpec(block_shape, index_map, pipeline_mode=pl.Buffered(1))
    except Exception:  # pragma: no cover - older jax without pipeline_mode
        return pl.BlockSpec(block_shape, index_map)


# ----------------------------------------------------------------------------
# In-kernel helper: 3x3 conv over TH output rows of a halo'd bf16 scratch
# ----------------------------------------------------------------------------
def _conv3x3_rows(pad_ref, w_ref, row0, TH, W):
    """Returns the (TH*W, Nout) f32 conv accumulator for output rows
    [row0, row0+TH).  pad_ref is a (Hp, Wp, Cin_p) bf16 halo'd image with
    Cin_p a multiple of 128; w_ref is a (3, 3*Cin_p, Nout) bf16 weight laid
    out (kx, ky*Cin_p).  The three ky taps are folded into one K = 3*Cin_p
    matmul per kx (3 deep-K dots, 3x fewer accumulator passes than 9 taps)."""
    cin = pad_ref.shape[-1]
    acc = None
    for dx in range(3):
        patch = jnp.concatenate(
            [pad_ref[pl.ds(row0 + dy, TH), pl.ds(dx, W), :] for dy in range(3)],
            axis=-1)                                    # (TH, W, 3*Cin_p)
        d = jnp.dot(patch.reshape(TH * W, 3 * cin), w_ref[dx],
                    preferred_element_type=jnp.float32)
        acc = d if acc is None else acc + d
    return acc


# ----------------------------------------------------------------------------
# Fused kernel: upsample(x1) + pad + concat + conv1+BN+ReLU + conv2+BN+ReLU
# ----------------------------------------------------------------------------
def _up_fused_kernel(x2_ref, x1c_ref, w1_ref, w2_ref, s1_ref, b1_ref,
                     s2_ref, b2_ref, o_ref, pad1_ref, pad2_ref, *,
                     H, W, C2, C1, H_up, W_up, pad_t, pad_l, TH, n_h,
                     row_lo, row_frac):
    h = pl.program_id(1)
    Cmid_p = pad2_ref.shape[-1]
    Cout_p = o_ref.shape[-1]

    # Build both halo'd images and run conv1 once per batch element (h == 0);
    # nothing but the raw inputs and the final output ever touches HBM.
    @pl.when(h == 0)
    def _build_and_conv1():
        # Zero covers the conv halo, the F.pad ring and the padded channels;
        # the interiors are overwritten just below.
        pad1_ref[...] = jnp.zeros_like(pad1_ref)
        pad2_ref[...] = jnp.zeros_like(pad2_ref)

        # Fused channel concat: skip connection x2 -> channels [0:C2].
        pad1_ref[1:H + 1, 1:W + 1, 0:C2] = x2_ref[0]

        # Bilinear 2x upsample of x1 (align_corners=True) fused with F.pad and
        # the concat.  Columns were pre-interpolated in the wrapper; each
        # output row is a static 2-tap blend of two resident rows followed by
        # one lane-aligned, sublane-dense store (no width-1 masked stores).
        for p in range(H_up):
            lo = row_lo[p]
            fr = row_frac[p]
            if fr == 0.0:
                v = x1c_ref[0, lo].astype(jnp.float32)
            elif fr == 1.0:
                v = x1c_ref[0, lo + 1].astype(jnp.float32)
            else:
                a = x1c_ref[0, lo].astype(jnp.float32)
                b = x1c_ref[0, lo + 1].astype(jnp.float32)
                v = a * (1.0 - fr) + b * fr
            pad1_ref[1 + pad_t + p, 1 + pad_l:1 + pad_l + W_up,
                     C2:C2 + C1] = v.astype(pad1_ref.dtype)

        # conv1 + BN(eval) + ReLU over the full image into the halo'd bf16 mid
        # scratch (channel dim padded to a lane multiple for aligned K).
        def conv1_block(row0):
            acc = _conv3x3_rows(pad1_ref, w1_ref, row0, TH, W)
            y = jnp.maximum(acc * s1_ref[0] + b1_ref[0], 0.0)
            pad2_ref[pl.ds(row0 + 1, TH), 1:W + 1, :] = (
                y.reshape(TH, W, Cmid_p).astype(pad2_ref.dtype))

        if n_h <= 8:
            for hh in range(n_h):
                conv1_block(hh * TH)
        else:
            @pl.loop(0, n_h)
            def _(hh):
                conv1_block(pl.multiple_of(hh * TH, TH))

    # conv2 + BN(eval) + ReLU for this output row tile; lane-dense bf16 store.
    row0 = pl.multiple_of(h * TH, TH)
    acc2 = _conv3x3_rows(pad2_ref, w2_ref, row0, TH, W)
    y2 = jnp.maximum(acc2 * s2_ref[0] + b2_ref[0], 0.0)
    o_ref[0] = y2.reshape(TH, W, Cout_p).astype(o_ref.dtype)


# ----------------------------------------------------------------------------
# Wrapper (pallas_call setup)
# ----------------------------------------------------------------------------
def up_double_conv(x2_nhwc, x1_nhwc, params, eps=1e-5):
    """Fused Up forward: bilinear 2x upsample (align_corners=True) of x1,
    F.pad to x2's spatial size, channel concat [x2, x1], then
    (conv3x3 -> BN(eval) -> ReLU) x 2, all in one pallas_call.
    Returns (N, H, W, Cout_p) bf16 with Cout_p a multiple of 128 (extra = 0)."""
    N, H, W, C2 = x2_nhwc.shape
    _, H1, W1, C1 = x1_nhwc.shape
    w1, w2 = params['w1'], params['w2']
    Cin = C2 + C1
    Cmid, Cout = w1.shape[-1], w2.shape[-1]
    assert w1.shape == (3, 3, Cin, Cmid)
    assert w2.shape == (3, 3, Cmid, Cout)

    H_up, W_up = 2 * H1, 2 * W1
    diffY, diffX = H - H_up, W - W_up
    if diffY < 0 or diffX < 0:
        # TODO(synk): F.pad with negative pads (crop) when up(x1) is larger
        # than x2 is not implemented; the standard UNet decoder never hits it.
        raise NotImplementedError("upsampled x1 larger than x2 is unsupported")
    pad_t, pad_l = diffY // 2, diffX // 2

    Cin_p = _round_up(Cin, _LANE)    # concat-scratch channels (lane aligned K)
    Cmid_p = _round_up(Cmid, _LANE)  # inter-conv channels (lane aligned)
    Cout_p = _round_up(Cout, _LANE)  # output channels (lane-dense stores)
    TH = _pick_tile_h(H, W)
    n_h = H // TH

    # bf16 inputs: halves resident-block DMA / VMEM; the MXU consumes bf16.
    x2_b = x2_nhwc.astype(jnp.bfloat16)

    # Column half of the separable bilinear upsample, hoisted to a tiny XLA
    # einsum on the small pre-upsample x1 so the kernel build phase has no
    # per-column masked stores / unaligned lane slices.
    mw = _align_corners_matrix(W_up, W1)                      # (W_up, W1) f32
    x1c = jnp.einsum('qw,nhwc->nhqc', mw, x1_nhwc.astype(jnp.float32))
    x1c = x1c.astype(jnp.bfloat16)                            # (N, H1, W_up, C1)
    row_lo, row_frac = _align_corners_grid(H_up, H1)          # static row taps

    # Conv weights laid out (kx, ky*Cin_padded, Cout_padded) bf16 so the three
    # ky taps fold into a single deep-K matmul per kx.
    w1p = jnp.zeros((3, 3, Cin_p, Cmid_p), jnp.bfloat16)
    w1p = w1p.at[:, :, :Cin, :Cmid].set(w1.astype(jnp.bfloat16))
    w1t = jnp.transpose(w1p, (1, 0, 2, 3)).reshape(3, 3 * Cin_p, Cmid_p)
    w2p = jnp.zeros((3, 3, Cmid_p, Cout_p), jnp.bfloat16)
    w2p = w2p.at[:, :, :Cmid, :Cout].set(w2.astype(jnp.bfloat16))
    w2t = jnp.transpose(w2p, (1, 0, 2, 3)).reshape(3, 3 * Cmid_p, Cout_p)

    s1, b1 = _fold_bn(params['g1'], params['b1'], params['m1'], params['v1'],
                      eps, Cmid_p)
    s2, b2 = _fold_bn(params['g2'], params['b2'], params['m2'], params['v2'],
                      eps, Cout_p)

    kernel = functools.partial(
        _up_fused_kernel, H=H, W=W, C2=C2, C1=C1, H_up=H_up, W_up=W_up,
        pad_t=pad_t, pad_l=pad_l, TH=TH, n_h=n_h,
        row_lo=row_lo, row_frac=row_frac)

    # VMEM budget from actual buffer sizes (review: don't hardcode; must stay
    # sane on v7x's 64 MiB while letting v5e/v6e use their larger VMEM).
    vmem_bytes = (
        (H + 2) * (W + 2) * (Cin_p + Cmid_p) * 2      # halo'd bf16 scratches
        + H * W * C2 * 2 + H1 * W_up * C1 * 2         # resident inputs (1 buf)
        + 9 * (Cin_p * Cmid_p + Cmid_p * Cout_p) * 2  # conv weights (1 buf)
        + 2 * (Cmid_p + Cout_p) * 4                   # folded BN scale/bias
        + 2 * TH * W * Cout_p * 2                     # output tile (2 bufs)
        + TH * W * (Cmid_p + Cout_p) * 4              # f32 accumulators
        + TH * W * 3 * max(Cin_p, Cmid_p) * 2)        # folded tap patches
    vmem_limit = max(32 << 20, min(int(vmem_bytes * 1.5) + (4 << 20), 100 << 20))

    flops = N * 2 * H * W * 9 * (Cin_p * Cmid_p + Cmid_p * Cout_p)
    bytes_accessed = (2 * N * (H * W * C2 + H1 * W_up * C1 + H * W * Cout_p)
                      + 2 * 9 * (Cin_p * Cmid_p + Cmid_p * Cout_p))

    return pl.pallas_call(
        kernel,
        out_shape=jax.ShapeDtypeStruct((N, H, W, Cout_p), jnp.bfloat16),
        grid=(N, n_h),
        in_specs=[
            _resident_spec((1, H, W, C2), lambda n, h: (n, 0, 0, 0)),
            _resident_spec((1, H1, W_up, C1), lambda n, h: (n, 0, 0, 0)),
            _resident_spec((3, 3 * Cin_p, Cmid_p), lambda n, h: (0, 0, 0)),
            _resident_spec((3, 3 * Cmid_p, Cout_p), lambda n, h: (0, 0, 0)),
            _resident_spec((1, Cmid_p), lambda n, h: (0, 0)),
            _resident_spec((1, Cmid_p), lambda n, h: (0, 0)),
            _resident_spec((1, Cout_p), lambda n, h: (0, 0)),
            _resident_spec((1, Cout_p), lambda n, h: (0, 0)),
        ],
        out_specs=pl.BlockSpec((1, TH, W, Cout_p), lambda n, h: (n, h, 0, 0)),
        scratch_shapes=[
            pltpu.VMEM((H + 2, W + 2, Cin_p), jnp.bfloat16),   # padded concat in
            pltpu.VMEM((H + 2, W + 2, Cmid_p), jnp.bfloat16),  # padded conv1 out
        ],
        compiler_params=pltpu.CompilerParams(
            # h must be "arbitrary": the scratches built / filled at h == 0 are
            # reused by the later row tiles of the same batch element.
            # TODO(synk): for N == 1 on v7x (2 TensorCores), split the rows into
            # two independent halves above the grid so both cores get work.
            dimension_semantics=("parallel", "arbitrary"),
            vmem_limit_bytes=int(vmem_limit)),
        cost_estimate=pl.CostEstimate(flops=int(flops), transcendentals=0,
                                      bytes_accessed=int(bytes_accessed)),
    )(x2_b, x1c, w1t, w2t, s1, b1, s2, b2)


# ----------------------------------------------------------------------------
# Up module forward (bilinear=True path of the PyTorch module)
# ----------------------------------------------------------------------------
def up_forward(x1_nchw, x2_nchw, params, eps=1e-5):
    # TODO(synk): only the bilinear=True branch of Up is implemented; the
    # ConvTranspose2d (bilinear=False) path is not used by the default ctor.
    x1 = jnp.transpose(x1_nchw, (0, 2, 3, 1)).astype(jnp.float32)  # NCHW->NHWC
    x2 = jnp.transpose(x2_nchw, (0, 2, 3, 1)).astype(jnp.float32)
    cout = params['w2'].shape[-1]
    y = up_double_conv(x2, x1, params, eps)            # (N, H, W, Cout_p) bf16
    y = y[..., :cout].astype(jnp.float32)
    return jnp.transpose(y, (0, 3, 1, 2))              # NHWC->NCHW


# ----------------------------------------------------------------------------
# Pure-JAX f32 reference (for a tolerance check against the bf16 kernel)
# ----------------------------------------------------------------------------
def up_forward_reference(x1_nchw, x2_nchw, params, eps=1e-5):
    x1 = jnp.transpose(x1_nchw, (0, 2, 3, 1)).astype(jnp.float32)
    x2 = jnp.transpose(x2_nchw, (0, 2, 3, 1)).astype(jnp.float32)
    _, H1, W1, _ = x1.shape
    mh = _align_corners_matrix(2 * H1, H1)
    mw = _align_corners_matrix(2 * W1, W1)
    x1u = jnp.einsum('ph,nhwc,qw->npqc', mh, x1, mw)
    dY = x2.shape[1] - x1u.shape[1]
    dX = x2.shape[2] - x1u.shape[2]
    x1u = jnp.pad(x1u, ((0, 0), (dY // 2, dY - dY // 2),
                        (dX // 2, dX - dX // 2), (0, 0)))
    x = jnp.concatenate([x2, x1u], axis=-1)

    def conv_bn_relu(x, w, g, b, m, v):
        y = lax.conv_general_dilated(x, w, (1, 1), 'SAME',
                                     dimension_numbers=('NHWC', 'HWIO', 'NHWC'))
        y = (y - m) / jnp.sqrt(v + eps) * g + b
        return jnp.maximum(y, 0.0)

    y = conv_bn_relu(x, params['w1'], params['g1'], params['b1'],
                     params['m1'], params['v1'])
    y = conv_bn_relu(y, params['w2'], params['g2'], params['b2'],
                     params['m2'], params['v2'])
    return jnp.transpose(y, (0, 3, 1, 2))


def make_params(key, in_channels, out_channels):
    """Deterministic synthetic parameters for Up(in_channels, out_channels, True).
    Conv weights are stored HWIO (equivalent to the PyTorch OIHW weights)."""
    mid_channels = in_channels // 2
    ks = jax.random.split(key, 10)
    return {
        'w1': 0.1 * jax.random.normal(ks[0], (3, 3, in_channels, mid_channels), jnp.float32),
        'g1': 1.0 + 0.1 * jax.random.normal(ks[1], (mid_channels,), jnp.float32),
        'b1': 0.1 * jax.random.normal(ks[2], (mid_channels,), jnp.float32),
        'm1': 0.05 * jax.random.normal(ks[3], (mid_channels,), jnp.float32),
        'v1': 0.5 + 0.1 * jnp.abs(jax.random.normal(ks[4], (mid_channels,), jnp.float32)),
        'w2': 0.1 * jax.random.normal(ks[5], (3, 3, mid_channels, out_channels), jnp.float32),
        'g2': 1.0 + 0.1 * jax.random.normal(ks[6], (out_channels,), jnp.float32),
        'b2': 0.1 * jax.random.normal(ks[7], (out_channels,), jnp.float32),
        'm2': 0.05 * jax.random.normal(ks[8], (out_channels,), jnp.float32),
        'v2': 0.5 + 0.1 * jnp.abs(jax.random.normal(ks[9], (out_channels,), jnp.float32)),
    }


if __name__ == "__main__":
    # Up(in_channels=8, out_channels=4, bilinear=True):
    #   x1: (N, in_channels//2, H1, W1)      deeper decoder feature (upsampled)
    #   x2: (N, in_channels//2, 2*H1, 2*W1)  skip connection
    key = jax.random.PRNGKey(0)
    k1, k2, kp = jax.random.split(key, 3)

    N, C_half, H1, W1 = 2, 4, 8, 8
    in_channels, out_channels = 2 * C_half, 4

    x1 = jax.random.normal(k1, (N, C_half, H1, W1), jnp.float32)          # NCHW
    x2 = jax.random.normal(k2, (N, C_half, 2 * H1, 2 * W1), jnp.float32)  # NCHW
    params = make_params(kp, in_channels, out_channels)

    out = jax.jit(up_forward)(x1, x2, params)
    out = jax.block_until_ready(out)

    assert out.shape == (N, out_channels, 2 * H1, 2 * W1), out.shape
    assert bool(jnp.all(jnp.isfinite(out)))

    ref = up_forward_reference(x1, x2, params)
    max_err = float(jnp.max(jnp.abs(out - ref)))
    assert max_err < 1e-1, f"max abs err vs f32 reference: {max_err}"

    print("KERNEL_OK")
</pallas_src>

<mosaic_0001>
module attributes {stable_mosaic.version = 11 : i64} {
  func.func @_up_fused_kernel(%arg0: i32, %arg1: i32, %arg2: memref<1x16x16x4xbf16, #tpu.memory_space<vmem>>, %arg3: memref<1x8x16x4xbf16, #tpu.memory_space<vmem>>, %arg4: memref<3x384x128xbf16, #tpu.memory_space<vmem>>, %arg5: memref<3x384x128xbf16, #tpu.memory_space<vmem>>, %arg6: memref<1x128xf32, #tpu.memory_space<vmem>>, %arg7: memref<1x128xf32, #tpu.memory_space<vmem>>, %arg8: memref<1x128xf32, #tpu.memory_space<vmem>>, %arg9: memref<1x128xf32, #tpu.memory_space<vmem>>, %arg10: memref<1x16x16x128xbf16, #tpu.memory_space<vmem>>, %arg11: memref<18x18x128xbf16, #tpu.memory_space<vmem>>, %arg12: memref<18x18x128xbf16, #tpu.memory_space<vmem>>) attributes {dimension_semantics = [#tpu.dimension_semantics<parallel>, #tpu.dimension_semantics<arbitrary>], iteration_bounds = array<i64: 2, 1>, scalar_prefetch = 0 : i64, scratch_operands = 2 : i64, tpu.core_type = #tpu.core_type<tc>, window_params = [{pipeline_mode = #tpu.pipeline_mode<synchronous>, transform_indices = @transform_0, window_bounds = array<i64: 1, 16, 16, 4>}, {pipeline_mode = #tpu.pipeline_mode<synchronous>, transform_indices = @transform_1, window_bounds = array<i64: 1, 8, 16, 4>}, {pipeline_mode = #tpu.pipeline_mode<synchronous>, transform_indices = @transform_2, window_bounds = array<i64: 3, 384, 128>}, {pipeline_mode = #tpu.pipeline_mode<synchronous>, transform_indices = @transform_3, window_bounds = array<i64: 3, 384, 128>}, {pipeline_mode = #tpu.pipeline_mode<synchronous>, transform_indices = @transform_4, window_bounds = array<i64: 1, 128>}, {pipeline_mode = #tpu.pipeline_mode<synchronous>, transform_indices = @transform_5, window_bounds = array<i64: 1, 128>}, {pipeline_mode = #tpu.pipeline_mode<synchronous>, transform_indices = @transform_6, window_bounds = array<i64: 1, 128>}, {pipeline_mode = #tpu.pipeline_mode<synchronous>, transform_indices = @transform_7, window_bounds = array<i64: 1, 128>}, {transform_indices = @transform_8, window_bounds = array<i64: 1, 16, 16, 128>}]} {
    %c0_i32 = arith.constant 0 : i32
    %0 = arith.cmpi eq, %arg1, %c0_i32 : i32
    %1 = arith.extui %0 : i1 to i32
    %c0_i32_0 = arith.constant 0 : i32
    %2 = arith.cmpi ne, %1, %c0_i32_0 : i32
    scf.if %2 {
      %cst_43 = arith.constant 0.000000e+00 : bf16
      %66 = vector.broadcast %cst_43 : bf16 to vector<18x18x128xbf16>
      %c0_44 = arith.constant 0 : index
      %c0_45 = arith.constant 0 : index
      %c0_46 = arith.constant 0 : index
      %67 = vector.load %arg11[%c0_44, %c0_45, %c0_46] : memref<18x18x128xbf16, #tpu.memory_space<vmem>>, vector<18x18x128xbf16>
      tpu.vector_store %arg11[%c0_44, %c0_45, %c0_46], %66 {strides = array<i32>} : memref<18x18x128xbf16, #tpu.memory_space<vmem>>, vector<18x18x128xbf16>,
      %cst_47 = arith.constant 0.000000e+00 : bf16
      %68 = vector.broadcast %cst_47 : bf16 to vector<18x18x128xbf16>
      %c0_48 = arith.constant 0 : index
      %c0_49 = arith.constant 0 : index
      %c0_50 = arith.constant 0 : index
      %69 = vector.load %arg12[%c0_48, %c0_49, %c0_50] : memref<18x18x128xbf16, #tpu.memory_space<vmem>>, vector<18x18x128xbf16>
      tpu.vector_store %arg12[%c0_48, %c0_49, %c0_50], %68 {strides = array<i32>} : memref<18x18x128xbf16, #tpu.memory_space<vmem>>, vector<18x18x128xbf16>,
      %c0_51 = arith.constant 0 : index
      %c0_52 = arith.constant 0 : index
      %c0_53 = arith.constant 0 : index
      %c0_54 = arith.constant 0 : index
      %70 = vector.load %arg2[%c0_51, %c0_52, %c0_53, %c0_54] : memref<1x16x16x4xbf16, #tpu.memory_space<vmem>>, vector<1x16x16x4xbf16>
      %71 = vector.shape_cast %70 : vector<1x16x16x4xbf16> to vector<16x16x4xbf16>
      %c1_55 = arith.constant 1 : index
      %c1_56 = arith.constant 1 : index
      %c0_57 = arith.constant 0 : index
      %72 = vector.load %arg11[%c1_55, %c1_56, %c0_57] : memref<18x18x128xbf16, #tpu.memory_space<vmem>>, vector<16x16x4xbf16>
      tpu.vector_store %arg11[%c1_55, %c1_56, %c0_57], %71 {strides = array<i32>} : memref<18x18x128xbf16, #tpu.memory_space<vmem>>, vector<16x16x4xbf16>,
      %c0_58 = arith.constant 0 : index
      %c0_59 = arith.constant 0 : index
      %c0_60 = arith.constant 0 : index
      %c0_61 = arith.constant 0 : index
      %73 = vector.load %arg3[%c0_58, %c0_59, %c0_60, %c0_61] : memref<1x8x16x4xbf16, #tpu.memory_space<vmem>>, vector<1x1x16x4xbf16>
      %74 = vector.shape_cast %73 : vector<1x1x16x4xbf16> to vector<16x4xbf16>
      %75 = arith.extf %74 : vector<16x4xbf16> to vector<16x4xf32>
      %76 = arith.truncf %75 : vector<16x4xf32> to vector<16x4xbf16>
      %c1_62 = arith.constant 1 : index
      %c1_63 = arith.constant 1 : index
      %c4 = arith.constant 4 : index
      %77 = vector.load %arg11[%c1_62, %c1_63, %c4] : memref<18x18x128xbf16, #tpu.memory_space<vmem>>, vector<1x16x4xbf16>
      %78 = vector.shape_cast %77 : vector<1x16x4xbf16> to vector<16x4xbf16>
      %79 = vector.shape_cast %76 : vector<16x4xbf16> to vector<1x16x4xbf16>
      tpu.vector_store %arg11[%c1_62, %c1_63, %c4], %79 {strides = array<i32>} : memref<18x18x128xbf16, #tpu.memory_space<vmem>>, vector<1x16x4xbf16>,
      %c0_64 = arith.constant 0 : index
      %c0_65 = arith.constant 0 : index
      %c0_66 = arith.constant 0 : index
      %c0_67 = arith.constant 0 : index
      %80 = vector.load %arg3[%c0_64, %c0_65, %c0_66, %c0_67] : memref<1x8x16x4xbf16, #tpu.memory_space<vmem>>, vector<1x1x16x4xbf16>
      %81 = vector.shape_cast %80 : vector<1x1x16x4xbf16> to vector<16x4xbf16>
      %82 = arith.extf %81 : vector<16x4xbf16> to vector<16x4xf32>
      %c0_68 = arith.constant 0 : index
      %c1_69 = arith.constant 1 : index
      %c0_70 = arith.constant 0 : index
      %c0_71 = arith.constant 0 : index
      %83 = vector.load %arg3[%c0_68, %c1_69, %c0_70, %c0_71] : memref<1x8x16x4xbf16, #tpu.memory_space<vmem>>, vector<1x1x16x4xbf16>
      %84 = vector.shape_cast %83 : vector<1x1x16x4xbf16> to vector<16x4xbf16>
      %85 = arith.extf %84 : vector<16x4xbf16> to vector<16x4xf32>
      %cst_72 = arith.constant 0.533333361 : f32
      %86 = vector.broadcast %cst_72 : f32 to vector<16x4xf32>
      %87 = arith.mulf %82, %86 : vector<16x4xf32>
      %cst_73 = arith.constant 0.466666669 : f32
      %88 = vector.broadcast %cst_73 : f32 to vector<16x4xf32>
      %89 = arith.mulf %85, %88 : vector<16x4xf32>
      %90 = arith.addf %87, %89 : vector<16x4xf32>
      %91 = arith.truncf %90 : vector<16x4xf32> to vector<16x4xbf16>
      %c2_74 = arith.constant 2 : index
      %c1_75 = arith.constant 1 : index
      %c4_76 = arith.constant 4 : index
      %92 = vector.load %arg11[%c2_74, %c1_75, %c4_76] : memref<18x18x128xbf16, #tpu.memory_space<vmem>>, vector<1x16x4xbf16>
      %93 = vector.shape_cast %92 : vector<1x16x4xbf16> to vector<16x4xbf16>
      %94 = vector.shape_cast %91 : vector<16x4xbf16> to vector<1x16x4xbf16>
      tpu.vector_store %arg11[%c2_74, %c1_75, %c4_76], %94 {strides = array<i32>} : memref<18x18x128xbf16, #tpu.memory_space<vmem>>, vector<1x16x4xbf16>,
      %c0_77 = arith.constant 0 : index
      %c0_78 = arith.constant 0 : index
      %c0_79 = arith.constant 0 : index
      %c0_80 = arith.constant 0 : index
      %95 = vector.load %arg3[%c0_77, %c0_78, %c0_79, %c0_80] : memref<1x8x16x4xbf16, #tpu.memory_space<vmem>>, vector<1x1x16x4xbf16>
      %96 = vector.shape_cast %95 : vector<1x1x16x4xbf16> to vector<16x4xbf16>
      %97 = arith.extf %96 : vector<16x4xbf16> to vector<16x4xf32>
      %c0_81 = arith.constant 0 : index
      %c1_82 = arith.constant 1 : index
      %c0_83 = arith.constant 0 : index
      %c0_84 = arith.constant 0 : index
      %98 = vector.load %arg3[%c0_81, %c1_82, %c0_83, %c0_84] : memref<1x8x16x4xbf16, #tpu.memory_space<vmem>>, vector<1x1x16x4xbf16>
      %99 = vector.shape_cast %98 : vector<1x1x16x4xbf16> to vector<16x4xbf16>
      %100 = arith.extf %99 : vector<16x4xbf16> to vector<16x4xf32>
      %cst_85 = arith.constant 0.0666666701 : f32
      %101 = vector.broadcast %cst_85 : f32 to vector<16x4xf32>
      %102 = arith.mulf %97, %101 : vector<16x4xf32>
      %cst_86 = arith.constant 0.933333337 : f32
      %103 = vector.broadcast %cst_86 : f32 to vector<16x4xf32>
      %104 = arith.mulf %100, %103 : vector<16x4xf32>
      %105 = arith.addf %102, %104 : vector<16x4xf32>
      %106 = arith.truncf %105 : vector<16x4xf32> to vector<16x4xbf16>
      %c3 = arith.constant 3 : index
      %c1_87 = arith.constant 1 : index
      %c4_88 = arith.constant 4 : index
      %107 = vector.load %arg11[%c3, %c1_87, %c4_88] : memref<18x18x128xbf16, #tpu.memory_space<vmem>>, vector<1x16x4xbf16>
      %108 = vector.shape_cast %107 : vector<1x16x4xbf16> to vector<16x4xbf16>
      %109 = vector.shape_cast %106 : vector<16x4xbf16> to vector<1x16x4xbf16>
      tpu.vector_store %arg11[%c3, %c1_87, %c4_88], %109 {strides = array<i32>} : memref<18x18x128xbf16, #tpu.memory_space<vmem>>, vector<1x16x4xbf16>,
      %c0_89 = arith.constant 0 : index
      %c1_90 = arith.constant 1 : index
      %c0_91 = arith.constant 0 : index
      %c0_92 = arith.constant 0 : index
      %110 = vector.load %arg3[%c0_89, %c1_90, %c0_91, %c0_92] : memref<1x8x16x4xbf16, #tpu.memory_space<vmem>>, vector<1x1x16x4xbf16>
      %111 = vector.shape_cast %110 : vector<1x1x16x4xbf16> to vector<16x4xbf16>
      %112 = arith.extf %111 : vector<16x4xbf16> to vector<16x4xf32>
      %c0_93 = arith.constant 0 : index
      %c2_94 = arith.constant 2 : index
      %c0_95 = arith.constant 0 : index
      %c0_96 = arith.constant 0 : index
      %113 = vector.load %arg3[%c0_93, %c2_94, %c0_95, %c0_96] : memref<1x8x16x4xbf16, #tpu.memory_space<vmem>>, vector<1x1x16x4xbf16>
      %114 = vector.shape_cast %113 : vector<1x1x16x4xbf16> to vector<16x4xbf16>
      %115 = arith.extf %114 : vector<16x4xbf16> to vector<16x4xf32>
      %cst_97 = arith.constant 6.000000e-01 : f32
      %116 = vector.broadcast %cst_97 : f32 to vector<16x4xf32>
      %117 = arith.mulf %112, %116 : vector<16x4xf32>
      %cst_98 = arith.constant 4.000000e-01 : f32
      %118 = vector.broadcast %cst_98 : f32 to vector<16x4xf32>
      %119 = arith.mulf %115, %118 : vector<16x4xf32>
      %120 = arith.addf %117, %119 : vector<16x4xf32>
      %121 = arith.truncf %120 : vector<16x4xf32> to vector<16x4xbf16>
      %c4_99 = arith.constant 4 : index
      %c1_100 = arith.constant 1 : index
      %c4_101 = arith.constant 4 : index
      %122 = vector.load %arg11[%c4_99, %c1_100, %c4_101] : memref<18x18x128xbf16, #tpu.memory_space<vmem>>, vector<1x16x4xbf16>
      %123 = vector.shape_cast %122 : vector<1x16x4xbf16> to vector<16x4xbf16>
      %124 = vector.shape_cast %121 : vector<16x4xbf16> to vector<1x16x4xbf16>
      tpu.vector_store %arg11[%c4_99, %c1_100, %c4_101], %124 {strides = array<i32>} : memref<18x18x128xbf16, #tpu.memory_space<vmem>>, vector<1x16x4xbf16>,
      %c0_102 = arith.constant 0 : index
      %c1_103 = arith.constant 1 : index
      %c0_104 = arith.constant 0 : index
      %c0_105 = arith.constant 0 : index
      %125 = vector.load %arg3[%c0_102, %c1_103, %c0_104, %c0_105] : memref<1x8x16x4xbf16, #tpu.memory_space<vmem>>, vector<1x1x16x4xbf16>
      %126 = vector.shape_cast %125 : vector<1x1x16x4xbf16> to vector<16x4xbf16>
      %127 = arith.extf %126 : vector<16x4xbf16> to vector<16x4xf32>
      %c0_106 = arith.constant 0 : index
      %c2_107 = arith.constant 2 : index
      %c0_108 = arith.constant 0 : index
      %c0_109 = arith.constant 0 : index
      %128 = vector.load %arg3[%c0_106, %c2_107, %c0_108, %c0_109] : memref<1x8x16x4xbf16, #tpu.memory_space<vmem>>, vector<1x1x16x4xbf16>
      %129 = vector.shape_cast %128 : vector<1x1x16x4xbf16> to vector<16x4xbf16>
      %130 = arith.extf %129 : vector<16x4xbf16> to vector<16x4xf32>
      %cst_110 = arith.constant 0.13333334 : f32
      %131 = vector.broadcast %cst_110 : f32 to vector<16x4xf32>
      %132 = arith.mulf %127, %131 : vector<16x4xf32>
      %cst_111 = arith.constant 0.866666674 : f32
      %133 = vector.broadcast %cst_111 : f32 to vector<16x4xf32>
      %134 = arith.mulf %130, %133 : vector<16x4xf32>
      %135 = arith.addf %132, %134 : vector<16x4xf32>
      %136 = arith.truncf %135 : vector<16x4xf32> to vector<16x4xbf16>
      %c5 = arith.constant 5 : index
      %c1_112 = arith.constant 1 : index
      %c4_113 = arith.constant 4 : index
      %137 = vector.load %arg11[%c5, %c1_112, %c4_113] : memref<18x18x128xbf16, #tpu.memory_space<vmem>>, vector<1x16x4xbf16>
      %138 = vector.shape_cast %137 : vector<1x16x4xbf16> to vector<16x4xbf16>
      %139 = vector.shape_cast %136 : vector<16x4xbf16> to vector<1x16x4xbf16>
      tpu.vector_store %arg11[%c5, %c1_112, %c4_113], %139 {strides = array<i32>} : memref<18x18x128xbf16, #tpu.memory_space<vmem>>, vector<1x16x4xbf16>,
      %c0_114 = arith.constant 0 : index
      %c2_115 = arith.constant 2 : index
      %c0_116 = arith.constant 0 : index
      %c0_117 = arith.constant 0 : index
      %140 = vector.load %arg3[%c0_114, %c2_115, %c0_116, %c0_117] : memref<1x8x16x4xbf16, #tpu.memory_space<vmem>>, vector<1x1x16x4xbf16>
      %141 = vector.shape_cast %140 : vector<1x1x16x4xbf16> to vector<16x4xbf16>
      %142 = arith.extf %141 : vector<16x4xbf16> to vector<16x4xf32>
      %c0_118 = arith.constant 0 : index
      %c3_119 = arith.constant 3 : index
      %c0_120 = arith.constant 0 : index
      %c0_121 = arith.constant 0 : index
      %143 = vector.load %arg3[%c0_118, %c3_119, %c0_120, %c0_121] : memref<1x8x16x4xbf16, #tpu.memory_space<vmem>>, vector<1x1x16x4xbf16>
      %144 = vector.shape_cast %143 : vector<1x1x16x4xbf16> to vector<16x4xbf16>
      %145 = arith.extf %144 : vector<16x4xbf16> to vector<16x4xf32>
      %cst_122 = arith.constant 0.666666686 : f32
      %146 = vector.broadcast %cst_122 : f32 to vector<16x4xf32>
      %147 = arith.mulf %142, %146 : vector<16x4xf32>
      %cst_123 = arith.constant 0.333333343 : f32
      %148 = vector.broadcast %cst_123 : f32 to vector<16x4xf32>
      %149 = arith.mulf %145, %148 : vector<16x4xf32>
      %150 = arith.addf %147, %149 : vector<16x4xf32>
      %151 = arith.truncf %150 : vector<16x4xf32> to vector<16x4xbf16>
      %c6 = arith.constant 6 : index
      %c1_124 = arith.constant 1 : index
      %c4_125 = arith.constant 4 : index
      %152 = vector.load %arg11[%c6, %c1_124, %c4_125] : memref<18x18x128xbf16, #tpu.memory_space<vmem>>, vector<1x16x4xbf16>
      %153 = vector.shape_cast %152 : vector<1x16x4xbf16> to vector<16x4xbf16>
      %154 = vector.shape_cast %151 : vector<16x4xbf16> to vector<1x16x4xbf16>
      tpu.vector_store %arg11[%c6, %c1_124, %c4_125], %154 {strides = array<i32>} : memref<18x18x128xbf16, #tpu.memory_space<vmem>>, vector<1x16x4xbf16>,
      %c0_126 = arith.constant 0 : index
      %c2_127 = arith.constant 2 : index
      %c0_128 = arith.constant 0 : index
      %c0_129 = arith.constant 0 : index
      %155 = vector.load %arg3[%c0_126, %c2_127, %c0_128, %c0_129] : memref<1x8x16x4xbf16, #tpu.memory_space<vmem>>, vector<1x1x16x4xbf16>
      %156 = vector.shape_cast %155 : vector<1x1x16x4xbf16> to vector<16x4xbf16>
      %157 = arith.extf %156 : vector<16x4xbf16> to vector<16x4xf32>
      %c0_130 = arith.constant 0 : index
      %c3_131 = arith.constant 3 : index
      %c0_132 = arith.constant 0 : index
      %c0_133 = arith.constant 0 : index
      %158 = vector.load %arg3[%c0_130, %c3_131, %c0_132, %c0_133] : memref<1x8x16x4xbf16, #tpu.memory_space<vmem>>, vector<1x1x16x4xbf16>
      %159 = vector.shape_cast %158 : vector<1x1x16x4xbf16> to vector<16x4xbf16>
      %160 = arith.extf %159 : vector<16x4xbf16> to vector<16x4xf32>
      %cst_134 = arith.constant 2.000000e-01 : f32
      %161 = vector.broadcast %cst_134 : f32 to vector<16x4xf32>
      %162 = arith.mulf %157, %161 : vector<16x4xf32>
      %cst_135 = arith.constant 8.000000e-01 : f32
      %163 = vector.broadcast %cst_135 : f32 to vector<16x4xf32>
      %164 = arith.mulf %160, %163 : vector<16x4xf32>
      %165 = arith.addf %162, %164 : vector<16x4xf32>
      %166 = arith.truncf %165 : vector<16x4xf32> to vector<16x4xbf16>
      %c7 = arith.constant 7 : index
      %c1_136 = arith.constant 1 : index
      %c4_137 = arith.constant 4 : index
      %167 = vector.load %arg11[%c7, %c1_136, %c4_137] : memref<18x18x128xbf16, #tpu.memory_space<vmem>>, vector<1x16x4xbf16>
      %168 = vector.shape_cast %167 : vector<1x16x4xbf16> to vector<16x4xbf16>
      %169 = vector.shape_cast %166 : vector<16x4xbf16> to vector<1x16x4xbf16>
      tpu.vector_store %arg11[%c7, %c1_136, %c4_137], %169 {strides = array<i32>} : memref<18x18x128xbf16, #tpu.memory_space<vmem>>, vector<1x16x4xbf16>,
      %c0_138 = arith.constant 0 : index
      %c3_139 = arith.constant 3 : index
      %c0_140 = arith.constant 0 : index
      %c0_141 = arith.constant 0 : index
      %170 = vector.load %arg3[%c0_138, %c3_139, %c0_140, %c0_141] : memref<1x8x16x4xbf16, #tpu.memory_space<vmem>>, vector<1x1x16x4xbf16>
      %171 = vector.shape_cast %170 : vector<1x1x16x4xbf16> to vector<16x4xbf16>
      %172 = arith.extf %171 : vector<16x4xbf16> to vector<16x4xf32>
      %c0_142 = arith.constant 0 : index
      %c4_143 = arith.constant 4 : index
      %c0_144 = arith.constant 0 : index
      %c0_145 = arith.constant 0 : index
      %173 = vector.load %arg3[%c0_142, %c4_143, %c0_144, %c0_145] : memref<1x8x16x4xbf16, #tpu.memory_space<vmem>>, vector<1x1x16x4xbf16>
      %174 = vector.shape_cast %173 : vector<1x1x16x4xbf16> to vector<16x4xbf16>
      %175 = arith.extf %174 : vector<16x4xbf16> to vector<16x4xf32>
      %cst_146 = arith.constant 0.733333349 : f32
      %176 = vector.broadcast %cst_146 : f32 to vector<16x4xf32>
      %177 = arith.mulf %172, %176 : vector<16x4xf32>
      %cst_147 = arith.constant 0.266666681 : f32
      %178 = vector.broadcast %cst_147 : f32 to vector<16x4xf32>
      %179 = arith.mulf %175, %178 : vector<16x4xf32>
      %180 = arith.addf %177, %179 : vector<16x4xf32>
      %181 = arith.truncf %180 : vector<16x4xf32> to vector<16x4xbf16>
      %c8 = arith.constant 8 : index
      %c1_148 = arith.constant 1 : index
      %c4_149 = arith.constant 4 : index
      %182 = vector.load %arg11[%c8, %c1_148, %c4_149] : memref<18x18x128xbf16, #tpu.memory_space<vmem>>, vector<1x16x4xbf16>
      %183 = vector.shape_cast %182 : vector<1x16x4xbf16> to vector<16x4xbf16>
      %184 = vector.shape_cast %181 : vector<16x4xbf16> to vector<1x16x4xbf16>
      tpu.vector_store %arg11[%c8, %c1_148, %c4_149], %184 {strides = array<i32>} : memref<18x18x128xbf16, #tpu.memory_space<vmem>>, vector<1x16x4xbf16>,
      %c0_150 = arith.constant 0 : index
      %c3_151 = arith.constant 3 : index
      %c0_152 = arith.constant 0 : index
      %c0_153 = arith.constant 0 : index
      %185 = vector.load %arg3[%c0_150, %c3_151, %c0_152, %c0_153] : memref<1x8x16x4xbf16, #tpu.memory_space<vmem>>, vector<1x1x16x4xbf16>
      %186 = vector.shape_cast %185 : vector<1x1x16x4xbf16> to vector<16x4xbf16>
      %187 = arith.extf %186 : vector<16x4xbf16> to vector<16x4xf32>
      %c0_154 = arith.constant 0 : index
      %c4_155 = arith.constant 4 : index
      %c0_156 = arith.constant 0 : index
      %c0_157 = arith.constant 0 : index
      %188 = vector.load %arg3[%c0_154, %c4_155, %c0_156, %c0_157] : memref<1x8x16x4xbf16, #tpu.memory_space<vmem>>, vector<1x1x16x4xbf16>
      %189 = vector.shape_cast %188 : vector<1x1x16x4xbf16> to vector<16x4xbf16>
      %190 = arith.extf %189 : vector<16x4xbf16> to vector<16x4xf32>
      %cst_158 = arith.constant 0.266666681 : f32
      %191 = vector.broadcast %cst_158 : f32 to vector<16x4xf32>
      %192 = arith.mulf %187, %191 : vector<16x4xf32>
      %cst_159 = arith.constant 0.733333349 : f32
      %193 = vector.broadcast %cst_159 : f32 to vector<16x4xf32>
      %194 = arith.mulf %190, %193 : vector<16x4xf32>
      %195 = arith.addf %192, %194 : vector<16x4xf32>
      %196 = arith.truncf %195 : vector<16x4xf32> to vector<16x4xbf16>
      %c9 = arith.constant 9 : index
      %c1_160 = arith.constant 1 : index
      %c4_161 = arith.constant 4 : index
      %197 = vector.load %arg11[%c9, %c1_160, %c4_161] : memref<18x18x128xbf16, #tpu.memory_space<vmem>>, vector<1x16x4xbf16>
      %198 = vector.shape_cast %197 : vector<1x16x4xbf16> to vector<16x4xbf16>
      %199 = vector.shape_cast %196 : vector<16x4xbf16> to vector<1x16x4xbf16>
      tpu.vector_store %arg11[%c9, %c1_160, %c4_161], %199 {strides = array<i32>} : memref<18x18x128xbf16, #tpu.memory_space<vmem>>, vector<1x16x4xbf16>,
      %c0_162 = arith.constant 0 : index
      %c4_163 = arith.constant 4 : index
      %c0_164 = arith.constant 0 : index
      %c0_165 = arith.constant 0 : index
      %200 = vector.load %arg3[%c0_162, %c4_163, %c0_164, %c0_165] : memref<1x8x16x4xbf16, #tpu.memory_space<vmem>>, vector<1x1x16x4xbf16>
      %201 = vector.shape_cast %200 : vector<1x1x16x4xbf16> to vector<16x4xbf16>
      %202 = arith.extf %201 : vector<16x4xbf16> to vector<16x4xf32>
      %c0_166 = arith.constant 0 : index
      %c5_167 = arith.constant 5 : index
      %c0_168 = arith.constant 0 : index
      %c0_169 = arith.constant 0 : index
      %203 = vector.load %arg3[%c0_166, %c5_167, %c0_168, %c0_169] : memref<1x8x16x4xbf16, #tpu.memory_space<vmem>>, vector<1x1x16x4xbf16>
      %204 = vector.shape_cast %203 : vector<1x1x16x4xbf16> to vector<16x4xbf16>
      %205 = arith.extf %204 : vector<16x4xbf16> to vector<16x4xf32>
      %cst_170 = arith.constant 8.000000e-01 : f32
      %206 = vector.broadcast %cst_170 : f32 to vector<16x4xf32>
      %207 = arith.mulf %202, %206 : vector<16x4xf32>
      %cst_171 = arith.constant 2.000000e-01 : f32
      %208 = vector.broadcast %cst_171 : f32 to vector<16x4xf32>
      %209 = arith.mulf %205, %208 : vector<16x4xf32>
      %210 = arith.addf %207, %209 : vector<16x4xf32>
      %211 = arith.truncf %210 : vector<16x4xf32> to vector<16x4xbf16>
      %c10 = arith.constant 10 : index
      %c1_172 = arith.constant 1 : index
      %c4_173 = arith.constant 4 : index
      %212 = vector.load %arg11[%c10, %c1_172, %c4_173] : memref<18x18x128xbf16, #tpu.memory_space<vmem>>, vector<1x16x4xbf16>
      %213 = vector.shape_cast %212 : vector<1x16x4xbf16> to vector<16x4xbf16>
      %214 = vector.shape_cast %211 : vector<16x4xbf16> to vector<1x16x4xbf16>
      tpu.vector_store %arg11[%c10, %c1_172, %c4_173], %214 {strides = array<i32>} : memref<18x18x128xbf16, #tpu.memory_space<vmem>>, vector<1x16x4xbf16>,
      %c0_174 = arith.constant 0 : index
      %c4_175 = arith.constant 4 : index
      %c0_176 = arith.constant 0 : index
      %c0_177 = arith.constant 0 : index
      %215 = vector.load %arg3[%c0_174, %c4_175, %c0_176, %c0_177] : memref<1x8x16x4xbf16, #tpu.memory_space<vmem>>, vector<1x1x16x4xbf16>
      %216 = vector.shape_cast %215 : vector<1x1x16x4xbf16> to vector<16x4xbf16>
      %217 = arith.extf %216 : vector<16x4xbf16> to vector<16x4xf32>
      %c0_178 = arith.constant 0 : index
      %c5_179 = arith.constant 5 : index
      %c0_180 = arith.constant 0 : index
      %c0_181 = arith.constant 0 : index
      %218 = vector.load %arg3[%c0_178, %c5_179, %c0_180, %c0_181] : memref<1x8x16x4xbf16, #tpu.memory_space<vmem>>, vector<1x1x16x4xbf16>
      %219 = vector.shape_cast %218 : vector<1x1x16x4xbf16> to vector<16x4xbf16>
      %220 = arith.extf %219 : vector<16x4xbf16> to vector<16x4xf32>
      %cst_182 = arith.constant 0.333333343 : f32
      %221 = vector.broadcast %cst_182 : f32 to vector<16x4xf32>
      %222 = arith.mulf %217, %221 : vector<16x4xf32>
      %cst_183 = arith.constant 0.666666686 : f32
      %223 = vector.broadcast %cst_183 : f32 to vector<16x4xf32>
      %224 = arith.mulf %220, %223 : vector<16x4xf32>
      %225 = arith.addf %222, %224 : vector<16x4xf32>
      %226 = arith.truncf %225 : vector<16x4xf32> to vector<16x4xbf16>
      %c11 = arith.constant 11 : index
      %c1_184 = arith.constant 1 : index
      %c4_185 = arith.constant 4 : index
      %227 = vector.load %arg11[%c11, %c1_184, %c4_185] : memref<18x18x128xbf16, #tpu.memory_space<vmem>>, vector<1x16x4xbf16>
      %228 = vector.shape_cast %227 : vector<1x16x4xbf16> to vector<16x4xbf16>
      %229 = vector.shape_cast %226 : vector<16x4xbf16> to vector<1x16x4xbf16>
      tpu.vector_store %arg11[%c11, %c1_184, %c4_185], %229 {strides = array<i32>} : memref<18x18x128xbf16, #tpu.memory_space<vmem>>, vector<1x16x4xbf16>,
      %c0_186 = arith.constant 0 : index
      %c5_187 = arith.constant 5 : index
      %c0_188 = arith.constant 0 : index
      %c0_189 = arith.constant 0 : index
      %230 = vector.load %arg3[%c0_186, %c5_187, %c0_188, %c0_189] : memref<1x8x16x4xbf16, #tpu.memory_space<vmem>>, vector<1x1x16x4xbf16>
      %231 = vector.shape_cast %230 : vector<1x1x16x4xbf16> to vector<16x4xbf16>
      %232 = arith.extf %231 : vector<16x4xbf16> to vector<16x4xf32>
      %c0_190 = arith.constant 0 : index
      %c6_191 = arith.constant 6 : index
      %c0_192 = arith.constant 0 : index
      %c0_193 = arith.constant 0 : index
      %233 = vector.load %arg3[%c0_190, %c6_191, %c0_192, %c0_193] : memref<1x8x16x4xbf16, #tpu.memory_space<vmem>>, vector<1x1x16x4xbf16>
      %234 = vector.shape_cast %233 : vector<1x1x16x4xbf16> to vector<16x4xbf16>
      %235 = arith.extf %234 : vector<16x4xbf16> to vector<16x4xf32>
      %cst_194 = arith.constant 0.866666674 : f32
      %236 = vector.broadcast %cst_194 : f32 to vector<16x4xf32>
      %237 = arith.mulf %232, %236 : vector<16x4xf32>
      %cst_195 = arith.constant 0.13333334 : f32
      %238 = vector.broadcast %cst_195 : f32 to vector<16x4xf32>
      %239 = arith.mulf %235, %238 : vector<16x4xf32>
      %240 = arith.addf %237, %239 : vector<16x4xf32>
      %241 = arith.truncf %240 : vector<16x4xf32> to vector<16x4xbf16>
      %c12 = arith.constant 12 : index
      %c1_196 = arith.constant 1 : index
      %c4_197 = arith.constant 4 : index
      %242 = vector.load %arg11[%c12, %c1_196, %c4_197] : memref<18x18x128xbf16, #tpu.memory_space<vmem>>, vector<1x16x4xbf16>
      %243 = vector.shape_cast %242 : vector<1x16x4xbf16> to vector<16x4xbf16>
      %244 = vector.shape_cast %241 : vector<16x4xbf16> to vector<1x16x4xbf16>
      tpu.vector_store %arg11[%c12, %c1_196, %c4_197], %244 {strides = array<i32>} : memref<18x18x128xbf16, #tpu.memory_space<vmem>>, vector<1x16x4xbf16>,
      %c0_198 = arith.constant 0 : index
      %c5_199 = arith.constant 5 : index
      %c0_200 = arith.constant 0 : index
      %c0_201 = arith.constant 0 : index
      %245 = vector.load %arg3[%c0_198, %c5_199, %c0_200, %c0_201] : memref<1x8x16x4xbf16, #tpu.memory_space<vmem>>, vector<1x1x16x4xbf16>
      %246 = vector.shape_cast %245 : vector<1x1x16x4xbf16> to vector<16x4xbf16>
      %247 = arith.extf %246 : vector<16x4xbf16> to vector<16x4xf32>
      %c0_202 = arith.constant 0 : index
      %c6_203 = arith.constant 6 : index
      %c0_204 = arith.constant 0 : index
      %c0_205 = arith.constant 0 : index
      %248 = vector.load %arg3[%c0_202, %c6_203, %c0_204, %c0_205] : memref<1x8x16x4xbf16, #tpu.memory_space<vmem>>, vector<1x1x16x4xbf16>
      %249 = vector.shape_cast %248 : vector<1x1x16x4xbf16> to vector<16x4xbf16>
      %250 = arith.extf %249 : vector<16x4xbf16> to vector<16x4xf32>
      %cst_206 = arith.constant 4.000000e-01 : f32
      %251 = vector.broadcast %cst_206 : f32 to vector<16x4xf32>
      %252 = arith.mulf %247, %251 : vector<16x4xf32>
      %cst_207 = arith.constant 6.000000e-01 : f32
      %253 = vector.broadcast %cst_207 : f32 to vector<16x4xf32>
      %254 = arith.mulf %250, %253 : vector<16x4xf32>
      %255 = arith.addf %252, %254 : vector<16x4xf32>
      %256 = arith.truncf %255 : vector<16x4xf32> to vector<16x4xbf16>
      %c13 = arith.constant 13 : index
      %c1_208 = arith.constant 1 : index
      %c4_209 = arith.constant 4 : index
      %257 = vector.load %arg11[%c13, %c1_208, %c4_209] : memref<18x18x128xbf16, #tpu.memory_space<vmem>>, vector<1x16x4xbf16>
      %258 = vector.shape_cast %257 : vector<1x16x4xbf16> to vector<16x4xbf16>
      %259 = vector.shape_cast %256 : vector<16x4xbf16> to vector<1x16x4xbf16>
      tpu.vector_store %arg11[%c13, %c1_208, %c4_209], %259 {strides = array<i32>} : memref<18x18x128xbf16, #tpu.memory_space<vmem>>, vector<1x16x4xbf16>,
      %c0_210 = arith.constant 0 : index
      %c6_211 = arith.constant 6 : index
      %c0_212 = arith.constant 0 : index
      %c0_213 = arith.constant 0 : index
      %260 = vector.load %arg3[%c0_210, %c6_211, %c0_212, %c0_213] : memref<1x8x16x4xbf16, #tpu.memory_space<vmem>>, vector<1x1x16x4xbf16>
      %261 = vector.shape_cast %260 : vector<1x1x16x4xbf16> to vector<16x4xbf16>
      %262 = arith.extf %261 : vector<16x4xbf16> to vector<16x4xf32>
      %c0_214 = arith.constant 0 : index
      %c7_215 = arith.constant 7 : index
      %c0_216 = arith.constant 0 : index
      %c0_217 = arith.constant 0 : index
      %263 = vector.load %arg3[%c0_214, %c7_215, %c0_216, %c0_217] : memref<1x8x16x4xbf16, #tpu.memory_space<vmem>>, vector<1x1x16x4xbf16>
      %264 = vector.shape_cast %263 : vector<1x1x16x4xbf16> to vector<16x4xbf16>
      %265 = arith.extf %264 : vector<16x4xbf16> to vector<16x4xf32>
      %cst_218 = arith.constant 0.933333337 : f32
      %266 = vector.broadcast %cst_218 : f32 to vector<16x4xf32>
      %267 = arith.mulf %262, %266 : vector<16x4xf32>
      %cst_219 = arith.constant 0.0666666701 : f32
      %268 = vector.broadcast %cst_219 : f32 to vector<16x4xf32>
      %269 = arith.mulf %265, %268 : vector<16x4xf32>
      %270 = arith.addf %267, %269 : vector<16x4xf32>
      %271 = arith.truncf %270 : vector<16x4xf32> to vector<16x4xbf16>
      %c14 = arith.constant 14 : index
      %c1_220 = arith.constant 1 : index
      %c4_221 = arith.constant 4 : index
      %272 = vector.load %arg11[%c14, %c1_220, %c4_221] : memref<18x18x128xbf16, #tpu.memory_space<vmem>>, vector<1x16x4xbf16>
      %273 = vector.shape_cast %272 : vector<1x16x4xbf16> to vector<16x4xbf16>
      %274 = vector.shape_cast %271 : vector<16x4xbf16> to vector<1x16x4xbf16>
      tpu.vector_store %arg11[%c14, %c1_220, %c4_221], %274 {strides = array<i32>} : memref<18x18x128xbf16, #tpu.memory_space<vmem>>, vector<1x16x4xbf16>,
      %c0_222 = arith.constant 0 : index
      %c6_223 = arith.constant 6 : index
      %c0_224 = arith.constant 0 : index
      %c0_225 = arith.constant 0 : index
      %275 = vector.load %arg3[%c0_222, %c6_223, %c0_224, %c0_225] : memref<1x8x16x4xbf16, #tpu.memory_space<vmem>>, vector<1x1x16x4xbf16>
      %276 = vector.shape_cast %275 : vector<1x1x16x4xbf16> to vector<16x4xbf16>
      %277 = arith.extf %276 : vector<16x4xbf16> to vector<16x4xf32>
      %c0_226 = arith.constant 0 : index
      %c7_227 = arith.constant 7 : index
      %c0_228 = arith.constant 0 : index
      %c0_229 = arith.constant 0 : index
      %278 = vector.load %arg3[%c0_226, %c7_227, %c0_228, %c0_229] : memref<1x8x16x4xbf16, #tpu.memory_space<vmem>>, vector<1x1x16x4xbf16>
      %279 = vector.shape_cast %278 : vector<1x1x16x4xbf16> to vector<16x4xbf16>
      %280 = arith.extf %279 : vector<16x4xbf16> to vector<16x4xf32>
      %cst_230 = arith.constant 0.466666669 : f32
      %281 = vector.broadcast %cst_230 : f32 to vector<16x4xf32>
      %282 = arith.mulf %277, %281 : vector<16x4xf32>
      %cst_231 = arith.constant 0.533333361 : f32
      %283 = vector.broadcast %cst_231 : f32 to vector<16x4xf32>
      %284 = arith.mulf %280, %283 : vector<16x4xf32>
      %285 = arith.addf %282, %284 : vector<16x4xf32>
      %286 = arith.truncf %285 : vector<16x4xf32> to vector<16x4xbf16>
      %c15 = arith.constant 15 : index
      %c1_232 = arith.constant 1 : index
      %c4_233 = arith.constant 4 : index
      %287 = vector.load %arg11[%c15, %c1_232, %c4_233] : memref<18x18x128xbf16, #tpu.memory_space<vmem>>, vector<1x16x4xbf16>
      %288 = vector.shape_cast %287 : vector<1x16x4xbf16> to vector<16x4xbf16>
      %289 = vector.shape_cast %286 : vector<16x4xbf16> to vector<1x16x4xbf16>
      tpu.vector_store %arg11[%c15, %c1_232, %c4_233], %289 {strides = array<i32>} : memref<18x18x128xbf16, #tpu.memory_space<vmem>>, vector<1x16x4xbf16>,
      %c0_234 = arith.constant 0 : index
      %c7_235 = arith.constant 7 : index
      %c0_236 = arith.constant 0 : index
      %c0_237 = arith.constant 0 : index
      %290 = vector.load %arg3[%c0_234, %c7_235, %c0_236, %c0_237] : memref<1x8x16x4xbf16, #tpu.memory_space<vmem>>, vector<1x1x16x4xbf16>
      %291 = vector.shape_cast %290 : vector<1x1x16x4xbf16> to vector<16x4xbf16>
      %292 = arith.extf %291 : vector<16x4xbf16> to vector<16x4xf32>
      %293 = arith.truncf %292 : vector<16x4xf32> to vector<16x4xbf16>
      %c16 = arith.constant 16 : index
      %c1_238 = arith.constant 1 : index
      %c4_239 = arith.constant 4 : index
      %294 = vector.load %arg11[%c16, %c1_238, %c4_239] : memref<18x18x128xbf16, #tpu.memory_space<vmem>>, vector<1x16x4xbf16>
      %295 = vector.shape_cast %294 : vector<1x16x4xbf16> to vector<16x4xbf16>
      %296 = vector.shape_cast %293 : vector<16x4xbf16> to vector<1x16x4xbf16>
      tpu.vector_store %arg11[%c16, %c1_238, %c4_239], %296 {strides = array<i32>} : memref<18x18x128xbf16, #tpu.memory_space<vmem>>, vector<1x16x4xbf16>,
      %c0_240 = arith.constant 0 : index
      %c0_241 = arith.constant 0 : index
      %c0_242 = arith.constant 0 : index
      %297 = vector.load %arg11[%c0_240, %c0_241, %c0_242] : memref<18x18x128xbf16, #tpu.memory_space<vmem>>, vector<16x16x128xbf16>
      %c1_243 = arith.constant 1 : index
      %c0_244 = arith.constant 0 : index
      %c0_245 = arith.constant 0 : index
      %298 = vector.load %arg11[%c1_243, %c0_244, %c0_245] : memref<18x18x128xbf16, #tpu.memory_space<vmem>>, vector<16x16x128xbf16>
      %c2_246 = arith.constant 2 : index
      %c0_247 = arith.constant 0 : index
      %c0_248 = arith.constant 0 : index
      %299 = vector.load %arg11[%c2_246, %c0_247, %c0_248] : memref<18x18x128xbf16, #tpu.memory_space<vmem>>, vector<16x16x128xbf16>
      %300 = tpu.concatenate %297, %298, %299 in 2 : vector<16x16x128xbf16>, vector<16x16x128xbf16>, vector<16x16x128xbf16> -> vector<16x16x384xbf16>
      %301 = vector.shape_cast %300 : vector<16x16x384xbf16> to vector<256x384xbf16>
      %c0_249 = arith.constant 0 : index
      %c0_250 = arith.constant 0 : index
      %c0_251 = arith.constant 0 : index
      %302 = vector.load %arg4[%c0_249, %c0_250, %c0_251] : memref<3x384x128xbf16, #tpu.memory_space<vmem>>, vector<1x384x128xbf16>
      %303 = vector.shape_cast %302 : vector<1x384x128xbf16> to vector<384x128xbf16>
      %cst_252 = arith.constant dense<0.000000e+00> : vector<256x128xf32>
      %304 = tpu.matmul %301, %303, %cst_252 {dimension_numbers = #tpu.dot_dimension_numbers<[1], [0], [0], [1], [0, 0, 1, 1], [], []>} : vector<256x384xbf16>, vector<384x128xbf16>, vector<256x128xf32> -> vector<256x128xf32>
      %c0_253 = arith.constant 0 : index
      %c1_254 = arith.constant 1 : index
      %c0_255 = arith.constant 0 : index
      %305 = vector.load %arg11[%c0_253, %c1_254, %c0_255] : memref<18x18x128xbf16, #tpu.memory_space<vmem>>, vector<16x16x128xbf16>
      %c1_256 = arith.constant 1 : index
      %c1_257 = arith.constant 1 : index
      %c0_258 = arith.constant 0 : index
      %306 = vector.load %arg11[%c1_256, %c1_257, %c0_258] : memref<18x18x128xbf16, #tpu.memory_space<vmem>>, vector<16x16x128xbf16>
      %c2_259 = arith.constant 2 : index
      %c1_260 = arith.constant 1 : index
      %c0_261 = arith.constant 0 : index
      %307 = vector.load %arg11[%c2_259, %c1_260, %c0_261] : memref<18x18x128xbf16, #tpu.memory_space<vmem>>, vector<16x16x128xbf16>
      %308 = tpu.concatenate %305, %306, %307 in 2 : vector<16x16x128xbf16>, vector<16x16x128xbf16>, vector<16x16x128xbf16> -> vector<16x16x384xbf16>
      %309 = vector.shape_cast %308 : vector<16x16x384xbf16> to vector<256x384xbf16>
      %c1_262 = arith.constant 1 : index
      %c0_263 = arith.constant 0 : index
      %c0_264 = arith.constant 0 : index
      %310 = vector.load %arg4[%c1_262, %c0_263, %c0_264] : memref<3x384x128xbf16, #tpu.memory_space<vmem>>, vector<1x384x128xbf16>
      %311 = vector.shape_cast %310 : vector<1x384x128xbf16> to vector<384x128xbf16>
      %cst_265 = arith.constant dense<0.000000e+00> : vector<256x128xf32>
      %312 = tpu.matmul %309, %311, %cst_265 {dimension_numbers = #tpu.dot_dimension_numbers<[1], [0], [0], [1], [0, 0, 1, 1], [], []>} : vector<256x384xbf16>, vector<384x128xbf16>, vector<256x128xf32> -> vector<256x128xf32>
      %313 = arith.addf %304, %312 : vector<256x128xf32>
      %c0_266 = arith.constant 0 : index
      %c2_267 = arith.constant 2 : index
      %c0_268 = arith.constant 0 : index
      %314 = vector.load %arg11[%c0_266, %c2_267, %c0_268] : memref<18x18x128xbf16, #tpu.memory_space<vmem>>, vector<16x16x128xbf16>
      %c1_269 = arith.constant 1 : index
      %c2_270 = arith.constant 2 : index
      %c0_271 = arith.constant 0 : index
      %315 = vector.load %arg11[%c1_269, %c2_270, %c0_271] : memref<18x18x128xbf16, #tpu.memory_space<vmem>>, vector<16x16x128xbf16>
      %c2_272 = arith.constant 2 : index
      %c2_273 = arith.constant 2 : index
      %c0_274 = arith.constant 0 : index
      %316 = vector.load %arg11[%c2_272, %c2_273, %c0_274] : memref<18x18x128xbf16, #tpu.memory_space<vmem>>, vector<16x16x128xbf16>
      %317 = tpu.concatenate %314, %315, %316 in 2 : vector<16x16x128xbf16>, vector<16x16x128xbf16>, vector<16x16x128xbf16> -> vector<16x16x384xbf16>
      %318 = vector.shape_cast %317 : vector<16x16x384xbf16> to vector<256x384xbf16>
      %c2_275 = arith.constant 2 : index
      %c0_276 = arith.constant 0 : index
      %c0_277 = arith.constant 0 : index
      %319 = vector.load %arg4[%c2_275, %c0_276, %c0_277] : memref<3x384x128xbf16, #tpu.memory_space<vmem>>, vector<1x384x128xbf16>
      %320 = vector.shape_cast %319 : vector<1x384x128xbf16> to vector<384x128xbf16>
      %cst_278 = arith.constant dense<0.000000e+00> : vector<256x128xf32>
      %321 = tpu.matmul %318, %320, %cst_278 {dimension_numbers = #tpu.dot_dimension_numbers<[1], [0], [0], [1], [0, 0, 1, 1], [], []>} : vector<256x384xbf16>, vector<384x128xbf16>, vector<256x128xf32> -> vector<256x128xf32>
      %322 = arith.addf %313, %321 : vector<256x128xf32>
      %c0_279 = arith.constant 0 : index
      %c0_280 = arith.constant 0 : index
      %323 = vector.load %arg6[%c0_279, %c0_280] : memref<1x128xf32, #tpu.memory_space<vmem>>, vector<1x128xf32>
      %324 = vector.shape_cast %323 : vector<1x128xf32> to vector<128xf32>
      %325 = vector.shape_cast %324 : vector<128xf32> to vector<1x128xf32>
      %326 = vector.broadcast %325 : vector<1x128xf32> to vector<256x128xf32>
      %327 = arith.mulf %322, %326 : vector<256x128xf32>
      %c0_281 = arith.constant 0 : index
      %c0_282 = arith.constant 0 : index
      %328 = vector.load %arg7[%c0_281, %c0_282] : memref<1x128xf32, #tpu.memory_space<vmem>>, vector<1x128xf32>
      %329 = vector.shape_cast %328 : vector<1x128xf32> to vector<128xf32>
      %330 = vector.shape_cast %329 : vector<128xf32> to vector<1x128xf32>
      %331 = vector.broadcast %330 : vector<1x128xf32> to vector<256x128xf32>
      %332 = arith.addf %327, %331 : vector<256x128xf32>
      %cst_283 = arith.constant 0.000000e+00 : f32
      %333 = vector.broadcast %cst_283 : f32 to vector<256x128xf32>
      %334 = arith.maximumf %332, %333 : vector<256x128xf32>
      %335 = vector.shape_cast %334 : vector<256x128xf32> to vector<16x16x128xf32>
      %336 = arith.truncf %335 : vector<16x16x128xf32> to vector<16x16x128xbf16>
      %c1_284 = arith.constant 1 : index
      %c1_285 = arith.constant 1 : index
      %c0_286 = arith.constant 0 : index
      %337 = vector.load %arg12[%c1_284, %c1_285, %c0_286] : memref<18x18x128xbf16, #tpu.memory_space<vmem>>, vector<16x16x128xbf16>
      tpu.vector_store %arg12[%c1_284, %c1_285, %c0_286], %336 {strides = array<i32>} : memref<18x18x128xbf16, #tpu.memory_space<vmem>>, vector<16x16x128xbf16>,
    } else {
    }
    %c16_i32 = arith.constant 16 : i32
    %3 = arith.muli %arg1, %c16_i32 : i32
    %4 = tpu.assume_multiple %3, 16 : i32
    %c0_i32_1 = arith.constant 0 : i32
    %5 = arith.addi %4, %c0_i32_1 : i32
    %6 = arith.index_cast %5 : i32 to index
    %c0 = arith.constant 0 : index
    %c0_2 = arith.constant 0 : index
    %7 = vector.load %arg12[%6, %c0, %c0_2] : memref<18x18x128xbf16, #tpu.memory_space<vmem>>, vector<16x16x128xbf16>
    %c1_i32 = arith.constant 1 : i32
    %8 = arith.addi %4, %c1_i32 : i32
    %9 = arith.index_cast %8 : i32 to index
    %c0_3 = arith.constant 0 : index
    %c0_4 = arith.constant 0 : index
    %10 = vector.load %arg12[%9, %c0_3, %c0_4] : memref<18x18x128xbf16, #tpu.memory_space<vmem>>, vector<16x16x128xbf16>
    %c2_i32 = arith.constant 2 : i32
    %11 = arith.addi %4, %c2_i32 : i32
    %12 = arith.index_cast %11 : i32 to index
    %c0_5 = arith.constant 0 : index
    %c0_6 = arith.constant 0 : index
    %13 = vector.load %arg12[%12, %c0_5, %c0_6] : memref<18x18x128xbf16, #tpu.memory_space<vmem>>, vector<16x16x128xbf16>
    %14 = tpu.concatenate %7, %10, %13 in 2 : vector<16x16x128xbf16>, vector<16x16x128xbf16>, vector<16x16x128xbf16> -> vector<16x16x384xbf16>
    %15 = vector.shape_cast %14 : vector<16x16x384xbf16> to vector<256x384xbf16>
    %c0_7 = arith.constant 0 : index
    %c0_8 = arith.constant 0 : index
    %c0_9 = arith.constant 0 : index
    %16 = vector.load %arg5[%c0_7, %c0_8, %c0_9] : memref<3x384x128xbf16, #tpu.memory_space<vmem>>, vector<1x384x128xbf16>
    %17 = vector.shape_cast %16 : vector<1x384x128xbf16> to vector<384x128xbf16>
    %cst = arith.constant dense<0.000000e+00> : vector<256x128xf32>
    %18 = tpu.matmul %15, %17, %cst {dimension_numbers = #tpu.dot_dimension_numbers<[1], [0], [0], [1], [0, 0, 1, 1], [], []>} : vector<256x384xbf16>, vector<384x128xbf16>, vector<256x128xf32> -> vector<256x128xf32>
    %c0_i32_10 = arith.constant 0 : i32
    %19 = arith.addi %4, %c0_i32_10 : i32
    %20 = arith.index_cast %19 : i32 to index
    %c1 = arith.constant 1 : index
    %c0_11 = arith.constant 0 : index
    %21 = vector.load %arg12[%20, %c1, %c0_11] : memref<18x18x128xbf16, #tpu.memory_space<vmem>>, vector<16x16x128xbf16>
    %c1_i32_12 = arith.constant 1 : i32
    %22 = arith.addi %4, %c1_i32_12 : i32
    %23 = arith.index_cast %22 : i32 to index
    %c1_13 = arith.constant 1 : index
    %c0_14 = arith.constant 0 : index
    %24 = vector.load %arg12[%23, %c1_13, %c0_14] : memref<18x18x128xbf16, #tpu.memory_space<vmem>>, vector<16x16x128xbf16>
    %c2_i32_15 = arith.constant 2 : i32
    %25 = arith.addi %4, %c2_i32_15 : i32
    %26 = arith.index_cast %25 : i32 to index
    %c1_16 = arith.constant 1 : index
    %c0_17 = arith.constant 0 : index
    %27 = vector.load %arg12[%26, %c1_16, %c0_17] : memref<18x18x128xbf16, #tpu.memory_space<vmem>>, vector<16x16x128xbf16>
    %28 = tpu.concatenate %21, %24, %27 in 2 : vector<16x16x128xbf16>, vector<16x16x128xbf16>, vector<16x16x128xbf16> -> vector<16x16x384xbf16>
    %29 = vector.shape_cast %28 : vector<16x16x384xbf16> to vector<256x384xbf16>
    %c1_18 = arith.constant 1 : index
    %c0_19 = arith.constant 0 : index
    %c0_20 = arith.constant 0 : index
    %30 = vector.load %arg5[%c1_18, %c0_19, %c0_20] : memref<3x384x128xbf16, #tpu.memory_space<vmem>>, vector<1x384x128xbf16>
    %31 = vector.shape_cast %30 : vector<1x384x128xbf16> to vector<384x128xbf16>
    %cst_21 = arith.constant dense<0.000000e+00> : vector<256x128xf32>
    %32 = tpu.matmul %29, %31, %cst_21 {dimension_numbers = #tpu.dot_dimension_numbers<[1], [0], [0], [1], [0, 0, 1, 1], [], []>} : vector<256x384xbf16>, vector<384x128xbf16>, vector<256x128xf32> -> vector<256x128xf32>
    %33 = arith.addf %18, %32 : vector<256x128xf32>
    %c0_i32_22 = arith.constant 0 : i32
    %34 = arith.addi %4, %c0_i32_22 : i32
    %35 = arith.index_cast %34 : i32 to index
    %c2 = arith.constant 2 : index
    %c0_23 = arith.constant 0 : index
    %36 = vector.load %arg12[%35, %c2, %c0_23] : memref<18x18x128xbf16, #tpu.memory_space<vmem>>, vector<16x16x128xbf16>
    %c1_i32_24 = arith.constant 1 : i32
    %37 = arith.addi %4, %c1_i32_24 : i32
    %38 = arith.index_cast %37 : i32 to index
    %c2_25 = arith.constant 2 : index
    %c0_26 = arith.constant 0 : index
    %39 = vector.load %arg12[%38, %c2_25, %c0_26] : memref<18x18x128xbf16, #tpu.memory_space<vmem>>, vector<16x16x128xbf16>
    %c2_i32_27 = arith.constant 2 : i32
    %40 = arith.addi %4, %c2_i32_27 : i32
    %41 = arith.index_cast %40 : i32 to index
    %c2_28 = arith.constant 2 : index
    %c0_29 = arith.constant 0 : index
    %42 = vector.load %arg12[%41, %c2_28, %c0_29] : memref<18x18x128xbf16, #tpu.memory_space<vmem>>, vector<16x16x128xbf16>
    %43 = tpu.concatenate %36, %39, %42 in 2 : vector<16x16x128xbf16>, vector<16x16x128xbf16>, vector<16x16x128xbf16> -> vector<16x16x384xbf16>
    %44 = vector.shape_cast %43 : vector<16x16x384xbf16> to vector<256x384xbf16>
    %c2_30 = arith.constant 2 : index
    %c0_31 = arith.constant 0 : index
    %c0_32 = arith.constant 0 : index
    %45 = vector.load %arg5[%c2_30, %c0_31, %c0_32] : memref<3x384x128xbf16, #tpu.memory_space<vmem>>, vector<1x384x128xbf16>
    %46 = vector.shape_cast %45 : vector<1x384x128xbf16> to vector<384x128xbf16>
    %cst_33 = arith.constant dense<0.000000e+00> : vector<256x128xf32>
    %47 = tpu.matmul %44, %46, %cst_33 {dimension_numbers = #tpu.dot_dimension_numbers<[1], [0], [0], [1], [0, 0, 1, 1], [], []>} : vector<256x384xbf16>, vector<384x128xbf16>, vector<256x128xf32> -> vector<256x128xf32>
    %48 = arith.addf %33, %47 : vector<256x128xf32>
    %c0_34 = arith.constant 0 : index
    %c0_35 = arith.constant 0 : index
    %49 = vector.load %arg8[%c0_34, %c0_35] : memref<1x128xf32, #tpu.memory_space<vmem>>, vector<1x128xf32>
    %50 = vector.shape_cast %49 : vector<1x128xf32> to vector<128xf32>
    %51 = vector.shape_cast %50 : vector<128xf32> to vector<1x128xf32>
    %52 = vector.broadcast %51 : vector<1x128xf32> to vector<256x128xf32>
    %53 = arith.mulf %48, %52 : vector<256x128xf32>
    %c0_36 = arith.constant 0 : index
    %c0_37 = arith.constant 0 : index
    %54 = vector.load %arg9[%c0_36, %c0_37] : memref<1x128xf32, #tpu.memory_space<vmem>>, vector<1x128xf32>
    %55 = vector.shape_cast %54 : vector<1x128xf32> to vector<128xf32>
    %56 = vector.shape_cast %55 : vector<128xf32> to vector<1x128xf32>
    %57 = vector.broadcast %56 : vector<1x128xf32> to vector<256x128xf32>
    %58 = arith.addf %53, %57 : vector<256x128xf32>
    %cst_38 = arith.constant 0.000000e+00 : f32
    %59 = vector.broadcast %cst_38 : f32 to vector<256x128xf32>
    %60 = arith.maximumf %58, %59 : vector<256x128xf32>
    %61 = vector.shape_cast %60 : vector<256x128xf32> to vector<16x16x128xf32>
    %62 = arith.truncf %61 : vector<16x16x128xf32> to vector<16x16x128xbf16>
    %c0_39 = arith.constant 0 : index
    %c0_40 = arith.constant 0 : index
    %c0_41 = arith.constant 0 : index
    %c0_42 = arith.constant 0 : index
    %63 = vector.load %arg10[%c0_39, %c0_40, %c0_41, %c0_42] : memref<1x16x16x128xbf16, #tpu.memory_space<vmem>>, vector<1x16x16x128xbf16>
    %64 = vector.shape_cast %63 : vector<1x16x16x128xbf16> to vector<16x16x128xbf16>
    %65 = vector.shape_cast %62 : vector<16x16x128xbf16> to vector<1x16x16x128xbf16>
    tpu.vector_store %arg10[%c0_39, %c0_40, %c0_41, %c0_42], %65 {strides = array<i32>} : memref<1x16x16x128xbf16, #tpu.memory_space<vmem>>, vector<1x16x16x128xbf16>,
    return
  }
  func.func @transform_0(%arg0: i32, %arg1: i32) -> (i32, i32, i32, i32) {
    %c0_i32 = arith.constant 0 : i32
    %c0_i32_0 = arith.constant 0 : i32
    %c0_i32_1 = arith.constant 0 : i32
    %c0_i32_2 = arith.constant 0 : i32
    return %arg0, %c0_i32, %c0_i32_0, %c0_i32_1 : i32, i32, i32, i32
  }
  func.func @transform_1(%arg0: i32, %arg1: i32) -> (i32, i32, i32, i32) {
    %c0_i32 = arith.constant 0 : i32
    %c0_i32_0 = arith.constant 0 : i32
    %c0_i32_1 = arith.constant 0 : i32
    %c0_i32_2 = arith.constant 0 : i32
    return %arg0, %c0_i32, %c0_i32_0, %c0_i32_1 : i32, i32, i32, i32
  }
  func.func @transform_2(%arg0: i32, %arg1: i32) -> (i32, i32, i32) {
    %c0_i32 = arith.constant 0 : i32
    %c0_i32_0 = arith.constant 0 : i32
    %c0_i32_1 = arith.constant 0 : i32
    %c0_i32_2 = arith.constant 0 : i32
    return %c0_i32, %c0_i32_0, %c0_i32_1 : i32, i32, i32
  }
  func.func @transform_3(%arg0: i32, %arg1: i32) -> (i32, i32, i32) {
    %c0_i32 = arith.constant 0 : i32
    %c0_i32_0 = arith.constant 0 : i32
    %c0_i32_1 = arith.constant 0 : i32
    %c0_i32_2 = arith.constant 0 : i32
    return %c0_i32, %c0_i32_0, %c0_i32_1 : i32, i32, i32
  }
  func.func @transform_4(%arg0: i32, %arg1: i32) -> (i32, i32) {
    %c0_i32 = arith.constant 0 : i32
    %c0_i32_0 = arith.constant 0 : i32
    %c0_i32_1 = arith.constant 0 : i32
    return %c0_i32, %c0_i32_0 : i32, i32
  }
  func.func @transform_5(%arg0: i32, %arg1: i32) -> (i32, i32) {
    %c0_i32 = arith.constant 0 : i32
    %c0_i32_0 = arith.constant 0 : i32
    %c0_i32_1 = arith.constant 0 : i32
    return %c0_i32, %c0_i32_0 : i32, i32
  }
  func.func @transform_6(%arg0: i32, %arg1: i32) -> (i32, i32) {
    %c0_i32 = arith.constant 0 : i32
    %c0_i32_0 = arith.constant 0 : i32
    %c0_i32_1 = arith.constant 0 : i32
    return %c0_i32, %c0_i32_0 : i32, i32
  }
  func.func @transform_7(%arg0: i32, %arg1: i32) -> (i32, i32) {
    %c0_i32 = arith.constant 0 : i32
    %c0_i32_0 = arith.constant 0 : i32
    %c0_i32_1 = arith.constant 0 : i32
    return %c0_i32, %c0_i32_0 : i32, i32
  }
  func.func @transform_8(%arg0: i32, %arg1: i32) -> (i32, i32, i32, i32) {
    %c0_i32 = arith.constant 0 : i32
    %c0_i32_0 = arith.constant 0 : i32
    %c0_i32_1 = arith.constant 0 : i32
    return %arg0, %arg1, %c0_i32, %c0_i32_0 : i32, i32, i32, i32
  }
}

</mosaic_0001>

<bundles_post_ra>
// kernel: up_forward.1
= control target key start
LH: loop header
LB: loop body
LE: loop exit
PB: predicated region body
PF: predicated region fallthrough
CT: control target
= control target key end

     0   :  { %s12149_s27 = smov 0   ;;  %s12151_s28 = smov 0   ;;  %s15228_s0 = inlined_call_operand.vmem [shape: bf16[2,16,16,4], index: 0, kind: input, shape index: {}]   ;;  %s15229_s1 = inlined_call_operand.vmem [shape: bf16[2,8,16,4], index: 1, kind: input, shape index: {}]   ;;  %s15230_s2 = inlined_call_operand.vmem [shape: bf16[3,384,128], index: 2, kind: input, shape index: {}]   ;;  %s15231_s3 = inlined_call_operand.vmem [shape: bf16[3,384,128], index: 3, kind: input, shape index: {}]   ;;  %s15232_s4 = inlined_call_operand.vmem [shape: f32[1,128], index: 4, kind: input, shape index: {}]   ;;  %s15233_s5 = inlined_call_operand.vmem [shape: f32[1,128], index: 5, kind: input, shape index: {}]   ;;  %s15234_s6 = inlined_call_operand.vmem [shape: f32[1,128], index: 6, kind: input, shape index: {}]   ;;  %s15235_s7 = inlined_call_operand.vmem [shape: f32[1,128], index: 7, kind: input, shape index: {}]   ;;  %s15236_s8 = inlined_call_operand.vmem [shape: bf16[2,16,16,128], index: 8, kind: output, shape index: {}]  }
   0x1   :  { %s12153_s29 = smov 0  }
   0x2 LB: > { %s30_s30 = sadd.s32 1, %s12096_s28  ;;  %p9144_p0 = scmp.ge.s32.totalorder %s12100_s29, 1  ;;  %s12100_s29 = sphi %s12153_s29, %s18_s29   ;;  %s12096_s28 = sphi %s12151_s28, %s15380_s28   ;;  %s12092_s27 = sphi %s12149_s27, %s15379_s27  }
   0x3   : > { %p32_p1 = scmp.ge.s32.totalorder %s30_s30, 2  ;;  %p286_p2 = scmp.lt.s32.totalorder %s12100_s29, 3 }
   0x5   : > { %s15382_s30 = smov (%p32_p1, %s30_s30), 0  ;;  %p287_p3 = pnand %p9144_p0, %p286_p2 }
   0x7   : > { %290 = sbr.rel (%p287_p3) target bundleno = 1262 (0x4ee), region = 52 }
   0xc   : > { %p330_p4 = scmp.lt.s32.totalorder %s12092_s27, 1  ;;  %v12172_v0 = vld [vmem:[%s15230_s2 + $0x138] sm:$0xff]   ;;  %v12102_v1 = vmov 0   ;;  %vm496_vm0 = vsmask.f32 256  ;;  %v11515_v3 = vld [vmem:[%s15230_s2 + $0x130] sm:$0xff]  }
   0xd   : > { %359 = vst [vmem:[#allocation2 + $0xc] sm:$0xf] %v12102_v1  ;;  %356 = vst [vmem:[#allocation2] sm:$0xf] %v12102_v1  ;;  %v11514_v2 = vld [vmem:[%s15230_s2 + $0xf8] sm:$0xff]   ;;  %10383 = vmatprep.subr.bf16.mxu0 %v12172_v0  ;;  %v11516_v4 = vld [vmem:[%s15230_s2 + $0xf0] sm:$0xff]  }
   0xe   : > { %s15384_s27 = smov (!%p330_p4, %s12092_s27), 1  ;;  %357 = vst [vmem:[#allocation2 + $0x4] sm:$0xf] %v12102_v1  ;;  %358 = vst [vmem:[#allocation2 + $0x8] sm:$0x1] %v12102_v1  ;;  %10384 = vmatpush3.bf16.msra.mxu0 %v11514_v2  ;;  %v11517_v5 = vld [vmem:[%s15230_s2 + $0x128] sm:$0xff]  }
   0xf   : > { %360 = vst [vmem:[#allocation2 + $0x10] sm:$0xf] %v12102_v1  ;;  %361 = vst [vmem:[#allocation2 + $0x14] sm:$0x1] %v12102_v1  ;;  %s10056_s13 = sshll.u32 %s15384_s27, 6  ;;  %10385 = vmatprep.subr.bf16.mxu0 %v11515_v3  ;;  %v15270_v22 = vmov 0 }
  0x10   : > { %362 = vst [vmem:[#allocation2 + $0x18] sm:$0xf] %v12102_v1  ;;  %363 = vst [vmem:[#allocation2 + $0x1c] sm:$0xf] %v12102_v1  ;;  %s12293_s18 = scalar_lea.vmem %s15229_s1, %s10056_s13  ;;  %vm497_vm1 = vsmask.f32 4368 }
  0x11   : > { %364 = vst [vmem:[#allocation2 + $0x20] sm:$0x1] %v12102_v1  ;;  %365 = vst [vmem:[#allocation2 + $0x24] sm:$0xf] %v12102_v1  ;;  %v938_v6 = vld [vmem:[%s12293_s18] sm:$0xf] }
  0x12   : > { %366 = vst [vmem:[#allocation2 + $0x28] sm:$0xf] %v12102_v1  ;;  %367 = vst [vmem:[#allocation2 + $0x2c] sm:$0x1] %v12102_v1  ;;  %v939_v7 = vld [vmem:[%s12293_s18 + $0x4] sm:$0xf]  ;;  %10386 = vmatpush3.bf16.msra.mxu0 %v11516_v4 }
  0x13   : > { %368 = vst [vmem:[#allocation2 + $0x30] sm:$0xf] %v12102_v1  ;;  %369 = vst [vmem:[#allocation2 + $0x34] sm:$0xf] %v12102_v1  ;;  %v10151_v8 = vld [vmem:[%s12293_s18] sm:$0xff]   ;;  %v941_v9 = vshrl.u32 %v938_v6, 16  ;;  %10387 = vmatprep.subr.bf16.mxu0 %v11517_v5 }
  0x14   : > { %370 = vst [vmem:[#allocation2 + $0x38] sm:$0x1] %v12102_v1  ;;  %371 = vst [vmem:[#allocation2 + $0x3c] sm:$0xf] %v12102_v1  ;;  %v944_v10 = vshll.u32 %v938_v6, 16  ;;  %v949_v11 = vshrl.u32 %v939_v7, 16  ;;  %v10152_v15 = vunpack.c.l.bf16 %v10151_v8  ;;  %v10153_v17 = vunpack.c.h.bf16 %v10151_v8 }
  0x15   : > { %372 = vst [vmem:[#allocation2 + $0x40] sm:$0xf] %v12102_v1  ;;  %373 = vst [vmem:[#allocation2 + $0x44] sm:$0x1] %v12102_v1  ;;  %v952_v12 = vshll.u32 %v939_v7, 16  ;;  %v10342_v13 = vld [vmem:[%s12293_s18 + $0x8] sm:$0xff]  }
  0x16   : > { %374 = vst [vmem:[#allocation2 + $0x48] sm:$0xf] %v12102_v1  ;;  %375 = vst [vmem:[#allocation2 + $0x4c] sm:$0xf] %v12102_v1  ;;  %v10345_v14 = vld [vmem:[%s12293_s18 + $0x10] sm:$0xff]   ;;  %v10156_v16 = vunpack.c.l.bf16 %v10342_v13  ;;  %v12306_v18 = vunpack.c.h.bf16 %v10342_v13  ;;  %v943_v19 = vrot.slane %v941_v9, 7 }
  0x17   : > { %376 = vst [vmem:[#allocation2 + $0x50] sm:$0x1] %v12102_v1  ;;  %377 = vst [vmem:[#allocation2 + $0x54] sm:$0xf] %v12102_v1  ;;  %v951_v20 = vrot.slane %v949_v11, 7  ;;  %v12308_v21 = vunpack.c.l.bf16 %v10345_v14  ;;  %v12316_v26 = vunpack.c.h.bf16 %v10345_v14  ;;  %s12103_s23 = smov 4  }
  0x18   : > { %378 = vst [vmem:[#allocation2 + $0x58] sm:$0xf] %v12102_v1  ;;  %379 = vst [vmem:[#allocation2 + $0x5c] sm:$0x1] %v12102_v1  ;;  %v987_v23 = vmul.f32 0.53333336, %v10152_v15  ;;  %v946_v27 = vor.u32 %v944_v10, %v943_v19 }
  0x19   : > { %380 = vst [vmem:[#allocation2 + $0x60] sm:$0xf] %v12102_v1  ;;  %381 = vst [vmem:[#allocation2 + $0x64] sm:$0xf] %v12102_v1  ;;  %v989_v24 = vmul.f32 0.46666667, %v10156_v16  ;;  %v954_v30 = vor.u32 %v952_v12, %v951_v20 }
  0x1a   : > { %382 = vst [vmem:[#allocation2 + $0x68] sm:$0x1] %v12102_v1  ;;  %383 = vst [vmem:[#allocation2 + $0x6c] sm:$0xf] %v12102_v1  ;;  %v988_v25 = vmul.f32 0.53333336, %v10153_v17  ;;  %957 = vrot.lane.b32.xlu0 %v946_v27, %s12103_s23 }
  0x1b   : > { %384 = vst [vmem:[#allocation2 + $0x70] sm:$0xf] %v12102_v1  ;;  %385 = vst [vmem:[#allocation2 + $0x74] sm:$0x1] %v12102_v1  ;;  %v947_v28 = vrot.slane %v943_v19, 4  ;;  %v956_v29 = vrot.slane %v951_v20, 4  ;;  %v991_v31 = vadd.f32 %v989_v24, %v987_v23 }
  0x1c   : > { %386 = vst [vmem:[#allocation2 + $0x78] sm:$0xf] %v12102_v1  ;;  %387 = vst [vmem:[#allocation2 + $0x7c] sm:$0xf] %v12102_v1  ;;  %v990_v32 = vmul.f32 0.46666667, %v12306_v18 }
  0x1d   : > { %388 = vst [vmem:[#allocation2 + $0x80] sm:$0x1] %v12102_v1  ;;  %389 = vst [vmem:[#allocation2 + $0x84] sm:$0xf] %v12102_v1  ;;  %v1041_v33 = vmul.f32 0.06666667, %v10152_v15  ;;  %961 = vrot.lane.b32.xlu1 %v956_v29, %s12103_s23  ;;  %v10058_v39 = vpack.c.bf16 %v991_v31, %v991_v31 }
  0x1e   : > { %390 = vst [vmem:[#allocation2 + $0x88] sm:$0xf] %v12102_v1  ;;  %391 = vst [vmem:[#allocation2 + $0x8c] sm:$0x1] %v12102_v1  ;;  %v1043_v34 = vmul.f32 0.93333334, %v10156_v16  ;;  %v992_v40 = vadd.f32 %v990_v32, %v988_v25 }
  0x1f   : > { %392 = vst [vmem:[#allocation2 + $0x90] sm:$0xf] %v12102_v1  ;;  %393 = vst [vmem:[#allocation2 + $0x94] sm:$0xf] %v12102_v1  ;;  %v1042_v36 = vmul.f32 0.06666667, %v10153_v17 }
  0x20   : > { %394 = vst [vmem:[#allocation2 + $0x98] sm:$0x1] %v12102_v1  ;;  %395 = vst [vmem:[#allocation2 + $0x9c] sm:$0xf] %v12102_v1  ;;  %v1044_v37 = vmul.f32 0.93333334, %v12306_v18  ;;  %v1045_v41 = vadd.f32 %v1043_v34, %v1041_v33  ;;  %v10059_v49 = vpack.c.bf16 %v992_v40, %v992_v40 }
  0x21   : > { %396 = vst [vmem:[#allocation2 + $0xa0] sm:$0xf] %v12102_v1  ;;  %397 = vst [vmem:[#allocation2 + $0xa4] sm:$0x1] %v12102_v1  ;;  %v1096_v38 = vmul.f32 0.6, %v10156_v16 }
  0x22   : > { %398 = vst [vmem:[#allocation2 + $0xa8] sm:$0xf] %v12102_v1  ;;  %399 = vst [vmem:[#allocation2 + $0xac] sm:$0xf] %v12102_v1  ;;  %v1098_v42 = vmul.f32 0.4, %v12308_v21  ;;  %v1046_v43 = vadd.f32 %v1044_v37, %v1042_v36  ;;  %v10060_v50 = vpack.c.bf16 %v1045_v41, %v1045_v41 }
  0x23   : > { %400 = vst [vmem:[#allocation2 + $0xb0] sm:$0x1] %v12102_v1  ;;  %401 = vst [vmem:[#allocation2 + $0xb4] sm:$0xf] %v12102_v1  ;;  %v1150_v44 = vmul.f32 0.13333334, %v10156_v16 }
  0x24   : > { %402 = vst [vmem:[#allocation2 + $0xb8] sm:$0xf] %v12102_v1  ;;  %403 = vst [vmem:[#allocation2 + $0xbc] sm:$0x1] %v12102_v1  ;;  %v1152_v45 = vmul.f32 0.8666667, %v12308_v21  ;;  %v10061_v51 = vpack.c.bf16 %v1046_v43, %v1046_v43  ;;  %v1100_v52 = vadd.f32 %v1098_v42, %v1096_v38 }
  0x25   : > { %404 = vst [vmem:[#allocation2 + $0xc0] sm:$0xf] %v12102_v1  ;;  %405 = vst [vmem:[#allocation2 + $0xc4] sm:$0xf] %v12102_v1  ;;  %v1097_v46 = vmul.f32 0.6, %v12306_v18 }
  0x26   : > { %406 = vst [vmem:[#allocation2 + $0xc8] sm:$0x1] %v12102_v1  ;;  %407 = vst [vmem:[#allocation2 + $0xcc] sm:$0xf] %v12102_v1  ;;  %v1000_v47 = vshrl.u32 %v10058_v39, 16  ;;  %v1003_v48 = vshll.u32 %v10058_v39, 16  ;;  %v1154_v53 = vadd.f32 %v1152_v45, %v1150_v44  ;;  %v10062_v61 = vpack.c.bf16 %v1100_v52, %v1100_v52 }
  0x27   : > { %408 = vst [vmem:[#allocation2 + $0xd0] sm:$0xf] %v12102_v1  ;;  %409 = vst [vmem:[#allocation2 + $0xd4] sm:$0x1] %v12102_v1  ;;  %v1099_v54 = vmul.f32 0.4, %v12316_v26 }
  0x28   : > { %410 = vst [vmem:[#allocation3] sm:$0xf] %v12102_v1  ;;  %411 = vst [vmem:[#allocation3 + $0x4] sm:$0xf] %v12102_v1  ;;  %v1002_v55 = vrot.slane %v1000_v47, 7  ;;  %v1008_v56 = vshrl.u32 %v10059_v49, 16  ;;  %v10064_v63 = vpack.c.bf16 %v1154_v53, %v1154_v53 }
  0x29   : > { %412 = vst [vmem:[#allocation3 + $0x8] sm:$0x1] %v12102_v1  ;;  %413 = vst [vmem:[#allocation3 + $0xc] sm:$0xf] %v12102_v1  ;;  %v1054_v57 = vshrl.u32 %v10060_v50, 16  ;;  %v1057_v58 = vshll.u32 %v10060_v50, 16  ;;  %v1101_v17 = vadd.f32 %v1099_v54, %v1097_v46 }
  0x2a   : > { %414 = vst [vmem:[#allocation3 + $0x10] sm:$0xf] %v12102_v1  ;;  %415 = vst [vmem:[#allocation3 + $0x14] sm:$0x1] %v12102_v1  ;;  %v10349_v59 = vld [vmem:[%s12293_s18 + $0x18] sm:$0xff]   ;;  %v1062_v60 = vshrl.u32 %v10061_v51, 16  ;;  %v1005_v2 = vor.u32 %v1003_v48, %v1002_v55 }
  0x2b   : > { %416 = vst [vmem:[#allocation3 + $0x18] sm:$0xf] %v12102_v1  ;;  %417 = vst [vmem:[#allocation3 + $0x1c] sm:$0xf] %v12102_v1  ;;  %v1011_v62 = vshll.u32 %v10059_v49, 16  ;;  %v11518_v0 = vld [vmem:[%s15230_s2 + $0xe8] sm:$0xff]   ;;  %v12345_v19 = vunpack.c.l.bf16 %v10349_v59  ;;  %v10063_v29 = vpack.c.bf16 %v1101_v17, %v1101_v17  ;;  %v12361_v34 = vunpack.c.h.bf16 %v10349_v59 }
  0x2c   : > { %418 = vst [vmem:[#allocation3 + $0x20] sm:$0x1] %v12102_v1  ;;  %419 = vst [vmem:[#allocation3 + $0x24] sm:$0xf] %v12102_v1  ;;  %v1010_v3 = vrot.slane %v1008_v56, 7  ;;  %v12336_v4 = vrot.slane %v1054_v57, 7  ;;  %10388 = vmatpush3.bf16.msra.mxu0 %v11518_v0  ;;  %1016 = vrot.lane.b32.xlu1 %v1005_v2, %s12103_s23 }
  0x2d   : > { %420 = vst [vmem:[#allocation3 + $0x28] sm:$0xf] %v12102_v1  ;;  %421 = vst [vmem:[#allocation3 + $0x2c] sm:$0x1] %v12102_v1  ;;  %v1006_v5 = vrot.slane %v1002_v55, 4  ;;  %v11520_v6 = vld [vmem:[%s15230_s2 + $0xe0] sm:$0xff]  }
  0x2e   : > { %422 = vst [vmem:[#allocation3 + $0x30] sm:$0xf] %v12102_v1  ;;  %423 = vst [vmem:[#allocation3 + $0x34] sm:$0xf] %v12102_v1  ;;  %v1064_v7 = vrot.slane %v1062_v60, 7  ;;  %v1109_v8 = vshrl.u32 %v10062_v61, 16  ;;  %v1059_v12 = vor.u32 %v1057_v58, %v12336_v4  ;;  %v1013_v13 = vor.u32 %v1011_v62, %v1010_v3 }
  0x2f   : > { %424 = vst [vmem:[#allocation3 + $0x38] sm:$0x1] %v12102_v1  ;;  %425 = vst [vmem:[#allocation3 + $0x3c] sm:$0xf] %v12102_v1  ;;  %v1112_v9 = vshll.u32 %v10062_v61, 16  ;;  %v1163_v10 = vshrl.u32 %v10064_v63, 16 }
  0x30   : > { %426 = vst [vmem:[#allocation3 + $0x40] sm:$0xf] %v12102_v1  ;;  %427 = vst [vmem:[#allocation3 + $0x44] sm:$0x1] %v12102_v1  ;;  %v1015_v11 = vrot.slane %v1010_v3, 4  ;;  %v1166_v14 = vshll.u32 %v10064_v63, 16  ;;  %1070 = vrot.lane.b32.xlu1 %v1059_v12, %s12103_s23 }
  0x31   : > { %428 = vst [vmem:[#allocation3 + $0x48] sm:$0xf] %v12102_v1  ;;  %429 = vst [vmem:[#allocation3 + $0x4c] sm:$0xf] %v12102_v1  ;;  %v1111_v15 = vrot.slane %v1109_v8, 7  ;;  %v12343_v16 = vrot.slane %v1163_v10, 7 }
  0x32   : > { %430 = vst [vmem:[#allocation3 + $0x50] sm:$0x1] %v12102_v1  ;;  %431 = vst [vmem:[#allocation3 + $0x54] sm:$0xf] %v12102_v1  ;;  %v11521_v20 = vld [vmem:[%s15230_s2 + $0x178] sm:$0xff]   ;;  %v1069_v23 = vrot.slane %v1064_v7, 4 }
  0x33   : > { %432 = vst [vmem:[#allocation3 + $0x58] sm:$0xf] %v12102_v1  ;;  %433 = vst [vmem:[#allocation3 + $0x5c] sm:$0x1] %v12102_v1  ;;  %v1065_v24 = vshll.u32 %v10061_v51, 16  ;;  %v1114_v27 = vor.u32 %v1112_v9, %v1111_v15  ;;  %11199 = vmatprep.subr.bf16.mxu1 %v11521_v20  ;;  %v11522_v31 = vld [vmem:[%s15230_s2 + $0x118] sm:$0xff]   ;;  %v1168_v32 = vor.u32 %v1166_v14, %v12343_v16 }
  0x34   : > { %434 = vst [vmem:[#allocation3 + $0x60] sm:$0xf] %v12102_v1  ;;  %435 = vst [vmem:[#allocation3 + $0x64] sm:$0xf] %v12102_v1  ;;  %v1151_v25 = vmul.f32 0.13333334, %v12306_v18  ;;  %11200 = vmatpush3.bf16.msra.mxu1 %v11521_v20 }
  0x35   : > { %436 = vst [vmem:[#allocation3 + $0x68] sm:$0x1] %v12102_v1  ;;  %437 = vst [vmem:[#allocation3 + $0x6c] sm:$0xf] %v12102_v1  ;;  %v1115_v33 = vrot.slane %v1111_v15, 4  ;;  %v1117_v36 = vshrl.u32 %v10063_v29, 16  ;;  %v1067_v40 = vor.u32 %v1065_v24, %v1064_v7  ;;  %1125 = vrot.lane.b32.xlu1 %v1114_v27, %s12103_s23 }
  0x36   : > { %438 = vst [vmem:[#allocation3 + $0x70] sm:$0xf] %v12102_v1  ;;  %439 = vst [vmem:[#allocation3 + $0x74] sm:$0x1] %v12102_v1  ;;  %v1153_v18 = vmul.f32 0.8666667, %v12316_v26 }
  0x37   : > { %440 = vst [vmem:[#allocation3 + $0x78] sm:$0xf] %v12102_v1  ;;  %441 = vst [vmem:[#allocation3 + $0x7c] sm:$0xf] %v12102_v1  ;;  %v1120_v37 = vshll.u32 %v10063_v29, 16  ;;  %v12371_v44 = vrot.slane %v1117_v36, 7 }
  0x38   : > { %442 = vst [vmem:[#allocation3 + $0x80] sm:$0x1] %v12102_v1  ;;  %443 = vst [vmem:[#allocation3 + $0x84] sm:$0xf] %v12102_v1  ;;  %v1205_v38 = vmul.f32 0.6666667, %v12308_v21  ;;  %v1155_v41 = vadd.f32 %v1153_v18, %v1151_v25 }
  0x39   : > { %444 = vst [vmem:[#allocation3 + $0x88] sm:$0xf] %v12102_v1  ;;  %445 = vst [vmem:[#allocation3 + $0x8c] sm:$0x1] %v12102_v1  ;;  %v1207_v39 = vmul.f32 0.33333334, %v12345_v19  ;;  %v1122_v53 = vor.u32 %v1120_v37, %v12371_v44  ;;  %1179 = vrot.lane.b32.xlu1 %v1168_v32, %s12103_s23 }
  0x3a   : > { %446 = vst [vmem:[#allocation3 + $0x90] sm:$0xf] %v12102_v1  ;;  %447 = vst [vmem:[#allocation3 + $0x94] sm:$0xf] %v12102_v1  ;;  %v1206_v42 = vmul.f32 0.6666667, %v12316_v26  ;;  %v10065_v49 = vpack.c.bf16 %v1155_v41, %v1155_v41 }
  0x3b   : > { %448 = vst [vmem:[#allocation3 + $0x98] sm:$0x1] %v12102_v1  ;;  %449 = vst [vmem:[#allocation3 + $0x9c] sm:$0xf] %v12102_v1  ;;  %v1208_v43 = vmul.f32 0.33333334, %v12361_v34  ;;  %v1209_v45 = vadd.f32 %v1207_v39, %v1205_v38 }
  0x3c   : > { %450 = vst [vmem:[#allocation3 + $0xa0] sm:$0xf] %v12102_v1  ;;  %451 = vst [vmem:[#allocation3 + $0xa4] sm:$0x1] %v12102_v1  ;;  %v1259_v46 = vmul.f32 0.2, %v12308_v21 }
  0x3d   : > { %452 = vst [vmem:[#allocation3 + $0xa8] sm:$0xf] %v12102_v1  ;;  %453 = vst [vmem:[#allocation3 + $0xac] sm:$0xf] %v12102_v1  ;;  %v1261_v47 = vmul.f32 0.8, %v12345_v19  ;;  %v1210_v50 = vadd.f32 %v1208_v43, %v1206_v42  ;;  %v10066_v54 = vpack.c.bf16 %v1209_v45, %v1209_v45 }
  0x3e   : > { %454 = vst [vmem:[#allocation3 + $0xb0] sm:$0x1] %v12102_v1  ;;  %455 = vst [vmem:[#allocation3 + $0xb4] sm:$0xf] %v12102_v1  ;;  %v11524_v48 = vld [vmem:[%s15230_s2 + $0x170] sm:$0xff]   ;;  %v1169_v21 = vrot.slane %v12343_v16, 4 }
  0x3f   : > { %456 = vst [vmem:[#allocation3 + $0xb8] sm:$0xf] %v12102_v1  ;;  %457 = vst [vmem:[#allocation3 + $0xbc] sm:$0x1] %v12102_v1  ;;  %v1260_v51 = vmul.f32 0.2, %v12316_v26  ;;  %v1263_v55 = vadd.f32 %v1261_v47, %v1259_v46  ;;  %11201 = vmatprep.subr.bf16.mxu1 %v11524_v48  ;;  %v10067_v59 = vpack.c.bf16 %v1210_v50, %v1210_v50 }
  0x40   : > { %458 = vst [vmem:[#allocation3 + $0xc0] sm:$0xf] %v12102_v1  ;;  %459 = vst [vmem:[#allocation3 + $0xc4] sm:$0xf] %v12102_v1  ;;  %v1262_v52 = vmul.f32 0.8, %v12361_v34  ;;  %11202 = vmatpush3.bf16.msra.mxu1 %v11524_v48 }
  0x41   : > { %460 = vst [vmem:[#allocation3 + $0xc8] sm:$0x1] %v12102_v1  ;;  %461 = vst [vmem:[#allocation3 + $0xcc] sm:$0xf] %v12102_v1  ;;  %v11525_v56 = vld [vmem:[%s15230_s2 + $0x110] sm:$0xff]   ;;  %v1171_v57 = vshrl.u32 %v10065_v49, 16  ;;  %v10068_v63 = vpack.c.bf16 %v1263_v55, %v1263_v55 }
  0x42   : > { %462 = vst [vmem:[#allocation3 + $0xd0] sm:$0xf] %v12102_v1  ;;  %463 = vst [vmem:[#allocation3 + $0xd4] sm:$0x1] %v12102_v1  ;;  %v11519_v1 = vld [vmem:[%s15230_s2 + $0x120] sm:$0xff]   ;;  %v1174_v58 = vshll.u32 %v10065_v49, 16  ;;  %v1264_v26 = vadd.f32 %v1262_v52, %v1260_v51 }
  0x43   : > { %vm12312_vm2 = vmor %vm496_vm0, %vm497_vm1  ;;  %10389 = vmatprep.subr.bf16.mxu0 %v11519_v1  ;;  %v1124_v61 = vrot.slane %v12371_v44, 4  ;;  %v1218_v62 = vshrl.u32 %v10066_v54, 16  ;;  %v10353_v0 = vld [vmem:[%s12293_s18 + $0x20] sm:$0xff]   ;;  %v1173_v1 = vrot.slane %v1171_v57, 7  ;;  %v1221_v2 = vshll.u32 %v10066_v54, 16  ;;  %v11527_v10 = vld [vmem:[%s15230_s2 + $0x168] sm:$0xff]  }
  0x44   : > { %v15271_v22 = vsel %vm12312_vm2, 4294967295, %v15270_v22  ;;  %v955_v35 = vsel %vm12312_vm2, %v947_v28, %v954_v30  ;;  %v1014_v28 = vsel %vm12312_vm2, %v1006_v5, %v1013_v13  ;;  %v1060_v30 = vrot.slane %v12336_v4, 4  ;;  %10390 = vmatpush3.bf16.msra.mxu0 %v11520_v6  ;;  %v11526_v5 = vld [vmem:[%s15230_s2 + $0xd0] sm:$0xff]   ;;  %v10357_v15 = vld [vmem:[%s12293_s18 + $0x28] sm:$0xff]   ;;  %11203 = vmatprep.subr.bf16.mxu1 %v11527_v10  ;;  %v11533_v38 = vld [vmem:[%s15230_s2 + $0x100] sm:$0xff]   ;;  %s10055_s16 = sshll.u32 %s15384_s27, 7 }
  0x45   : > { %15272 = vst [vmem:[#allocation4_spill] sm:$0xff] %v15271_v22  ;;  %959 = vrot.lane.b32.xlu0 %v955_v35, %s12103_s23  ;;  %v11523_v35 = vld [vmem:[%s15230_s2 + $0xd8] sm:$0xff]   ;;  %10391 = vmatprep.subr.bf16.mxu0 %v11522_v31  ;;  %v1123_v60 = vsel %vm12312_vm2, %v1115_v33, %v1122_v53  ;;  %v1226_v3 = vshrl.u32 %v10067_v59, 16  ;;  %v12392_v4 = vpack.c.bf16 %v1264_v26, %v1264_v26  ;;  %v1220_v7 = vrot.slane %v1218_v62, 7  ;;  %v11528_v16 = vld [vmem:[%s15230_s2 + $0x108] sm:$0xff]   ;;  %v11532_v33 = vld [vmem:[%s15230_s2 + $0x160] sm:$0xff]   ;;  %s12571_s20 = scalar_lea.vmem %s15228_s0, %s10055_s16 }
  0x46   : > { %v1068_v6 = vsel %vm12312_vm2, %v1060_v30, %v1067_v40  ;;  %v1229_v8 = vshll.u32 %v10067_v59, 16  ;;  %v1272_v9 = vshrl.u32 %v10068_v63, 16  ;;  %v12406_v14 = vunpack.c.l.bf16 %v10353_v0  ;;  %v11529_v24 = vld [vmem:[%s15230_s2 + $0xc8] sm:$0xff]   ;;  %11204 = vmatpush3.bf16.msra.mxu1 %v11527_v10 }
  0x47   : > { %v12403_v12 = vrot.slane %v1226_v3, 7  ;;  %v1280_v13 = vshrl.u32 %v12392_v4, 16  ;;  %v1178_v17 = vrot.slane %v1173_v1, 4  ;;  %v1224_v20 = vrot.slane %v1220_v7, 4  ;;  %1072 = vrot.lane.b32.xlu1 %v1068_v6, %s12103_s23  ;;  %11205 = vmatprep.subr.bf16.mxu1 %v11532_v33  ;;  %v11534_v3 = vld [vmem:[%s15230_s2 + $0xc0] sm:$0xff]  }
  0x48   : > { %10392 = vmatpush3.bf16.msra.mxu0 %v11523_v35  ;;  %v1223_v25 = vor.u32 %v1221_v2, %v1220_v7  ;;  %v12416_v27 = vrot.slane %v1272_v9, 7  ;;  %v12422_v31 = vunpack.c.h.bf16 %v10353_v0  ;;  %v1314_v32 = vmul.f32 0.73333335, %v12345_v19  ;;  %v11535_v7 = vld [vmem:[%s15230_s2 + $0x158] sm:$0xff]  }
  0x49   : > { %1020 = vrot.lane.b32.xlu0 %v1015_v11, %s12103_s23  ;;  %10393 = vmatprep.subr.bf16.mxu0 %v11525_v56  ;;  %v1176_v11 = vor.u32 %v1174_v58, %v1173_v1  ;;  %v1231_v30 = vor.u32 %v1229_v8, %v12403_v12  ;;  %v1233_v18 = vrot.slane %v12403_v12, 4  ;;  %v12431_v36 = vrot.slane %v1280_v13, 7 }
  0x4a   : > { %v1278_v35 = vrot.slane %v12416_v27, 4  ;;  %v1316_v37 = vmul.f32 0.26666668, %v12406_v14  ;;  %v1315_v39 = vmul.f32 0.73333335, %v12361_v34  ;;  %v12440_v42 = vunpack.c.l.bf16 %v10357_v15  ;;  %11206 = vmatpush3.bf16.msra.mxu1 %v11532_v33 }
  0x4b   : > { %v1177_v29 = vsel %vm12312_vm2, %v1169_v21, %v1176_v11  ;;  %v1317_v40 = vmul.f32 0.26666668, %v12422_v31  ;;  %v1368_v41 = vmul.f32 0.26666668, %v12345_v19  ;;  %v1370_v45 = vmul.f32 0.73333335, %v12406_v14  ;;  %11207 = vmatprep.subr.bf16.mxu1 %v11535_v7 }
  0x4c   : > { %10394 = vmatpush3.bf16.msra.mxu0 %v11526_v5  ;;  %1181 = vrot.lane.b32.xlu1 %v1177_v29, %s12103_s23  ;;  %v1318_v44 = vadd.f32 %v1316_v37, %v1314_v32  ;;  %v1369_v46 = vmul.f32 0.26666668, %v12361_v34  ;;  %v1371_v48 = vmul.f32 0.73333335, %v12422_v31  ;;  %v12447_v49 = vunpack.c.h.bf16 %v10357_v15  ;;  %v11538_v11 = vld [vmem:[%s15230_s2 + $0x150] sm:$0xff]  }
  0x4d   : > { %1074 = vrot.lane.b32.xlu0 %v1069_v23, %s12103_s23  ;;  %v1275_v23 = vshll.u32 %v10068_v63, 16  ;;  %10395 = vmatprep.subr.bf16.mxu0 %v11528_v16  ;;  %v1319_v47 = vadd.f32 %v1317_v40, %v1315_v39  ;;  %v1423_v19 = vmul.f32 0.8, %v12406_v14  ;;  %v1372_v51 = vadd.f32 %v1370_v45, %v1368_v41  ;;  %v11546_v41 = vld [vmem:[%s15230_s2 + $0x140] sm:$0xff]  }
  0x4e   : > { %v10070_v50 = vpack.c.bf16 %v1318_v44, %v1318_v44  ;;  %v1425_v52 = vmul.f32 0.2, %v12440_v42  ;;  %v1424_v53 = vmul.f32 0.8, %v12422_v31  ;;  %v1232_v34 = vsel %vm12312_vm2, %v1224_v20, %v1231_v30  ;;  %11208 = vmatpush3.bf16.msra.mxu1 %v11535_v7 }
  0x4f   : > { %v1277_v43 = vor.u32 %v1275_v23, %v12416_v27  ;;  %v10071_v21 = vpack.c.bf16 %v1319_v47, %v1319_v47  ;;  %v1373_v54 = vadd.f32 %v1371_v48, %v1369_v46  ;;  %v1426_v55 = vmul.f32 0.2, %v12447_v49  ;;  %11209 = vmatprep.subr.bf16.mxu1 %v11538_v11 }
  0x50   : > { %10396 = vmatpush3.bf16.msra.mxu0 %v11529_v24  ;;  %1234 = vrot.lane.b32.xlu1 %v1223_v25, %s12103_s23  ;;  %v1327_v57 = vshrl.u32 %v10070_v50, 16  ;;  %v10072_v58 = vpack.c.bf16 %v1372_v51, %v1372_v51  ;;  %v1427_v59 = vadd.f32 %v1425_v52, %v1423_v19  ;;  %v1330_v0 = vshll.u32 %v10070_v50, 16 }
  0x51   : > { %1018 = vrot.lane.b32.xlu0 %v1014_v28, %s12103_s23  ;;  %v1283_v28 = vshll.u32 %v12392_v4, 16  ;;  %10397 = vmatprep.subr.bf16.mxu0 %v11533_v38  ;;  %v1335_v26 = vshrl.u32 %v10071_v21, 16  ;;  %v1428_v62 = vadd.f32 %v1426_v55, %v1424_v53  ;;  %v1287_v13 = vrot.slane %v12431_v36, 4 }
  0x52   : > { %v1329_v63 = vrot.slane %v1327_v57, 7  ;;  %v1381_v1 = vshrl.u32 %v10072_v58, 16  ;;  %v12459_v2 = vpack.c.bf16 %v1427_v59, %v1427_v59  ;;  %v1384_v5 = vshll.u32 %v10072_v58, 16  ;;  %11210 = vmatpush3.bf16.msra.mxu1 %v11538_v11 }
  0x53   : > { %v1285_v56 = vor.u32 %v1283_v28, %v12431_v36  ;;  %v12464_v4 = vrot.slane %v1335_v26, 7  ;;  %v12473_v10 = vpack.c.bf16 %v1428_v62, %v1428_v62  ;;  %v1477_v24 = vmul.f32 0.33333334, %v12406_v14  ;;  %v11541_v28 = vld [vmem:[%s15230_s2 + $0x148] sm:$0xff]  }
  0x54   : > { %1288 = vrot.lane.b32.xlu1 %v1277_v43, %s12103_s23  ;;  %v12470_v8 = vrot.slane %v1381_v1, 7  ;;  %v1436_v9 = vshrl.u32 %v12459_v2, 16  ;;  %10398 = vmatpush3.bf16.msra.mxu0 %v11534_v3  ;;  %v1333_v15 = vrot.slane %v1329_v63, 4  ;;  %v1332_v25 = vor.u32 %v1330_v0, %v1329_v63  ;;  %v10365_v63 = vld [vmem:[%s12293_s18 + $0x38] sm:$0xff]  }
  0x55   : > { %1127 = vrot.lane.b32.xlu0 %v1123_v60, %s12103_s23  ;;  %v1338_v60 = vshll.u32 %v10071_v21, 16  ;;  %v1286_v12 = vsel %vm12312_vm2, %v1278_v35, %v1285_v56  ;;  %v1444_v32 = vshrl.u32 %v12473_v10, 16  ;;  %v1479_v33 = vmul.f32 0.6666667, %v12440_v42  ;;  %11211 = vmatprep.subr.bf16.mxu1 %v11541_v28 }
  0x56   : > { %v1386_v27 = vor.u32 %v1384_v5, %v12470_v8  ;;  %v1387_v29 = vrot.slane %v12470_v8, 4  ;;  %v12493_v30 = vrot.slane %v1436_v9, 7  ;;  %v1480_v35 = vmul.f32 0.6666667, %v12447_v49  ;;  %11212 = vmatpush3.bf16.msra.mxu1 %v11541_v28 }
  0x57   : > { %v1340_v16 = vor.u32 %v1338_v60, %v12464_v4  ;;  %v1447_v38 = vshll.u32 %v12473_v10, 16  ;;  %v1481_v39 = vadd.f32 %v1479_v33, %v1477_v24  ;;  %v1532_v44 = vmul.f32 0.8666667, %v12440_v42  ;;  %11213 = vmatprep.subr.bf16.mxu1 %v11546_v41 }
  0x58   : > { %1290 = vrot.lane.b32.xlu1 %v1286_v12, %s12103_s23  ;;  %v1533_v46 = vmul.f32 0.8666667, %v12447_v49  ;;  %v12518_v47 = vrot.slane %v1444_v32, 7  ;;  %v1586_v50 = vmul.f32 0.4, %v12440_v42  ;;  %v1342_v21 = vrot.slane %v12464_v4, 4 }
  0x59   : > { %1129 = vrot.lane.b32.xlu0 %v1124_v61, %s12103_s23  ;;  %v10073_v61 = vpack.c.bf16 %v1373_v54, %v1373_v54  ;;  %v1341_v14 = vsel %vm12312_vm2, %v1333_v15, %v1340_v16  ;;  %v10076_v48 = vpack.c.bf16 %v1481_v39, %v1481_v39  ;;  %v1439_v57 = vshll.u32 %v12459_v2, 16 }
  0x5a   : > { %v1442_v60 = vrot.slane %v12493_v30, 4  ;;  %v1449_v0 = vor.u32 %v1447_v38, %v12518_v47  ;;  %11214 = vmatpush3.bf16.msra.mxu1 %v11546_v41  ;;  %v10252_v10 = vunpack.c.l.bf16 %v10365_v63  ;;  %v1451_v11 = vrot.slane %v12518_v47, 4  ;;  %v12563_v47 = vld [vmem:[%s12293_s18 + $0x38] sm:$0xf] }
  0x5b   : > { %v1389_v6 = vshrl.u32 %v10073_v61, 16  ;;  %v1392_v23 = vshll.u32 %v10073_v61, 16  ;;  %v1490_v54 = vshrl.u32 %v10076_v48, 16  ;;  %v1493_v2 = vshll.u32 %v10076_v48, 16 }
  0x5c   : > { %1343 = vrot.lane.b32.xlu1 %v1332_v25, %s12103_s23  ;;  %v1441_v8 = vor.u32 %v1439_v57, %v12493_v30  ;;  %v10253_v15 = vunpack.c.h.bf16 %v10365_v63  ;;  %v1450_v16 = vsel %vm12312_vm2, %v1442_v60, %v1449_v0  ;;  %v1643_v33 = vmul.f32 0.06666667, %v10252_v10 }
  0x5d   : > { %1183 = vrot.lane.b32.xlu0 %v1178_v17, %s12103_s23  ;;  %v10361_v17 = vld [vmem:[%s12293_s18 + $0x30] sm:$0xff]   ;;  %v12484_v20 = vrot.slane %v1389_v6, 7  ;;  %v1492_v1 = vrot.slane %v1490_v54, 7  ;;  %v1697_v41 = vmul.f32 0.53333336, %v10252_v10  ;;  %vm820_vm3 = vcmask 27648  }
  0x5e   : > { %v12501_v36 = vunpack.c.l.bf16 %v10361_v17  ;;  %v12506_v40 = vunpack.c.h.bf16 %v10361_v17  ;;  %vm821_vm4 = vsmask.f32 7938  ;;  %vm828_vm5 = vcmask 24576  }
  0x5f   : > { %v1394_v37 = vor.u32 %v1392_v23, %v12484_v20  ;;  %v1396_v4 = vrot.slane %v12484_v20, 4  ;;  %v1495_v17 = vor.u32 %v1493_v2, %v1492_v1  ;;  %v1496_v20 = vrot.slane %v1492_v1, 4  ;;  %vm12634_vm6 = vmand %vm820_vm3, %vm821_vm4 }
  0x60   : > { %v1534_v45 = vmul.f32 0.13333334, %v12501_v36  ;;  %v1535_v19 = vmul.f32 0.13333334, %v12506_v40  ;;  %v1588_v53 = vmul.f32 0.6, %v12501_v36  ;;  %1397 = vrot.lane.b32.xlu1 %v1386_v27, %s12103_s23  ;;  %vm12643_vm7 = vmand %vm828_vm5, %vm496_vm0 }
  0x61   : > { %1236 = vrot.lane.b32.xlu0 %v1232_v34, %s12103_s23  ;;  %v1587_v34 = vmul.f32 0.4, %v12447_v49  ;;  %v1589_v56 = vmul.f32 0.6, %v12506_v40  ;;  %v11566_v49 = vld [vmem:[%s15230_s2 + $0x78] sm:$0xff]   ;;  %v1395_v26 = vsel %vm12312_vm2, %v1387_v29, %v1394_v37  ;;  %vm966_vm8 = vcmask 60448  }
  0x62   : > { %v1536_v52 = vadd.f32 %v1534_v45, %v1532_v44  ;;  %v1537_v55 = vadd.f32 %v1535_v19, %v1533_v46  ;;  %v1590_v59 = vadd.f32 %v1588_v53, %v1586_v50  ;;  %10519 = vmatprep.subr.bf16.mxu1 %v11566_v49  ;;  %v1641_v32 = vmul.f32 0.93333334, %v12501_v36  ;;  %vm12795_vm10 = vmand %vm966_vm8, %vm821_vm4 }
  0x63   : > { %v1591_v62 = vadd.f32 %v1589_v56, %v1587_v34  ;;  %v1644_v37 = vmul.f32 0.06666667, %v10253_v15  ;;  %v1695_v39 = vmul.f32 0.46666667, %v12501_v36  ;;  %v1698_v46 = vmul.f32 0.53333336, %v10253_v15 }
  0x64   : > { %v10078_v58 = vpack.c.bf16 %v1536_v52, %v1536_v52  ;;  %v10079_v61 = vpack.c.bf16 %v1537_v55, %v1537_v55  ;;  %v10080_v3 = vpack.c.bf16 %v1590_v59, %v1590_v59  ;;  %1399 = vrot.lane.b32.xlu1 %v1395_v26, %s12103_s23  ;;  %v1645_v38 = vadd.f32 %v1643_v33, %v1641_v32  ;;  %v12577_v34 = vld [vmem:[%s12293_s18 + $0x3c] sm:$0xf] }
  0x65   : > { %1238 = vrot.lane.b32.xlu0 %v1233_v18, %s12103_s23  ;;  %v1478_v18 = vmul.f32 0.33333334, %v12422_v31  ;;  %v11565_v31 = vld [vmem:[%s15230_s2 + $0xb8] sm:$0xff]   ;;  %v1744_v59 = vshrl.u32 %v12563_v47, 16  ;;  %vm973_vm9 = vcmask 57376   ;;  %vm4199_vm13 = vcmask 1046528  }
  0x66   : > { %11247 = vmatprep.subr.bf16.mxu0 %v11565_v31  ;;  %v1545_v7 = vshrl.u32 %v10078_v58, 16  ;;  %v1553_v9 = vshrl.u32 %v10079_v61, 16  ;;  %v1599_v12 = vshrl.u32 %v10080_v3, 16  ;;  %v1548_v23 = vshll.u32 %v10078_v58, 16  ;;  %vm12806_vm11 = vmand %vm973_vm9, %vm496_vm0 }
  0x67   : > { %v1482_v43 = vadd.f32 %v1480_v35, %v1478_v18  ;;  %v1556_v28 = vshll.u32 %v10079_v61, 16  ;;  %v1602_v30 = vshll.u32 %v10080_v3, 16  ;;  %v1642_v35 = vmul.f32 0.93333334, %v12506_v40  ;;  %v465_v3 = vld [vmem:[%s12571_s20 + $0x4] sm:$0xf] }
  0x68   : > { %v1547_v27 = vrot.slane %v1545_v7, 7  ;;  %v12550_v29 = vrot.slane %v1553_v9, 7  ;;  %1452 = vrot.lane.b32.xlu1 %v1441_v8, %s12103_s23  ;;  %v1696_v31 = vmul.f32 0.46666667, %v12506_v40  ;;  %v10082_v50 = vpack.c.bf16 %v1645_v38, %v1645_v38  ;;  %v466_v8 = vld [vmem:[%s12571_s20 + $0x8] sm:$0xf] }
  0x69   : > { %1292 = vrot.lane.b32.xlu0 %v1287_v13, %s12103_s23  ;;  %v10077_v51 = vpack.c.bf16 %v1482_v43, %v1482_v43  ;;  %v10081_v13 = vpack.c.bf16 %v1591_v62, %v1591_v62  ;;  %v1646_v45 = vadd.f32 %v1644_v37, %v1642_v35  ;;  %v1752_v61 = vshrl.u32 %v12577_v34, 16  ;;  %v464_v62 = vld [vmem:[%s12571_s20] sm:$0xf]  ;;  %v12625_v35 = vld [vmem:[%s12571_s20 + $0x14] sm:$0xf] }
  0x6a   : > { %v1550_v44 = vor.u32 %v1548_v23, %v1547_v27  ;;  %v1551_v48 = vrot.slane %v1547_v27, 4  ;;  %v1558_v19 = vor.u32 %v1556_v28, %v12550_v29  ;;  %v1700_v53 = vadd.f32 %v1698_v46, %v1696_v31  ;;  %v468_v23 = vld [vmem:[%s12571_s20 + $0x10] sm:$0xf]  ;;  %v823_v28 = vld [vmem:[#allocation2 + $0xc] sm:$0xf] }
  0x6b   : > { %v1498_v42 = vshrl.u32 %v10077_v51, 16  ;;  %v1501_v6 = vshll.u32 %v10077_v51, 16  ;;  %v1607_v18 = vshrl.u32 %v10081_v13, 16  ;;  %v1699_v51 = vadd.f32 %v1697_v41, %v1695_v39  ;;  %v830_v39 = vld [vmem:[#allocation2 + $0x14] sm:$0x1] }
  0x6c   : > { %1506 = vrot.lane.b32.xlu1 %v1495_v17, %s12103_s23  ;;  %v1610_v40 = vshll.u32 %v10081_v13, 16  ;;  %v10083_v52 = vpack.c.bf16 %v1646_v45, %v1646_v45  ;;  %v1560_v54 = vrot.slane %v12550_v29, 4  ;;  %v1654_v55 = vshrl.u32 %v10082_v50, 16  ;;  %v12606_v13 = vld [vmem:[%s12571_s20 + $0xc] sm:$0xf] }
  0x6d   : > { %1345 = vrot.lane.b32.xlu0 %v1341_v14, %s12103_s23  ;;  %v12539_v5 = vrot.slane %v1498_v42, 7  ;;  %v12554_v14 = vrot.slane %v1599_v12, 7  ;;  %v12574_v36 = vrot.slane %v1607_v18, 7  ;;  %v10084_v56 = vpack.c.bf16 %v1699_v51, %v1699_v51  ;;  %v11584_v51 = vld [vmem:[%s15230_s2 + $0xb0] sm:$0xff]  }
  0x6e   : > { %v1662_v57 = vshrl.u32 %v10083_v52, 16  ;;  %v1665_v42 = vshll.u32 %v10083_v52, 16  ;;  %v12582_v58 = vpack.c.bf16 %v1700_v53, %v1700_v53  ;;  %v1656_v26 = vrot.slane %v1654_v55, 7  ;;  %v837_v52 = vld [vmem:[#allocation2 + $0x20] sm:$0x1] }
  0x6f   : > { %v1503_v24 = vor.u32 %v1501_v6, %v12539_v5  ;;  %v1505_v25 = vrot.slane %v12539_v5, 4  ;;  %v1605_v49 = vrot.slane %v12554_v14, 4  ;;  %v1708_v60 = vshrl.u32 %v10084_v56, 16 }
  0x70   : > { %v1612_v63 = vor.u32 %v1610_v40, %v12574_v36  ;;  %v1657_v0 = vshll.u32 %v10082_v50, 16  ;;  %v12590_v1 = vrot.slane %v1662_v57, 7  ;;  %v1716_v2 = vshrl.u32 %v12582_v58, 16  ;;  %v470_v50 = vld [vmem:[%s12571_s20 + $0x18] sm:$0xf] }
  0x71   : > { %1347 = vrot.lane.b32.xlu0 %v1342_v21, %s12103_s23  ;;  %v1504_v43 = vsel %vm12312_vm2, %v1496_v20, %v1503_v24  ;;  %v1604_v21 = vor.u32 %v1602_v30, %v12554_v14  ;;  %v1614_v5 = vrot.slane %v12574_v36, 4  ;;  %v12597_v6 = vrot.slane %v1708_v60, 7  ;;  %v472_v57 = vld [vmem:[%s12571_s20 + $0x20] sm:$0xf] }
  0x72   : > { %1508 = vrot.lane.b32.xlu1 %v1504_v43, %s12103_s23  ;;  %v1711_v7 = vshll.u32 %v10084_v56, 16  ;;  %v1660_v9 = vrot.slane %v1656_v26, 4  ;;  %v1667_v10 = vor.u32 %v1665_v42, %v12590_v1  ;;  %v1747_v12 = vshll.u32 %v12563_v47, 16 }
  0x73   : > { %v1719_v15 = vshll.u32 %v12582_v58, 16  ;;  %v1755_v17 = vshll.u32 %v12577_v34, 16  ;;  %v500_v20 = vshrl.u32 %v464_v62, 16  ;;  %v1613_v24 = vsel %vm12312_vm2, %v1605_v49, %v1612_v63 }
  0x74   : > { %v12618_v27 = vrot.slane %v1716_v2, 7  ;;  %v503_v30 = vshll.u32 %v464_v62, 16  ;;  %v12621_v32 = vor.u32 %v1711_v7, %v12597_v6  ;;  %v1714_v33 = vrot.slane %v12597_v6, 4 }
  0x75   : > { %1401 = vrot.lane.b32.xlu0 %v1396_v4, %s12103_s23  ;;  %v1559_v4 = vsel %vm12312_vm2, %v1551_v48, %v1558_v19  ;;  %v502_v14 = vrot.slane %v500_v20, 7  ;;  %v508_v18 = vshrl.u32 %v465_v3, 16  ;;  %v12630_v37 = vsel %vm12312_vm2, %v1660_v9, %v1667_v10  ;;  %v833_v48 = vld [vmem:[#allocation2 + $0x18] sm:$0xf]  ;;  %v471_v10 = vld [vmem:[%s12571_s20 + $0x1c] sm:$0xf] }
  0x76   : > { %1561 = vrot.lane.b32.xlu1 %v1550_v44, %s12103_s23  ;;  %v511_v41 = vshll.u32 %v465_v3, 16  ;;  %v517_v31 = vshrl.u32 %v466_v8, 16  ;;  %v520_v43 = vshll.u32 %v466_v8, 16  ;;  %v525_v19 = vshrl.u32 %v12606_v13, 16  ;;  %v840_v3 = vld [vmem:[#allocation2 + $0x24] sm:$0xf] }
  0x77   : > { %v505_v44 = vor.u32 %v503_v30, %v502_v14  ;;  %v510_v45 = vrot.slane %v508_v18, 7  ;;  %v506_v46 = vrot.slane %v502_v14, 4  ;;  %v534_v53 = vshrl.u32 %v468_v23, 16 }
  0x78   : > { %v519_v40 = vrot.slane %v517_v31, 7  ;;  %v537_v55 = vshll.u32 %v468_v23, 16  ;;  %v542_v56 = vshrl.u32 %v12625_v35, 16  ;;  %v551_v62 = vshrl.u32 %v470_v50, 16  ;;  %v847_v23 = vld [vmem:[#allocation2 + $0x30] sm:$0xf] }
  0x79   : > { %1454 = vrot.lane.b32.xlu0 %v1450_v16, %s12103_s23  ;;  %v12609_v16 = vrot.slane %v1752_v61, 7  ;;  %v824_v42 = vsel %vm12634_vm6, %v505_v44, %v823_v28  ;;  %v513_v49 = vor.u32 %v511_v41, %v510_v45  ;;  %v12654_v60 = vrot.slane %v534_v53, 7  ;;  %v854_v41 = vld [vmem:[#allocation2 + $0x3c] sm:$0xf] }
  0x7a   : > { %1615 = vrot.lane.b32.xlu1 %v1604_v21, %s12103_s23  ;;  %825 = vst [vmem:[#allocation2 + $0xc] sm:$0xf] %v824_v42  ;;  %v522_v21 = vor.u32 %v520_v43, %v519_v40  ;;  %v544_v61 = vrot.slane %v542_v56, 7  ;;  %v554_v7 = vshll.u32 %v470_v50, 16  ;;  %v553_v9 = vrot.slane %v551_v62, 7 }
  0x7b   : > { %v523_v28 = vrot.slane %v519_v40, 4  ;;  %v568_v30 = vshrl.u32 %v472_v57, 16  ;;  %v571_v31 = vshll.u32 %v472_v57, 16  ;;  %v1721_v43 = vor.u32 %v1719_v15, %v12618_v27  ;;  %v475_v62 = vld [vmem:[%s12571_s20 + $0x2c] sm:$0xf] }
  0x7c   : > { %v834_v29 = vsel %vm12634_vm6, %v522_v21, %v833_v48  ;;  %v549_v8 = vrot.slane %v544_v61, 4  ;;  %v559_v36 = vshrl.u32 %v471_v10, 16  ;;  %v562_v48 = vshll.u32 %v471_v10, 16 }
  0x7d   : > { %1456 = vrot.lane.b32.xlu0 %v1451_v11, %s12103_s23  ;;  %v12602_v11 = vrot.slane %v1744_v59, 7  ;;  %v515_v59 = vrot.slane %v510_v45, 4  ;;  %835 = vst [vmem:[#allocation2 + $0x18] sm:$0xf] %v834_v29  ;;  %v12679_v44 = vrot.slane %v568_v30, 7  ;;  %v545_v40 = vshll.u32 %v12625_v35, 16 }
  0x7e   : > { %1617 = vrot.lane.b32.xlu1 %v1613_v24, %s12103_s23  ;;  %v528_v24 = vshll.u32 %v12606_v13, 16  ;;  %v561_v50 = vrot.slane %v559_v36, 7  ;;  %v1757_v53 = vor.u32 %v1755_v17, %v12609_v16  ;;  %v1722_v34 = vsel %vm12312_vm2, %v1714_v33, %v1721_v43  ;;  %v868_v30 = vld [vmem:[#allocation2 + $0x54] sm:$0xf] }
  0x7f   : > { %v831_v63 = vsel %vm12643_vm7, %v515_v59, %v830_v39  ;;  %v556_v39 = vor.u32 %v554_v7, %v553_v9  ;;  %v573_v15 = vor.u32 %v571_v31, %v12679_v44  ;;  %v1777_v59 = vld [vmem:[#allocation2] sm:$0xf]  ;;  %v1749_v17 = vor.u32 %v1747_v12, %v12602_v11 }
  0x80   : > { %832 = vst [vmem:[#allocation2 + $0x14] sm:$0x1] %v831_v63  ;;  %v564_v57 = vor.u32 %v562_v48, %v561_v50  ;;  %v566_v42 = vrot.slane %v561_v50, 4  ;;  %v574_v21 = vrot.slane %v12679_v44, 4  ;;  %v1723_v12 = vrot.slane %v12618_v27, 4 }
  0x81   : > { %1510 = vrot.lane.b32.xlu0 %v1505_v25, %s12103_s23  ;;  %v12616_v25 = vor.u32 %v1657_v0, %v1656_v26  ;;  %v527_v26 = vrot.slane %v525_v19, 7  ;;  %v514_v0 = vsel %vm12312_vm2, %v506_v46, %v513_v49  ;;  %v848_v45 = vsel %vm12634_vm6, %v556_v39, %v847_v23  ;;  %v858_v49 = vld [vmem:[#allocation2 + $0x44] sm:$0x1]  ;;  %v480_v48 = vld [vmem:[%s12571_s20 + $0x40] sm:$0xf] }
  0x82   : > { %827 = vst.msk [vmem:[#allocation2 + $0x10] sm:$0xf] %vm820_vm3, %v514_v0  ;;  %v557_v46 = vrot.slane %v553_v9, 4  ;;  %v540_v19 = vrot.slane %v12654_v60, 4  ;;  %849 = vst [vmem:[#allocation2 + $0x30] sm:$0xf] %v848_v45  ;;  %v855_v35 = vsel %vm12634_vm6, %v573_v15, %v854_v41 }
  0x83   : > { %v532_v2 = vrot.slane %v527_v26, 4  ;;  %v530_v13 = vor.u32 %v528_v24, %v527_v26  ;;  %1670 = vrot.lane.b32.xlu1 %v12616_v25, %s12103_s23  ;;  %v1669_v25 = vrot.slane %v12590_v1, 4  ;;  %v1778_v1 = vld [vmem:[#allocation2 + $0x4] sm:$0xf]  ;;  %856 = vst [vmem:[#allocation2 + $0x3c] sm:$0xf] %v855_v35 }
  0x84   : > { %v12710_v26 = vld [vmem:[#allocation2 + $0x8] ss:$0 sps:$4 sm:$0x11]   ;;  %v1759_v0 = vrot.slane %v12609_v16, 4  ;;  %v12731_v27 = vcombine.low %v1777_v59, %v1778_v1  ;;  %v596_v9 = vshll.u32 %v475_v62, 16  ;;  %vm5466_vm14 = vcmask 1043456  }
  0x85   : > { %1563 = vrot.lane.b32.xlu0 %v1559_v4, %s12103_s23  ;;  %v844_v4 = vld [vmem:[#allocation2 + $0x2c] sm:$0x1]  ;;  %v838_v20 = vsel %vm12643_vm7, %v532_v2, %v837_v52  ;;  %v531_v58 = vsel %vm12312_vm2, %v523_v28, %v530_v13  ;;  %v1750_v52 = vrot.slane %v12602_v11, 4  ;;  %v476_v11 = vld [vmem:[%s12571_s20 + $0x30] sm:$0xf]  ;;  %v2410_v39 = vshll.u32 %v12710_v26, 16  ;;  %vm13872_vm1 = vmand %vm5466_vm14, %vm821_vm4 }
  0x86   : > { %839 = vst [vmem:[#allocation2 + $0x20] sm:$0x1] %v838_v20  ;;  %v845_v18 = vsel %vm12643_vm7, %v549_v8, %v844_v4  ;;  %836 = vst.msk [vmem:[#allocation2 + $0x1c] sm:$0xf] %vm820_vm3, %v531_v58  ;;  %v861_v16 = vld [vmem:[#allocation2 + $0x48] sm:$0xf] }
  0x87   : > { %846 = vst [vmem:[#allocation2 + $0x2c] sm:$0x1] %v845_v18  ;;  %1724 = vrot.lane.b32.xlu1 %v12621_v32, %s12103_s23  ;;  %v565_v32 = vsel %vm12312_vm2, %v557_v46, %v564_v57  ;;  %v1758_v63 = vsel %vm12312_vm2, %v1750_v52, %v1757_v53  ;;  %v602_v10 = vshrl.u32 %v476_v11, 16  ;;  %v865_v20 = vld [vmem:[#allocation2 + $0x50] sm:$0x1]  ;;  %vm5472_vm15 = vcmask 1040384  }
  0x88   : > { %850 = vst.msk [vmem:[#allocation2 + $0x34] sm:$0xf] %vm820_vm3, %v565_v32  ;;  %v478_v18 = vld [vmem:[%s12571_s20 + $0x38] sm:$0xf]  ;;  %v479_v13 = vld [vmem:[%s12571_s20 + $0x3c] sm:$0xf] }
  0x89   : > { %1565 = vrot.lane.b32.xlu0 %v1560_v54, %s12103_s23  ;;  %v539_v54 = vor.u32 %v537_v55, %v12654_v60  ;;  %v851_v55 = vld [vmem:[#allocation2 + $0x38] sm:$0x1]  ;;  %v604_v41 = vrot.slane %v602_v10, 7  ;;  %v872_v46 = vld [vmem:[#allocation2 + $0x5c] sm:$0x1]  ;;  %v619_v50 = vshrl.u32 %v478_v18, 16 }
  0x8a   : > { %v852_v33 = vsel %vm12643_vm7, %v566_v42, %v851_v55  ;;  %v875_v53 = vld [vmem:[#allocation2 + $0x60] sm:$0xf]  ;;  %v622_v55 = vshll.u32 %v478_v18, 16  ;;  %v482_v59 = vld [vmem:[%s12571_s20 + $0x48] sm:$0xf]  ;;  %v627_v1 = vshrl.u32 %v479_v13, 16 }
  0x8b   : > { %v841_v14 = vsel %vm12634_vm6, %v539_v54, %v840_v3  ;;  %853 = vst [vmem:[#allocation2 + $0x38] sm:$0x1] %v852_v33  ;;  %v477_v3 = vld [vmem:[%s12571_s20 + $0x34] sm:$0xf]  ;;  %v593_v54 = vshrl.u32 %v475_v62, 16  ;;  %1726 = vrot.lane.b32.xlu1 %v1722_v34, %s12103_s23  ;;  %v608_v58 = vrot.slane %v604_v41, 4 }
  0x8c   : > { %842 = vst [vmem:[#allocation2 + $0x24] sm:$0xf] %v841_v14  ;;  %v605_v14 = vshll.u32 %v476_v11, 16  ;;  %v610_v31 = vshrl.u32 %v477_v3, 16  ;;  %v613_v43 = vshll.u32 %v477_v3, 16  ;;  %v636_v34 = vshrl.u32 %v480_v48, 16 }
  0x8d   : > { %1619 = vrot.lane.b32.xlu0 %v1614_v5, %s12103_s23  ;;  %v473_v5 = vld [vmem:[%s12571_s20 + $0x24] sm:$0xf]  ;;  %v595_v24 = vrot.slane %v593_v54, 7  ;;  %v629_v33 = vrot.slane %v627_v1, 7  ;;  %v879_v11 = vld [vmem:[#allocation2 + $0x68] sm:$0x1] }
  0x8e   : > { %v576_v56 = vshrl.u32 %v473_v5, 16  ;;  %v579_v47 = vshll.u32 %v473_v5, 16  ;;  %v612_v15 = vrot.slane %v610_v31, 7  ;;  %v656_v3 = vshll.u32 %v482_v59, 16  ;;  %v889_v18 = vld [vmem:[#allocation2 + $0x78] sm:$0xf] }
  0x8f   : > { %v598_v5 = vor.u32 %v596_v9, %v595_v24  ;;  %v600_v45 = vrot.slane %v595_v24, 4  ;;  %1760 = vrot.lane.b32.xlu1 %v1749_v17, %s12103_s23  ;;  %v639_v17 = vshll.u32 %v480_v48, 16  ;;  %v634_v54 = vrot.slane %v629_v33, 4  ;;  %v886_v9 = vld [vmem:[#allocation2 + $0x74] sm:$0x1] }
  0x90   : > { %v578_v60 = vrot.slane %v576_v56, 7  ;;  %v481_v56 = vld [vmem:[%s12571_s20 + $0x44] sm:$0xf]  ;;  %v615_v57 = vor.u32 %v613_v43, %v612_v15  ;;  %v617_v42 = vrot.slane %v612_v15, 4  ;;  %v485_v31 = vld [vmem:[%s12571_s20 + $0x54] sm:$0xf] }
  0x91   : > { %1672 = vrot.lane.b32.xlu0 %v12630_v37, %s12103_s23  ;;  %v547_v37 = vor.u32 %v545_v40, %v544_v61  ;;  %v474_v61 = vld [vmem:[%s12571_s20 + $0x28] sm:$0xf]  ;;  %v866_v52 = vsel %vm12643_vm7, %v600_v45, %v865_v20  ;;  %v893_v45 = vld [vmem:[#allocation2 + $0x80] sm:$0x1]  ;;  %v486_v15 = vld [vmem:[%s12571_s20 + $0x58] sm:$0xf] }
  0x92   : > { %v583_v2 = vrot.slane %v578_v60, 4  ;;  %v581_v4 = vor.u32 %v579_v47, %v578_v60  ;;  %v585_v7 = vshrl.u32 %v474_v61, 16  ;;  %v588_v29 = vshll.u32 %v474_v61, 16  ;;  %867 = vst [vmem:[#allocation2 + $0x50] sm:$0x1] %v866_v52 }
  0x93   : > { %v548_v6 = vsel %vm12312_vm2, %v540_v19, %v547_v37  ;;  %v607_v19 = vor.u32 %v605_v14, %v604_v41  ;;  %v621_v37 = vrot.slane %v619_v50, 7  ;;  %1764 = vrot.lane.b32.xlu1 %v1759_v0, %s12103_s23  ;;  %v616_v60 = vsel %vm12312_vm2, %v608_v58, %v615_v57  ;;  %v900_v1 = vld [vmem:[#allocation2 + $0x8c] sm:$0x1] }
  0x94   : > { %843 = vst.msk [vmem:[#allocation2 + $0x28] sm:$0xf] %vm820_vm3, %v548_v6  ;;  %v859_v8 = vsel %vm12643_vm7, %v583_v2, %v858_v49  ;;  %v582_v23 = vsel %vm12312_vm2, %v574_v21, %v581_v4  ;;  %v587_v28 = vrot.slane %v585_v7, 7  ;;  %v630_v49 = vshll.u32 %v479_v13, 16  ;;  %v483_v21 = vld [vmem:[%s12571_s20 + $0x4c] sm:$0xf] }
  0x95   : > { %1674 = vrot.lane.b32.xlu0 %v1669_v25, %s12103_s23  ;;  %860 = vst [vmem:[#allocation2 + $0x44] sm:$0x1] %v859_v8  ;;  %857 = vst.msk [vmem:[#allocation2 + $0x40] sm:$0xf] %vm820_vm3, %v582_v23  ;;  %v869_v35 = vsel %vm12634_vm6, %v607_v19, %v868_v30  ;;  %v873_v61 = vsel %vm12643_vm7, %v617_v42, %v872_v46  ;;  %v624_v62 = vor.u32 %v622_v55, %v621_v37  ;;  %v882_v6 = vld [vmem:[#allocation2 + $0x6c] sm:$0xf] }
  0x96   : > { %v590_v44 = vor.u32 %v588_v29, %v587_v28  ;;  %v591_v36 = vrot.slane %v587_v28, 4  ;;  %870 = vst [vmem:[#allocation2 + $0x54] sm:$0xf] %v869_v35  ;;  %v625_v32 = vrot.slane %v621_v37, 4  ;;  %871 = vst.msk [vmem:[#allocation2 + $0x58] sm:$0xf] %vm820_vm3, %v616_v60  ;;  %v632_v29 = vor.u32 %v630_v49, %v629_v33 }
  0x97   : > { %874 = vst [vmem:[#allocation2 + $0x5c] sm:$0x1] %v873_v61  ;;  %v638_v47 = vrot.slane %v636_v34, 7  ;;  %v876_v0 = vsel %vm12634_vm6, %v624_v62, %v875_v53  ;;  %v653_v2 = vshrl.u32 %v482_v59, 16  ;;  %v661_v4 = vshrl.u32 %v483_v21, 16 }
  0x98   : > { %v862_v40 = vsel %vm12634_vm6, %v590_v44, %v861_v16  ;;  %v599_v25 = vsel %vm12312_vm2, %v591_v36, %v598_v5  ;;  %v484_v7 = vld [vmem:[%s12571_s20 + $0x50] sm:$0xf]  ;;  %877 = vst [vmem:[#allocation2 + $0x60] sm:$0xf] %v876_v0  ;;  %v664_v28 = vshll.u32 %v483_v21, 16  ;;  %v633_v24 = vsel %vm12312_vm2, %v625_v32, %v632_v29 }
  0x99   : > { %1728 = vrot.lane.b32.xlu0 %v1723_v12, %s12103_s23  ;;  %863 = vst [vmem:[#allocation2 + $0x48] sm:$0xf] %v862_v40  ;;  %864 = vst.msk [vmem:[#allocation2 + $0x4c] sm:$0xf] %vm820_vm3, %v599_v25  ;;  %v644_v12 = vshrl.u32 %v481_v56, 16  ;;  %v641_v8 = vor.u32 %v639_v17, %v638_v47  ;;  %v642_v16 = vrot.slane %v638_v47, 4  ;;  %v880_v14 = vsel %vm12643_vm7, %v634_v54, %v879_v11 }
  0x9a   : > { %v655_v20 = vrot.slane %v653_v2, 7  ;;  %v663_v23 = vrot.slane %v661_v4, 7  ;;  %v670_v41 = vshrl.u32 %v484_v7, 16  ;;  %878 = vst.msk [vmem:[#allocation2 + $0x64] sm:$0xf] %vm820_vm3, %v633_v24  ;;  %v673_v58 = vshll.u32 %v484_v7, 16 }
  0x9b   : > { %v646_v10 = vrot.slane %v644_v12, 7  ;;  %v883_v30 = vsel %vm12634_vm6, %v641_v8, %v882_v6  ;;  %881 = vst [vmem:[#allocation2 + $0x68] sm:$0x1] %v880_v14  ;;  %v896_v5 = vld [vmem:[#allocation2 + $0x84] sm:$0xf]  ;;  %v678_v52 = vshrl.u32 %v485_v31, 16 }
  0x9c   : > { %884 = vst [vmem:[#allocation2 + $0x6c] sm:$0xf] %v883_v30  ;;  %v658_v44 = vor.u32 %v656_v3, %v655_v20  ;;  %v659_v36 = vrot.slane %v655_v20, 4  ;;  %v666_v46 = vor.u32 %v664_v28, %v663_v23  ;;  %v668_v48 = vrot.slane %v663_v23, 4  ;;  %v487_v53 = vld [vmem:[%s12571_s20 + $0x5c] sm:$0xf] }
  0x9d   : > { %1762 = vrot.lane.b32.xlu0 %v1758_v63, %s12103_s23  ;;  %v647_v63 = vshll.u32 %v481_v56, 16  ;;  %v651_v13 = vrot.slane %v646_v10, 4  ;;  %v672_v19 = vrot.slane %v670_v41, 7  ;;  %v488_v55 = vld [vmem:[%s12571_s20 + $0x60] sm:$0xf]  ;;  %v680_v37 = vrot.slane %v678_v52, 7  ;;  %s15116_s23 = scalar_lea.vmem %s15236_s8, %s10055_s16 }
  0x9e   : > { %v890_v25 = vsel %vm12634_vm6, %v658_v44, %v889_v18  ;;  %v667_v56 = vsel %vm12312_vm2, %v659_v36, %v666_v46  ;;  %v894_v57 = vsel %vm12643_vm7, %v668_v48, %v893_v45  ;;  %v681_v59 = vshll.u32 %v485_v31, 16  ;;  %v903_v21 = vld [vmem:[#allocation2 + $0x90] sm:$0xf]  ;;  %v910_v47 = vld [vmem:[#allocation2 + $0x9c] sm:$0xf]  ;;  %v962_v44 = vpop.permute.xlu1 %961 }
  0x9f   : > { %v649_v43 = vor.u32 %v647_v63, %v646_v10  ;;  %v887_v40 = vsel %vm12643_vm7, %v651_v13, %v886_v9  ;;  %891 = vst [vmem:[#allocation2 + $0x78] sm:$0xf] %v890_v25  ;;  %v675_v35 = vor.u32 %v673_v58, %v672_v19  ;;  %v676_v42 = vrot.slane %v672_v19, 4  ;;  %892 = vst.msk [vmem:[#allocation2 + $0x7c] sm:$0xf] %vm820_vm3, %v667_v56  ;;  %v958_v13 = vpop.permute.xlu0 %957 }
  0xa0   : > { %888 = vst [vmem:[#allocation2 + $0x74] sm:$0x1] %v887_v40  ;;  %895 = vst [vmem:[#allocation2 + $0x80] sm:$0x1] %v894_v57  ;;  %v687_v49 = vshrl.u32 %v486_v15, 16  ;;  %v690_v34 = vshll.u32 %v486_v15, 16  ;;  %v683_v32 = vor.u32 %v681_v59, %v680_v37 }
  0xa1   : > { %v650_v50 = vsel %vm12312_vm2, %v642_v16, %v649_v43  ;;  %v897_v17 = vsel %vm12634_vm6, %v675_v35, %v896_v5  ;;  %v695_v60 = vshrl.u32 %v487_v53, 16  ;;  %v698_v61 = vshll.u32 %v487_v53, 16  ;;  %v907_v12 = vld [vmem:[#allocation2 + $0x98] sm:$0x1]  ;;  %v968_v63 = vld [vmem:[#allocation2 + $0xc] sm:$0xf] }
  0xa2   : > { %885 = vst.msk [vmem:[#allocation2 + $0x70] sm:$0xf] %vm820_vm3, %v650_v50  ;;  %v704_v62 = vshrl.u32 %v488_v55, 16  ;;  %898 = vst [vmem:[#allocation2 + $0x84] sm:$0xf] %v897_v17  ;;  %v685_v6 = vrot.slane %v680_v37, 4  ;;  %v684_v54 = vsel %vm12312_vm2, %v676_v42, %v683_v32  ;;  %v969_v19 = vsel %vm12795_vm10, %v958_v13, %v968_v63 }
  0xa3   : > { %v689_v33 = vrot.slane %v687_v49, 7  ;;  %v707_v11 = vshll.u32 %v488_v55, 16  ;;  %v975_v0 = vld [vmem:[#allocation2 + $0x14] sm:$0x1]  ;;  %v697_v2 = vrot.slane %v695_v60, 7  ;;  %v2405_v23 = vshll.u32 %v12731_v27, 16 }
  0xa4   : > { %v706_v3 = vrot.slane %v704_v62, 7  ;;  %v489_v4 = vld [vmem:[%s12571_s20 + $0x64] sm:$0xf]  ;;  %v490_v7 = vld [vmem:[%s12571_s20 + $0x68] sm:$0xf]  ;;  %v901_v8 = vsel %vm12643_vm7, %v685_v6, %v900_v1  ;;  %v976_v58 = vsel %vm12806_vm11, %v962_v44, %v975_v0 }
  0xa5   : > { %v692_v16 = vor.u32 %v690_v34, %v689_v33  ;;  %v693_v9 = vrot.slane %v689_v33, 4  ;;  %v491_v10 = vld [vmem:[%s12571_s20 + $0x6c] sm:$0xf]  ;;  %899 = vst.msk [vmem:[#allocation2 + $0x88] sm:$0xf] %vm820_vm3, %v684_v54  ;;  %v700_v28 = vor.u32 %v698_v61, %v697_v2  ;;  %v702_v24 = vrot.slane %v697_v2, 4 }
  0xa6   : > { %902 = vst [vmem:[#allocation2 + $0x8c] sm:$0x1] %v901_v8  ;;  %v709_v30 = vor.u32 %v707_v11, %v706_v3  ;;  %v710_v18 = vrot.slane %v706_v3, 4  ;;  %v712_v41 = vshrl.u32 %v489_v4, 16  ;;  %v715_v31 = vshll.u32 %v489_v4, 16 }
  0xa7   : > { %v904_v14 = vsel %vm12634_vm6, %v692_v16, %v903_v21  ;;  %v492_v43 = vld [vmem:[%s12571_s20 + $0x70] sm:$0xf]  ;;  %v701_v36 = vsel %vm12312_vm2, %v693_v9, %v700_v28  ;;  %v908_v45 = vsel %vm12643_vm7, %v702_v24, %v907_v12  ;;  %v721_v46 = vshrl.u32 %v490_v7, 16  ;;  %v493_v48 = vld [vmem:[%s12571_s20 + $0x74] sm:$0xf] }
  0xa8   : > { %905 = vst [vmem:[#allocation2 + $0x90] sm:$0xf] %v904_v14  ;;  %v911_v5 = vsel %vm12634_vm6, %v709_v30, %v910_v47  ;;  %906 = vst.msk [vmem:[#allocation2 + $0x94] sm:$0xf] %vm820_vm3, %v701_v36  ;;  %v714_v15 = vrot.slane %v712_v41, 7  ;;  %v724_v40 = vshll.u32 %v490_v7, 16  ;;  %v1017_v30 = vpop.permute.xlu1 %1016 }
  0xa9   : > { %912 = vst [vmem:[#allocation2 + $0x9c] sm:$0xf] %v911_v5  ;;  %909 = vst [vmem:[#allocation2 + $0x98] sm:$0x1] %v908_v45  ;;  %v914_v50 = vld [vmem:[#allocation2 + $0xa4] sm:$0x1] }
  0xaa   : > { %970 = vst [vmem:[#allocation2 + $0xc] sm:$0xf] %v969_v19  ;;  %977 = vst [vmem:[#allocation2 + $0x14] sm:$0x1] %v976_v58  ;;  %v917_v25 = vld [vmem:[#allocation2 + $0xa8] sm:$0xf]  ;;  %v717_v35 = vor.u32 %v715_v31, %v714_v15 }
  0xab   : > { %v723_v52 = vrot.slane %v721_v46, 7  ;;  %v729_v53 = vshrl.u32 %v491_v10, 16  ;;  %v732_v55 = vshll.u32 %v491_v10, 16  ;;  %v738_v56 = vshrl.u32 %v492_v43, 16  ;;  %v924_v42 = vld [vmem:[#allocation2 + $0xb4] sm:$0xf] }
  0xac   : > { %v719_v57 = vrot.slane %v714_v15, 4  ;;  %v741_v37 = vshll.u32 %v492_v43, 16  ;;  %v921_v59 = vld [vmem:[#allocation2 + $0xb0] sm:$0x1]  ;;  %v746_v1 = vshrl.u32 %v493_v48, 16  ;;  %v718_v62 = vsel %vm12312_vm2, %v710_v18, %v717_v35 }
  0xad   : > { %v726_v34 = vor.u32 %v724_v40, %v723_v52  ;;  %v727_v17 = vrot.slane %v723_v52, 4  ;;  %v731_v21 = vrot.slane %v729_v53, 7  ;;  %v740_v60 = vrot.slane %v738_v56, 7  ;;  %v494_v61 = vld [vmem:[%s12571_s20 + $0x78] sm:$0xf]  ;;  %v1071_v52 = vpop.permute.xlu1 %1070 }
  0xae   : > { %v915_v32 = vsel %vm12643_vm7, %v719_v57, %v914_v50  ;;  %v748_v6 = vrot.slane %v746_v1, 7  ;;  %v749_v33 = vshll.u32 %v493_v48, 16  ;;  %v928_v47 = vld [vmem:[#allocation2 + $0xbc] sm:$0x1]  ;;  %913 = vst.msk [vmem:[#allocation2 + $0xa0] sm:$0xf] %vm820_vm3, %v718_v62 }
  0xaf   : > { %916 = vst [vmem:[#allocation2 + $0xa4] sm:$0x1] %v915_v32  ;;  %v918_v11 = vsel %vm12634_vm6, %v726_v34, %v917_v25  ;;  %v734_v12 = vor.u32 %v732_v55, %v731_v21  ;;  %v736_v63 = vrot.slane %v731_v21, 4  ;;  %v743_v0 = vor.u32 %v741_v37, %v740_v60  ;;  %v1026_v2 = vld [vmem:[#allocation2 + $0x18] sm:$0xf] }
  0xb0   : > { %919 = vst [vmem:[#allocation2 + $0xa8] sm:$0xf] %v918_v11  ;;  %v744_v3 = vrot.slane %v740_v60, 4  ;;  %v751_v4 = vor.u32 %v749_v33, %v748_v6  ;;  %v753_v7 = vrot.slane %v748_v6, 4  ;;  %v755_v54 = vshrl.u32 %v494_v61, 16 }
  0xb1   : > { %v1030_v8 = vld [vmem:[#allocation2 + $0x20] sm:$0x1]  ;;  %v735_v16 = vsel %vm12312_vm2, %v727_v17, %v734_v12  ;;  %v925_v9 = vsel %vm12634_vm6, %v743_v0, %v924_v42  ;;  %v922_v10 = vsel %vm12643_vm7, %v736_v63, %v921_v59  ;;  %v758_v28 = vshll.u32 %v494_v61, 16  ;;  %v495_v24 = vld [vmem:[%s12571_s20 + $0x7c] sm:$0xf]  ;;  %v1126_v32 = vpop.permute.xlu1 %1125 }
  0xb2   : > { %v1080_v14 = vld [vmem:[#allocation2 + $0x24] sm:$0xf]  ;;  %v1809_v18 = vld [vmem:[#allocation2 + $0xc] sm:$0xf]  ;;  %920 = vst.msk [vmem:[#allocation2 + $0xac] sm:$0xf] %vm820_vm3, %v735_v16  ;;  %v752_v41 = vsel %vm12312_vm2, %v744_v3, %v751_v4  ;;  %v929_v31 = vsel %vm12643_vm7, %v753_v7, %v928_v47  ;;  %v1027_v43 = vsel %vm12795_vm10, %v1017_v30, %v1026_v2 }
  0xb3   : > { %926 = vst [vmem:[#allocation2 + $0xb4] sm:$0xf] %v925_v9  ;;  %923 = vst [vmem:[#allocation2 + $0xb0] sm:$0x1] %v922_v10  ;;  %vm2401_vm12 = vsmask.f32 7424  ;;  %v1081_v57 = vsel %vm12795_vm10, %v1071_v52, %v1080_v14 }
  0xb4   : > { %v11531_v13 = vld [vmem:[#allocation2 + $0x14] ss:$0 sps:$4 sm:$0x11]   ;;  %927 = vst.msk [vmem:[#allocation2 + $0xb8] sm:$0xf] %vm820_vm3, %v752_v41  ;;  %v757_v44 = vrot.slane %v755_v54, 7 }
  0xb5   : > { %930 = vst [vmem:[#allocation2 + $0xbc] sm:$0x1] %v929_v31  ;;  %1028 = vst [vmem:[#allocation2 + $0x18] sm:$0xf] %v1027_v43  ;;  %v2403_v5 = vshrl.u32 %v12731_v27, 16  ;;  %v763_v48 = vshrl.u32 %v495_v24, 16  ;;  %v1180_v7 = vpop.permute.xlu1 %1179 }
  0xb6   : > { %v1779_v45 = vld [vmem:[#allocation2 + $0xc] sm:$0xf]  ;;  %v931_v46 = vld [vmem:[#allocation2 + $0xc0] sm:$0xf]  ;;  %v2407_v15 = vrot.slane %v2405_v23, 1  ;;  %v760_v40 = vor.u32 %v758_v28, %v757_v44  ;;  %v766_v25 = vshll.u32 %v495_v24, 16 }
  0xb7   : > { %v960_v49 = vpop.permute.xlu0 %959  ;;  %v1084_v53 = vld [vmem:[#allocation2 + $0x2c] sm:$0x1]  ;;  %v2422_v56 = vshll.u32 %v11531_v13, 16  ;;  %v765_v35 = vrot.slane %v763_v48, 7  ;;  %v1135_v42 = vld [vmem:[#allocation2 + $0x30] sm:$0xf] }
  0xb8   : > { %972 = vst.msk [vmem:[#allocation2 + $0x10] sm:$0xf] %vm966_vm8, %v960_v49  ;;  %v932_v59 = vsel %vm12634_vm6, %v760_v40, %v931_v46  ;;  %v761_v23 = vrot.slane %v757_v44, 4  ;;  %1082 = vst [vmem:[#allocation2 + $0x24] sm:$0xf] %v1081_v57  ;;  %v2412_v34 = vrot.slane %v2410_v39, 1  ;;  %v2408_v60 = vor.u32 %v2407_v15, %v2403_v5 }
  0xb9   : > { %933 = vst [vmem:[#allocation2 + $0xc0] sm:$0xf] %v932_v59  ;;  %v935_v17 = vld [vmem:[#allocation2 + $0xc8] sm:$0x1]  ;;  %v768_v61 = vor.u32 %v766_v25, %v765_v35  ;;  %v770_v62 = vrot.slane %v765_v35, 4  ;;  %v2424_v33 = vrot.slane %v2422_v56, 1  ;;  %v1136_v47 = vsel %vm12795_vm10, %v1126_v32, %v1135_v42  ;;  %v1073_v13 = vpop.permute.xlu1 %1072 }
  0xba   : > { %v1189_v11 = vld [vmem:[#allocation2 + $0x3c] sm:$0xf]  ;;  %v11545_v26 = vld [vmem:[#allocation2 + $0x14] ss:$0 sps:$4 sm:$0x11]   ;;  %v2413_v3 = vsel %vm2401_vm12, %v2408_v60, %v2412_v34  ;;  %v11620_v60 = vld [vmem:[%s15230_s2 + $0xa0] sm:$0xff]  }
  0xbb   : > { %v1021_v36 = vpop.permute.xlu0 %1020  ;;  %v769_v12 = vsel %vm12312_vm2, %v761_v23, %v768_v61  ;;  %v936_v63 = vsel %vm12643_vm7, %v770_v62, %v935_v17  ;;  %1137 = vst [vmem:[#allocation2 + $0x30] sm:$0xf] %v1136_v47  ;;  %v1190_v16 = vsel %vm12795_vm10, %v1180_v7, %v1189_v11  ;;  %v2446_v10 = vshll.u32 %v11545_v26, 16  ;;  %v1139_v24 = vld [vmem:[#allocation2 + $0x38] sm:$0x1] }
  0xbc   : > { %v1031_v19 = vsel %vm12806_vm11, %v1021_v36, %v1030_v8  ;;  %934 = vst.msk [vmem:[#allocation2 + $0xc4] sm:$0xf] %vm820_vm3, %v769_v12  ;;  %937 = vst [vmem:[#allocation2 + $0xc8] sm:$0x1] %v936_v63  ;;  %v11915_v43 = vld [vmem:[%s15230_s2 + $0xb8] sm:$0xff]  }
  0xbd   : > { %1032 = vst [vmem:[#allocation2 + $0x20] sm:$0x1] %v1031_v19  ;;  %1191 = vst [vmem:[#allocation2 + $0x3c] sm:$0xf] %v1190_v16  ;;  %v1811_v5 = vld [vmem:[#allocation2 + $0x18] sm:$0xf] }
  0xbe   : > { %1083 = vst.msk [vmem:[#allocation2 + $0x28] sm:$0xf] %vm966_vm8, %v1073_v13  ;;  %v2448_v25 = vrot.slane %v2446_v10, 1  ;;  %v1781_v42 = vld [vmem:[#allocation2 + $0x18] sm:$0xf]  ;;  %v1182_v23 = vpop.permute.xlu1 %1181  ;;  %vm13885_vm3 = vmand %vm5472_vm15, %vm496_vm0 }
  0xbf   : > { %v1810_v58 = vld [vmem:[#allocation2 + $0x10] sm:$0xf]  ;;  %v1075_v1 = vpop.permute.xlu0 %1074  ;;  %1192 = vst.msk [vmem:[#allocation2 + $0x40] sm:$0xf] %vm966_vm8, %v1182_v23 }
  0xc0   : > { %v1780_v50 = vld [vmem:[#allocation2 + $0x10] sm:$0xf]  ;;  %v12856_v55 = vcombine.low %v1809_v18, %v1810_v58  ;;  %v1085_v21 = vsel %vm12806_vm11, %v1075_v1, %v1084_v53  ;;  %v11601_v18 = vld [vmem:[%s15230_s2 + $0xa8] sm:$0xff]   ;;  %v1193_v58 = vld [vmem:[#allocation2 + $0x44] sm:$0x1] }
  0xc1   : > { %v12860_v37 = vcombine.low %v1779_v45, %v1780_v50  ;;  %1086 = vst [vmem:[#allocation2 + $0x2c] sm:$0x1] %v1085_v21  ;;  %v1841_v45 = vld [vmem:[#allocation2 + $0x18] sm:$0xf]  ;;  %v1244_v1 = vld [vmem:[#allocation2 + $0x48] sm:$0xf] }
  0xc2   : > { %v2417_v49 = vshll.u32 %v12856_v55, 16  ;;  %v2415_v38 = vshrl.u32 %v12856_v55, 16  ;;  %v1235_v7 = vpop.permute.xlu1 %1234  ;;  %v1248_v13 = vld [vmem:[#allocation2 + $0x50] sm:$0x1] }
  0xc3   : > { %v2441_v39 = vshll.u32 %v12860_v37, 16  ;;  %v1019_v0 = vpop.permute.xlu0 %1018  ;;  %v2439_v9 = vshrl.u32 %v12860_v37, 16 }
  0xc4   : > { %v2419_v6 = vrot.slane %v2417_v49, 1  ;;  %1029 = vst.msk [vmem:[#allocation2 + $0x1c] sm:$0xf] %vm966_vm8, %v1019_v0  ;;  %v11540_v4 = vld [vmem:[#allocation2 + $0x20] ss:$0 sps:$4 sm:$0x11]  }
  0xc5   : > { %v11543_v8 = vld [vmem:[#allocation2 + $0x20] ss:$0 sps:$4 sm:$0x11]   ;;  %v2443_v30 = vrot.slane %v2441_v39, 1  ;;  %v2458_v41 = vshll.u32 %v11540_v4, 16 }
  0xc6   : > { %v2420_v2 = vor.u32 %v2419_v6, %v2415_v38  ;;  %v11552_v14 = vld [vmem:[#allocation2 + $0x20] ss:$0 sps:$4 sm:$0x11]   ;;  %v2434_v44 = vshll.u32 %v11543_v8, 16  ;;  %v1845_v6 = vld [vmem:[#allocation2 + $0x30] sm:$0xf] }
  0xc7   : > { %v1128_v28 = vpop.permute.xlu0 %1127  ;;  %v2482_v48 = vshll.u32 %v11552_v14, 16  ;;  %v2444_v40 = vor.u32 %v2443_v30, %v2439_v9  ;;  %v2460_v35 = vrot.slane %v2458_v41, 1  ;;  %v1815_v4 = vld [vmem:[#allocation2 + $0x30] sm:$0xf]  ;;  %v1814_v8 = vld [vmem:[#allocation2 + $0x28] sm:$0xf] }
  0xc8   : > { %v2425_v54 = vsel %vm2401_vm12, %v2420_v2, %v2424_v33  ;;  %1138 = vst.msk [vmem:[#allocation2 + $0x34] sm:$0xf] %vm966_vm8, %v1128_v28  ;;  %v11548_v31 = vld [vmem:[#allocation2 + $0x2c] ss:$0 sps:$4 sm:$0x11]   ;;  %v2436_v49 = vrot.slane %v2434_v44, 1  ;;  %v1245_v28 = vsel %vm12795_vm10, %v1235_v7, %v1244_v1 }
  0xc9   : > { %3251 = vmatprep.mubr.bf16.mxu0 %v2425_v54  ;;  %v11550_v36 = vld [vmem:[#allocation2 + $0x2c] ss:$0 sps:$4 sm:$0x11]   ;;  %v2494_v46 = vshll.u32 %v11548_v31, 16  ;;  %v2484_v38 = vrot.slane %v2482_v48, 1  ;;  %v2449_v54 = vsel %vm2401_vm12, %v2444_v40, %v2448_v25  ;;  %v11639_v31 = vld [vmem:[%s15230_s2 + $0x98] sm:$0xff]   ;;  %v1289_v25 = vpop.permute.xlu1 %1288 }
  0xca   : > { %3252 = vmatmul.mubr.bf16.vlgmr.msra.gmra.mxu0 %v2413_v3  ;;  %v2470_v52 = vshll.u32 %v11550_v36, 16  ;;  %v1813_v2 = vld [vmem:[#allocation2 + $0x24] sm:$0xf]  ;;  %v1298_v14 = vld [vmem:[#allocation2 + $0x54] sm:$0xf] }
  0xcb   : > { %11248 = vmatpush3.bf16.msra.mxu0 %v11915_v43  ;;  %v1130_v19 = vpop.permute.xlu0 %1129  ;;  %v1812_v15 = vld [vmem:[#allocation2 + $0x1c] sm:$0xf]  ;;  %v12901_v34 = vrot.slane %v2494_v46, 1  ;;  %v12926_v41 = vcombine.low %v1813_v2, %v1814_v8  ;;  %1246 = vst [vmem:[#allocation2 + $0x48] sm:$0xf] %v1245_v28  ;;  %v12938_v48 = vld [vmem:[%s15230_s2 + $0x90] sm:$0xff]   ;;  %v1299_v23 = vsel %vm12795_vm10, %v1289_v25, %v1298_v14 }
  0xcc   : > { %11249 = vmatprep.subr.bf16.mxu0 %v11584_v51  ;;  %v1842_v50 = vld [vmem:[#allocation2 + $0x1c] sm:$0xf]  ;;  %v1140_v53 = vsel %vm12806_vm11, %v1130_v19, %v1139_v24  ;;  %v12897_v56 = vcombine.low %v1811_v5, %v1812_v15  ;;  %v12903_v17 = vrot.slane %v2470_v52, 1  ;;  %v1784_v46 = vld [vmem:[#allocation2 + $0x28] sm:$0xf] }
  0xcd   : > { %v12899_v57 = vcombine.low %v1841_v45, %v1842_v50  ;;  %v1782_v59 = vld [vmem:[#allocation2 + $0x1c] sm:$0xf]  ;;  %1141 = vst [vmem:[#allocation2 + $0x38] sm:$0x1] %v1140_v53  ;;  %v2487_v15 = vshrl.u32 %v12926_v41, 16  ;;  %v2489_v50 = vshll.u32 %v12926_v41, 16 }
  0xce   : > { %v12905_v21 = vcombine.low %v1781_v42, %v1782_v59  ;;  %v2451_v61 = vshrl.u32 %v12897_v56, 16  ;;  %v2453_v62 = vshll.u32 %v12897_v56, 16  ;;  %v1783_v40 = vld [vmem:[#allocation2 + $0x24] sm:$0xf]  ;;  %1300 = vst [vmem:[#allocation2 + $0x54] sm:$0xf] %v1299_v23 }
  0xcf   : > { %11250 = vmatpush3.bf16.msra.mxu0 %v11584_v51  ;;  %v2429_v32 = vshll.u32 %v12899_v57, 16  ;;  %v1184_v33 = vpop.permute.xlu0 %1183  ;;  %v2427_v47 = vshrl.u32 %v12899_v57, 16  ;;  %v1846_v26 = vld [vmem:[#allocation2 + $0x34] sm:$0xf]  ;;  %v1844_v51 = vld [vmem:[#allocation2 + $0x28] sm:$0xf] }
  0xd0   : > { %11251 = vmatprep.subr.bf16.mxu0 %v11601_v18  ;;  %v2477_v11 = vshll.u32 %v12905_v21, 16  ;;  %v1816_v39 = vld [vmem:[#allocation2 + $0x34] sm:$0xf]  ;;  %v1194_v12 = vsel %vm12806_vm11, %v1184_v33, %v1193_v58  ;;  %v2455_v63 = vrot.slane %v2453_v62, 1  ;;  %v12918_v3 = vcombine.low %v1845_v6, %v1846_v26  ;;  %v1818_v7 = vld [vmem:[#allocation2 + $0x40] sm:$0xf] }
  0xd1   : > { %v2431_v0 = vrot.slane %v2429_v32, 1  ;;  %1195 = vst [vmem:[#allocation2 + $0x44] sm:$0x1] %v1194_v12  ;;  %v2475_v16 = vshrl.u32 %v12905_v21, 16  ;;  %v12922_v10 = vcombine.low %v1815_v4, %v1816_v39  ;;  %v2491_v1 = vrot.slane %v2489_v50, 1  ;;  %v11569_v12 = vld [vmem:[%s15230_s2 + $0x38] sm:$0xff]  }
  0xd2   : > { %v2479_v9 = vrot.slane %v2477_v11, 1  ;;  %v2456_v24 = vor.u32 %v2455_v63, %v2451_v61  ;;  %v2499_v5 = vshrl.u32 %v12918_v3, 16  ;;  %v2501_v45 = vshll.u32 %v12918_v3, 16  ;;  %v1302_v32 = vld [vmem:[#allocation2 + $0x5c] sm:$0x1] }
  0xd3   : > { %11252 = vmatpush3.bf16.msra.mxu0 %v11601_v18  ;;  %v2432_v30 = vor.u32 %v2431_v0, %v2427_v47  ;;  %v1843_v18 = vld [vmem:[#allocation2 + $0x24] sm:$0xf]  ;;  %v1237_v43 = vpop.permute.xlu0 %1236  ;;  %v2525_v61 = vshll.u32 %v12922_v10, 16  ;;  %v1847_v47 = vld [vmem:[#allocation2 + $0x3c] sm:$0xf]  ;;  %v12954_v26 = vcombine.low %v1783_v40, %v1784_v46  ;;  %v2492_v0 = vor.u32 %v2491_v1, %v2487_v15  ;;  %v11577_v40 = vld [vmem:[%s15230_s2 + $0x30] sm:$0xff]  }
  0xd4   : > { %11253 = vmatprep.subr.bf16.mxu0 %v11620_v60  ;;  %v12931_v44 = vcombine.low %v1843_v18, %v1844_v51  ;;  %v2480_v36 = vor.u32 %v2479_v9, %v2475_v16  ;;  %1247 = vst.msk [vmem:[#allocation2 + $0x4c] sm:$0xf] %vm966_vm8, %v1237_v43  ;;  %v2461_v19 = vsel %vm2401_vm12, %v2456_v24, %v2460_v35  ;;  %v11554_v59 = vld [vmem:[#allocation2 + $0x38] ss:$0 sps:$4 sm:$0x11]   ;;  %v2503_v35 = vrot.slane %v2501_v45, 1 }
  0xd5   : > { %v2437_v58 = vsel %vm2401_vm12, %v2432_v30, %v2436_v49  ;;  %3259 = vmatprep.mubr.bf16.mxu0 %v2461_v19  ;;  %v11556_v49 = vld [vmem:[#allocation2 + $0x38] ss:$0 sps:$4 sm:$0x11]   ;;  %v1848_v11 = vld [vmem:[#allocation2 + $0x40] sm:$0xf]  ;;  %v2527_v2 = vrot.slane %v2525_v61, 1  ;;  %v2497_v14 = vsel %vm2401_vm12, %v2492_v0, %v12901_v34 }
  0xd6   : > { %11215 = vmatprep.mubr.bf16.mxu1 %v2437_v58  ;;  %v2463_v52 = vshrl.u32 %v12931_v44, 16  ;;  %v2465_v53 = vshll.u32 %v12931_v44, 16  ;;  %v12948_v42 = vsel %vm2401_vm12, %v2480_v36, %v2484_v38  ;;  %3260 = vmatmul.mubr.bf16.gmra.mxu0 %v2449_v54  ;;  %v2504_v33 = vor.u32 %v2503_v35, %v2499_v5  ;;  %v12956_v39 = vld [vmem:[#allocation2 + $0x2c] ss:$0 sps:$4 sm:$0x11]   ;;  %v1291_v54 = vpop.permute.xlu1 %1290  ;;  %v11576_v30 = vld [vmem:[%s15230_s2 + $0x70] sm:$0xff]  }
  0xd7   : > { %11254 = vmatpush3.bf16.msra.mxu0 %v11620_v60  ;;  %v2523_v60 = vshrl.u32 %v12922_v10, 16  ;;  %v1239_v62 = vpop.permute.xlu0 %1238  ;;  %v2506_v38 = vshll.u32 %v11554_v59, 16  ;;  %v2530_v4 = vshll.u32 %v11556_v49, 16  ;;  %v1353_v16 = vld [vmem:[#allocation2 + $0x60] sm:$0xf]  ;;  %v12963_v9 = vcombine.low %v1847_v47, %v1848_v11  ;;  %v11657_v5 = vld [vmem:[%s15230_s2 + $0x88] sm:$0xff]   ;;  %3267 = vmatprep.mubr.bf16.mxu0 %v2497_v14 }
  0xd8   : > { %11255 = vmatprep.subr.bf16.mxu0 %v11639_v31  ;;  %v2467_v6 = vrot.slane %v2465_v53, 1  ;;  %v1249_v63 = vsel %vm12806_vm11, %v1239_v62, %v1248_v13  ;;  %v11558_v28 = vld [vmem:[#allocation2 + $0x44] ss:$0 sps:$4 sm:$0x11]   ;;  %v2511_v24 = vshrl.u32 %v12954_v26, 16  ;;  %v2513_v43 = vshll.u32 %v12954_v26, 16 }
  0xd9   : > { %1250 = vst [vmem:[#allocation2 + $0x50] sm:$0x1] %v1249_v63  ;;  %v2508_v51 = vrot.slane %v2506_v38, 1  ;;  %1301 = vst.msk [vmem:[#allocation2 + $0x58] sm:$0xf] %vm966_vm8, %v1291_v54  ;;  %v2528_v18 = vor.u32 %v2527_v2, %v2523_v60  ;;  %v2535_v58 = vshrl.u32 %v12963_v9, 16 }
  0xda   : > { %v2468_v8 = vor.u32 %v2467_v6, %v2463_v52  ;;  %v1817_v13 = vld [vmem:[#allocation2 + $0x3c] sm:$0xf]  ;;  %v11562_v36 = vld [vmem:[#allocation2 + $0x44] ss:$0 sps:$4 sm:$0x11]   ;;  %v2537_v34 = vshll.u32 %v12963_v9, 16  ;;  %v1344_v23 = vpop.permute.xlu1 %1343 }
  0xdb   : > { %11256 = vmatpush3.bf16.msra.mxu0 %v11639_v31  ;;  %v2532_v31 = vrot.slane %v2530_v4, 1  ;;  %v1293_v45 = vpop.permute.xlu0 %1292  ;;  %v2509_v19 = vsel %vm2401_vm12, %v2504_v33, %v2508_v51  ;;  %v1849_v15 = vld [vmem:[#allocation2 + $0x48] sm:$0xf]  ;;  %v1850_v50 = vld [vmem:[#allocation2 + $0x4c] sm:$0xf]  ;;  %v2542_v53 = vshll.u32 %v11558_v28, 16  ;;  %v12993_v61 = vcombine.low %v1817_v13, %v1818_v7 }
  0xdc   : > { %11257 = vmatprep.subr.bf16.mxu0 %v12938_v48  ;;  %v2473_v46 = vsel %vm2401_vm12, %v2468_v8, %v12903_v17  ;;  %v1303_v25 = vsel %vm12806_vm11, %v1293_v45, %v1302_v32  ;;  %v2515_v17 = vrot.slane %v2513_v43, 1  ;;  %v1786_v59 = vld [vmem:[#allocation2 + $0x34] sm:$0xf]  ;;  %v11585_v35 = vld [vmem:[%s15230_s2 + $0x68] sm:$0xff]   ;;  %v2539_v49 = vrot.slane %v2537_v34, 1  ;;  %v11658_v33 = vld [vmem:[%s15230_s2 + $0x80] sm:$0xff]  }
  0xdd   : > { %11216 = vmatmul.mubr.bf16.vlgmr.msra.gmra.mxu1 %v2473_v46  ;;  %v2533_v52 = vsel %vm2401_vm12, %v2528_v18, %v2532_v31  ;;  %1304 = vst [vmem:[#allocation2 + $0x5c] sm:$0x1] %v1303_v25  ;;  %v1407_v1 = vld [vmem:[#allocation2 + $0x6c] sm:$0xf]  ;;  %v2518_v60 = vshll.u32 %v12956_v39, 16  ;;  %v2566_v62 = vshll.u32 %v11562_v36, 16  ;;  %v13001_v11 = vcombine.low %v1849_v15, %v1850_v50 }
  0xde   : > { %11219 = vmatprep.mubr.bf16.mxu1 %v2509_v19  ;;  %10520 = vmatpush3.bf16.msra.mxu1 %v11569_v12  ;;  %v1785_v32 = vld [vmem:[#allocation2 + $0x30] sm:$0xf]  ;;  %v1819_v6 = vld [vmem:[#allocation2 + $0x48] sm:$0xf]  ;;  %v2544_v38 = vrot.slane %v2542_v53, 1  ;;  %v2516_v47 = vor.u32 %v2515_v17, %v2511_v24  ;;  %v2540_v4 = vor.u32 %v2539_v49, %v2535_v58  ;;  %v2561_v54 = vshll.u32 %v12993_v61, 16  ;;  %v1398_v14 = vpop.permute.xlu1 %1397 }
  0xdf   : > { %11258 = vmatpush3.bf16.msra.mxu0 %v12938_v48  ;;  %v1354_v48 = vsel %vm12795_vm10, %v1344_v23, %v1353_v16  ;;  %v13003_v39 = vld [vmem:[#allocation2 + $0x38] ss:$0 sps:$4 sm:$0x11]   ;;  %v1820_v63 = vld [vmem:[#allocation2 + $0x4c] sm:$0xf]  ;;  %10521 = vmatprep.subr.bf16.mxu1 %v11576_v30  ;;  %v1346_v0 = vpop.permute.xlu0 %1345  ;;  %v2520_v7 = vrot.slane %v2518_v60, 1  ;;  %v13008_v24 = vcombine.low %v1785_v32, %v1786_v59  ;;  %v1408_v46 = vsel %vm12795_vm10, %v1398_v14, %v1407_v1 }
  0xe0   : > { %3268 = vmatmul.mubr.bf16.gmra.mxu0 %v12948_v42  ;;  %v1787_v12 = vld [vmem:[#allocation2 + $0x3c] sm:$0xf]  ;;  %1355 = vst [vmem:[#allocation2 + $0x60] sm:$0xf] %v1354_v48  ;;  %v1357_v2 = vld [vmem:[#allocation2 + $0x68] sm:$0x1]  ;;  %11259 = vmatprep.subr.bf16.mxu0 %v11657_v5  ;;  %v13010_v30 = vcombine.low %v1819_v6, %v1820_v63  ;;  %v2545_v18 = vsel %vm2401_vm12, %v2540_v4, %v2544_v38 }
  0xe1   : > { %3275 = vmatprep.mubr.bf16.mxu0 %v2533_v52  ;;  %v2559_v42 = vshrl.u32 %v12993_v61, 16  ;;  %v1851_v8 = vld [vmem:[#allocation2 + $0x54] sm:$0xf]  ;;  %v1788_v51 = vld [vmem:[#allocation2 + $0x40] sm:$0xf]  ;;  %v2568_v16 = vrot.slane %v2566_v62, 1  ;;  %v2521_v31 = vsel %vm2401_vm12, %v2516_v47, %v2520_v7 }
  0xe2   : > { %1356 = vst.msk [vmem:[#allocation2 + $0x64] sm:$0xf] %vm966_vm8, %v1346_v0  ;;  %v11564_v28 = vld [vmem:[#allocation2 + $0x50] ss:$0 sps:$4 sm:$0x11]   ;;  %v2563_v43 = vrot.slane %v2561_v54, 1  ;;  %10522 = vmatpush3.bf16.msra.mxu1 %v11577_v40  ;;  %v13014_v36 = vcombine.low %v1787_v12, %v1788_v51  ;;  %v1400_v60 = vpop.permute.xlu1 %1399 }
  0xe3   : > { %11260 = vmatpush3.bf16.msra.mxu0 %v11657_v5  ;;  %v1852_v13 = vld [vmem:[#allocation2 + $0x58] sm:$0xf]  ;;  %v11586_v45 = vld [vmem:[%s15230_s2 + $0x28] sm:$0xff]   ;;  %v2573_v5 = vshll.u32 %v13001_v11, 16  ;;  %v2578_v19 = vshll.u32 %v11564_v28, 16  ;;  %10523 = vmatprep.subr.bf16.mxu1 %v11585_v35  ;;  %v11593_v15 = vld [vmem:[%s15230_s2 + $0x60] sm:$0xff]   ;;  %v1348_v50 = vpop.permute.xlu0 %1347 }
  0xe4   : > { %11261 = vmatprep.subr.bf16.mxu0 %v11658_v33  ;;  %v13022_v58 = vcombine.low %v1851_v8, %v1852_v13  ;;  %v11573_v34 = vld [vmem:[#allocation2 + $0x50] ss:$0 sps:$4 sm:$0x11]   ;;  %1409 = vst [vmem:[#allocation2 + $0x6c] sm:$0xf] %v1408_v46  ;;  %v2564_v25 = vor.u32 %v2563_v43, %v2559_v42  ;;  %v2571_v52 = vshrl.u32 %v13001_v11, 16  ;;  %v1358_v59 = vsel %vm12806_vm11, %v1348_v50, %v1357_v2 }
  0xe5   : > { %v1411_v40 = vld [vmem:[#allocation2 + $0x74] sm:$0x1]  ;;  %v2549_v53 = vshll.u32 %v13008_v24, 16  ;;  %v2554_v17 = vshll.u32 %v13003_v39, 16  ;;  %11220 = vmatmul.mubr.bf16.gmra.mxu1 %v2545_v18  ;;  %v2575_v23 = vrot.slane %v2573_v5, 1  ;;  %v2580_v35 = vrot.slane %v2578_v19, 1 }
  0xe6   : > { %v2547_v1 = vshrl.u32 %v13008_v24, 16  ;;  %v11596_v49 = vld [vmem:[%s15230_s2 + $0x20] sm:$0xff]   ;;  %1359 = vst [vmem:[#allocation2 + $0x68] sm:$0x1] %v1358_v59  ;;  %v2569_v62 = vsel %vm2401_vm12, %v2564_v25, %v2568_v16  ;;  %v1462_v32 = vld [vmem:[#allocation2 + $0x78] sm:$0xf]  ;;  %10524 = vmatpush3.bf16.msra.mxu1 %v11586_v45  ;;  %v1453_v13 = vpop.permute.xlu1 %1452 }
  0xe7   : > { %11262 = vmatpush3.bf16.msra.mxu0 %v11658_v33  ;;  %v11568_v6 = vld [vmem:[#allocation2 + $0x5c] ss:$0 sps:$4 sm:$0x11]   ;;  %v2607_v48 = vshrl.u32 %v13022_v58, 16  ;;  %v2609_v38 = vshll.u32 %v13022_v58, 16  ;;  %v2551_v47 = vrot.slane %v2549_v53, 1  ;;  %v2576_v39 = vor.u32 %v2575_v23, %v2571_v52  ;;  %10525 = vmatprep.subr.bf16.mxu1 %v11593_v15  ;;  %v1402_v4 = vpop.permute.xlu0 %1401 }
  0xe8   : > { %3276 = vmatmul.mubr.bf16.gmra.mxu0 %v2521_v31  ;;  %1410 = vst.msk [vmem:[#allocation2 + $0x70] sm:$0xf] %vm966_vm8, %v1400_v60  ;;  %v2556_v63 = vrot.slane %v2554_v17, 1  ;;  %v2597_v12 = vshll.u32 %v13010_v30, 16  ;;  %v2602_v33 = vshll.u32 %v11573_v34, 16  ;;  %v11604_v2 = vld [vmem:[%s15230_s2 + $0x58] sm:$0xff]   ;;  %v1412_v16 = vsel %vm12806_vm11, %v1402_v4, %v1411_v40 }
  0xe9   : > { %v1853_v0 = vld [vmem:[#allocation2 + $0x60] sm:$0xf]  ;;  %3283 = vmatprep.mubr.bf16.mxu0 %v2569_v62  ;;  %v2611_v7 = vrot.slane %v2609_v38, 1  ;;  %v2614_v42 = vshll.u32 %v11568_v6, 16  ;;  %v2552_v54 = vor.u32 %v2551_v47, %v2547_v1  ;;  %v2595_v8 = vshrl.u32 %v13010_v30, 16  ;;  %v11605_v43 = vld [vmem:[%s15230_s2 + $0x18] sm:$0xff]  }
  0xea   : > { %v1854_v51 = vld [vmem:[#allocation2 + $0x64] sm:$0xf]  ;;  %v2581_v28 = vsel %vm2401_vm12, %v2576_v39, %v2580_v35  ;;  %v2599_v14 = vrot.slane %v2597_v12, 1  ;;  %v2604_v18 = vrot.slane %v2602_v33, 1  ;;  %1413 = vst [vmem:[#allocation2 + $0x74] sm:$0x1] %v1412_v16  ;;  %10526 = vmatpush3.bf16.msra.mxu1 %v11596_v49  ;;  %v1463_v25 = vsel %vm12795_vm10, %v1453_v13, %v1462_v32 }
  0xeb   : > { %v11579_v31 = vld [vmem:[#allocation2 + $0x44] ss:$0 sps:$4 sm:$0x11]   ;;  %11223 = vmatprep.mubr.bf16.mxu1 %v2581_v28  ;;  %v2612_v45 = vor.u32 %v2611_v7, %v2607_v48  ;;  %v2616_v46 = vrot.slane %v2614_v42, 1  ;;  %v13051_v19 = vcombine.low %v1853_v0, %v1854_v51  ;;  %v2583_v34 = vshrl.u32 %v13014_v36, 16  ;;  %v11612_v50 = vld [vmem:[%s15230_s2 + $0x50] sm:$0xff]   ;;  %10527 = vmatprep.subr.bf16.mxu1 %v11604_v2  ;;  %v1455_v23 = vpop.permute.xlu0 %1454  ;;  %v1507_v0 = vpop.permute.xlu1 %1506 }
  0xec   : > { %v1516_v5 = vld [vmem:[#allocation2 + $0x84] sm:$0xf]  ;;  %v1822_v15 = vld [vmem:[#allocation2 + $0x58] sm:$0xf]  ;;  %v2600_v52 = vor.u32 %v2599_v14, %v2595_v8  ;;  %v2585_v53 = vshll.u32 %v13014_v36, 16  ;;  %v2590_v17 = vshll.u32 %v11579_v31, 16  ;;  %v2557_v48 = vsel %vm2401_vm12, %v2552_v54, %v2556_v63 }
  0xed   : > { %v11661_v40 = vld [vmem:[%s15230_s2 + $0x1f8] sm:$0xff]   ;;  %v1821_v59 = vld [vmem:[#allocation2 + $0x54] sm:$0xf]  ;;  %1464 = vst [vmem:[#allocation2 + $0x78] sm:$0xf] %v1463_v25  ;;  %v2617_v35 = vsel %vm2401_vm12, %v2612_v45, %v2616_v46  ;;  %v2643_v49 = vshrl.u32 %v13051_v19, 16  ;;  %v1517_v63 = vsel %vm12795_vm10, %v1507_v0, %v1516_v5 }
  0xee   : > { %v1466_v1 = vld [vmem:[#allocation2 + $0x80] sm:$0x1]  ;;  %v2645_v60 = vshll.u32 %v13051_v19, 16  ;;  %v13066_v62 = vcombine.low %v1821_v59, %v1822_v15  ;;  %v11581_v6 = vld [vmem:[#allocation2 + $0x5c] ss:$0 sps:$4 sm:$0x11]   ;;  %10655 = vmatprep.subr.bf16.mxu0 %v11661_v40  ;;  %11224 = vmatmul.mubr.bf16.gmra.mxu1 %v2617_v35  ;;  %v2605_v38 = vsel %vm2401_vm12, %v2600_v52, %v2604_v18 }
  0xef   : > { %v11613_v32 = vld [vmem:[%s15230_s2 + $0x10] sm:$0xff]   ;;  %1465 = vst.msk [vmem:[#allocation2 + $0x7c] sm:$0xf] %vm966_vm8, %v1455_v23  ;;  %v11575_v47 = vld [vmem:[#allocation2 + $0x68] ss:$0 sps:$4 sm:$0x11]   ;;  %10528 = vmatpush3.bf16.msra.mxu1 %v11605_v43  ;;  %v1457_v18 = vpop.permute.xlu0 %1456 }
  0xf0   : > { %v2587_v39 = vrot.slane %v2585_v53, 1  ;;  %v1855_v12 = vld [vmem:[#allocation2 + $0x6c] sm:$0xf]  ;;  %v2647_v2 = vrot.slane %v2645_v60, 1  ;;  %v2592_v4 = vrot.slane %v2590_v17, 1  ;;  %v2631_v7 = vshrl.u32 %v13066_v62, 16  ;;  %3284 = vmatmul.mubr.bf16.gmra.mxu0 %v2557_v48  ;;  %10529 = vmatprep.subr.bf16.mxu1 %v11612_v50  ;;  %v1509_v53 = vpop.permute.xlu1 %1508 }
  0xf1   : > { %v11621_v33 = vld [vmem:[%s15230_s2 + $0x48] sm:$0xff]   ;;  %v2633_v42 = vshll.u32 %v13066_v62, 16  ;;  %v1856_v8 = vld [vmem:[#allocation2 + $0x70] sm:$0xf]  ;;  %v2650_v54 = vshll.u32 %v11575_v47, 16  ;;  %v2638_v16 = vshll.u32 %v11581_v6, 16  ;;  %3291 = vmatprep.mubr.bf16.mxu0 %v2605_v38 }
  0xf2   : > { %v2588_v51 = vor.u32 %v2587_v39, %v2583_v34  ;;  %v1789_v28 = vld [vmem:[#allocation2 + $0x48] sm:$0xf]  ;;  %v1790_v14 = vld [vmem:[#allocation2 + $0x4c] sm:$0xf]  ;;  %1518 = vst [vmem:[#allocation2 + $0x84] sm:$0xf] %v1517_v63  ;;  %v2648_v13 = vor.u32 %v2647_v2, %v2643_v49  ;;  %v13081_v46 = vcombine.low %v1855_v12, %v1856_v8  ;;  %v1467_v34 = vsel %vm12806_vm11, %v1457_v18, %v1466_v1 }
  0xf3   : > { %v1520_v31 = vld [vmem:[#allocation2 + $0x8c] sm:$0x1]  ;;  %v2635_v45 = vrot.slane %v2633_v42, 1  ;;  %v13083_v15 = vcombine.low %v1789_v28, %v1790_v14  ;;  %v11588_v43 = vld [vmem:[#allocation2 + $0x50] ss:$0 sps:$4 sm:$0x11]   ;;  %10530 = vmatpush3.bf16.msra.mxu1 %v11613_v32  ;;  %v1511_v38 = vpop.permute.xlu0 %1510 }
  0xf4   : > { %v11624_v5 = vld [vmem:[%s15230_s2 + $0x8] sm:$0xff]   ;;  %v2652_v40 = vrot.slane %v2650_v54, 1  ;;  %v2640_v50 = vrot.slane %v2638_v16, 1  ;;  %v1823_v25 = vld [vmem:[#allocation2 + $0x60] sm:$0xf]  ;;  %v2681_v35 = vshll.u32 %v13081_v46, 16  ;;  %v2593_v1 = vsel %vm2401_vm12, %v2588_v51, %v2592_v4  ;;  %10531 = vmatprep.subr.bf16.mxu1 %v11621_v33  ;;  %v1562_v54 = vpop.permute.xlu1 %1561 }
  0xf5   : > { %v11631_v52 = vld [vmem:[%s15230_s2 + $0x40] sm:$0xff]   ;;  %1468 = vst [vmem:[#allocation2 + $0x80] sm:$0x1] %v1467_v34  ;;  %v1571_v17 = vld [vmem:[#allocation2 + $0x90] sm:$0xf]  ;;  %v2636_v59 = vor.u32 %v2635_v45, %v2631_v7  ;;  %v2621_v60 = vshll.u32 %v13083_v15, 16  ;;  %v1521_v4 = vsel %vm12806_vm11, %v1511_v38, %v1520_v31 }
  0xf6   : > { %v11583_v23 = vld [vmem:[#allocation2 + $0x74] ss:$0 sps:$4 sm:$0x11]   ;;  %1519 = vst.msk [vmem:[#allocation2 + $0x88] sm:$0xf] %vm966_vm8, %v1509_v53  ;;  %v2653_v49 = vsel %vm2401_vm12, %v2648_v13, %v2652_v40  ;;  %v2626_v6 = vshll.u32 %v11588_v43, 16  ;;  %v1572_v13 = vsel %vm12795_vm10, %v1562_v54, %v1571_v17 }
  0xf7   : > { %v1824_v48 = vld [vmem:[#allocation2 + $0x64] sm:$0xf]  ;;  %11227 = vmatprep.mubr.bf16.mxu1 %v2653_v49  ;;  %v2679_v47 = vshrl.u32 %v13081_v46, 16  ;;  %v2683_v39 = vrot.slane %v2681_v35, 1  ;;  %v2686_v12 = vshll.u32 %v11583_v23, 16  ;;  %v2641_v7 = vsel %vm2401_vm12, %v2636_v59, %v2640_v50  ;;  %10532 = vmatpush3.bf16.msra.mxu1 %v11624_v5  ;;  %v13112_v31 = vld [vmem:[%s15230_s2 + $0x238] sm:$0xff]  }
  0xf8   : > { %v13099_v0 = vcombine.low %v1823_v25, %v1824_v48  ;;  %v11590_v32 = vld [vmem:[#allocation2 + $0x68] ss:$0 sps:$4 sm:$0x11]   ;;  %v11634_v2 = vld [vmem:[%s15230_s2] sm:$0xff]   ;;  %v2619_v33 = vshrl.u32 %v13083_v15, 16  ;;  %v2623_v42 = vrot.slane %v2621_v60, 1  ;;  %3292 = vmatmul.mubr.bf16.gmra.mxu0 %v2593_v1  ;;  %10533 = vmatprep.subr.bf16.mxu1 %v11631_v52  ;;  %v1564_v25 = vpop.permute.xlu0 %1563  ;;  %v1616_v60 = vpop.permute.xlu1 %1615 }
  0xf9   : > { %v1857_v8 = vld [vmem:[#allocation2 + $0x78] sm:$0xf]  ;;  %v1858_v63 = vld [vmem:[#allocation2 + $0x7c] sm:$0xf]  ;;  %1522 = vst [vmem:[#allocation2 + $0x8c] sm:$0x1] %v1521_v4  ;;  %v2684_v51 = vor.u32 %v2683_v39, %v2679_v47  ;;  %3299 = vmatprep.mubr.bf16.mxu0 %v2641_v7 }
  0xfa   : > { %v2688_v16 = vrot.slane %v2686_v12, 1  ;;  %v1625_v28 = vld [vmem:[#allocation2 + $0x9c] sm:$0xf]  ;;  %v2628_v14 = vrot.slane %v2626_v6, 1  ;;  %v2669_v18 = vshll.u32 %v13099_v0, 16  ;;  %v2667_v45 = vshrl.u32 %v13099_v0, 16 }
  0xfb   : > { %v2674_v43 = vshll.u32 %v11590_v32, 16  ;;  %v13117_v34 = vcombine.low %v1857_v8, %v1858_v63  ;;  %v1791_v40 = vld [vmem:[#allocation2 + $0x54] sm:$0xf]  ;;  %v1792_v50 = vld [vmem:[#allocation2 + $0x58] sm:$0xf]  ;;  %v2624_v17 = vor.u32 %v2623_v42, %v2619_v33  ;;  %10534 = vmatpush3.bf16.msra.mxu1 %v11634_v2  ;;  %v1626_v39 = vsel %vm12795_vm10, %v1616_v60, %v1625_v28 }
  0xfc   : > { %1573 = vst [vmem:[#allocation2 + $0x90] sm:$0xf] %v1572_v13  ;;  %v2689_v5 = vsel %vm2401_vm12, %v2684_v51, %v2688_v16  ;;  %v1575_v53 = vld [vmem:[#allocation2 + $0x98] sm:$0x1]  ;;  %v2671_v59 = vrot.slane %v2669_v18, 1  ;;  %v13120_v23 = vcombine.low %v1791_v40, %v1792_v50  ;;  %11295 = vmatprep.subr.bf16.mxu1 %v13112_v31  ;;  %v1566_v42 = vpop.permute.xlu0 %1565  ;;  %v1618_v40 = vpop.permute.xlu1 %1617 }
  0xfd   : > { %v11598_v35 = vld [vmem:[#allocation2 + $0x5c] ss:$0 sps:$4 sm:$0x11]   ;;  %1574 = vst.msk [vmem:[#allocation2 + $0x94] sm:$0xf] %vm966_vm8, %v1564_v25  ;;  %11228 = vmatmul.mubr.bf16.gmra.mxu1 %v2689_v5  ;;  %v2676_v49 = vrot.slane %v2674_v43, 1  ;;  %v1576_v16 = vsel %vm12806_vm11, %v1566_v42, %v1575_v53  ;;  %v2629_v28 = vsel %vm2401_vm12, %v2624_v17, %v2628_v14 }
  0xfe   : > { %v11592_v1 = vld [vmem:[#allocation2 + $0x80] ss:$0 sps:$4 sm:$0x11]   ;;  %v2672_v6 = vor.u32 %v2671_v59, %v2667_v45  ;;  %v2715_v52 = vshrl.u32 %v13117_v34, 16  ;;  %v2717_v48 = vshll.u32 %v13117_v34, 16  ;;  %v2657_v4 = vshll.u32 %v13120_v23, 16 }
  0xff   : > { %v1859_v38 = vld [vmem:[#allocation2 + $0x84] sm:$0xf]  ;;  %v1860_v47 = vld [vmem:[#allocation2 + $0x88] sm:$0xf]  ;;  %v2722_v12 = vshll.u32 %v11592_v1, 16  ;;  %v2655_v54 = vshrl.u32 %v13120_v23, 16 }
 0x100   : > { %v13127_v32 = vcombine.low %v1859_v38, %v1860_v47  ;;  %v1825_v7 = vld [vmem:[#allocation2 + $0x6c] sm:$0xf]  ;;  %v1826_v33 = vld [vmem:[#allocation2 + $0x70] sm:$0xf]  ;;  %1627 = vst [vmem:[#allocation2 + $0x9c] sm:$0xf] %v1626_v39  ;;  %v2677_v18 = vsel %vm2401_vm12, %v2672_v6, %v2676_v49  ;;  %3300 = vmatmul.mubr.bf16.gmra.mxu0 %v2629_v28  ;;  %v1620_v6 = vpop.permute.xlu0 %1619 }
 0x101   : > { %v1629_v8 = vld [vmem:[#allocation2 + $0xa4] sm:$0x1]  ;;  %v2719_v63 = vrot.slane %v2717_v48, 1  ;;  %v2662_v51 = vshll.u32 %v11598_v35, 16  ;;  %v13132_v2 = vcombine.low %v1825_v7, %v1826_v33  ;;  %v2724_v13 = vrot.slane %v2722_v12, 1  ;;  %3307 = vmatprep.mubr.bf16.mxu0 %v2677_v18 }
 0x102   : > { %v11595_v45 = vld [vmem:[#allocation2 + $0x8c] ss:$0 sps:$4 sm:$0x11]   ;;  %v1793_v43 = vld [vmem:[#allocation2 + $0x60] sm:$0xf]  ;;  %v2751_v5 = vshrl.u32 %v13127_v32, 16 }
 0x103   : > { %1577 = vst [vmem:[#allocation2 + $0x98] sm:$0x1] %v1576_v16  ;;  %v2720_v50 = vor.u32 %v2719_v63, %v2715_v52  ;;  %v1680_v25 = vld [vmem:[#allocation2 + $0xa8] sm:$0xf]  ;;  %v2753_v59 = vshll.u32 %v13127_v32, 16  ;;  %v2659_v35 = vrot.slane %v2657_v4, 1  ;;  %v1630_v4 = vsel %vm12806_vm11, %v1620_v6, %v1629_v8 }
 0x104   : > { %v11600_v1 = vld [vmem:[#allocation2 + $0x74] ss:$0 sps:$4 sm:$0x11]   ;;  %1628 = vst.msk [vmem:[#allocation2 + $0xa0] sm:$0xf] %vm966_vm8, %v1618_v40  ;;  %v2758_v53 = vshll.u32 %v11595_v45, 16 }
 0x105   : > { %v2664_v14 = vrot.slane %v2662_v51, 1  ;;  %v2703_v17 = vshrl.u32 %v13132_v2, 16  ;;  %v2705_v49 = vshll.u32 %v13132_v2, 16  ;;  %v1861_v60 = vld [vmem:[#allocation2 + $0x90] sm:$0xf]  ;;  %v2725_v52 = vsel %vm2401_vm12, %v2720_v50, %v2724_v13  ;;  %v1671_v51 = vpop.permute.xlu1 %1670 }
 0x106   : > { %v2755_v48 = vrot.slane %v2753_v59, 1  ;;  %v2660_v38 = vor.u32 %v2659_v35, %v2655_v54  ;;  %v2710_v47 = vshll.u32 %v11600_v1, 16  ;;  %v1862_v39 = vld [vmem:[#allocation2 + $0x94] sm:$0xf]  ;;  %v1794_v12 = vld [vmem:[#allocation2 + $0x64] sm:$0xf]  ;;  %11231 = vmatprep.mubr.bf16.mxu1 %v2725_v52  ;;  %v1681_v45 = vsel %vm12795_vm10, %v1671_v51, %v1680_v25  ;;  %v1673_v59 = vpop.permute.xlu0 %1672 }
 0x107   : > { %v2760_v7 = vrot.slane %v2758_v53, 1  ;;  %v2707_v33 = vrot.slane %v2705_v49, 1  ;;  %v13146_v42 = vcombine.low %v1861_v60, %v1862_v39  ;;  %v1827_v63 = vld [vmem:[#allocation2 + $0x78] sm:$0xf]  ;;  %1631 = vst [vmem:[#allocation2 + $0xa4] sm:$0x1] %v1630_v4  ;;  %v13148_v18 = vcombine.low %v1793_v43, %v1794_v12 }
 0x108   : > { %v2756_v16 = vor.u32 %v2755_v48, %v2751_v5  ;;  %v2712_v28 = vrot.slane %v2710_v47, 1  ;;  %v11607_v13 = vld [vmem:[#allocation2 + $0x68] ss:$0 sps:$4 sm:$0x11]   ;;  %v1828_v54 = vld [vmem:[#allocation2 + $0x7c] sm:$0xf]  ;;  %v2665_v25 = vsel %vm2401_vm12, %v2660_v38, %v2664_v14 }
 0x109   : > { %v1734_v40 = vld [vmem:[#allocation2 + $0xb4] sm:$0xf]  ;;  %v2708_v50 = vor.u32 %v2707_v33, %v2703_v17  ;;  %v2789_v8 = vshll.u32 %v13146_v42, 16  ;;  %1682 = vst [vmem:[#allocation2 + $0xa8] sm:$0xf] %v1681_v45  ;;  %v2787_v53 = vshrl.u32 %v13146_v42, 16  ;;  %v13158_v6 = vcombine.low %v1827_v63, %v1828_v54  ;;  %v1725_v52 = vpop.permute.xlu1 %1724  ;;  %3308 = vmatmul.mubr.bf16.gmra.mxu0 %v2665_v25 }
 0x10a   : > { %v2761_v35 = vsel %vm2401_vm12, %v2756_v16, %v2760_v7  ;;  %v1684_v1 = vld [vmem:[#allocation2 + $0xb0] sm:$0x1]  ;;  %v2693_v5 = vshll.u32 %v13148_v18, 16  ;;  %v2698_v43 = vshll.u32 %v11607_v13, 16  ;;  %1683 = vst.msk [vmem:[#allocation2 + $0xac] sm:$0xf] %vm966_vm8, %v1673_v59  ;;  %v1735_v7 = vsel %vm12795_vm10, %v1725_v52, %v1734_v40  ;;  %v1675_v63 = vpop.permute.xlu0 %1674 }
 0x10b   : > { %v11609_v49 = vld [vmem:[#allocation2 + $0x80] ss:$0 sps:$4 sm:$0x11]   ;;  %11232 = vmatmul.mubr.bf16.gmra.mxu1 %v2761_v35  ;;  %v11603_v60 = vld [vmem:[#allocation2 + $0x98] ss:$0 sps:$4 sm:$0x11]   ;;  %v2713_v48 = vsel %vm2401_vm12, %v2708_v50, %v2712_v28 }
 0x10c   : > { %v2791_v17 = vrot.slane %v2789_v8, 1  ;;  %v2691_v47 = vshrl.u32 %v13148_v18, 16  ;;  %v2695_v39 = vrot.slane %v2693_v5, 1  ;;  %v2746_v12 = vshll.u32 %v11609_v49, 16  ;;  %v1864_v4 = vld [vmem:[#allocation2 + $0xa0] sm:$0xf]  ;;  %3315 = vmatprep.mubr.bf16.mxu0 %v2713_v48 }
 0x10d   : > { %v2794_v51 = vshll.u32 %v11603_v60, 16  ;;  %v2700_v16 = vrot.slane %v2698_v43, 1  ;;  %v1863_v14 = vld [vmem:[#allocation2 + $0x9c] sm:$0xf]  ;;  %v1795_v38 = vld [vmem:[#allocation2 + $0x6c] sm:$0xf]  ;;  %v1685_v8 = vsel %vm12806_vm11, %v1675_v63, %v1684_v1 }
 0x10e   : > { %v2792_v33 = vor.u32 %v2791_v17, %v2787_v53  ;;  %1736 = vst [vmem:[#allocation2 + $0xb4] sm:$0xf] %v1735_v7  ;;  %v1738_v13 = vld [vmem:[#allocation2 + $0xbc] sm:$0x1]  ;;  %v2739_v28 = vshrl.u32 %v13158_v6, 16  ;;  %v2741_v54 = vshll.u32 %v13158_v6, 16  ;;  %v13166_v45 = vcombine.low %v1863_v14, %v1864_v4  ;;  %v1727_v53 = vpop.permute.xlu1 %1726 }
 0x10f   : > { %v1796_v50 = vld [vmem:[#allocation2 + $0x70] sm:$0xf]  ;;  %v2796_v40 = vrot.slane %v2794_v51, 1  ;;  %v11611_v59 = vld [vmem:[#allocation2 + $0xa4] ss:$0 sps:$4 sm:$0x11]   ;;  %v2696_v5 = vor.u32 %v2695_v39, %v2691_v47  ;;  %v1729_v51 = vpop.permute.xlu0 %1728 }
 0x110   : > { %v13170_v35 = vcombine.low %v1795_v38, %v1796_v50  ;;  %1686 = vst [vmem:[#allocation2 + $0xb0] sm:$0x1] %v1685_v8  ;;  %v1770_v43 = vld [vmem:[#allocation2 + $0xc0] sm:$0xf]  ;;  %v2743_v49 = vrot.slane %v2741_v54, 1  ;;  %v2748_v25 = vrot.slane %v2746_v12, 1  ;;  %v1739_v12 = vsel %vm12806_vm11, %v1729_v51, %v1738_v13 }
 0x111   : > { %v2825_v60 = vshll.u32 %v13166_v45, 16  ;;  %v11615_v17 = vld [vmem:[#allocation2 + $0x74] ss:$0 sps:$4 sm:$0x11]   ;;  %1737 = vst.msk [vmem:[#allocation2 + $0xb8] sm:$0xf] %vm966_vm8, %v1727_v53  ;;  %v2797_v52 = vsel %vm2401_vm12, %v2792_v33, %v2796_v40  ;;  %v2701_v8 = vsel %vm2401_vm12, %v2696_v5, %v2700_v16 }
 0x112   : > { %v2823_v48 = vshrl.u32 %v13166_v45, 16  ;;  %v2830_v1 = vshll.u32 %v11611_v59, 16  ;;  %v2729_v4 = vshll.u32 %v13170_v35, 16  ;;  %v1829_v7 = vld [vmem:[#allocation2 + $0x84] sm:$0xf]  ;;  %11235 = vmatprep.mubr.bf16.mxu1 %v2797_v52  ;;  %v2744_v14 = vor.u32 %v2743_v49, %v2739_v28  ;;  %v1761_v40 = vpop.permute.xlu1 %1760  ;;  %3316 = vmatmul.mubr.bf16.gmra.mxu0 %v2701_v8 }
 0x113   : > { %v2827_v47 = vrot.slane %v2825_v60, 1  ;;  %v2734_v39 = vshll.u32 %v11615_v17, 16  ;;  %v1830_v38 = vld [vmem:[#allocation2 + $0x88] sm:$0xf]  ;;  %1740 = vst [vmem:[#allocation2 + $0xbc] sm:$0x1] %v1739_v12  ;;  %v1771_v49 = vsel %vm12795_vm10, %v1761_v40, %v1770_v43  ;;  %v1763_v16 = vpop.permute.xlu0 %1762 }
 0x114   : > { %v2832_v63 = vrot.slane %v2830_v1, 1  ;;  %v2731_v54 = vrot.slane %v2729_v4, 1  ;;  %v13179_v50 = vcombine.low %v1829_v7, %v1830_v38  ;;  %v11617_v33 = vld [vmem:[#allocation2 + $0x8c] ss:$0 sps:$4 sm:$0x11]   ;;  %v2727_v53 = vshrl.u32 %v13170_v35, 16 }
 0x115   : > { %v2828_v59 = vor.u32 %v2827_v47, %v2823_v48  ;;  %v1865_v52 = vld [vmem:[#allocation2 + $0xa8] sm:$0xf]  ;;  %v1866_v28 = vld [vmem:[#allocation2 + $0xac] sm:$0xf]  ;;  %v2749_v13 = vsel %vm2401_vm12, %v2744_v14, %v2748_v25  ;;  %v2736_v17 = vrot.slane %v2734_v39, 1  ;;  %v2782_v7 = vshll.u32 %v11617_v33, 16 }
 0x116   : > { %v1774_v60 = vld [vmem:[#allocation2 + $0xc8] sm:$0x1]  ;;  %v2777_v1 = vshll.u32 %v13179_v50, 16  ;;  %v1797_v4 = vld [vmem:[#allocation2 + $0x78] sm:$0xf]  ;;  %3323 = vmatprep.mubr.bf16.mxu0 %v2749_v13  ;;  %v2775_v48 = vshrl.u32 %v13179_v50, 16  ;;  %v13189_v51 = vcombine.low %v1865_v52, %v1866_v28  ;;  %v2732_v29 = vor.u32 %v2731_v54, %v2727_v53  ;;  %v1765_v39 = vpop.permute.xlu1 %1764 }
 0x117   : > { %1772 = vst [vmem:[#allocation2 + $0xc0] sm:$0xf] %v1771_v49  ;;  %v2833_v5 = vsel %vm2401_vm12, %v2828_v59, %v2832_v63  ;;  %v1798_v47 = vld [vmem:[#allocation2 + $0x7c] sm:$0xf]  ;;  %1773 = vst.msk [vmem:[#allocation2 + $0xc4] sm:$0xf] %vm966_vm8, %v1763_v16  ;;  %v1775_v33 = vsel %vm12806_vm11, %v1765_v39, %v1774_v60 }
 0x118   : > { %11236 = vmatmul.mubr.bf16.gmra.mxu1 %v2833_v5  ;;  %v2779_v43 = vrot.slane %v2777_v1, 1  ;;  %v11619_v25 = vld [vmem:[#allocation2 + $0xb0] ss:$0 sps:$4 sm:$0x11]   ;;  %v13192_v14 = vcombine.low %v1797_v4, %v1798_v47  ;;  %v2784_v38 = vrot.slane %v2782_v7, 1  ;;  %v2861_v12 = vshll.u32 %v13189_v51, 16 }
 0x119   : > { %v1867_v8 = vld [vmem:[#allocation2 + $0xb4] sm:$0xf]  ;;  %v1868_v63 = vld [vmem:[#allocation2 + $0xb8] sm:$0xf]  ;;  %v2866_v59 = vshll.u32 %v11619_v25, 16  ;;  %v2859_v54 = vshrl.u32 %v13189_v51, 16  ;;  %v2737_v4 = vsel %vm2401_vm12, %v2732_v29, %v2736_v17 }
 0x11a   : > { %v2780_v40 = vor.u32 %v2779_v43, %v2775_v48  ;;  %v13197_v52 = vcombine.low %v1867_v8, %v1868_v63  ;;  %v11626_v28 = vld [vmem:[#allocation2 + $0x80] ss:$0 sps:$4 sm:$0x11]   ;;  %v1831_v49 = vld [vmem:[#allocation2 + $0x90] sm:$0xf]  ;;  %v2863_v53 = vrot.slane %v2861_v12, 1  ;;  %3324 = vmatmul.mubr.bf16.gmra.mxu0 %v2737_v4 }
 0x11b   : > { %1776 = vst [vmem:[#allocation2 + $0xc8] sm:$0x1] %v1775_v33  ;;  %v2765_v13 = vshll.u32 %v13192_v14, 16  ;;  %v1832_v1 = vld [vmem:[#allocation2 + $0x94] sm:$0xf]  ;;  %v2868_v16 = vrot.slane %v2866_v59, 1 }
 0x11c   : > { %v11623_v5 = vld [vmem:[#allocation2 + $0xbc] ss:$0 sps:$4 sm:$0x11]   ;;  %v13202_v7 = vcombine.low %v1831_v49, %v1832_v1  ;;  %v2864_v20 = vor.u32 %v2863_v53, %v2859_v54  ;;  %v2897_v60 = vshll.u32 %v13197_v52, 16  ;;  %v2763_v48 = vshrl.u32 %v13192_v14, 16 }
 0x11d   : > { %v2767_v47 = vrot.slane %v2765_v13, 1  ;;  %v2785_v43 = vsel %vm2401_vm12, %v2780_v40, %v2784_v38  ;;  %v2895_v25 = vshrl.u32 %v13197_v52, 16  ;;  %v2902_v39 = vshll.u32 %v11623_v5, 16  ;;  %v11628_v8 = vld [vmem:[#allocation2 + $0x98] ss:$0 sps:$4 sm:$0x11]  }
 0x11e   : > { %v2770_v12 = vshll.u32 %v11626_v28, 16  ;;  %3331 = vmatprep.mubr.bf16.mxu0 %v2785_v43  ;;  %v2869_v17 = vsel %vm2401_vm12, %v2864_v20, %v2868_v16  ;;  %v2899_v29 = vrot.slane %v2897_v60, 1  ;;  %v2813_v63 = vshll.u32 %v13202_v7, 16  ;;  %v1869_v33 = vld [vmem:[#allocation2 + $0xc0] sm:$0xf] }
 0x11f   : > { %v1870_v59 = vld [vmem:[#allocation2 + $0xc4] sm:$0xf]  ;;  %11239 = vmatprep.mubr.bf16.mxu1 %v2869_v17  ;;  %v2904_v49 = vrot.slane %v2902_v39, 1  ;;  %v2811_v54 = vshrl.u32 %v13202_v7, 16  ;;  %v2818_v53 = vshll.u32 %v11628_v8, 16  ;;  %v2768_v40 = vor.u32 %v2767_v47, %v2763_v48 }
 0x120   : > { %v13211_v13 = vcombine.low %v1869_v33, %v1870_v59  ;;  %v2900_v38 = vor.u32 %v2899_v29, %v2895_v25  ;;  %v2772_v1 = vrot.slane %v2770_v12, 1  ;;  %v2815_v28 = vrot.slane %v2813_v63, 1  ;;  %v1871_v4 = vld [vmem:[#allocation2 + $0xcc] sm:$0xf]  ;;  %v1872_v39 = vld [vmem:[#allocation2 + $0xd0] sm:$0xf] }
 0x121   : > { %v2820_v5 = vrot.slane %v2818_v53, 1  ;;  %v13216_v8 = vcombine.low %v1871_v4, %v1872_v39  ;;  %v11633_v33 = vld [vmem:[#allocation2 + $0xd4] ss:$0 sps:$4 sm:$0x11]   ;;  %v1799_v12 = vld [vmem:[#allocation2 + $0x84] sm:$0xf] }
 0x122   : > { %v11630_v43 = vld [vmem:[#allocation2 + $0xc8] ss:$0 sps:$4 sm:$0x11]   ;;  %v2905_v16 = vsel %vm2401_vm12, %v2900_v38, %v2904_v49  ;;  %v2816_v20 = vor.u32 %v2815_v28, %v2811_v54  ;;  %v2931_v60 = vshrl.u32 %v13211_v13, 16  ;;  %v2933_v17 = vshll.u32 %v13211_v13, 16 }
 0x123   : > { %11240 = vmatmul.mubr.bf16.gmra.mxu1 %v2905_v16  ;;  %v2938_v22 = vshll.u32 %v11630_v43, 16  ;;  %15281 = vst [vmem:[#allocation5_spill] sm:$0xff] %v13216_v8  ;;  %v2773_v48 = vsel %vm2401_vm12, %v2768_v40, %v2772_v1  ;;  %v2967_v63 = vshrl.u32 %v13216_v8, 16  ;;  %v2969_v59 = vshll.u32 %v13216_v8, 16  ;;  %v1800_v54 = vld [vmem:[#allocation2 + $0x88] sm:$0xf] }
 0x124   : > { %v2821_v47 = vsel %vm2401_vm12, %v2816_v20, %v2820_v5  ;;  %v2935_v25 = vrot.slane %v2933_v17, 1  ;;  %3332 = vmatmul.mubr.bf16.gmra.mxu0 %v2773_v48  ;;  %v2974_v49 = vshll.u32 %v11633_v33, 16  ;;  %v13222_v38 = vcombine.low %v1799_v12, %v1800_v54  ;;  %v11636_v28 = vld [vmem:[#allocation2 + $0x8c] ss:$0 sps:$4 sm:$0x11]  }
 0x125   : > { %v2940_v29 = vrot.slane %v2938_v22, 1  ;;  %3339 = vmatprep.mubr.bf16.mxu0 %v2821_v47  ;;  %v2971_v4 = vrot.slane %v2969_v59, 1  ;;  %v1834_v40 = vld [vmem:[#allocation2 + $0xa0] sm:$0xf]  ;;  %v2806_v16 = vshll.u32 %v11636_v28, 16 }
 0x126   : > { %v2936_v53 = vor.u32 %v2935_v25, %v2931_v60  ;;  %v2976_v43 = vrot.slane %v2974_v49, 1  ;;  %v2801_v5 = vshll.u32 %v13222_v38, 16  ;;  %v1833_v22 = vld [vmem:[#allocation2 + $0x9c] sm:$0xf]  ;;  %v2799_v17 = vshrl.u32 %v13222_v38, 16 }
 0x127   : > { %v2972_v20 = vor.u32 %v2971_v4, %v2967_v63  ;;  %v13227_v39 = vcombine.low %v1833_v22, %v1834_v40  ;;  %v11638_v33 = vld [vmem:[#allocation2 + $0xa4] ss:$0 sps:$4 sm:$0x11]   ;;  %v2808_v48 = vrot.slane %v2806_v16, 1  ;;  %v1801_v59 = vld [vmem:[#allocation2 + $0x90] sm:$0xf] }
 0x128   : > { %v2941_v1 = vsel %vm2401_vm12, %v2936_v53, %v2940_v29  ;;  %v2803_v60 = vrot.slane %v2801_v5, 1  ;;  %v2854_v12 = vshll.u32 %v11638_v33, 16  ;;  %v1802_v49 = vld [vmem:[#allocation2 + $0x94] sm:$0xf]  ;;  %v1804_v33 = vld [vmem:[#allocation2 + $0xa0] sm:$0xf] }
 0x129   : > { %11243 = vmatprep.mubr.bf16.mxu1 %v2941_v1  ;;  %v2977_v47 = vsel %vm2401_vm12, %v2972_v20, %v2976_v43  ;;  %v2849_v25 = vshll.u32 %v13227_v39, 16  ;;  %v2847_v63 = vshrl.u32 %v13227_v39, 16  ;;  %v13233_v28 = vcombine.low %v1801_v59, %v1802_v49  ;;  %v11642_v4 = vld [vmem:[#allocation2 + $0x98] ss:$0 sps:$4 sm:$0x11]  }
 0x12a   : > { %v2804_v29 = vor.u32 %v2803_v60, %v2799_v17  ;;  %v2856_v53 = vrot.slane %v2854_v12, 1  ;;  %v1835_v1 = vld [vmem:[#allocation2 + $0xa8] sm:$0xf]  ;;  %v1836_v43 = vld [vmem:[#allocation2 + $0xac] sm:$0xf]  ;;  %v2842_v22 = vshll.u32 %v11642_v4, 16 }
 0x12b   : > { %11244 = vmatmul.mubr.bf16.gmra.mxu1 %v2977_v47  ;;  %v2851_v54 = vrot.slane %v2849_v25, 1  ;;  %v2837_v16 = vshll.u32 %v13233_v28, 16  ;;  %v11644_v20 = vld [vmem:[#allocation2 + $0xb0] ss:$0 sps:$4 sm:$0x11]   ;;  %v13237_v17 = vcombine.low %v1835_v1, %v1836_v43 }
 0x12c   : > { %3717 = vmatprep.mubr.bf16.mxu1 %v12856_v55  ;;  %v2809_v40 = vsel %vm2401_vm12, %v2804_v29, %v2808_v48  ;;  %v1803_v55 = vld [vmem:[#allocation2 + $0x9c] sm:$0xf]  ;;  %v11650_v60 = vld [vmem:[%s15230_s2 + $0x230] sm:$0xff]   ;;  %v2835_v48 = vshrl.u32 %v13233_v28, 16  ;;  %v2890_v12 = vshll.u32 %v11644_v20, 16  ;;  %v2844_v59 = vrot.slane %v2842_v22, 1 }
 0x12d   : > { %3340 = vmatmul.mubr.bf16.gmra.mxu0 %v2809_v40  ;;  %v2852_v5 = vor.u32 %v2851_v54, %v2847_v63  ;;  %v2839_v25 = vrot.slane %v2837_v16, 1  ;;  %v11646_v29 = vld [vmem:[#allocation2 + $0xa4] ss:$0 sps:$4 sm:$0x11]   ;;  %v2885_v49 = vshll.u32 %v13237_v17, 16  ;;  %v13245_v63 = vcombine.low %v1803_v55, %v1804_v33  ;;  %v11659_v33 = vld [vmem:[%s15230_s2 + $0x228] sm:$0xff]  }
 0x12e   : > { %v1837_v54 = vld [vmem:[#allocation2 + $0xb4] sm:$0xf]  ;;  %v1838_v4 = vld [vmem:[#allocation2 + $0xb8] sm:$0xf]  ;;  %v2883_v1 = vshrl.u32 %v13237_v17, 16  ;;  %v2878_v43 = vshll.u32 %v11646_v29, 16 }
 0x12f   : > { %v2857_v47 = vsel %vm2401_vm12, %v2852_v5, %v2856_v53  ;;  %15282 = vst [vmem:[#allocation6_spill] sm:$0xff] %v13245_v63  ;;  %v2840_v40 = vor.u32 %v2839_v25, %v2835_v48  ;;  %v13248_v8 = vcombine.low %v1837_v54, %v1838_v4  ;;  %v2887_v53 = vrot.slane %v2885_v49, 1  ;;  %v11648_v20 = vld [vmem:[#allocation2 + $0xbc] ss:$0 sps:$4 sm:$0x11]  }
 0x130   : > { %3347 = vmatprep.mubr.bf16.mxu0 %v2857_v47  ;;  %v2892_v5 = vrot.slane %v2890_v12, 1  ;;  %v2873_v16 = vshll.u32 %v13245_v63, 16  ;;  %v2871_v22 = vshrl.u32 %v13245_v63, 16  ;;  %v2926_v25 = vshll.u32 %v11648_v20, 16  ;;  %v1806_v49 = vld [vmem:[#allocation2 + $0xac] sm:$0xf] }
 0x131   : > { %15283 = vst [vmem:[#allocation7_spill] sm:$0xff] %v13248_v8  ;;  %v2921_v55 = vshll.u32 %v13248_v8, 16  ;;  %v2845_v47 = vsel %vm2401_vm12, %v2840_v40, %v2844_v59  ;;  %v2880_v12 = vrot.slane %v2878_v43, 1  ;;  %v2919_v54 = vshrl.u32 %v13248_v8, 16  ;;  %v11660_v59 = vld [vmem:[%s15230_s2 + $0x220] sm:$0xff]  }
 0x132   : > { %v2875_v48 = vrot.slane %v2873_v16, 1  ;;  %v11652_v63 = vld [vmem:[#allocation2 + $0xb0] ss:$0 sps:$4 sm:$0x11]   ;;  %v2928_v43 = vrot.slane %v2926_v25, 1 }
 0x133   : > { %3718 = vmatmul.mubr.bf16.vlgmr.msra.gmra.mxu1 %v12731_v27  ;;  %v2888_v27 = vor.u32 %v2887_v53, %v2883_v1  ;;  %v2923_v29 = vrot.slane %v2921_v55, 1  ;;  %v1839_v1 = vld [vmem:[#allocation2 + $0xc0] sm:$0xf]  ;;  %v13267_v53 = vld [vmem:[#allocation2 + $0xc4] sm:$0xf]  ;;  %v2914_v20 = vshll.u32 %v11652_v63, 16 }
 0x134   : > { %11296 = vmatpush3.bf16.msra.mxu1 %v13112_v31  ;;  %3725 = vmatprep.mubr.bf16.mxu1 %v12897_v56  ;;  %v1805_v31 = vld [vmem:[#allocation2 + $0xa8] sm:$0xf]  ;;  %v2876_v40 = vor.u32 %v2875_v48, %v2871_v22  ;;  %v13282_v48 = vld [vmem:[#allocation2 + $0xbc] ss:$0 sps:$4 sm:$0x11]  }
 0x135   : > { %11297 = vmatprep.subr.bf16.mxu1 %v11650_v60  ;;  %3348 = vmatmul.mubr.bf16.gmra.mxu0 %v2845_v47  ;;  %v2893_v56 = vsel %vm2401_vm12, %v2888_v27, %v2892_v5  ;;  %v13262_v4 = vcombine.low %v1805_v31, %v1806_v49  ;;  %v13270_v5 = vld [vmem:[#allocation2 + $0xc8] ss:$0 sps:$4 sm:$0x11]   ;;  %v2924_v55 = vor.u32 %v2923_v29, %v2919_v54  ;;  %v1807_v27 = vld [vmem:[#allocation2 + $0xb4] sm:$0xf]  ;;  %v11663_v63 = vld [vmem:[%s15230_s2 + $0x218] sm:$0xff]  }
 0x136   : > { %3355 = vmatprep.mubr.bf16.mxu0 %v2893_v56  ;;  %v13273_v47 = vcombine.low %v1839_v1, %v13267_v53  ;;  %v13275_v31 = vld [vmem:[#allocation2 + $0xb8] sm:$0xf]  ;;  %v2881_v25 = vsel %vm2401_vm12, %v2876_v40, %v2880_v12  ;;  %v2916_v56 = vrot.slane %v2914_v20, 1  ;;  %v2950_v12 = vshll.u32 %v13282_v48, 16 }
 0x137   : > { %15284 = vst [vmem:[#allocation8_spill] sm:$0xff] %v13262_v4  ;;  %v2909_v16 = vshll.u32 %v13262_v4, 16  ;;  %v13280_v22 = vcombine.low %v1807_v27, %v13275_v31  ;;  %v2907_v29 = vshrl.u32 %v13262_v4, 16  ;;  %v2929_v27 = vsel %vm2401_vm12, %v2924_v55, %v2928_v43  ;;  %v11679_v43 = vld [vmem:[%s15230_s2 + $0x208] sm:$0xff]  }
 0x138   : > { %11298 = vmatpush3.bf16.msra.mxu1 %v11650_v60  ;;  %15285 = vst [vmem:[#allocation9_spill] sm:$0xff] %v13273_v47  ;;  %v2962_v60 = vshll.u32 %v13270_v5, 16  ;;  %v2957_v49 = vshll.u32 %v13273_v47, 16  ;;  %v2955_v54 = vshrl.u32 %v13273_v47, 16  ;;  %v2952_v20 = vrot.slane %v2950_v12, 1 }
 0x139   : > { %11299 = vmatprep.subr.bf16.mxu1 %v11659_v33  ;;  %v2945_v1 = vshll.u32 %v13280_v22, 16  ;;  %v2943_v40 = vshrl.u32 %v13280_v22, 16  ;;  %v4025_v12 = vld [vmem:[#allocation2 + $0x24] sm:$0xe] }
 0x13a   : > { %v2959_v8 = vrot.slane %v2957_v49, 1  ;;  %v4336_v49 = vrot.slane %v13282_v48, 1 }
 0x13b   : > { %3726 = vmatmul.mubr.bf16.gmra.mxu1 %v12860_v37  ;;  %v2911_v37 = vrot.slane %v2909_v16, 1  ;;  %v2947_v16 = vrot.slane %v2945_v1, 1 }
 0x13c   : > { %3733 = vmatprep.mubr.bf16.mxu1 %v12926_v41  ;;  %11300 = vmatpush3.bf16.msra.mxu1 %v11659_v33  ;;  %v2964_v41 = vrot.slane %v2962_v60, 1  ;;  %v11670_v33 = vld [vmem:[%s15230_s2 + $0x210] sm:$0xff]   ;;  %v2960_v4 = vor.u32 %v2959_v8, %v2955_v54  ;;  %v11680_v8 = vld [vmem:[%s15230_s2 + $0x200] sm:$0xff]  }
 0x13d   : > { %11301 = vmatprep.subr.bf16.mxu1 %v11660_v59  ;;  %3356 = vmatmul.mubr.bf16.gmra.mxu0 %v2881_v25  ;;  %v2912_v47 = vor.u32 %v2911_v37, %v2907_v29  ;;  %v4339_v25 = vrot.slane %v13270_v5, 1  ;;  %v4007_v5 = vld [vmem:[#allocation2] sm:$0xe] }
 0x13e   : > { %3363 = vmatprep.mubr.bf16.mxu0 %v2929_v27  ;;  %v2965_v60 = vsel %vm2401_vm12, %v2960_v4, %v2964_v41  ;;  %v11662_v4 = vld [vmem:[%s15230_s2 + $0x1b8] sm:$0xff]   ;;  %v11922_v41 = vld [vmem:[#allocation2 + $0x10] sm:$0xf] }
 0x13f   : > { %v2917_v55 = vsel %vm2401_vm12, %v2912_v47, %v2916_v56  ;;  %v11921_v27 = vld [vmem:[#allocation2 + $0x1c] sm:$0xf] }
 0x140   : > { %11302 = vmatpush3.bf16.msra.mxu1 %v11660_v59  ;;  %v11917_v59 = vld [vmem:[#allocation2 + $0x14] ss:$0 sps:$4 sm:$0x11]  }
 0x141   : > { %11303 = vmatprep.subr.bf16.mxu1 %v11663_v63  ;;  %v4204_v47 = vrot.slane %v11917_v59, 1 }
 0x143   : > { %3734 = vmatmul.mubr.bf16.gmra.mxu1 %v12905_v21  ;;  %v2948_v21 = vor.u32 %v2947_v16, %v2943_v40 }
 0x144   : > { %3741 = vmatprep.mubr.bf16.mxu1 %v12922_v10  ;;  %11304 = vmatpush3.bf16.msra.mxu1 %v11663_v63 }
 0x145   : > { %11305 = vmatprep.subr.bf16.mxu1 %v11670_v33  ;;  %3364 = vmatmul.mubr.bf16.gmra.mxu0 %v2917_v55  ;;  %v2953_v10 = vsel %vm2401_vm12, %v2948_v21, %v2952_v20 }
 0x146   : > { %3371 = vmatprep.mubr.bf16.mxu0 %v2965_v60 }
 0x148   : > { %11306 = vmatpush3.bf16.msra.mxu1 %v11670_v33  ;;  %v11923_v33 = vld [vmem:[#allocation2 + $0x28] sm:$0xf] }
 0x149   : > { %11307 = vmatprep.subr.bf16.mxu1 %v11679_v43 }
 0x14b   : > { %3742 = vmatmul.mubr.bf16.gmra.mxu1 %v12954_v26  ;;  %v11664_v26 = vld [vmem:[%s15230_s2 + $0x1f0] sm:$0xff]  }
 0x14c   : > { %3749 = vmatprep.mubr.bf16.mxu1 %v12993_v61  ;;  %11308 = vmatpush3.bf16.msra.mxu1 %v11679_v43  ;;  %v11666_v61 = vld [vmem:[%s15230_s2 + $0x1e8] sm:$0xff]  }
 0x14d   : > { %11309 = vmatprep.subr.bf16.mxu1 %v11680_v8  ;;  %3372 = vmatmul.mubr.bf16.gmra.mxu0 %v2953_v10  ;;  %v11925_v43 = vld [vmem:[#allocation2 + $0x2c] ss:$0 sps:$4 sm:$0x11]  }
 0x14e   : > { %11263 = vmatprep.mubr.bf16.mxu0 %v12899_v57  ;;  %v11665_v57 = vld [vmem:[%s15230_s2 + $0x1b0] sm:$0xff]   ;;  %v4222_v55 = vrot.slane %v11925_v43, 1 }
 0x150   : > { %11310 = vmatpush3.bf16.msra.mxu1 %v11680_v8 }
 0x153   : > { %3750 = vmatmul.mubr.bf16.gmra.mxu1 %v13008_v24  ;;  %v11667_v24 = vld [vmem:[%s15230_s2 + $0x1a8] sm:$0xff]  }
 0x154   : > { %3757 = vmatprep.mubr.bf16.mxu1 %v13010_v30  ;;  %v11671_v30 = vld [vmem:[%s15230_s2 + $0x1d8] sm:$0xff]  }
 0x155   : > { %11264 = vmatmul.mubr.bf16.vlgmr.msra.gmra.mxu0 %v12931_v44  ;;  %v11669_v44 = vld [vmem:[%s15230_s2 + $0x1a0] sm:$0xff]  }
 0x156   : > { %11267 = vmatprep.mubr.bf16.mxu0 %v12918_v3  ;;  %10656 = vmatpush3.bf16.msra.mxu0 %v11662_v4  ;;  %v11668_v3 = vld [vmem:[%s15230_s2 + $0x1e0] sm:$0xff]  }
 0x157   : > { %10657 = vmatprep.subr.bf16.mxu0 %v11664_v26 }
 0x15a   : > { %10658 = vmatpush3.bf16.msra.mxu0 %v11665_v57 }
 0x15b   : > { %3758 = vmatmul.mubr.bf16.gmra.mxu1 %v13014_v36  ;;  %10659 = vmatprep.subr.bf16.mxu0 %v11666_v61  ;;  %v11672_v36 = vld [vmem:[%s15230_s2 + $0x198] sm:$0xff]  }
 0x15c   : > { %3765 = vmatprep.mubr.bf16.mxu1 %v13066_v62  ;;  %v11675_v62 = vld [vmem:[%s15230_s2 + $0x1c8] sm:$0xff]  }
 0x15d   : > { %11268 = vmatmul.mubr.bf16.gmra.mxu0 %v12963_v9  ;;  %v11673_v9 = vld [vmem:[%s15230_s2 + $0x1d0] sm:$0xff]  }
 0x15e   : > { %11271 = vmatprep.mubr.bf16.mxu0 %v13001_v11  ;;  %10660 = vmatpush3.bf16.msra.mxu0 %v11667_v24  ;;  %v11674_v11 = vld [vmem:[%s15230_s2 + $0x190] sm:$0xff]   ;;  %v4009_v24 = vld [vmem:[#allocation2 + $0x18] sm:$0xe] }
 0x15f   : > { %10661 = vmatprep.subr.bf16.mxu0 %v11668_v3  ;;  %v15287_v3 = vld [vmem:[#allocation6_spill] sm:$0xff] }
 0x162   : > { %10662 = vmatpush3.bf16.msra.mxu0 %v11669_v44 }
 0x163   : > { %3766 = vmatmul.mubr.bf16.gmra.mxu1 %v13083_v15  ;;  %10663 = vmatprep.subr.bf16.mxu0 %v11671_v30  ;;  %v11676_v15 = vld [vmem:[%s15230_s2 + $0x188] sm:$0xff]  }
 0x164   : > { %3773 = vmatprep.mubr.bf16.mxu1 %v13099_v0  ;;  %v4023_v0 = vld [vmem:[#allocation2 + $0xc] sm:$0xe] }
 0x165   : > { %11272 = vmatmul.mubr.bf16.gmra.mxu0 %v13022_v58  ;;  %v11677_v58 = vld [vmem:[%s15230_s2 + $0x1c0] sm:$0xff]   ;;  %v15288_v30 = vld [vmem:[#allocation7_spill] sm:$0xff] }
 0x166   : > { %11275 = vmatprep.mubr.bf16.mxu0 %v13051_v19  ;;  %10664 = vmatpush3.bf16.msra.mxu0 %v11672_v36  ;;  %v11678_v19 = vld [vmem:[%s15230_s2 + $0x180] sm:$0xff]  }
 0x167   : > { %10665 = vmatprep.subr.bf16.mxu0 %v11673_v9  ;;  %v11926_v9 = vld [vmem:[#allocation2 + $0x1c] sm:$0xf] }
 0x16a   : > { %10666 = vmatpush3.bf16.msra.mxu0 %v11674_v11  ;;  %v4026_v11 = vld [vmem:[#allocation2 + $0x30] sm:$0xe] }
 0x16b   : > { %3774 = vmatmul.mubr.bf16.gmra.mxu1 %v13120_v23  ;;  %10667 = vmatprep.subr.bf16.mxu0 %v11675_v62  ;;  %v4038_v23 = vld [vmem:[#allocation2 + $0xc0] sm:$0xe] }
 0x16c   : > { %3781 = vmatprep.mubr.bf16.mxu1 %v13132_v2  ;;  %v4022_v2 = vld [vmem:[#allocation2 + $0xb4] sm:$0xe]  ;;  %v9456_v63 = vcombine.low %v4038_v23, %v13267_v53 }
 0x16d   : > { %11276 = vmatmul.mubr.bf16.gmra.mxu0 %v13081_v46  ;;  %v11916_v46 = vld [vmem:[#allocation2 + $0x10] sm:$0xf] }
 0x16e   : > { %11279 = vmatprep.mubr.bf16.mxu0 %v13117_v34  ;;  %10668 = vmatpush3.bf16.msra.mxu0 %v11676_v15  ;;  %v9441_v34 = vcombine.low %v4023_v0, %v11916_v46  ;;  %v4338_v37 = vrot.slane %v9456_v63, 1 }
 0x16f   : > { %10669 = vmatprep.subr.bf16.mxu0 %v11677_v58 }
 0x170   : > { %v4203_v56 = vrot.slane %v9441_v34, 1  ;;  %v13385_v1 = vsel %vm4199_vm13, %v4338_v37, %v4339_v25  ;;  %v15290_v37 = vld [vmem:[#allocation9_spill] sm:$0xff] }
 0x172   : > { %10670 = vmatpush3.bf16.msra.mxu0 %v11678_v19  ;;  %v4205_v60 = vsel %vm4199_vm13, %v4203_v56, %v4204_v47  ;;  %v11927_v19 = vld [vmem:[#allocation2 + $0x34] sm:$0xf]  ;;  %v4039_v47 = vld [vmem:[#allocation2 + $0x18] sm:$0xe] }
 0x173   : > { %3782 = vmatmul.mubr.bf16.gmra.mxu1 %v13148_v18  ;;  %v11918_v18 = vld [vmem:[#allocation2 + $0x8] ss:$0 sps:$4 sm:$0x11]   ;;  %v9444_v0 = vcombine.low %v4026_v11, %v11927_v19  ;;  %v11937_v11 = vld [vmem:[#allocation2 + $0x34] sm:$0xf] }
 0x174   : > { %3789 = vmatprep.mubr.bf16.mxu1 %v13158_v6  ;;  %v4201_v29 = vrot.slane %v11918_v18, 1  ;;  %v9440_v6 = vcombine.low %v4022_v2, %v13275_v31  ;;  %v4008_v31 = vld [vmem:[#allocation2 + $0xc] sm:$0xe]  ;;  %v11928_v2 = vld [vmem:[#allocation2 + $0x38] ss:$0 sps:$4 sm:$0x11]  }
 0x175   : > { %11280 = vmatmul.mubr.bf16.gmra.mxu0 %v13127_v32  ;;  %v11919_v32 = vld [vmem:[#allocation2 + $0x20] ss:$0 sps:$4 sm:$0x11]   ;;  %v9426_v40 = vcombine.low %v4008_v31, %v11922_v41  ;;  %v4231_v59 = vrot.slane %v11928_v2, 1  ;;  %v15289_v18 = vld [vmem:[#allocation8_spill] sm:$0xff] }
 0x176   : > { %11283 = vmatprep.mubr.bf16.mxu0 %v13146_v42  ;;  %v4213_v42 = vrot.slane %v11919_v32, 1  ;;  %v4335_v54 = vrot.slane %v9440_v6, 1  ;;  %v11939_v2 = vld [vmem:[#allocation2 + $0x38] ss:$0 sps:$4 sm:$0x11]  }
 0x177   : > { %v4209_v8 = vrot.slane %v9426_v40, 1  ;;  %v11932_v40 = vld [vmem:[#allocation2 + $0x40] sm:$0xf] }
 0x178   : > { %v13389_v53 = vsel %vm4199_vm13, %v4335_v54, %v4336_v49  ;;  %v11930_v49 = vld [vmem:[#allocation2 + $0x1c] sm:$0xf]  ;;  %v4230_v54 = vrot.slane %v9444_v0, 1  ;;  %v4011_v0 = vld [vmem:[#allocation2 + $0x30] sm:$0xe] }
 0x179   : > { %v9457_v32 = vcombine.low %v4039_v47, %v11930_v49 }
 0x17b   : > { %3790 = vmatmul.mubr.bf16.gmra.mxu1 %v13170_v35  ;;  %v4024_v35 = vld [vmem:[#allocation2 + $0x18] sm:$0xe] }
 0x17c   : > { %3797 = vmatprep.mubr.bf16.mxu1 %v13179_v50  ;;  %v11920_v50 = vld [vmem:[#allocation2 + $0x4] sm:$0xf] }
 0x17d   : > { %11284 = vmatmul.mubr.bf16.gmra.mxu0 %v13166_v45  ;;  %v9425_v48 = vcombine.low %v4007_v5, %v11920_v50  ;;  %v9442_v45 = vcombine.low %v4024_v35, %v11921_v27  ;;  %v4010_v5 = vld [vmem:[#allocation2 + $0x24] sm:$0xe]  ;;  %v11931_v50 = vld [vmem:[#allocation2 + $0x28] sm:$0xf]  ;;  %v4027_v27 = vld [vmem:[#allocation2 + $0x3c] sm:$0xe] }
 0x17e   : > { %11287 = vmatprep.mubr.bf16.mxu0 %v13189_v51  ;;  %v9443_v51 = vcombine.low %v4025_v12, %v11923_v33  ;;  %v9445_v33 = vcombine.low %v4027_v27, %v11932_v40  ;;  %v11943_v27 = vld [vmem:[#allocation2 + $0x50] ss:$0 sps:$4 sm:$0x11]   ;;  %v4043_v40 = vld [vmem:[#allocation2 + $0x48] sm:$0xe] }
 0x17f   : > { %v4212_v16 = vrot.slane %v9442_v45, 1  ;;  %v4232_v45 = vsel %vm4199_vm13, %v4230_v54, %v4231_v59  ;;  %v4225_v59 = vrot.slane %v11939_v2, 1  ;;  %v11951_v2 = vld [vmem:[#allocation2 + $0x5c] ss:$0 sps:$4 sm:$0x11]  }
 0x180   : > { %v4221_v21 = vrot.slane %v9443_v51, 1 }
 0x182   : > { %v4223_v62 = vsel %vm4199_vm13, %v4221_v21, %v4222_v55 }
 0x183   : > { %3798 = vmatmul.mubr.bf16.gmra.mxu1 %v13192_v14  ;;  %v4200_v14 = vrot.slane %v9425_v48, 1  ;;  %v9428_v48 = vcombine.low %v4010_v5, %v11931_v50  ;;  %v4042_v5 = vld [vmem:[#allocation2 + $0x3c] sm:$0xe] }
 0x184   : > { %3805 = vmatprep.mubr.bf16.mxu1 %v13202_v7  ;;  %v11924_v7 = vld [vmem:[#allocation2 + $0x14] ss:$0 sps:$4 sm:$0x11]  }
 0x185   : > { %11288 = vmatmul.mubr.bf16.gmra.mxu0 %v13197_v52  ;;  %v4210_v20 = vrot.slane %v11924_v7, 1  ;;  %v4227_v55 = vrot.slane %v9428_v48, 1 }
 0x186   : > { %11291 = vmatprep.mubr.bf16.mxu0 %v13211_v13  ;;  %v15286_v13 = vld [vmem:[#allocation5_spill] sm:$0xff] }
 0x187   : > { %v4211_v36 = vsel %vm4199_vm13, %v4209_v8, %v4210_v20 }
 0x18a   : > { %v10399_v52 = vpop.f32.mrf.mxu0 }
 0x18b   : > { %3806 = vmatmul.mubr.bf16.gmra.mxu1 %v13222_v38  ;;  %v4202_v38 = vsel %vm4199_vm13, %v4200_v14, %v4201_v29  ;;  %v11929_v29 = vld [vmem:[#allocation2 + $0x20] ss:$0 sps:$4 sm:$0x11]  }
 0x18c   : > { %3813 = vmatprep.mubr.bf16.mxu1 %v13227_v39  ;;  %v10400_v10 = vpop.f32.mrf.mxu0  ;;  %v4214_v39 = vsel %vm4199_vm13, %v4212_v16, %v4213_v42  ;;  %v4219_v6 = vrot.slane %v11929_v29, 1  ;;  %v4206_v16 = vrot.slane %v9457_v32, 1 }
 0x18d   : > { %11292 = vmatmul.mubr.bf16.gmra.mxu0 %v15286_v13  ;;  %v10401_v4 = vadd.f32 %v10400_v10, %v10399_v52  ;;  %v11933_v52 = vld [vmem:[#allocation2 + $0x20] ss:$0 sps:$4 sm:$0x11]   ;;  %v4239_v10 = vrot.slane %v9445_v33, 1 }
 0x18e   : > { %4617 = vmatprep.mubr.bf16.mxu0 %v4205_v60  ;;  %v10402_v26 = vpop.f32.mrf.mxu0  ;;  %v4207_v13 = vrot.slane %v11933_v52, 1  ;;  %v4040_v60 = vld [vmem:[#allocation2 + $0x24] sm:$0xe]  ;;  %v4012_v52 = vld [vmem:[#allocation2 + $0x3c] sm:$0xe] }
 0x190   : > { %v10403_v57 = vpop.f32.mrf.mxu0 }
 0x191   : > { %v10404_v61 = vadd.f32 %v10403_v57, %v10402_v26 }
 0x193   : > { %3814 = vmatmul.mubr.bf16.gmra.mxu1 %v13233_v28  ;;  %v9427_v28 = vcombine.low %v4009_v24, %v11926_v9  ;;  %v11936_v24 = vld [vmem:[#allocation2 + $0x2c] ss:$0 sps:$4 sm:$0x11]  }
 0x194   : > { %3821 = vmatprep.mubr.bf16.mxu1 %v13237_v17 }
 0x195   : > { %4618 = vmatmul.mubr.bf16.vlgmr.msra.gmra.mxu0 %v4202_v38  ;;  %v4218_v23 = vrot.slane %v9427_v28, 1  ;;  %v11935_v38 = vld [vmem:[#allocation2 + $0x28] sm:$0xf] }
 0x196   : > { %4625 = vmatprep.mubr.bf16.mxu0 %v4214_v39  ;;  %v10405_v44 = vpop.f32.mrf.mxu0  ;;  %v9458_v57 = vcombine.low %v4040_v60, %v11935_v38 }
 0x197   : > { %v4220_v35 = vsel %vm4199_vm13, %v4218_v23, %v4219_v6  ;;  %v11941_v6 = vld [vmem:[#allocation2 + $0x4c] sm:$0xf] }
 0x198   : > { %v10406_v17 = vpop.f32.mrf.mxu0  ;;  %v4215_v19 = vrot.slane %v9458_v57, 1 }
 0x199   : > { %v10407_v15 = vadd.f32 %v10406_v17, %v10405_v44  ;;  %v4208_v44 = vsel %vm4199_vm13, %v4206_v16, %v4207_v13  ;;  %v4028_v17 = vld [vmem:[#allocation2 + $0x48] sm:$0xe] }
 0x19a   : > { %v10408_v58 = vpop.f32.mrf.mxu0  ;;  %v9446_v49 = vcombine.low %v4028_v17, %v11941_v6 }
 0x19b   : > { %3822 = vmatmul.mubr.bf16.gmra.mxu1 %v15287_v3  ;;  %v4228_v3 = vrot.slane %v11936_v24, 1  ;;  %v11947_v24 = vld [vmem:[#allocation2 + $0x44] ss:$0 sps:$4 sm:$0x11]  }
 0x19c   : > { %3829 = vmatprep.mubr.bf16.mxu1 %v15288_v30  ;;  %v10409_v46 = vpop.f32.mrf.mxu0 }
 0x19d   : > { %4626 = vmatmul.mubr.bf16.gmra.mxu0 %v4211_v36  ;;  %v11217_v34 = vpop.f32.mrf.mxu1  ;;  %v10410_v63 = vadd.f32 %v10409_v46, %v10408_v58  ;;  %v4041_v36 = vld [vmem:[#allocation2 + $0x30] sm:$0xe]  ;;  %v4229_v9 = vsel %vm4199_vm13, %v4227_v55, %v4228_v3  ;;  %v11938_v46 = vld [vmem:[#allocation2 + $0x34] sm:$0xf]  ;;  %v4248_v55 = vrot.slane %v9446_v49, 1  ;;  %v4234_v3 = vrot.slane %v11947_v24, 1 }
 0x19e   : > { %4633 = vmatprep.mubr.bf16.mxu0 %v4223_v62  ;;  %v13408_v25 = vadd.f32 %v11217_v34, %v10407_v15  ;;  %v9459_v62 = vcombine.low %v4041_v36, %v11937_v11  ;;  %v9429_v34 = vcombine.low %v4011_v0, %v11938_v46  ;;  %v11949_v36 = vld [vmem:[#allocation2 + $0x50] ss:$0 sps:$4 sm:$0x11]   ;;  %v4044_v0 = vld [vmem:[#allocation2 + $0x54] sm:$0xe] }
 0x19f   : > { %v3414_v56 = vpop.f32.mrf.mxu1 }
 0x1a0   : > { %v10411_v42 = vpop.f32.mrf.mxu0  ;;  %v13413_v31 = vadd.f32 %v10401_v4, %v3414_v56  ;;  %v11934_v4 = vld [vmem:[#allocation2 + $0x44] ss:$0 sps:$4 sm:$0x11]   ;;  %v4224_v54 = vrot.slane %v9459_v62, 1 }
 0x1a1   : > { %v11218_v41 = vpop.f32.mrf.mxu1  ;;  %v4240_v26 = vrot.slane %v11934_v4, 1 }
 0x1a2   : > { %v10412_v12 = vpop.f32.mrf.mxu0  ;;  %v13416_v14 = vadd.f32 %v11218_v41, %v10410_v63  ;;  %v4226_v16 = vsel %vm4199_vm13, %v4224_v54, %v4225_v59  ;;  %v4258_v59 = vrot.slane %v11951_v2, 1 }
 0x1a3   : > { %3830 = vmatmul.mubr.bf16.gmra.mxu1 %v15289_v18  ;;  %v10413_v51 = vadd.f32 %v10412_v12, %v10411_v42  ;;  %v3417_v20 = vpop.f32.mrf.mxu1  ;;  %v4241_v15 = vsel %vm4199_vm13, %v4239_v10, %v4240_v26  ;;  %v11940_v18 = vld [vmem:[#allocation2 + $0x2c] ss:$0 sps:$4 sm:$0x11]   ;;  %v11944_v12 = vld [vmem:[#allocation2 + $0x40] sm:$0xf] }
 0x1a4   : > { %3837 = vmatprep.mubr.bf16.mxu1 %v15290_v37  ;;  %v10414_v7 = vpop.f32.mrf.mxu0  ;;  %v13418_v43 = vadd.f32 %v10404_v61, %v3417_v20  ;;  %v4216_v29 = vrot.slane %v11940_v18, 1  ;;  %v11942_v37 = vld [vmem:[#allocation2 + $0x38] ss:$0 sps:$4 sm:$0x11]   ;;  %v9460_v41 = vcombine.low %v4042_v5, %v11944_v12  ;;  %v11946_v10 = vld [vmem:[#allocation2 + $0x4c] sm:$0xf] }
 0x1a5   : > { %4634 = vmatmul.mubr.bf16.gmra.mxu0 %v4220_v35  ;;  %v11221_v21 = vpop.f32.mrf.mxu1  ;;  %v4237_v56 = vrot.slane %v11942_v37, 1  ;;  %v9461_v4 = vcombine.low %v4043_v40, %v11946_v10  ;;  %v4029_v26 = vld [vmem:[#allocation2 + $0x54] sm:$0xe]  ;;  %v4045_v18 = vld [vmem:[#allocation2 + $0x60] sm:$0xe] }
 0x1a6   : > { %4641 = vmatprep.mubr.bf16.mxu0 %v4232_v45  ;;  %v10415_v8 = vpop.f32.mrf.mxu0  ;;  %v4217_v48 = vsel %vm4199_vm13, %v4215_v19, %v4216_v29  ;;  %v4249_v45 = vrot.slane %v11943_v27, 1  ;;  %v4030_v27 = vld [vmem:[#allocation2 + $0x60] sm:$0xe] }
 0x1a7   : > { %v10416_v39 = vadd.f32 %v10415_v8, %v10414_v7  ;;  %v3430_v30 = vpop.f32.mrf.mxu1  ;;  %v11945_v8 = vld [vmem:[#allocation2 + $0x40] sm:$0xf]  ;;  %v4242_v19 = vrot.slane %v9461_v4, 1 }
 0x1a8   : > { %v10417_v61 = vpop.f32.mrf.mxu0  ;;  %v13423_v28 = vadd.f32 %v10413_v51, %v3430_v30  ;;  %v4236_v51 = vrot.slane %v9429_v34, 1  ;;  %v4250_v38 = vsel %vm4199_vm13, %v4248_v55, %v4249_v45  ;;  %v11956_v55 = vld [vmem:[#allocation2 + $0x68] ss:$0 sps:$4 sm:$0x11]  }
 0x1aa   : > { %v10418_v58 = vpop.f32.mrf.mxu0  ;;  %v4238_v60 = vsel %vm4199_vm13, %v4236_v51, %v4237_v56  ;;  %v4013_v56 = vld [vmem:[#allocation2 + $0x48] sm:$0xe] }
 0x1ab   : > { %3838 = vmatmul.mubr.bf16.gmra.mxu1 %v13280_v22  ;;  %v11222_v22 = vpop.f32.mrf.mxu1  ;;  %v10419_v23 = vadd.f32 %v10418_v58, %v10417_v61  ;;  %v11950_v58 = vld [vmem:[#allocation2 + $0x44] ss:$0 sps:$4 sm:$0x11]  }
 0x1ac   : > { %11311 = vmatprep.mubr.bf16.mxu1 %v4208_v44  ;;  %v10420_v47 = vpop.f32.mrf.mxu0  ;;  %v11948_v44 = vld [vmem:[#allocation2 + $0x58] sm:$0xf] }
 0x1ad   : > { %4642 = vmatmul.mubr.bf16.gmra.mxu0 %v4229_v9  ;;  %v3433_v63 = vpop.f32.mrf.mxu1  ;;  %v13426_v32 = vadd.f32 %v11221_v21, %v10419_v23  ;;  %v9430_v21 = vcombine.low %v4012_v52, %v11945_v8  ;;  %v9447_v61 = vcombine.low %v4029_v26, %v11948_v44  ;;  %v4243_v9 = vrot.slane %v11949_v36, 1  ;;  %v11958_v26 = vld [vmem:[#allocation2 + $0x50] ss:$0 sps:$4 sm:$0x11]  }
 0x1ae   : > { %4649 = vmatprep.mubr.bf16.mxu0 %v4241_v15  ;;  %v13428_v42 = vadd.f32 %v10416_v39, %v3433_v63  ;;  %v10421_v35 = vpop.f32.mrf.mxu0  ;;  %v4233_v39 = vrot.slane %v9460_v41, 1  ;;  %v4261_v52 = vrot.slane %v11956_v55, 1  ;;  %v11959_v44 = vld [vmem:[#allocation2 + $0x68] ss:$0 sps:$4 sm:$0x11]  }
 0x1af   : > { %v13430_v50 = vpop.f32.mrf.mxu1  ;;  %v10422_v33 = vadd.f32 %v10421_v35, %v10420_v47  ;;  %v4245_v15 = vrot.slane %v9430_v21, 1  ;;  %v4257_v34 = vrot.slane %v9447_v61, 1  ;;  %v11952_v47 = vld [vmem:[#allocation2 + $0x58] sm:$0xf]  ;;  %v4244_v6 = vsel %vm4199_vm13, %v4242_v19, %v4243_v9  ;;  %v11953_v35 = vld [vmem:[#allocation2 + $0x64] sm:$0xf] }
 0x1b0   : > { %v10423_v7 = vpop.f32.mrf.mxu0  ;;  %v4235_v46 = vsel %vm4199_vm13, %v4233_v39, %v4234_v3  ;;  %v9462_v63 = vcombine.low %v4044_v0, %v11952_v47  ;;  %v11957_v21 = vld [vmem:[#allocation2 + $0x64] sm:$0xf]  ;;  %v4046_v39 = vld [vmem:[#allocation2 + $0x6c] sm:$0xe]  ;;  %v4267_v61 = vrot.slane %v11959_v44, 1 }
 0x1b1   : > { %v3446_v20 = vpop.f32.mrf.mxu1  ;;  %v13434_v13 = vadd.f32 %v11222_v22, %v10422_v33  ;;  %v4246_v22 = vrot.slane %v11950_v58, 1  ;;  %v4259_v45 = vsel %vm4199_vm13, %v4257_v34, %v4258_v59  ;;  %v11954_v33 = vld [vmem:[#allocation2 + $0x5c] ss:$0 sps:$4 sm:$0x11]   ;;  %v9448_v10 = vcombine.low %v4030_v27, %v11957_v21  ;;  %v4047_v9 = vld [vmem:[#allocation2 + $0x78] sm:$0xe] }
 0x1b2   : > { %v10424_v57 = vpop.f32.mrf.mxu0  ;;  %v4251_v40 = vrot.slane %v9462_v63, 1  ;;  %v4252_v51 = vrot.slane %v11954_v33, 1  ;;  %v4014_v0 = vld [vmem:[#allocation2 + $0x54] sm:$0xe]  ;;  %v11961_v34 = vld [vmem:[#allocation2 + $0x58] sm:$0xf] }
 0x1b3   : > { %11312 = vmatmul.mubr.bf16.vlgmr.msra.gmra.mxu1 %v4217_v48  ;;  %v10425_v30 = vadd.f32 %v10424_v57, %v10423_v7  ;;  %v13438_v11 = vpop.f32.mrf.mxu1  ;;  %v4247_v5 = vsel %vm4199_vm13, %v4245_v15, %v4246_v22  ;;  %v9463_v48 = vcombine.low %v4045_v18, %v11953_v35  ;;  %v11955_v7 = vld [vmem:[#allocation2 + $0x4c] sm:$0xf]  ;;  %v4266_v19 = vrot.slane %v9448_v10, 1  ;;  %v11962_v59 = vld [vmem:[#allocation2 + $0x7c] sm:$0xf] }
 0x1b4   : > { %11315 = vmatprep.mubr.bf16.mxu1 %v4226_v16  ;;  %v10426_v62 = vpop.f32.mrf.mxu0  ;;  %v4253_v3 = vsel %vm4199_vm13, %v4251_v40, %v4252_v51  ;;  %v9432_v2 = vcombine.low %v4014_v0, %v11961_v34  ;;  %v9465_v47 = vcombine.low %v4047_v9, %v11962_v59  ;;  %v4031_v63 = vld [vmem:[#allocation2 + $0x6c] sm:$0xe]  ;;  %v11966_v33 = vld [vmem:[#allocation2 + $0x5c] ss:$0 sps:$4 sm:$0x11]  }
 0x1b5   : > { %4650 = vmatmul.mubr.bf16.gmra.mxu0 %v4238_v60  ;;  %v13440_v17 = vadd.f32 %v10425_v30, %v3446_v20  ;;  %v3449_v49 = vpop.f32.mrf.mxu1  ;;  %v9431_v20 = vcombine.low %v4013_v56, %v11955_v7  ;;  %v4260_v57 = vrot.slane %v9463_v48, 1  ;;  %v11960_v30 = vld [vmem:[#allocation2 + $0x70] sm:$0xf]  ;;  %v4268_v18 = vsel %vm4199_vm13, %v4266_v19, %v4267_v61  ;;  %v4048_v7 = vld [vmem:[#allocation2 + $0x84] sm:$0xe] }
 0x1b6   : > { %4657 = vmatprep.mubr.bf16.mxu0 %v4250_v38  ;;  %v10427_v23 = vpop.f32.mrf.mxu0  ;;  %v4255_v38 = vrot.slane %v11958_v26, 1  ;;  %v9464_v36 = vcombine.low %v4046_v39, %v11960_v30  ;;  %v11964_v56 = vld [vmem:[#allocation2 + $0x70] sm:$0xf]  ;;  %v4263_v40 = vrot.slane %v9432_v2, 1  ;;  %v4264_v51 = vrot.slane %v11966_v33, 1 }
 0x1b7   : > { %v10428_v29 = vadd.f32 %v10427_v23, %v10426_v62  ;;  %v4254_v15 = vrot.slane %v9431_v20, 1  ;;  %v4262_v58 = vsel %vm4199_vm13, %v4260_v57, %v4261_v52  ;;  %v11967_v21 = vld [vmem:[#allocation2 + $0x74] ss:$0 sps:$4 sm:$0x11]   ;;  %v11968_v26 = vld [vmem:[#allocation2 + $0x88] sm:$0xf] }
 0x1b8   : > { %v10429_v37 = vpop.f32.mrf.mxu0  ;;  %v4276_v10 = vrot.slane %v11967_v21, 1  ;;  %v4049_v57 = vld [vmem:[#allocation2 + $0x90] sm:$0xe]  ;;  %v4015_v44 = vld [vmem:[#allocation2 + $0x60] sm:$0xe]  ;;  %v4265_v30 = vsel %vm4199_vm13, %v4263_v40, %v4264_v51 }
 0x1b9   : > { %v13444_v54 = vadd.f32 %v10428_v29, %v3449_v49  ;;  %v11963_v49 = vld [vmem:[#allocation2 + $0x74] ss:$0 sps:$4 sm:$0x11]   ;;  %v11970_v19 = vld [vmem:[#allocation2 + $0x8c] ss:$0 sps:$4 sm:$0x11]  }
 0x1ba   : > { %v10430_v12 = vpop.f32.mrf.mxu0  ;;  %v4288_v0 = vrot.slane %v11970_v19, 1  ;;  %v11971_v34 = vld [vmem:[#allocation2 + $0x64] sm:$0xf]  ;;  %v11972_v59 = vld [vmem:[#allocation2 + $0x98] ss:$0 sps:$4 sm:$0x11]  }
 0x1bb   : > { %11316 = vmatmul.mubr.bf16.gmra.mxu1 %v4235_v46  ;;  %v10431_v16 = vadd.f32 %v10430_v12, %v10429_v37  ;;  %v4256_v46 = vsel %vm4199_vm13, %v4254_v15, %v4255_v38  ;;  %v4270_v37 = vrot.slane %v11963_v49, 1  ;;  %v9466_v38 = vcombine.low %v4048_v7, %v11968_v26  ;;  %v11976_v40 = vld [vmem:[#allocation2 + $0xa0] sm:$0xf]  ;;  %v4051_v51 = vld [vmem:[#allocation2 + $0xa8] sm:$0xe] }
 0x1bc   : > { %11319 = vmatprep.mubr.bf16.mxu1 %v4244_v6  ;;  %v10432_v60 = vpop.f32.mrf.mxu0  ;;  %v4269_v6 = vrot.slane %v9464_v36, 1  ;;  %v11969_v36 = vld [vmem:[#allocation2 + $0x94] sm:$0xf]  ;;  %v9433_v2 = vcombine.low %v4015_v44, %v11971_v34  ;;  %v4016_v21 = vld [vmem:[#allocation2 + $0x6c] sm:$0xe] }
 0x1bd   : > { %4658 = vmatmul.mubr.bf16.gmra.mxu0 %v4247_v5  ;;  %v13448_v41 = vpop.f32.mrf.mxu1  ;;  %v13451_v4 = vadd.f32 %v13430_v50, %v10431_v16  ;;  %v9449_v5 = vcombine.low %v4031_v63, %v11964_v56  ;;  %v4278_v16 = vrot.slane %v9465_v47, 1  ;;  %v9467_v9 = vcombine.low %v4049_v57, %v11969_v36  ;;  %v11981_v19 = vld [vmem:[#allocation2 + $0xb0] ss:$0 sps:$4 sm:$0x11]  }
 0x1be   : > { %4665 = vmatprep.mubr.bf16.mxu0 %v4259_v45  ;;  %v10433_v24 = vpop.f32.mrf.mxu0  ;;  %v4271_v52 = vsel %vm4199_vm13, %v4269_v6, %v4270_v37  ;;  %v4297_v47 = vrot.slane %v11972_v59, 1  ;;  %v11974_v37 = vld [vmem:[#allocation2 + $0x68] ss:$0 sps:$4 sm:$0x11]   ;;  %v4272_v7 = vrot.slane %v9433_v2, 1 }
 0x1bf   : > { %v3462_v8 = vpop.f32.mrf.mxu1  ;;  %v10434_v62 = vadd.f32 %v10433_v24, %v10432_v60  ;;  %v4275_v60 = vrot.slane %v9449_v5, 1  ;;  %v4273_v56 = vrot.slane %v11974_v37, 1  ;;  %v4296_v5 = vrot.slane %v9467_v9, 1 }
 0x1c0   : > { %v10435_v50 = vpop.f32.mrf.mxu0 }
 0x1c1   : > { %v13455_v22 = vpop.f32.mrf.mxu1  ;;  %v13458_v23 = vadd.f32 %v13438_v11, %v10434_v62  ;;  %v11965_v11 = vld [vmem:[#allocation2 + $0x80] ss:$0 sps:$4 sm:$0x11]   ;;  %v4032_v62 = vld [vmem:[#allocation2 + $0x78] sm:$0xe]  ;;  %v4277_v15 = vsel %vm4199_vm13, %v4275_v60, %v4276_v10  ;;  %v4274_v26 = vsel %vm4199_vm13, %v4272_v7, %v4273_v56 }
 0x1c2   : > { %v10436_v29 = vpop.f32.mrf.mxu0  ;;  %v4279_v48 = vrot.slane %v11965_v11, 1 }
 0x1c3   : > { %11320 = vmatmul.mubr.bf16.gmra.mxu1 %v4253_v3  ;;  %v10437_v35 = vadd.f32 %v10436_v29, %v10435_v50  ;;  %v3465_v27 = vpop.f32.mrf.mxu1  ;;  %v4287_v50 = vrot.slane %v9466_v38, 1  ;;  %v11973_v29 = vld [vmem:[#allocation2 + $0x7c] sm:$0xf]  ;;  %v11977_v38 = vld [vmem:[#allocation2 + $0x70] sm:$0xf] }
 0x1c4   : > { %11323 = vmatprep.mubr.bf16.mxu1 %v4262_v58  ;;  %v10438_v45 = vpop.f32.mrf.mxu0  ;;  %v9450_v6 = vcombine.low %v4032_v62, %v11973_v29  ;;  %v9434_v57 = vcombine.low %v4016_v21, %v11977_v38  ;;  %v11979_v62 = vld [vmem:[#allocation2 + $0xa4] ss:$0 sps:$4 sm:$0x11]   ;;  %v4054_v21 = vld [vmem:[#allocation2 + $0xcc] sm:$0xe] }
 0x1c5   : > { %4666 = vmatmul.mubr.bf16.gmra.mxu0 %v4256_v46  ;;  %v13462_v12 = vadd.f32 %v10437_v35, %v3462_v8  ;;  %v4280_v8 = vsel %vm4199_vm13, %v4278_v16, %v4279_v48  ;;  %v4050_v35 = vld [vmem:[#allocation2 + $0x9c] sm:$0xe]  ;;  %v4289_v48 = vsel %vm4199_vm13, %v4287_v50, %v4288_v0  ;;  %v4315_v0 = vrot.slane %v11981_v19, 1  ;;  %v11990_v19 = vld [vmem:[#allocation2 + $0xd0] sm:$0xf] }
 0x1c6   : > { %4673 = vmatprep.mubr.bf16.mxu0 %v4268_v18  ;;  %v10439_v20 = vpop.f32.mrf.mxu0  ;;  %v9468_v33 = vcombine.low %v4050_v35, %v11976_v40  ;;  %v4284_v60 = vrot.slane %v9450_v6, 1  ;;  %v4281_v59 = vrot.slane %v9434_v57, 1  ;;  %v4052_v6 = vld [vmem:[#allocation2 + $0xb4] sm:$0xe] }
 0x1c7   : > { %v10440_v39 = vadd.f32 %v10439_v20, %v10438_v45  ;;  %v4298_v20 = vsel %vm4199_vm13, %v4296_v5, %v4297_v47  ;;  %v11982_v47 = vld [vmem:[#allocation2 + $0x74] ss:$0 sps:$4 sm:$0x11]   ;;  %v11983_v35 = vld [vmem:[#allocation2 + $0x8c] ss:$0 sps:$4 sm:$0x11]  }
 0x1c8   : > { %v4305_v9 = vrot.slane %v9468_v33, 1 }
 0x1c9   : > { %v10441_v24 = vpop.f32.mrf.mxu0  ;;  %v13470_v61 = vadd.f32 %v10440_v39, %v3465_v27  ;;  %v11975_v27 = vld [vmem:[#allocation2 + $0x80] ss:$0 sps:$4 sm:$0x11]   ;;  %v11978_v39 = vld [vmem:[#allocation2 + $0xac] sm:$0xf] }
 0x1ca   : > { %v4285_v45 = vrot.slane %v11975_v27, 1 }
 0x1cb   : > { %v13464_v55 = vpop.f32.mrf.mxu1  ;;  %11324 = vmatmul.mubr.bf16.gmra.mxu1 %v4271_v52  ;;  %v10442_v58 = vpop.f32.mrf.mxu0 }
 0x1cc   : > { %11327 = vmatprep.mubr.bf16.mxu1 %v4280_v8  ;;  %v10443_v46 = vadd.f32 %v10442_v58, %v10441_v24  ;;  %v9469_v8 = vcombine.low %v4051_v51, %v11978_v39  ;;  %v4033_v24 = vld [vmem:[#allocation2 + $0x84] sm:$0xe]  ;;  %v4286_v44 = vsel %vm4199_vm13, %v4284_v60, %v4285_v45  ;;  %v11980_v58 = vld [vmem:[#allocation2 + $0x88] sm:$0xf]  ;;  %v4053_v45 = vld [vmem:[#allocation2 + $0xc0] sm:$0xe] }
 0x1cd   : > { %v13468_v3 = vpop.f32.mrf.mxu1  ;;  %4674 = vmatmul.mubr.bf16.gmra.mxu0 %v4265_v30  ;;  %v10444_v18 = vpop.f32.mrf.mxu0  ;;  %v9451_v50 = vcombine.low %v4033_v24, %v11980_v58  ;;  %v4034_v60 = vld [vmem:[#allocation2 + $0x90] sm:$0xe]  ;;  %v11986_v39 = vld [vmem:[#allocation2 + $0xbc] ss:$0 sps:$4 sm:$0x11]  }
 0x1ce   : > { %4681 = vmatprep.mubr.bf16.mxu0 %v4277_v15  ;;  %v13477_v49 = vadd.f32 %v13448_v41, %v10443_v46  ;;  %v4306_v15 = vrot.slane %v11979_v62, 1  ;;  %v4314_v29 = vrot.slane %v9469_v8, 1  ;;  %v4324_v8 = vrot.slane %v11986_v39, 1  ;;  %v4035_v39 = vld [vmem:[#allocation2 + $0x9c] sm:$0xe] }
 0x1cf   : > { %v13474_v63 = vpop.f32.mrf.mxu1  ;;  %v10445_v11 = vpop.f32.mrf.mxu0  ;;  %v4293_v5 = vrot.slane %v9451_v50, 1  ;;  %v11989_v50 = vld [vmem:[#allocation2 + $0x94] sm:$0xf] }
 0x1d0   : > { %v10446_v16 = vadd.f32 %v10445_v11, %v10444_v18  ;;  %v4282_v18 = vrot.slane %v11982_v47, 1  ;;  %v4307_v56 = vsel %vm4199_vm13, %v4305_v9, %v4306_v15  ;;  %v4294_v11 = vrot.slane %v11983_v35, 1  ;;  %v11988_v9 = vld [vmem:[#allocation2 + $0xc8] ss:$0 sps:$4 sm:$0x11]   ;;  %v11699_v35 = vld [vmem:[%s15231_s3 + $0x138] sm:$0xff]  }
 0x1d1   : > { %v13481_v52 = vpop.f32.mrf.mxu1  ;;  %v4333_v62 = vrot.slane %v11988_v9, 1  ;;  %10791 = vmatprep.subr.bf16.mxu1 %v11699_v35 }
 0x1d2   : > { %v10447_v41 = vpop.f32.mrf.mxu0  ;;  %v13484_v10 = vadd.f32 %v13455_v22, %v10446_v16  ;;  %v4017_v16 = vld [vmem:[#allocation2 + $0x78] sm:$0xe]  ;;  %v4283_v7 = vsel %vm4199_vm13, %v4281_v59, %v4282_v18  ;;  %v11991_v59 = vld [vmem:[#allocation2 + $0x80] ss:$0 sps:$4 sm:$0x11]  }
 0x1d3   : > { %11328 = vmatmul.mubr.bf16.gmra.mxu1 %v4289_v48  ;;  %v11984_v48 = vld [vmem:[#allocation2 + $0xb8] sm:$0xf]  ;;  %v4291_v47 = vrot.slane %v11991_v59, 1 }
 0x1d4   : > { %11331 = vmatprep.mubr.bf16.mxu1 %v4298_v20  ;;  %v10448_v30 = vpop.f32.mrf.mxu0  ;;  %v9470_v27 = vcombine.low %v4052_v6, %v11984_v48  ;;  %v11985_v20 = vld [vmem:[#allocation2 + $0xc4] sm:$0xf] }
 0x1d5   : > { %4682 = vmatmul.mubr.bf16.gmra.mxu0 %v4274_v26  ;;  %v10449_v22 = vadd.f32 %v10448_v30, %v10447_v41  ;;  %v9471_v41 = vcombine.low %v4053_v45, %v11985_v20  ;;  %v4295_v26 = vsel %vm4199_vm13, %v4293_v5, %v4294_v11  ;;  %v11700_v11 = vld [vmem:[%s15231_s3 + $0xf8] sm:$0xff]  }
 0x1d6   : > { %4689 = vmatprep.mubr.bf16.mxu0 %v4286_v44  ;;  %v10450_v46 = vpop.f32.mrf.mxu0  ;;  %v4323_v57 = vrot.slane %v9470_v27, 1  ;;  %v11987_v44 = vld [vmem:[#allocation2 + $0x7c] sm:$0xf]  ;;  %10792 = vmatpush3.bf16.msra.mxu1 %v11700_v11 }
 0x1d7   : > { %v13493_v2 = vadd.f32 %v10449_v22, %v13468_v3  ;;  %v4316_v3 = vsel %vm4199_vm13, %v4314_v29, %v4315_v0  ;;  %v9435_v30 = vcombine.low %v4017_v16, %v11987_v44  ;;  %v9452_v22 = vcombine.low %v4034_v60, %v11989_v50 }
 0x1d8   : > { %v13488_v36 = vpop.f32.mrf.mxu1  ;;  %v10451_v37 = vpop.f32.mrf.mxu0  ;;  %v9472_v0 = vcombine.low %v4054_v21, %v11990_v19  ;;  %v4332_v18 = vrot.slane %v9471_v41, 1  ;;  %v11993_v41 = vld [vmem:[#allocation2 + $0xd4] ss:$0 sps:$4 sm:$0x11]  }
 0x1d9   : > { %v13496_v40 = vadd.f32 %v10451_v37, %v10450_v46  ;;  %v4325_v37 = vsel %vm4199_vm13, %v4323_v57, %v4324_v8  ;;  %v4290_v27 = vrot.slane %v9435_v30, 1  ;;  %v4302_v16 = vrot.slane %v9452_v22, 1  ;;  %v11995_v30 = vld [vmem:[#allocation2 + $0xa0] sm:$0xf] }
 0x1da   : > { %v13490_v34 = vpop.f32.mrf.mxu1  ;;  %v10453_v51 = vpop.f32.mrf.mxu0  ;;  %v4334_v45 = vsel %vm4199_vm13, %v4332_v18, %v4333_v62  ;;  %v4341_v20 = vrot.slane %v9472_v0, 1  ;;  %v4342_v60 = vrot.slane %v11993_v41, 1  ;;  %v9453_v9 = vcombine.low %v4035_v39, %v11995_v30  ;;  %v11996_v0 = vld [vmem:[#allocation2 + $0x8c] ss:$0 sps:$4 sm:$0x11]   ;;  %v11703_v18 = vld [vmem:[%s15231_s3 + $0xf0] sm:$0xff]  }
 0x1db   : > { %11332 = vmatmul.mubr.bf16.gmra.mxu1 %v4307_v56  ;;  %v11992_v56 = vld [vmem:[#allocation2 + $0x98] ss:$0 sps:$4 sm:$0x11]   ;;  %v4300_v59 = vrot.slane %v11996_v0, 1 }
 0x1dc   : > { %v13499_v33 = vpop.f32.mrf.mxu1  ;;  %11335 = vmatprep.mubr.bf16.mxu1 %v4316_v3  ;;  %v10454_v38 = vpop.f32.mrf.mxu0  ;;  %v4303_v5 = vrot.slane %v11992_v56, 1  ;;  %v4343_v50 = vsel %vm4199_vm13, %v4341_v20, %v4342_v60  ;;  %v11997_v56 = vld [vmem:[#allocation2 + $0xa4] ss:$0 sps:$4 sm:$0x11]   ;;  %v11999_v60 = vld [vmem:[#allocation2 + $0xac] sm:$0xf] }
 0x1dd   : > { %4690 = vmatmul.mubr.bf16.gmra.mxu0 %v4283_v7  ;;  %v10455_v24 = vadd.f32 %v10454_v38, %v10453_v51  ;;  %v4018_v7 = vld [vmem:[#allocation2 + $0x84] sm:$0xe]  ;;  %v11994_v38 = vld [vmem:[#allocation2 + $0x88] sm:$0xf] }
 0x1de   : > { %4697 = vmatprep.mubr.bf16.mxu0 %v4295_v26  ;;  %v13503_v15 = vpop.f32.mrf.mxu1  ;;  %v10456_v58 = vpop.f32.mrf.mxu0  ;;  %v4292_v26 = vsel %vm4199_vm13, %v4290_v27, %v4291_v47  ;;  %v9436_v57 = vcombine.low %v4018_v7, %v11994_v38  ;;  %v4304_v8 = vsel %vm4199_vm13, %v4302_v16, %v4303_v5  ;;  %v11702_v47 = vld [vmem:[%s15231_s3 + $0x130] sm:$0xff]   ;;  %v4312_v5 = vrot.slane %v11997_v56, 1  ;;  %v4036_v27 = vld [vmem:[#allocation2 + $0xa8] sm:$0xe] }
 0x1df   : > { %v13506_v46 = vadd.f32 %v13464_v55, %v10455_v24  ;;  %v11701_v55 = vld [vmem:[%s15231_s3 + $0x178] sm:$0xff]   ;;  %10793 = vmatprep.subr.bf16.mxu1 %v11702_v47  ;;  %v11998_v7 = vld [vmem:[#allocation2 + $0x94] sm:$0xf]  ;;  %v12001_v30 = vld [vmem:[#allocation2 + $0xb0] ss:$0 sps:$4 sm:$0x11]  }
 0x1e0   : > { %v10457_v29 = vpop.f32.mrf.mxu0  ;;  %11343 = vmatprep.subr.bf16.mxu0 %v11701_v55  ;;  %v4299_v19 = vrot.slane %v9436_v57, 1  ;;  %10794 = vmatpush3.bf16.msra.mxu1 %v11703_v18  ;;  %v12000_v39 = vld [vmem:[#allocation2 + $0x98] ss:$0 sps:$4 sm:$0x11]  }
 0x1e1   : > { %v10458_v48 = vadd.f32 %v10457_v29, %v10456_v58  ;;  %11344 = vmatpush3.bf16.msra.mxu0 %v11701_v55 }
 0x1e2   : > { %v4301_v55 = vsel %vm4199_vm13, %v4299_v19, %v4300_v59 }
 0x1e3   : > { %v13508_v6 = vpop.f32.mrf.mxu1  ;;  %11336 = vmatmul.mubr.bf16.gmra.mxu1 %v4325_v37  ;;  %v13524_v21 = vadd.f32 %v13474_v63, %v10458_v48  ;;  %v4311_v37 = vrot.slane %v9453_v9, 1  ;;  %v4321_v9 = vrot.slane %v12001_v30, 1  ;;  %v12004_v30 = vld [vmem:[#allocation2 + $0xa4] ss:$0 sps:$4 sm:$0x11]  }
 0x1e4   : > { %v10459_v3 = vpop.f32.mrf.mxu0  ;;  %11339 = vmatprep.mubr.bf16.mxu1 %v4334_v45 }
 0x1e5   : > { %v13521_v51 = vpop.f32.mrf.mxu1  ;;  %4698 = vmatmul.mubr.bf16.gmra.mxu0 %v4292_v26  ;;  %v9454_v26 = vcombine.low %v4036_v27, %v11999_v60  ;;  %v4037_v27 = vld [vmem:[#allocation2 + $0xb4] sm:$0xe] }
 0x1e6   : > { %v10460_v24 = vpop.f32.mrf.mxu0  ;;  %4705 = vmatprep.mubr.bf16.mxu0 %v4304_v8  ;;  %v4309_v8 = vrot.slane %v12000_v39, 1 }
 0x1e7   : > { %v13528_v44 = vpop.f32.mrf.mxu1  ;;  %v10461_v62 = vadd.f32 %v10460_v24, %v10459_v3  ;;  %v4313_v3 = vsel %vm4199_vm13, %v4311_v37, %v4312_v5  ;;  %v4320_v18 = vrot.slane %v9454_v26, 1 }
 0x1e8   : > { %v10462_v63 = vpop.f32.mrf.mxu0 }
 0x1e9   : > { %v13530_v58 = vpop.f32.mrf.mxu1  ;;  %v13534_v22 = vadd.f32 %v10461_v62, %v13490_v34  ;;  %v4019_v34 = vld [vmem:[#allocation2 + $0x90] sm:$0xe]  ;;  %v11704_v62 = vld [vmem:[%s15231_s3 + $0x128] sm:$0xff]  }
 0x1ea   : > { %v10463_v29 = vpop.f32.mrf.mxu0  ;;  %v9437_v20 = vcombine.low %v4019_v34, %v11998_v7  ;;  %10795 = vmatprep.subr.bf16.mxu1 %v11704_v62  ;;  %v12002_v34 = vld [vmem:[#allocation2 + $0xa0] sm:$0xf]  ;;  %v12003_v7 = vld [vmem:[#allocation2 + $0xb8] sm:$0xf]  ;;  %v4318_v62 = vrot.slane %v12004_v30, 1 }
 0x1eb   : > { %v13542_v35 = vadd.f32 %v10463_v29, %v10462_v63  ;;  %v13544_v11 = vpop.f32.mrf.mxu1  ;;  %11340 = vmatmul.mubr.bf16.gmra.mxu1 %v4343_v50  ;;  %v11705_v63 = vld [vmem:[%s15231_s3 + $0xe8] sm:$0xff]   ;;  %v11706_v50 = vld [vmem:[%s15231_s3 + $0x170] sm:$0xff]   ;;  %v4020_v29 = vld [vmem:[#allocation2 + $0x9c] sm:$0xe] }
 0x1ec   : > { %v4308_v59 = vrot.slane %v9437_v20, 1  ;;  %11345 = vmatprep.subr.bf16.mxu0 %v11706_v50  ;;  %10796 = vmatpush3.bf16.msra.mxu1 %v11705_v63  ;;  %v9455_v20 = vcombine.low %v4037_v27, %v12003_v7 }
 0x1ed   : > { %v13547_v48 = vpop.f32.mrf.mxu1  ;;  %v10465_v45 = vpop.f32.mrf.mxu0  ;;  %4706 = vmatmul.mubr.bf16.gmra.mxu0 %v4301_v55  ;;  %v9438_v55 = vcombine.low %v4020_v29, %v12002_v34  ;;  %v4021_v29 = vld [vmem:[#allocation2 + $0xa8] sm:$0xe] }
 0x1ee   : > { %4713 = vmatprep.mubr.bf16.mxu0 %v4313_v3  ;;  %v4310_v56 = vsel %vm4199_vm13, %v4308_v59, %v4309_v8  ;;  %11346 = vmatpush3.bf16.msra.mxu0 %v11706_v50  ;;  %v4322_v3 = vsel %vm4199_vm13, %v4320_v18, %v4321_v9  ;;  %v4329_v9 = vrot.slane %v9455_v20, 1 }
 0x1ef   : > { %v13550_v16 = vpop.f32.mrf.mxu1  ;;  %v10466_v41 = vpop.f32.mrf.mxu0 }
 0x1f0   : > { %v10467_v38 = vadd.f32 %v10466_v41, %v10465_v45 }
 0x1f1   : > { %v13552_v57 = vpop.f32.mrf.mxu1  ;;  %v10468_v24 = vpop.f32.mrf.mxu0 }
 0x1f2   : > { %v13564_v19 = vadd.f32 %v13488_v36, %v10467_v38 }
 0x1f3   : > { %v10535_v0 = vpop.f32.mrf.mxu1  ;;  %v10469_v47 = vpop.f32.mrf.mxu0 }
 0x1f4   : > { %v10470_v37 = vadd.f32 %v10469_v47, %v10468_v24  ;;  %v4317_v24 = vrot.slane %v9438_v55, 1 }
 0x1f5   : > { %v10536_v5 = vpop.f32.mrf.mxu1  ;;  %v10471_v45 = vpop.f32.mrf.mxu0  ;;  %4714 = vmatmul.mubr.bf16.gmra.mxu0 %v4310_v56 }
 0x1f6   : > { %v10537_v36 = vadd.f32 %v10536_v5, %v10535_v0  ;;  %v13569_v41 = vadd.f32 %v13499_v33, %v10470_v37  ;;  %4721 = vmatprep.mubr.bf16.mxu0 %v4322_v3  ;;  %v12005_v0 = vld [vmem:[#allocation2 + $0xbc] ss:$0 sps:$4 sm:$0x11]   ;;  %v4319_v37 = vsel %vm4199_vm13, %v4317_v24, %v4318_v62 }
 0x1f7   : > { %v10538_v60 = vpop.f32.mrf.mxu1  ;;  %v10472_v26 = vpop.f32.mrf.mxu0  ;;  %v4330_v59 = vrot.slane %v12005_v0, 1 }
 0x1f8   : > { %v13572_v38 = vadd.f32 %v10537_v36, %v13413_v31  ;;  %v10473_v39 = vadd.f32 %v10472_v26, %v10471_v45  ;;  %v12006_v45 = vld [vmem:[#allocation2 + $0xac] sm:$0xf] }
 0x1f9   : > { %v10539_v8 = vpop.f32.mrf.mxu1  ;;  %v13574_v63 = vpop.f32.mrf.mxu0  ;;  %v4331_v55 = vsel %vm4199_vm13, %v4329_v9, %v4330_v59 }
 0x1fa   : > { %v10540_v50 = vadd.f32 %v10539_v8, %v10538_v60  ;;  %v13577_v33 = vadd.f32 %v10473_v39, %v13521_v51  ;;  %v9439_v51 = vcombine.low %v4021_v29, %v12006_v45  ;;  %v12007_v60 = vld [vmem:[#allocation2 + $0xb0] ss:$0 sps:$4 sm:$0x11]  }
 0x1fb   : > { %v10541_v47 = vpop.f32.mrf.mxu1  ;;  %v13579_v18 = vpop.f32.mrf.mxu0 }
 0x1fc   : > { %v13582_v31 = vadd.f32 %v10540_v50, %v13418_v43  ;;  %v4327_v43 = vrot.slane %v12007_v60, 1  ;;  %v4326_v30 = vrot.slane %v9439_v51, 1 }
 0x1fd   : > { %v10542_v56 = vpop.f32.mrf.mxu1  ;;  %v10477_v5 = vpop.f32.mrf.mxu0  ;;  %4722 = vmatmul.mubr.bf16.gmra.mxu0 %v4319_v37 }
 0x1fe   : > { %v10543_v34 = vadd.f32 %v10542_v56, %v10541_v47  ;;  %4729 = vmatprep.mubr.bf16.mxu0 %v4331_v55  ;;  %v4328_v0 = vsel %vm4199_vm13, %v4326_v30, %v4327_v43 }
 0x1ff   : > { %v10544_v27 = vpop.f32.mrf.mxu1  ;;  %v10478_v36 = vpop.f32.mrf.mxu0 }
 0x200   : > { %v3728_v3 = vadd.f32 %v10543_v34, %v13408_v25  ;;  %v10479_v7 = vadd.f32 %v10478_v36, %v10477_v5 }
 0x201   : > { %v10545_v20 = vpop.f32.mrf.mxu1  ;;  %v10480_v26 = vpop.f32.mrf.mxu0 }
 0x202   : > { %v10546_v39 = vadd.f32 %v10545_v20, %v10544_v27  ;;  %v13588_v8 = vadd.f32 %v13508_v6, %v10479_v7 }
 0x203   : > { %v10547_v24 = vpop.f32.mrf.mxu1  ;;  %v10481_v62 = vpop.f32.mrf.mxu0 }
 0x204   : > { %v3731_v50 = vadd.f32 %v10546_v39, %v13416_v14  ;;  %v10482_v9 = vadd.f32 %v10481_v62, %v10480_v26  ;;  %v11707_v14 = vld [vmem:[%s15231_s3 + $0x120] sm:$0xff]  }
 0x205   : > { %v10548_v59 = vpop.f32.mrf.mxu1  ;;  %v10483_v47 = vpop.f32.mrf.mxu0  ;;  %4730 = vmatmul.mubr.bf16.gmra.mxu0 %v4328_v0  ;;  %10797 = vmatprep.subr.bf16.mxu1 %v11707_v14 }
 0x206   : > { %v10549_v25 = vadd.f32 %v10548_v59, %v10547_v24  ;;  %v13593_v29 = vadd.f32 %v13528_v44, %v10482_v9  ;;  %4737 = vmatprep.mubr.bf16.mxu0 %v13385_v1  ;;  %v11708_v1 = vld [vmem:[%s15231_s3 + $0xe0] sm:$0xff]  }
 0x207   : > { %v10550_v37 = vpop.f32.mrf.mxu1  ;;  %v10484_v6 = vpop.f32.mrf.mxu0  ;;  %10798 = vmatpush3.bf16.msra.mxu1 %v11708_v1 }
 0x208   : > { %v3736_v56 = vadd.f32 %v10549_v25, %v13423_v28  ;;  %v10485_v5 = vadd.f32 %v10484_v6, %v10483_v47 }
 0x209   : > { %v10551_v34 = vpop.f32.mrf.mxu1  ;;  %v13600_v55 = vpop.f32.mrf.mxu0 }
 0x20a   : > { %v10552_v27 = vadd.f32 %v10551_v34, %v10550_v37  ;;  %v13603_v45 = vadd.f32 %v10485_v5, %v13547_v48 }
 0x20b   : > { %v10553_v44 = vpop.f32.mrf.mxu1  ;;  %v13608_v51 = vpop.f32.mrf.mxu0 }
 0x20c   : > { %v13611_v28 = vadd.f32 %v10552_v27, %v13428_v42  ;;  %v11709_v42 = vld [vmem:[%s15231_s3 + $0x118] sm:$0xff]  }
 0x20d   : > { %v10554_v36 = vpop.f32.mrf.mxu1  ;;  %v10489_v7 = vpop.f32.mrf.mxu0  ;;  %4738 = vmatmul.mubr.bf16.gmra.mxu0 %v13389_v53  ;;  %10799 = vmatprep.subr.bf16.mxu1 %v11709_v42 }
 0x20e   : > { %v10555_v20 = vadd.f32 %v10554_v36, %v10553_v44  ;;  %v11711_v44 = vld [vmem:[%s15231_s3 + $0x168] sm:$0xff]  }
 0x20f   : > { %v10556_v60 = vpop.f32.mrf.mxu1  ;;  %v10490_v48 = vpop.f32.mrf.mxu0  ;;  %11347 = vmatprep.subr.bf16.mxu0 %v11711_v44 }
 0x210   : > { %v3744_v43 = vadd.f32 %v10555_v20, %v13426_v32  ;;  %v10491_v26 = vadd.f32 %v10490_v48, %v10489_v7  ;;  %11348 = vmatpush3.bf16.msra.mxu0 %v11711_v44 }
 0x211   : > { %v10557_v39 = vpop.f32.mrf.mxu1  ;;  %v10492_v24 = vpop.f32.mrf.mxu0 }
 0x212   : > { %v10558_v30 = vadd.f32 %v10557_v39, %v10556_v60  ;;  %v13616_v62 = vadd.f32 %v13544_v11, %v10491_v26 }
 0x213   : > { %v10559_v9 = vpop.f32.mrf.mxu1  ;;  %v10493_v0 = vpop.f32.mrf.mxu0 }
 0x214   : > { %v3747_v53 = vadd.f32 %v10558_v30, %v13434_v13  ;;  %v10494_v59 = vadd.f32 %v10493_v0, %v10492_v24  ;;  %v11710_v13 = vld [vmem:[%s15231_s3 + $0xd8] sm:$0xff]  }
 0x215   : > { %v10560_v47 = vpop.f32.mrf.mxu1  ;;  %v11265_v25 = vpop.f32.mrf.mxu0  ;;  %10800 = vmatpush3.bf16.msra.mxu1 %v11710_v13 }
 0x216   : > { %v10561_v32 = vadd.f32 %v10560_v47, %v10559_v9  ;;  %v13623_v37 = vadd.f32 %v13550_v16, %v10494_v59  ;;  %v13625_v6 = vadd.f32 %v11265_v25, %v3728_v3 }
 0x217   : > { %v10562_v11 = vpop.f32.mrf.mxu1  ;;  %v3880_v5 = vpop.f32.mrf.mxu0 }
 0x218   : > { %v3752_v34 = vadd.f32 %v10561_v32, %v13440_v17  ;;  %v13629_v14 = vadd.f32 %v3880_v5, %v13572_v38 }
 0x219   : > { %v10563_v27 = vpop.f32.mrf.mxu1  ;;  %v11266_v16 = vpop.f32.mrf.mxu0 }
 0x21a   : > { %v10564_v1 = vadd.f32 %v10563_v27, %v10562_v11  ;;  %v13637_v3 = vadd.f32 %v11266_v16, %v3731_v50 }
 0x21b   : > { %v10565_v36 = vpop.f32.mrf.mxu1  ;;  %v13639_v17 = vpop.f32.mrf.mxu0 }
 0x21c   : > { %v13642_v38 = vadd.f32 %v10564_v1, %v13444_v54  ;;  %v11712_v54 = vld [vmem:[%s15231_s3 + $0x110] sm:$0xff]  }
 0x21d   : > { %v10566_v7 = vpop.f32.mrf.mxu1  ;;  %v11269_v20 = vpop.f32.mrf.mxu0  ;;  %10801 = vmatprep.subr.bf16.mxu1 %v11712_v54 }
 0x21e   : > { %v10567_v60 = vadd.f32 %v10566_v7, %v10565_v36  ;;  %v13644_v48 = vadd.f32 %v11269_v20, %v3744_v43  ;;  %v11713_v43 = vld [vmem:[%s15231_s3 + $0xd0] sm:$0xff]  }
 0x21f   : > { %v10568_v26 = vpop.f32.mrf.mxu1  ;;  %v3896_v39 = vpop.f32.mrf.mxu0  ;;  %10802 = vmatpush3.bf16.msra.mxu1 %v11713_v43  ;;  %v11714_v43 = vld [vmem:[%s15231_s3 + $0x108] sm:$0xff]  }
 0x220   : > { %v3760_v24 = vadd.f32 %v10567_v60, %v13451_v4  ;;  %v13647_v50 = vadd.f32 %v3896_v39, %v3736_v56  ;;  %10803 = vmatprep.subr.bf16.mxu1 %v11714_v43 }
 0x221   : > { %v10569_v30 = vpop.f32.mrf.mxu1  ;;  %v11270_v9 = vpop.f32.mrf.mxu0 }
 0x222   : > { %v10570_v42 = vadd.f32 %v10569_v30, %v10568_v26  ;;  %v13652_v0 = vadd.f32 %v11270_v9, %v3747_v53 }
 0x223   : > { %v10571_v59 = vpop.f32.mrf.mxu1  ;;  %v13657_v47 = vpop.f32.mrf.mxu0 }
 0x224   : > { %v3763_v4 = vadd.f32 %v10570_v42, %v13458_v23 }
 0x225   : > { %v10572_v56 = vpop.f32.mrf.mxu1  ;;  %v11273_v25 = vpop.f32.mrf.mxu0 }
 0x226   : > { %v10573_v32 = vadd.f32 %v10572_v56, %v10571_v59  ;;  %v13660_v11 = vadd.f32 %v11273_v25, %v3760_v24 }
 0x227   : > { %v10574_v5 = vpop.f32.mrf.mxu1  ;;  %v3912_v27 = vpop.f32.mrf.mxu0 }
 0x228   : > { %v3768_v53 = vadd.f32 %v10573_v32, %v13462_v12  ;;  %v13663_v13 = vadd.f32 %v3912_v27, %v3752_v34 }
 0x229   : > { %v10575_v44 = vpop.f32.mrf.mxu1  ;;  %v11274_v16 = vpop.f32.mrf.mxu0 }
 0x22a   : > { %v10576_v1 = vadd.f32 %v10575_v44, %v10574_v5  ;;  %v13665_v36 = vadd.f32 %v11274_v16, %v3763_v4 }
 0x22b   : > { %v10577_v7 = vpop.f32.mrf.mxu1  ;;  %v13667_v23 = vpop.f32.mrf.mxu0 }
 0x22c   : > { %v13670_v20 = vadd.f32 %v10576_v1, %v13470_v61  ;;  %v11715_v61 = vld [vmem:[%s15231_s3 + $0xc8] sm:$0xff]  }
 0x22d   : > { %v10578_v60 = vpop.f32.mrf.mxu1  ;;  %v11277_v26 = vpop.f32.mrf.mxu0  ;;  %10804 = vmatpush3.bf16.msra.mxu1 %v11715_v61 }
 0x22e   : > { %v10579_v39 = vadd.f32 %v10578_v60, %v10577_v7  ;;  %v11718_v60 = vld [vmem:[%s15231_s3 + $0x158] sm:$0xff]  }
 0x22f   : > { %v10580_v24 = vpop.f32.mrf.mxu1  ;;  %v3928_v12 = vpop.f32.mrf.mxu0 }
 0x230   : > { %v3776_v30 = vadd.f32 %v10579_v39, %v13477_v49  ;;  %v13673_v34 = vadd.f32 %v3928_v12, %v3768_v53  ;;  %v11716_v49 = vld [vmem:[%s15231_s3 + $0x160] sm:$0xff]   ;;  %v3482_v39 = vadd.f32 %v13496_v40, %v13481_v52 }
 0x231   : > { %v10581_v9 = vpop.f32.mrf.mxu1  ;;  %v11278_v54 = vpop.f32.mrf.mxu0  ;;  %11349 = vmatprep.subr.bf16.mxu0 %v11716_v49 }
 0x232   : > { %15291 = vst [vmem:[#allocation5_spill] sm:$0xff] %v13673_v34  ;;  %v13675_v42 = vadd.f32 %v11277_v26, %v3776_v30  ;;  %v10582_v59 = vadd.f32 %v10581_v9, %v10580_v24  ;;  %11350 = vmatpush3.bf16.msra.mxu0 %v11716_v49  ;;  %v11719_v26 = vld [vmem:[%s15231_s3 + $0xc0] sm:$0xff]  }
 0x233   : > { %v10583_v4 = vpop.f32.mrf.mxu1  ;;  %v13687_v25 = vpop.f32.mrf.mxu0  ;;  %11351 = vmatprep.subr.bf16.mxu0 %v11718_v60 }
 0x234   : > { %15292 = vst [vmem:[#allocation6_spill] sm:$0xff] %v13675_v42  ;;  %v3779_v56 = vadd.f32 %v10582_v59, %v13484_v10  ;;  %v11717_v10 = vld [vmem:[%s15231_s3 + $0x100] sm:$0xff]   ;;  %v11720_v59 = vld [vmem:[%s15231_s3 + $0x150] sm:$0xff]  }
 0x235   : > { %v10584_v32 = vpop.f32.mrf.mxu1  ;;  %v11281_v27 = vpop.f32.mrf.mxu0  ;;  %10805 = vmatprep.subr.bf16.mxu1 %v11717_v10 }
 0x236   : > { %v13689_v5 = vadd.f32 %v11278_v54, %v3779_v56  ;;  %v10585_v53 = vadd.f32 %v10584_v32, %v10583_v4  ;;  %10806 = vmatpush3.bf16.msra.mxu1 %v11719_v26  ;;  %11352 = vmatpush3.bf16.msra.mxu0 %v11718_v60  ;;  %v11725_v60 = vld [vmem:[%s15231_s3 + $0x148] sm:$0xff]  }
 0x237   : > { %v10586_v44 = vpop.f32.mrf.mxu1  ;;  %v3944_v1 = vpop.f32.mrf.mxu0  ;;  %11353 = vmatprep.subr.bf16.mxu0 %v11720_v59 }
 0x238   : > { %15293 = vst [vmem:[#allocation7_spill] sm:$0xff] %v13689_v5  ;;  %v3784_v16 = vadd.f32 %v10585_v53, %v13493_v2 }
 0x239   : > { %v10587_v7 = vpop.f32.mrf.mxu1  ;;  %v11282_v2 = vpop.f32.mrf.mxu0 }
 0x23a   : > { %v13703_v24 = vadd.f32 %v3944_v1, %v3784_v16  ;;  %v10588_v30 = vadd.f32 %v10587_v7, %v10586_v44  ;;  %11354 = vmatpush3.bf16.msra.mxu0 %v11720_v59 }
 0x23b   : > { %v10589_v12 = vpop.f32.mrf.mxu1  ;;  %v13707_v54 = vpop.f32.mrf.mxu0  ;;  %11355 = vmatprep.subr.bf16.mxu0 %v11725_v60 }
 0x23c   : > { %15294 = vst [vmem:[#allocation8_spill] sm:$0xff] %v13703_v24  ;;  %v13705_v9 = vadd.f32 %v10588_v30, %v3482_v39 }
 0x23d   : > { %v10590_v43 = vpop.f32.mrf.mxu1  ;;  %v11285_v61 = vpop.f32.mrf.mxu0 }
 0x23e   : > { %v10591_v52 = vadd.f32 %v10590_v43, %v10589_v12  ;;  %11356 = vmatpush3.bf16.msra.mxu0 %v11725_v60  ;;  %v3498_v43 = vadd.f32 %v13542_v35, %v13503_v15 }
 0x23f   : > { %v10592_v40 = vpop.f32.mrf.mxu1  ;;  %v3960_v4 = vpop.f32.mrf.mxu0 }
 0x240   : > { %v3792_v49 = vadd.f32 %v10591_v52, %v13506_v46  ;;  %v11726_v46 = vld [vmem:[%s15231_s3 + $0xb8] sm:$0xff]  }
 0x241   : > { %v10593_v56 = vpop.f32.mrf.mxu1  ;;  %v11286_v53 = vpop.f32.mrf.mxu0  ;;  %11391 = vmatprep.subr.bf16.mxu1 %v11726_v46 }
 0x242   : > { %v13713_v32 = vadd.f32 %v11281_v27, %v3792_v49  ;;  %v10594_v44 = vadd.f32 %v10593_v56, %v10592_v40 }
 0x243   : > { %v10595_v16 = vpop.f32.mrf.mxu1  ;;  %v13716_v7 = vpop.f32.mrf.mxu0 }
 0x244   : > { %15295 = vst [vmem:[#allocation9_spill] sm:$0xff] %v13713_v32  ;;  %v3795_v1 = vadd.f32 %v10594_v44, %v13524_v21 }
 0x245   : > { %v10596_v10 = vpop.f32.mrf.mxu1  ;;  %v11289_v27 = vpop.f32.mrf.mxu0 }
 0x246   : > { %v13724_v26 = vadd.f32 %v11282_v2, %v3795_v1  ;;  %v10597_v39 = vadd.f32 %v10596_v10, %v10595_v16 }
 0x247   : > { %v10598_v30 = vpop.f32.mrf.mxu1  ;;  %v3976_v12 = vpop.f32.mrf.mxu0 }
 0x248   : > { %15296 = vst [vmem:[#allocation10_spill] sm:$0xff] %v13724_v26  ;;  %v3800_v21 = vadd.f32 %v10597_v39, %v13534_v22  ;;  %v11731_v22 = vld [vmem:[%s15231_s3 + $0x140] sm:$0xff]  }
 0x249   : > { %v10599_v59 = vpop.f32.mrf.mxu1  ;;  %v11290_v40 = vpop.f32.mrf.mxu0  ;;  %11357 = vmatprep.subr.bf16.mxu0 %v11731_v22 }
 0x24a   : > { %v13729_v52 = vadd.f32 %v3960_v4, %v3800_v21  ;;  %v10600_v49 = vadd.f32 %v10599_v59, %v10598_v30  ;;  %11358 = vmatpush3.bf16.msra.mxu0 %v11731_v22 }
 0x24b   : > { %v10601_v56 = vpop.f32.mrf.mxu1  ;;  %v13733_v44 = vpop.f32.mrf.mxu0 }
 0x24c   : > { %15297 = vst [vmem:[#allocation11_spill] sm:$0xff] %v13729_v52  ;;  %v13731_v2 = vadd.f32 %v10600_v49, %v3498_v43 }
 0x24d   : > { %v10602_v16 = vpop.f32.mrf.mxu1  ;;  %v13735_v1 = vpop.f32.mrf.mxu0 }
 0x24e   : > { %v10603_v10 = vadd.f32 %v10602_v16, %v10601_v56  ;;  %v10476_v56 = vadd.f32 %v13579_v18, %v13574_v63 }
 0x24f   : > { %v10604_v60 = vpop.f32.mrf.mxu1  ;;  %v13741_v35 = vpop.f32.mrf.mxu0 }
 0x250   : > { %v3808_v15 = vadd.f32 %v10603_v10, %v13564_v19 }
 0x251   : > { %v10605_v4 = vpop.f32.mrf.mxu1  ;;  %v13745_v39 = vpop.f32.mrf.mxu0 }
 0x252   : > { %v13743_v46 = vadd.f32 %v11285_v61, %v3808_v15  ;;  %v10606_v30 = vadd.f32 %v10605_v4, %v10604_v60  ;;  %v3514_v60 = vadd.f32 %v10476_v56, %v13530_v58 }
 0x253   : > { %v10607_v21 = vpop.f32.mrf.mxu1  ;;  %v13748_v43 = vpop.f32.mrf.mxu0 }
 0x254   : > { %15298 = vst [vmem:[#allocation12_spill] sm:$0xff] %v13743_v46  ;;  %v3811_v59 = vadd.f32 %v10606_v30, %v13569_v41 }
 0x255   : > { %v10608_v49 = vpop.f32.mrf.mxu1  ;;  %v10671_v16 = vpop.f32.mrf.mxu0 }
 0x256   : > { %v13752_v19 = vadd.f32 %v11286_v53, %v3811_v59  ;;  %v10609_v10 = vadd.f32 %v10608_v49, %v10607_v21 }
 0x257   : > { %v10610_v52 = vpop.f32.mrf.mxu1  ;;  %v10672_v22 = vpop.f32.mrf.mxu0 }
 0x258   : > { %15299 = vst [vmem:[#allocation13_spill] sm:$0xff] %v13752_v19  ;;  %v3816_v61 = vadd.f32 %v10609_v10, %v13577_v33 }
 0x259   : > { %v10611_v15 = vpop.f32.mrf.mxu1  ;;  %v13758_v41 = vpop.f32.mrf.mxu0 }
 0x25a   : > { %v13756_v4 = vadd.f32 %v3976_v12, %v3816_v61  ;;  %v10612_v30 = vadd.f32 %v10611_v15, %v10610_v52 }
 0x25b   : > { %v10613_v46 = vpop.f32.mrf.mxu1  ;;  %v13762_v63 = vpop.f32.mrf.mxu0 }
 0x25c   : > { %15300 = vst [vmem:[#allocation14_spill] sm:$0xff] %v13756_v4  ;;  %v13760_v26 = vadd.f32 %v10612_v30, %v3514_v60  ;;  %v10488_v60 = vadd.f32 %v13608_v51, %v13600_v55 }
 0x25d   : > { %v10614_v18 = vpop.f32.mrf.mxu1  ;;  %v10677_v53 = vpop.f32.mrf.mxu0 }
 0x25e   : > { %v10615_v21 = vadd.f32 %v10614_v18, %v10613_v46 }
 0x25f   : > { %v10616_v59 = vpop.f32.mrf.mxu1  ;;  %v10678_v49 = vpop.f32.mrf.mxu0 }
 0x260   : > { %v3824_v33 = vadd.f32 %v10615_v21, %v13588_v8  ;;  %v10679_v24 = vadd.f32 %v10678_v49, %v10677_v53 }
 0x261   : > { %v10617_v10 = vpop.f32.mrf.mxu1  ;;  %v10680_v58 = vpop.f32.mrf.mxu0 }
 0x262   : > { %v13765_v19 = vadd.f32 %v11289_v27, %v3824_v33  ;;  %v10618_v12 = vadd.f32 %v10617_v10, %v10616_v59  ;;  %v5586_v33 = vld [vmem:[#allocation3] sm:$0xf]  ;;  %v5587_v59 = vld [vmem:[#allocation3 + $0x4] sm:$0xf] }
 0x263   : > { %v10619_v56 = vpop.f32.mrf.mxu1  ;;  %v10681_v61 = vpop.f32.mrf.mxu0  ;;  %v13780_v55 = vcombine.low %v5586_v33, %v5587_v59 }
 0x264   : > { %15301 = vst [vmem:[#allocation15_spill] sm:$0xff] %v13765_v19  ;;  %v3827_v52 = vadd.f32 %v10618_v12, %v13593_v29  ;;  %v3530_v29 = vadd.f32 %v10488_v60, %v13552_v57  ;;  %v10682_v53 = vadd.f32 %v10681_v61, %v10680_v58 }
 0x265   : > { %v10620_v15 = vpop.f32.mrf.mxu1  ;;  %v13772_v46 = vpop.f32.mrf.mxu0 }
 0x266   : > { %v13770_v30 = vadd.f32 %v11290_v40, %v3827_v52  ;;  %v10621_v18 = vadd.f32 %v10620_v15, %v10619_v56 }
 0x267   : > { %v10622_v8 = vpop.f32.mrf.mxu1  ;;  %v13775_v27 = vpop.f32.mrf.mxu0 }
 0x268   : > { %15302 = vst [vmem:[#allocation16_spill] sm:$0xff] %v13770_v30  ;;  %v3832_v21 = vadd.f32 %v10621_v18, %v13603_v45  ;;  %v11728_v18 = vld [vmem:[#allocation3 + $0x8] ss:$0 sps:$4 sm:$0x11]   ;;  %v6222_v30 = vshll.u32 %v13780_v55, 16 }
 0x269   : > { %v10623_v10 = vpop.f32.mrf.mxu1  ;;  %v13778_v12 = vpop.f32.mrf.mxu0  ;;  %v6227_v5 = vshll.u32 %v11728_v18, 16 }
 0x26a   : > { %v10624_v19 = vadd.f32 %v10623_v10, %v10622_v8  ;;  %v6220_v10 = vshrl.u32 %v13780_v55, 16 }
 0x26b   : > { %v10625_v4 = vpop.f32.mrf.mxu1  ;;  %v13784_v40 = vpop.f32.mrf.mxu0 }
 0x26c   : > { %v13782_v51 = vadd.f32 %v10624_v19, %v3530_v29  ;;  %v6224_v29 = vrot.slane %v6222_v30, 1 }
 0x26d   : > { %v10626_v56 = vpop.f32.mrf.mxu1  ;;  %v10689_v52 = vpop.f32.mrf.mxu0 }
 0x26e   : > { %v10627_v45 = vadd.f32 %v10626_v56, %v10625_v4  ;;  %v10673_v4 = vadd.f32 %v10672_v22, %v10671_v16  ;;  %v6225_v61 = vor.u32 %v6224_v29, %v6220_v10 }
 0x26f   : > { %v10628_v15 = vpop.f32.mrf.mxu1  ;;  %v10690_v57 = vpop.f32.mrf.mxu0 }
 0x270   : > { %v3840_v32 = vadd.f32 %v10627_v45, %v13616_v62  ;;  %v13794_v62 = vadd.f32 %v13741_v35, %v3832_v21  ;;  %v13814_v35 = vld [vmem:[%s15233_s5] ss:$0 sm:$0xff] }
 0x271   : > { %v10629_v60 = vpop.f32.mrf.mxu1  ;;  %v10692_v33 = vpop.f32.mrf.mxu0 }
 0x272   : > { %v13789_v8 = vadd.f32 %v13735_v1, %v3840_v32  ;;  %v10630_v19 = vadd.f32 %v10629_v60, %v10628_v15  ;;  %v13799_v32 = vld [vmem:[%s15232_s4] ss:$0 sm:$0xff] }
 0x273   : > { %v11313_v59 = vpop.f32.mrf.mxu1  ;;  %v10693_v42 = vpop.f32.mrf.mxu0 }
 0x274   : > { %v3843_v56 = vadd.f32 %v10630_v19, %v13623_v37  ;;  %v4789_v34 = vadd.f32 %v11313_v59, %v10679_v24  ;;  %v3884_v37 = vadd.f32 %v13639_v17, %v13582_v31  ;;  %v13809_v24 = vadd.f32 %v13657_v47, %v13611_v28 }
 0x275   : > { %v4780_v1 = vpop.f32.mrf.mxu1  ;;  %v10695_v16 = vpop.f32.mrf.mxu0  ;;  %v13822_v28 = vadd.f32 %v13667_v23, %v13642_v38  ;;  %v13826_v47 = vadd.f32 %v13687_v25, %v13670_v20  ;;  %v13841_v20 = vadd.f32 %v13733_v44, %v13760_v26  ;;  %v10685_v25 = vadd.f32 %v13775_v27, %v13772_v46 }
 0x276   : > { %v13802_v49 = vadd.f32 %v13745_v39, %v3843_v56  ;;  %v4909_v30 = vadd.f32 %v4789_v34, %v13625_v6  ;;  %v4781_v22 = vadd.f32 %v10673_v4, %v4780_v1  ;;  %v6229_v39 = vrot.slane %v6227_v5, 1 }
 0x277   : > { %v11314_v58 = vpop.f32.mrf.mxu1  ;;  %v10676_v6 = vadd.f32 %v13762_v63, %v13758_v41  ;;  %v10696_v17 = vpop.f32.mrf.mxu0  ;;  %v13830_v5 = vadd.f32 %v13707_v54, %v13705_v9  ;;  %v13834_v41 = vadd.f32 %v13716_v7, %v13731_v2  ;;  %v10691_v9 = vadd.f32 %v10690_v57, %v10689_v52 }
 0x278   : > { %v4948_v34 = vmul.f32 %v13799_v32, %v4909_v30  ;;  %v4907_v31 = vadd.f32 %v4781_v22, %v13629_v14  ;;  %v4792_v21 = vadd.f32 %v11314_v58, %v10682_v53  ;;  %v13846_v7 = vsel %vm2401_vm12, %v6225_v61, %v6229_v39 }
 0x279   : > { %v4783_v63 = vpop.f32.mrf.mxu1  ;;  %v10698_v23 = vpop.f32.mrf.mxu0  ;;  %v13852_v26 = vadd.f32 %v13784_v40, %v13778_v12  ;;  %v10694_v44 = vadd.f32 %v10693_v42, %v10692_v33  ;;  %v13856_v27 = vadd.f32 %v13748_v43, %v13782_v51  ;;  %v13860_v56 = vadd.f32 %v10696_v17, %v10695_v16 }
 0x27a   : > { %v4987_v14 = vadd.f32 %v13814_v35, %v4948_v34  ;;  %v4946_v45 = vmul.f32 %v13799_v32, %v4907_v31  ;;  %v4910_v38 = vadd.f32 %v4792_v21, %v13637_v3  ;;  %v4784_v15 = vadd.f32 %v10676_v6, %v4783_v63  ;;  %v5477_v21 = vld [vmem:[#allocation3 + $0x18] sm:$0xf] }
 0x27b   : > { %v11317_v54 = vpop.f32.mrf.mxu1  ;;  %v10699_v19 = vpop.f32.mrf.mxu0 }
 0x27c   : > { %v5019_v2 = vmax.f32 %v4987_v14, 0.0  ;;  %v4985_v18 = vadd.f32 %v13814_v35, %v4946_v45  ;;  %v4949_v60 = vmul.f32 %v13799_v32, %v4910_v38  ;;  %v4908_v3 = vadd.f32 %v4784_v15, %v3884_v37 }
 0x27d   : > { %v4805_v59 = vadd.f32 %v11317_v54, %v10691_v9  ;;  %v4796_v46 = vpop.f32.mrf.mxu1  ;;  %v10701_v4 = vpop.f32.mrf.mxu0  ;;  %v13862_v1 = vadd.f32 %v10699_v19, %v10698_v23 }
 0x27e   : > { %v10088_v52 = vpack.c.bf16 %v5019_v2, %v5019_v2  ;;  %v5017_v57 = vmax.f32 %v4985_v18, 0.0  ;;  %v4988_v10 = vadd.f32 %v13814_v35, %v4949_v60  ;;  %v4947_v29 = vmul.f32 %v13799_v32, %v4908_v3  ;;  %v5468_v2 = vld [vmem:[#allocation3 + $0xc] sm:$0xf] }
 0x27f   : > { %v4913_v12 = vadd.f32 %v4805_v59, %v13644_v48  ;;  %v4797_v42 = vadd.f32 %v10685_v25, %v4796_v46  ;;  %v11318_v40 = vpop.f32.mrf.mxu1  ;;  %v10702_v51 = vpop.f32.mrf.mxu0 }
 0x280   : > { %v5163_v33 = vshrl.u32 %v10088_v52, 16  ;;  %v5166_v53 = vshll.u32 %v10088_v52, 16  ;;  %v10086_v30 = vpack.c.bf16 %v5017_v57, %v5017_v57  ;;  %v5020_v43 = vmax.f32 %v4988_v10, 0.0 }
 0x281   : > { %v4986_v22 = vadd.f32 %v13814_v35, %v4947_v29  ;;  %v4952_v37 = vmul.f32 %v13799_v32, %v4913_v12  ;;  %v4911_v58 = vadd.f32 %v4797_v42, %v13647_v50  ;;  %v13868_v61 = vadd.f32 %v10702_v51, %v10701_v4  ;;  %v4799_v16 = vpop.f32.mrf.mxu1  ;;  %v10704_v31 = vpop.f32.mrf.mxu0  ;;  %v5481_v4 = vld [vmem:[#allocation3 + $0x20] sm:$0x1] }
 0x282   : > { %v5165_v39 = vrot.slane %v5163_v33, 7  ;;  %v5146_v6 = vshrl.u32 %v10086_v30, 16  ;;  %v5149_v34 = vshll.u32 %v10086_v30, 16  ;;  %v10089_v48 = vpack.c.bf16 %v5020_v43, %v5020_v43 }
 0x283   : > { %v5018_v63 = vmax.f32 %v4986_v22, 0.0  ;;  %v4991_v14 = vadd.f32 %v13814_v35, %v4952_v37  ;;  %v4950_v50 = vmul.f32 %v13799_v32, %v4911_v58  ;;  %v4808_v45 = vadd.f32 %v11318_v40, %v10694_v44  ;;  %v13878_v38 = vpop.f32.mrf.mxu1  ;;  %v10705_v54 = vpop.f32.mrf.mxu0 }
 0x284   : > { %v5168_v23 = vor.u32 %v5166_v53, %v5165_v39  ;;  %v5169_v15 = vrot.slane %v5165_v39, 4  ;;  %v5148_v25 = vrot.slane %v5146_v6, 7  ;;  %v5171_v9 = vshrl.u32 %v10089_v48, 16 }
 0x285   : > { %v5174_v18 = vshll.u32 %v10089_v48, 16  ;;  %v10087_v60 = vpack.c.bf16 %v5018_v63, %v5018_v63  ;;  %v5023_v3 = vmax.f32 %v4991_v14, 0.0  ;;  %v4989_v19 = vadd.f32 %v13814_v35, %v4950_v50  ;;  %v4812_v59 = vpop.f32.mrf.mxu1  ;;  %v10707_v10 = vpop.f32.mrf.mxu0  ;;  %v5474_v50 = vld [vmem:[#allocation3 + $0x14] sm:$0x1] }
 0x286   : > { %v5478_v46 = vsel %vm13872_vm1, %v5168_v23, %v5477_v21  ;;  %v5151_v52 = vor.u32 %v5149_v34, %v5148_v25  ;;  %v5152_v57 = vrot.slane %v5148_v25, 4  ;;  %v5173_v44 = vrot.slane %v5171_v9, 7 }
 0x287   : > { %5479 = vst [vmem:[#allocation3 + $0x18] sm:$0xf] %v5478_v46  ;;  %v5154_v12 = vshrl.u32 %v10087_v60, 16  ;;  %v5157_v42 = vshll.u32 %v10087_v60, 16  ;;  %v10092_v40 = vpack.c.bf16 %v5023_v3, %v5023_v3  ;;  %v5021_v33 = vmax.f32 %v4989_v19, 0.0  ;;  %v11322_v53 = vpop.f32.mrf.mxu1  ;;  %v10708_v37 = vpop.f32.mrf.mxu0 }
 0x288   : > { %v5469_v30 = vsel %vm13872_vm1, %v5151_v52, %v5468_v2  ;;  %v5176_v43 = vor.u32 %v5174_v18, %v5173_v44  ;;  %v5178_v51 = vrot.slane %v5173_v44, 4  ;;  %v4914_v22 = vadd.f32 %v4808_v45, %v13652_v0  ;;  %v5491_v3 = vld [vmem:[#allocation3 + $0x30] sm:$0xf] }
 0x289   : > { %5470 = vst [vmem:[#allocation3 + $0xc] sm:$0xf] %v5469_v30  ;;  %v5156_v58 = vrot.slane %v5154_v12, 7  ;;  %v5197_v39 = vshrl.u32 %v10092_v40, 16  ;;  %v5200_v6 = vshll.u32 %v10092_v40, 16  ;;  %v10090_v34 = vpack.c.bf16 %v5021_v33, %v5021_v33  ;;  %v4815_v48 = vpop.f32.mrf.mxu1  ;;  %v10710_v9 = vpop.f32.mrf.mxu0 }
 0x28a   : > { %v5177_v63 = vsel %vm12312_vm2, %v5169_v15, %v5176_v43  ;;  %v5482_v14 = vsel %vm13885_vm3, %v5178_v51, %v5481_v4  ;;  %v4953_v23 = vmul.f32 %v13799_v32, %v4914_v22  ;;  %v4800_v25 = vadd.f32 %v13852_v26, %v4799_v16  ;;  %v5484_v30 = vld [vmem:[#allocation3 + $0x24] sm:$0xf] }
 0x28b   : > { %5480 = vst [vmem:[#allocation3 + $0x1c] sm:$0xf] %v5177_v63  ;;  %5483 = vst [vmem:[#allocation3 + $0x20] sm:$0x1] %v5482_v14  ;;  %v5159_v0 = vor.u32 %v5157_v42, %v5156_v58  ;;  %v5161_v45 = vrot.slane %v5156_v58, 4  ;;  %v13898_v2 = vrot.slane %v5197_v39, 7  ;;  %v13900_v60 = vpop.f32.mrf.mxu1  ;;  %v10706_v52 = vadd.f32 %v10705_v54, %v10704_v31  ;;  %v10711_v44 = vpop.f32.mrf.mxu0 }
 0x28c   : > { %v5180_v18 = vshrl.u32 %v10090_v34, 16  ;;  %v5183_v15 = vshll.u32 %v10090_v34, 16  ;;  %v4992_v19 = vadd.f32 %v13814_v35, %v4953_v23  ;;  %v4912_v46 = vadd.f32 %v4800_v25, %v13809_v24 }
 0x28d   : > { %v5160_v26 = vsel %vm12312_vm2, %v5152_v57, %v5159_v0  ;;  %v5475_v16 = vsel %vm13885_vm3, %v5161_v45, %v5474_v50  ;;  %v5202_v4 = vor.u32 %v5200_v6, %v13898_v2  ;;  %v5203_v12 = vrot.slane %v13898_v2, 4  ;;  %v13915_v31 = vpop.f32.mrf.mxu0  ;;  %v4828_v54 = vpop.f32.mrf.mxu1 }
 0x28e   : > { %5471 = vst [vmem:[#allocation3 + $0x10] sm:$0xf] %v5160_v26  ;;  %5476 = vst [vmem:[#allocation3 + $0x14] sm:$0x1] %v5475_v16  ;;  %v13910_v42 = vrot.slane %v5180_v18, 7  ;;  %v5024_v40 = vmax.f32 %v4992_v19, 0.0  ;;  %v4951_v33 = vmul.f32 %v13799_v32, %v4912_v46  ;;  %v4821_v24 = vadd.f32 %v13878_v38, %v13868_v61 }
 0x28f   : > { %v5492_v57 = vsel %vm13872_vm1, %v5202_v4, %v5491_v3  ;;  %v4813_v43 = vadd.f32 %v13860_v56, %v4812_v59  ;;  %v10709_v51 = vadd.f32 %v10708_v37, %v10707_v10  ;;  %v4824_v22 = vadd.f32 %v11322_v53, %v10706_v52  ;;  %v10714_v61 = vpop.f32.mrf.mxu0  ;;  %v13929_v37 = vpop.f32.mrf.mxu1  ;;  %v5495_v18 = vld [vmem:[#allocation3 + $0x38] sm:$0x1] }
 0x290   : > { %5493 = vst [vmem:[#allocation3 + $0x30] sm:$0xf] %v5492_v57  ;;  %v5185_v58 = vor.u32 %v5183_v15, %v13910_v42  ;;  %v5186_v39 = vrot.slane %v13910_v42, 4  ;;  %v10093_v6 = vpack.c.bf16 %v5024_v40, %v5024_v40  ;;  %v4990_v34 = vadd.f32 %v13814_v35, %v4951_v33 }
 0x291   : > { %v4917_v38 = vadd.f32 %v4821_v24, %v13660_v11  ;;  %v4915_v63 = vadd.f32 %v4813_v43, %v13663_v13  ;;  %v4918_v14 = vadd.f32 %v4824_v22, %v13665_v36  ;;  %v4816_v50 = vadd.f32 %v13862_v1, %v4815_v48  ;;  %v13931_v23 = vpop.f32.mrf.mxu0  ;;  %v4831_v42 = vpop.f32.mrf.mxu1  ;;  %v5488_v22 = vld [vmem:[#allocation3 + $0x2c] sm:$0x1] }
 0x292   : > { %v5485_v56 = vsel %vm13872_vm1, %v5185_v58, %v5484_v30  ;;  %v5205_v59 = vshrl.u32 %v10093_v6, 16  ;;  %v5208_v10 = vshll.u32 %v10093_v6, 16  ;;  %v5022_v53 = vmax.f32 %v4990_v34, 0.0  ;;  %v15308_v30 = vld [vmem:[#allocation5_spill] sm:$0xff] }
 0x293   : > { %5486 = vst [vmem:[#allocation3 + $0x24] sm:$0xf] %v5485_v56  ;;  %v4956_v25 = vmul.f32 %v13799_v32, %v4917_v38  ;;  %v4954_v11 = vmul.f32 %v13799_v32, %v4915_v63  ;;  %v4957_v13 = vmul.f32 %v13799_v32, %v4918_v14  ;;  %v4916_v36 = vadd.f32 %v4816_v50, %v13822_v28  ;;  %v10717_v2 = vpop.f32.mrf.mxu0  ;;  %v13953_v56 = vpop.f32.mrf.mxu1 }
 0x294   : > { %v5207_v1 = vrot.slane %v5205_v59, 7  ;;  %v10091_v48 = vpack.c.bf16 %v5022_v53, %v5022_v53  ;;  %v10712_v0 = vadd.f32 %v10711_v44, %v10710_v9  ;;  %v4829_v45 = vadd.f32 %v10709_v51, %v4828_v54 }
 0x295   : > { %v4995_v3 = vadd.f32 %v13814_v35, %v4956_v25  ;;  %v4993_v15 = vadd.f32 %v13814_v35, %v4954_v11  ;;  %v4996_v19 = vadd.f32 %v13814_v35, %v4957_v13  ;;  %v4955_v46 = vmul.f32 %v13799_v32, %v4916_v36  ;;  %v13941_v28 = vpop.f32.mrf.mxu0 }
 0x296   : > { %v5210_v52 = vor.u32 %v5208_v10, %v5207_v1  ;;  %v5212_v26 = vrot.slane %v5207_v1, 4  ;;  %v5188_v16 = vshrl.u32 %v10091_v48, 16  ;;  %v5191_v4 = vshll.u32 %v10091_v48, 16 }
 0x297   : > { %v5027_v40 = vmax.f32 %v4995_v3, 0.0  ;;  %v5025_v9 = vmax.f32 %v4993_v15, 0.0  ;;  %v5028_v44 = vmax.f32 %v4996_v19, 0.0  ;;  %v4994_v33 = vadd.f32 %v13814_v35, %v4955_v46  ;;  %v13949_v51 = vpop.f32.mrf.mxu0  ;;  %v5505_v15 = vld [vmem:[#allocation3 + $0x48] sm:$0xf] }
 0x298   : > { %v5211_v24 = vsel %vm12312_vm2, %v5203_v12, %v5210_v52  ;;  %v5496_v54 = vsel %vm13885_vm3, %v5212_v26, %v5495_v18  ;;  %v5190_v57 = vrot.slane %v5188_v16, 7  ;;  %v4919_v43 = vadd.f32 %v4829_v45, %v15308_v30  ;;  %v5498_v19 = vld [vmem:[#allocation3 + $0x3c] sm:$0xf]  ;;  %v4844_v16 = vpop.f32.mrf.mxu1 }
 0x299   : > { %5494 = vst [vmem:[#allocation3 + $0x34] sm:$0xf] %v5211_v24  ;;  %5497 = vst [vmem:[#allocation3 + $0x38] sm:$0x1] %v5496_v54  ;;  %v10096_v58 = vpack.c.bf16 %v5027_v40, %v5027_v40  ;;  %v10094_v6 = vpack.c.bf16 %v5025_v9, %v5025_v9  ;;  %v10097_v34 = vpack.c.bf16 %v5028_v44, %v5028_v44  ;;  %v5026_v38 = vmax.f32 %v4994_v33, 0.0  ;;  %v10722_v59 = vpop.f32.mrf.mxu0 }
 0x29a   : > { %v5193_v63 = vor.u32 %v5191_v4, %v5190_v57  ;;  %v5195_v14 = vrot.slane %v5190_v57, 4  ;;  %v4958_v50 = vmul.f32 %v13799_v32, %v4919_v43  ;;  %v10715_v12 = vadd.f32 %v10714_v61, %v13915_v31  ;;  %v5509_v24 = vld [vmem:[#allocation3 + $0x50] sm:$0x1] }
 0x29b   : > { %v5231_v10 = vshrl.u32 %v10096_v58, 16  ;;  %v5234_v53 = vshll.u32 %v10096_v58, 16  ;;  %v5214_v25 = vshrl.u32 %v10094_v6, 16  ;;  %v5217_v11 = vshll.u32 %v10094_v6, 16  ;;  %v10723_v45 = vpop.f32.mrf.mxu0 }
 0x29c   : > { %v5194_v13 = vsel %vm12312_vm2, %v5186_v39, %v5193_v63  ;;  %v5489_v36 = vsel %vm13885_vm3, %v5195_v14, %v5488_v22  ;;  %v5239_v1 = vshrl.u32 %v10097_v34, 16  ;;  %v5242_v48 = vshll.u32 %v10097_v34, 16  ;;  %v13976_v63 = vpop.f32.mrf.mxu1 }
 0x29d   : > { %5487 = vst [vmem:[#allocation3 + $0x28] sm:$0xf] %v5194_v13  ;;  %5490 = vst [vmem:[#allocation3 + $0x2c] sm:$0x1] %v5489_v36  ;;  %v5233_v18 = vrot.slane %v5231_v10, 7  ;;  %v5216_v31 = vrot.slane %v5214_v25, 7  ;;  %v10095_v61 = vpack.c.bf16 %v5026_v38, %v5026_v38  ;;  %v4997_v3 = vadd.f32 %v13814_v35, %v4958_v50  ;;  %v13962_v4 = vpop.f32.mrf.mxu0 }
 0x29e   : > { %v5241_v46 = vrot.slane %v5239_v1, 7  ;;  %v4837_v52 = vadd.f32 %v13900_v60, %v10715_v12  ;;  %v4832_v26 = vadd.f32 %v10712_v0, %v4831_v42  ;;  %v10718_v39 = vadd.f32 %v10717_v2, %v13931_v23  ;;  %v15309_v2 = vld [vmem:[#allocation6_spill] sm:$0xff]  ;;  %v5502_v50 = vld [vmem:[#allocation3 + $0x44] sm:$0x1] }
 0x29f   : > { %v5236_v40 = vor.u32 %v5234_v53, %v5233_v18  ;;  %v5237_v9 = vrot.slane %v5233_v18, 4  ;;  %v5219_v44 = vor.u32 %v5217_v11, %v5216_v31  ;;  %v5220_v33 = vrot.slane %v5216_v31, 4  ;;  %v13964_v22 = vpop.f32.mrf.mxu0  ;;  %v11788_v11 = vld [vmem:[%s15231_s3 + $0x78] sm:$0xff]  }
 0x2a0   : > { %v5244_v54 = vor.u32 %v5242_v48, %v5241_v46  ;;  %v5246_v57 = vrot.slane %v5241_v46, 4  ;;  %v5222_v30 = vshrl.u32 %v10095_v61, 16  ;;  %v5225_v43 = vshll.u32 %v10095_v61, 16  ;;  %v11722_v48 = vld [vmem:[#allocation3 + $0x20] ss:$0 sps:$4 sm:$0x11]   ;;  %10927 = vmatprep.subr.bf16.mxu0 %v11788_v11 }
 0x2a1   : > { %v5506_v60 = vsel %vm13872_vm1, %v5236_v40, %v5505_v15  ;;  %v5499_v23 = vsel %vm13872_vm1, %v5219_v44, %v5498_v19  ;;  %v5029_v0 = vmax.f32 %v4997_v3, 0.0  ;;  %v4921_v42 = vadd.f32 %v4837_v52, %v15309_v2  ;;  %v13978_v14 = vpop.f32.mrf.mxu0  ;;  %v9612_v19 = vld [vmem:[#allocation3 + $0x1c] sm:$0xf]  ;;  %v9611_v44 = vld [vmem:[#allocation3 + $0x18] sm:$0xf] }
 0x2a2   : > { %5507 = vst [vmem:[#allocation3 + $0x48] sm:$0xf] %v5506_v60  ;;  %5500 = vst [vmem:[#allocation3 + $0x3c] sm:$0xf] %v5499_v23  ;;  %v5245_v58 = vsel %vm12312_vm2, %v5237_v9, %v5244_v54  ;;  %v5510_v6 = vsel %vm13885_vm3, %v5246_v57, %v5509_v24  ;;  %v5224_v34 = vrot.slane %v5222_v30, 7  ;;  %v4920_v38 = vadd.f32 %v4832_v26, %v13826_v47  ;;  %v15311_v54 = vld [vmem:[#allocation8_spill] sm:$0xff] }
 0x2a3   : > { %5508 = vst [vmem:[#allocation3 + $0x4c] sm:$0xf] %v5245_v58  ;;  %5511 = vst [vmem:[#allocation3 + $0x50] sm:$0x1] %v5510_v6  ;;  %v10098_v12 = vpack.c.bf16 %v5029_v0, %v5029_v0  ;;  %v4960_v10 = vmul.f32 %v13799_v32, %v4921_v42  ;;  %v4840_v53 = vadd.f32 %v13929_v37, %v10718_v39  ;;  %v13988_v18 = vpop.f32.mrf.mxu0  ;;  %v15310_v37 = vld [vmem:[#allocation7_spill] sm:$0xff]  ;;  %v6251_v30 = vshll.u32 %v11722_v48, 16 }
 0x2a4   : > { %v10721_v25 = vadd.f32 %v13949_v51, %v13941_v28  ;;  %v5227_v47 = vor.u32 %v5225_v43, %v5224_v34  ;;  %v5229_v13 = vrot.slane %v5224_v34, 4  ;;  %v4959_v36 = vmul.f32 %v13799_v32, %v4920_v38  ;;  %v5512_v26 = vld [vmem:[#allocation3 + $0x54] sm:$0xf] }
 0x2a5   : > { %v10724_v1 = vadd.f32 %v10723_v45, %v10722_v59  ;;  %v5248_v31 = vshrl.u32 %v10098_v12, 16  ;;  %v5251_v61 = vshll.u32 %v10098_v12, 16  ;;  %v4999_v3 = vadd.f32 %v13814_v35, %v4960_v10  ;;  %v4847_v45 = vpop.f32.mrf.mxu1  ;;  %v14001_v43 = vpop.f32.mrf.mxu0 }
 0x2a6   : > { %v4922_v15 = vadd.f32 %v4840_v53, %v15310_v37  ;;  %v5228_v28 = vsel %vm12312_vm2, %v5220_v33, %v5227_v47  ;;  %v5503_v51 = vsel %vm13885_vm3, %v5229_v13, %v5502_v50  ;;  %v4998_v46 = vadd.f32 %v13814_v35, %v4959_v36  ;;  %v5519_v36 = vld [vmem:[#allocation3 + $0x60] sm:$0xf] }
 0x2a7   : > { %v4845_v59 = vadd.f32 %v10721_v25, %v4844_v16  ;;  %5501 = vst [vmem:[#allocation3 + $0x40] sm:$0xf] %v5228_v28  ;;  %5504 = vst [vmem:[#allocation3 + $0x44] sm:$0x1] %v5503_v51  ;;  %v5250_v52 = vrot.slane %v5248_v31, 7  ;;  %v5031_v39 = vmax.f32 %v4999_v3, 0.0  ;;  %v4848_v9 = vadd.f32 %v10724_v1, %v4847_v45  ;;  %v14011_v47 = vpop.f32.mrf.mxu0 }
 0x2a8   : > { %v4961_v40 = vmul.f32 %v13799_v32, %v4922_v15  ;;  %v5030_v24 = vmax.f32 %v4998_v46, 0.0  ;;  %v13999_v33 = vcombine.low %v9611_v44, %v9612_v19  ;;  %v6253_v48 = vrot.slane %v6251_v30, 1  ;;  %v5523_v30 = vld [vmem:[#allocation3 + $0x68] sm:$0x1] }
 0x2a9   : > { %v4923_v57 = vadd.f32 %v4845_v59, %v15311_v54  ;;  %v5253_v60 = vor.u32 %v5251_v61, %v5250_v52  ;;  %v5254_v16 = vrot.slane %v5250_v52, 4  ;;  %v10100_v23 = vpack.c.bf16 %v5031_v39, %v5031_v39  ;;  %v5516_v61 = vld [vmem:[#allocation3 + $0x5c] sm:$0x1]  ;;  %v11724_v59 = vld [vmem:[#allocation3 + $0x14] ss:$0 sps:$4 sm:$0x11]  }
 0x2aa   : > { %v5000_v0 = vadd.f32 %v13814_v35, %v4961_v40  ;;  %v10099_v2 = vpack.c.bf16 %v5030_v24, %v5030_v24  ;;  %v4924_v58 = vadd.f32 %v4848_v9, %v13830_v5  ;;  %v6244_v6 = vshrl.u32 %v13999_v33, 16  ;;  %v14017_v40 = vpop.f32.mrf.mxu0 }
 0x2ab   : > { %v4962_v42 = vmul.f32 %v13799_v32, %v4923_v57  ;;  %v5513_v34 = vsel %vm13872_vm1, %v5253_v60, %v5512_v26  ;;  %v5265_v38 = vshrl.u32 %v10100_v23, 16  ;;  %v5268_v50 = vshll.u32 %v10100_v23, 16  ;;  %v9580_v57 = vld [vmem:[#allocation3 + $0x10] sm:$0xf] }
 0x2ac   : > { %v5032_v12 = vmax.f32 %v5000_v0, 0.0  ;;  %5514 = vst [vmem:[#allocation3 + $0x54] sm:$0xf] %v5513_v34  ;;  %v5256_v10 = vshrl.u32 %v10099_v2, 16  ;;  %v5259_v53 = vshll.u32 %v10099_v2, 16  ;;  %v4963_v11 = vmul.f32 %v13799_v32, %v4924_v58 }
 0x2ad   : > { %v5001_v25 = vadd.f32 %v13814_v35, %v4962_v42  ;;  %v5267_v13 = vrot.slane %v5265_v38, 7  ;;  %v6246_v1 = vshll.u32 %v13999_v33, 16  ;;  %v10727_v15 = vadd.f32 %v13964_v22, %v13962_v4  ;;  %v9579_v34 = vld [vmem:[#allocation3 + $0xc] sm:$0xf] }
 0x2ae   : > { %v10101_v5 = vpack.c.bf16 %v5032_v12, %v5032_v12  ;;  %v5258_v31 = vrot.slane %v5256_v10, 7  ;;  %v5002_v37 = vadd.f32 %v13814_v35, %v4963_v11  ;;  %v11730_v38 = vld [vmem:[#allocation3 + $0x20] ss:$0 sps:$4 sm:$0x11]   ;;  %v14027_v10 = vcombine.low %v9579_v34, %v9580_v57 }
 0x2af   : > { %v5033_v3 = vmax.f32 %v5001_v25, 0.0  ;;  %v5270_v19 = vor.u32 %v5268_v50, %v5267_v13  ;;  %v5271_v28 = vrot.slane %v5267_v13, 4  ;;  %v6248_v24 = vrot.slane %v6246_v1, 1  ;;  %v15312_v50 = vld [vmem:[#allocation9_spill] sm:$0xff]  ;;  %v5526_v13 = vld [vmem:[#allocation3 + $0x6c] sm:$0xf] }
 0x2b0   : > { %v5273_v51 = vshrl.u32 %v10101_v5, 16  ;;  %v5276_v46 = vshll.u32 %v10101_v5, 16  ;;  %v5261_v45 = vor.u32 %v5259_v53, %v5258_v31  ;;  %v5263_v52 = vrot.slane %v5258_v31, 4  ;;  %v14029_v53 = vpop.f32.mrf.mxu0 }
 0x2b1   : > { %v10102_v26 = vpack.c.bf16 %v5033_v3, %v5033_v3  ;;  %v5034_v39 = vmax.f32 %v5002_v37, 0.0  ;;  %v5520_v9 = vsel %vm13872_vm1, %v5270_v19, %v5519_v36  ;;  %v4853_v54 = vadd.f32 %v13953_v56, %v10727_v15  ;;  %v9581_v37 = vld [vmem:[#allocation3 + $0x18] sm:$0xf] }
 0x2b2   : > { %v5275_v44 = vrot.slane %v5273_v51, 7  ;;  %5521 = vst [vmem:[#allocation3 + $0x60] sm:$0xf] %v5520_v9  ;;  %v5262_v4 = vsel %vm12312_vm2, %v5254_v16, %v5261_v45  ;;  %v5517_v22 = vsel %vm13885_vm3, %v5263_v52, %v5516_v61  ;;  %v6249_v58 = vor.u32 %v6248_v24, %v6244_v6  ;;  %v9582_v6 = vld [vmem:[#allocation3 + $0x1c] sm:$0xf]  ;;  %v14046_v24 = vpop.f32.mrf.mxu1 }
 0x2b3   : > { %v5282_v60 = vshrl.u32 %v10102_v26, 16  ;;  %v5285_v23 = vshll.u32 %v10102_v26, 16  ;;  %5515 = vst [vmem:[#allocation3 + $0x58] sm:$0xf] %v5262_v4  ;;  %5518 = vst [vmem:[#allocation3 + $0x5c] sm:$0x1] %v5517_v22  ;;  %v10103_v42 = vpack.c.bf16 %v5034_v39, %v5034_v39  ;;  %v4925_v12 = vadd.f32 %v4853_v54, %v15312_v50  ;;  %v14044_v39 = vpop.f32.mrf.mxu0 }
 0x2b4   : > { %v5278_v0 = vor.u32 %v5276_v46, %v5275_v44  ;;  %v5280_v2 = vrot.slane %v5275_v44, 4  ;;  %v6239_v16 = vshll.u32 %v11724_v59, 16  ;;  %v6254_v61 = vsel %vm2401_vm12, %v6249_v58, %v6253_v48  ;;  %v5530_v59 = vld [vmem:[#allocation3 + $0x74] sm:$0x1]  ;;  %v9614_v48 = vld [vmem:[#allocation3 + $0x28] sm:$0xf] }
 0x2b5   : > { %v5284_v56 = vrot.slane %v5282_v60, 7  ;;  %v5290_v36 = vshrl.u32 %v10103_v42, 16  ;;  %v5293_v5 = vshll.u32 %v10103_v42, 16  ;;  %v4964_v3 = vmul.f32 %v13799_v32, %v4925_v12  ;;  %11359 = vmatprep.mubr.bf16.mxu0 %v6254_v61  ;;  %v11733_v4 = vld [vmem:[#allocation3 + $0x2c] ss:$0 sps:$4 sm:$0x11]  }
 0x2b6   : > { %v5279_v25 = vsel %vm12312_vm2, %v5271_v28, %v5278_v0  ;;  %v5524_v11 = vsel %vm13885_vm3, %v5280_v2, %v5523_v30  ;;  %v6232_v19 = vshrl.u32 %v14027_v10, 16  ;;  %v6234_v28 = vshll.u32 %v14027_v10, 16  ;;  %v5589_v0 = vld [vmem:[#allocation3 + $0x10] sm:$0xf]  ;;  %v5588_v12 = vld [vmem:[#allocation3 + $0xc] sm:$0xf] }
 0x2b7   : > { %5522 = vst [vmem:[#allocation3 + $0x64] sm:$0xf] %v5279_v25  ;;  %5525 = vst [vmem:[#allocation3 + $0x68] sm:$0x1] %v5524_v11  ;;  %v5287_v1 = vor.u32 %v5285_v23, %v5284_v56  ;;  %v5288_v31 = vrot.slane %v5284_v56, 4  ;;  %v5292_v15 = vrot.slane %v5290_v36, 7  ;;  %v5003_v45 = vadd.f32 %v13814_v35, %v4964_v3  ;;  %v4860_v11 = vpop.f32.mrf.mxu1 }
 0x2b8   : > { %v6241_v51 = vrot.slane %v6239_v16, 1  ;;  %v14042_v52 = vcombine.low %v9581_v37, %v9582_v6  ;;  %v6275_v26 = vshll.u32 %v11730_v38, 16  ;;  %v6236_v54 = vrot.slane %v6234_v28, 1  ;;  %v9613_v38 = vld [vmem:[#allocation3 + $0x24] sm:$0xf]  ;;  %v14061_v16 = vpop.f32.mrf.mxu0  ;;  %v11742_v25 = vld [vmem:[%s15231_s3 + $0xb0] sm:$0xff]  }
 0x2b9   : > { %v5527_v46 = vsel %vm13872_vm1, %v5287_v1, %v5526_v13  ;;  %v5295_v9 = vor.u32 %v5293_v5, %v5292_v15  ;;  %v5297_v44 = vrot.slane %v5292_v15, 4  ;;  %v10730_v57 = vadd.f32 %v13988_v18, %v13978_v14  ;;  %v15313_v13 = vld [vmem:[#allocation10_spill] sm:$0xff]  ;;  %v11735_v1 = vld [vmem:[#allocation3 + $0x14] ss:$0 sps:$4 sm:$0x11]  }
 0x2ba   : > { %5528 = vst [vmem:[#allocation3 + $0x6c] sm:$0xf] %v5527_v46  ;;  %v5035_v22 = vmax.f32 %v5003_v45, 0.0  ;;  %v6268_v30 = vshrl.u32 %v14042_v52, 16  ;;  %v6270_v60 = vshll.u32 %v14042_v52, 16  ;;  %v6277_v23 = vrot.slane %v6275_v26, 1 }
 0x2bb   : > { %v5296_v2 = vsel %vm12312_vm2, %v5288_v31, %v5295_v9  ;;  %v5531_v42 = vsel %vm13885_vm3, %v5297_v44, %v5530_v59  ;;  %v6237_v58 = vor.u32 %v6236_v54, %v6232_v19  ;;  %v4856_v34 = vadd.f32 %v13976_v63, %v10730_v57  ;;  %v5533_v3 = vld [vmem:[#allocation3 + $0x78] sm:$0xf]  ;;  %v9616_v46 = vld [vmem:[#allocation3 + $0x34] sm:$0xf]  ;;  %v12008_v45 = vld [vmem:[%s15231_s3 + $0xb8] sm:$0xff]   ;;  %v14082_v54 = vpop.f32.mrf.mxu0 }
 0x2bc   : > { %5529 = vst [vmem:[#allocation3 + $0x70] sm:$0xf] %v5296_v2  ;;  %5532 = vst [vmem:[#allocation3 + $0x74] sm:$0x1] %v5531_v42  ;;  %v10104_v14 = vpack.c.bf16 %v5035_v22, %v5035_v22  ;;  %v6272_v18 = vrot.slane %v6270_v60, 1  ;;  %v10733_v56 = vadd.f32 %v14011_v47, %v14001_v43  ;;  %v14059_v50 = vcombine.low %v9613_v38, %v9614_v48  ;;  %v15314_v48 = vld [vmem:[#allocation11_spill] sm:$0xff] }
 0x2bd   : > { %v6242_v63 = vsel %vm2401_vm12, %v6237_v58, %v6241_v51  ;;  %v4926_v36 = vadd.f32 %v4856_v34, %v15313_v13  ;;  %v6287_v5 = vshll.u32 %v11733_v4, 16  ;;  %v14068_v6 = vcombine.low %v5588_v12, %v5589_v0  ;;  %v9615_v51 = vld [vmem:[#allocation3 + $0x30] sm:$0xf]  ;;  %v11737_v44 = vld [vmem:[#allocation3 + $0x38] ss:$0 sps:$4 sm:$0x11]  }
 0x2be   : > { %v5299_v31 = vshrl.u32 %v10104_v14, 16  ;;  %v5302_v43 = vshll.u32 %v10104_v14, 16  ;;  %7068 = vmatprep.mubr.bf16.mxu1 %v6242_v63  ;;  %v6273_v47 = vor.u32 %v6272_v18, %v6268_v30  ;;  %v4861_v61 = vadd.f32 %v10733_v56, %v4860_v11  ;;  %v11757_v60 = vld [vmem:[%s15231_s3 + $0xa8] sm:$0xff]   ;;  %v11739_v58 = vld [vmem:[#allocation3 + $0x2c] ss:$0 sps:$4 sm:$0x11]  }
 0x2bf   : > { %7069 = vmatmul.mubr.bf16.vlgmr.msra.gmra.mxu1 %v13846_v7  ;;  %v4965_v37 = vmul.f32 %v13799_v32, %v4926_v36  ;;  %v6280_v15 = vshrl.u32 %v14059_v50, 16  ;;  %v6282_v19 = vshll.u32 %v14059_v50, 16  ;;  %v6289_v28 = vrot.slane %v6287_v5, 1  ;;  %v9584_v56 = vld [vmem:[#allocation3 + $0x28] sm:$0xf]  ;;  %v11791_v12 = vld [vmem:[%s15231_s3 + $0x38] sm:$0xff]   ;;  %v14102_v36 = vpop.f32.mrf.mxu0 }
 0x2c0   : > { %v14074_v59 = vrot.slane %v5299_v31, 7  ;;  %11392 = vmatpush3.bf16.msra.mxu1 %v12008_v45  ;;  %v6278_v26 = vsel %vm2401_vm12, %v6273_v47, %v6277_v23  ;;  %v4927_v7 = vadd.f32 %v4861_v61, %v15314_v48  ;;  %v6256_v9 = vshrl.u32 %v14068_v6, 16  ;;  %v11792_v5 = vld [vmem:[%s15231_s3 + $0x70] sm:$0xff]   ;;  %v9583_v61 = vld [vmem:[#allocation3 + $0x24] sm:$0xf] }
 0x2c1   : > { %7076 = vmatprep.mubr.bf16.mxu1 %v6278_v26  ;;  %v5004_v57 = vadd.f32 %v13814_v35, %v4965_v37  ;;  %v6284_v4 = vrot.slane %v6282_v19, 1  ;;  %v6258_v22 = vshll.u32 %v14068_v6, 16  ;;  %v6263_v30 = vshll.u32 %v11735_v1, 16  ;;  %11393 = vmatprep.subr.bf16.mxu1 %v11742_v25  ;;  %v11770_v19 = vld [vmem:[%s15231_s3 + $0xa0] sm:$0xff]   ;;  %v11795_v26 = vld [vmem:[%s15231_s3 + $0x30] sm:$0xff]  }
 0x2c2   : > { %v5304_v23 = vor.u32 %v5302_v43, %v14074_v59  ;;  %v5305_v0 = vrot.slane %v14074_v59, 4  ;;  %v4966_v2 = vmul.f32 %v13799_v32, %v4927_v7  ;;  %v14092_v42 = vcombine.low %v9615_v51, %v9616_v46 }
 0x2c3   : > { %v5036_v34 = vmax.f32 %v5004_v57, 0.0  ;;  %v6285_v38 = vor.u32 %v6284_v4, %v6280_v15  ;;  %v6260_v14 = vrot.slane %v6258_v22, 1  ;;  %v6265_v18 = vrot.slane %v6263_v30, 1  ;;  %v11741_v57 = vld [vmem:[#allocation3 + $0x44] ss:$0 sps:$4 sm:$0x11]   ;;  %v14121_v4 = vpop.f32.mrf.mxu0 }
 0x2c4   : > { %v5534_v11 = vsel %vm13872_vm1, %v5304_v23, %v5533_v3  ;;  %v5005_v63 = vadd.f32 %v13814_v35, %v4966_v2  ;;  %v6316_v13 = vshrl.u32 %v14092_v42, 16  ;;  %v6318_v32 = vshll.u32 %v14092_v42, 16  ;;  %11394 = vmatpush3.bf16.msra.mxu1 %v11742_v25  ;;  %v14108_v35 = vpop.f32.mrf.mxu1  ;;  %v11800_v22 = vld [vmem:[%s15231_s3 + $0x68] sm:$0xff]  }
 0x2c5   : > { %5535 = vst [vmem:[#allocation3 + $0x78] sm:$0xf] %v5534_v11  ;;  %v10105_v1 = vpack.c.bf16 %v5036_v34, %v5036_v34  ;;  %v6290_v31 = vsel %vm2401_vm12, %v6285_v38, %v6289_v28  ;;  %v6261_v43 = vor.u32 %v6260_v14, %v6256_v9  ;;  %v6323_v47 = vshll.u32 %v11737_v44, 16  ;;  %11395 = vmatprep.subr.bf16.mxu1 %v11757_v60  ;;  %v9618_v34 = vld [vmem:[#allocation3 + $0x40] sm:$0xf] }
 0x2c6   : > { %v5037_v3 = vmax.f32 %v5005_v63, 0.0  ;;  %11360 = vmatmul.mubr.bf16.vlgmr.msra.gmra.mxu0 %v6290_v31  ;;  %v6320_v37 = vrot.slane %v6318_v32, 1  ;;  %v14110_v25 = vcombine.low %v9583_v61, %v9584_v56  ;;  %v6311_v15 = vshll.u32 %v11739_v58, 16  ;;  %v4863_v38 = vpop.f32.mrf.mxu1  ;;  %v5537_v14 = vld [vmem:[#allocation3 + $0x80] sm:$0x1] }
 0x2c7   : > { %v5307_v51 = vshrl.u32 %v10105_v1, 16  ;;  %v5310_v46 = vshll.u32 %v10105_v1, 16  ;;  %v6266_v28 = vsel %vm2401_vm12, %v6261_v43, %v6265_v18  ;;  %v6325_v45 = vrot.slane %v6323_v47, 1  ;;  %10928 = vmatpush3.bf16.msra.mxu0 %v11791_v12  ;;  %v11783_v63 = vld [vmem:[%s15231_s3 + $0x98] sm:$0xff]  }
 0x2c8   : > { %v10106_v48 = vpack.c.bf16 %v5037_v3, %v5037_v3  ;;  %7077 = vmatmul.mubr.bf16.gmra.mxu1 %v6266_v28  ;;  %v6321_v7 = vor.u32 %v6320_v37, %v6316_v13  ;;  %v6304_v9 = vshrl.u32 %v14110_v25, 16  ;;  %v6306_v44 = vshll.u32 %v14110_v25, 16  ;;  %10929 = vmatprep.subr.bf16.mxu0 %v11792_v5  ;;  %v11801_v5 = vld [vmem:[%s15231_s3 + $0x28] sm:$0xff]   ;;  %v11744_v61 = vld [vmem:[#allocation3 + $0x20] ss:$0 sps:$4 sm:$0x11]   ;;  %v14142_v3 = vpop.f32.mrf.mxu0 }
 0x2c9   : > { %v5309_v30 = vrot.slane %v5307_v51, 7  ;;  %v6313_v23 = vrot.slane %v6311_v15, 1  ;;  %v10736_v2 = vadd.f32 %v14029_v53, %v14017_v40  ;;  %v10739_v58 = vadd.f32 %v14061_v16, %v14044_v39  ;;  %11396 = vmatpush3.bf16.msra.mxu1 %v11757_v60  ;;  %v5540_v40 = vld [vmem:[#allocation3 + $0x84] sm:$0xf]  ;;  %v9617_v16 = vld [vmem:[#allocation3 + $0x3c] sm:$0xf] }
 0x2ca   : > { %v5316_v18 = vshrl.u32 %v10106_v48, 16  ;;  %v5319_v56 = vshll.u32 %v10106_v48, 16  ;;  %v6326_v12 = vsel %vm2401_vm12, %v6321_v7, %v6325_v45  ;;  %v6308_v11 = vrot.slane %v6306_v44, 1  ;;  %11397 = vmatprep.subr.bf16.mxu1 %v11770_v19  ;;  %v5591_v60 = vld [vmem:[#allocation3 + $0x1c] sm:$0xf] }
 0x2cb   : > { %v5312_v13 = vor.u32 %v5310_v46, %v5309_v30  ;;  %v5314_v32 = vrot.slane %v5309_v30, 4  ;;  %11363 = vmatprep.mubr.bf16.mxu0 %v6326_v12  ;;  %v4864_v53 = vadd.f32 %v10736_v2, %v4863_v38  ;;  %v4869_v39 = vadd.f32 %v14046_v24, %v10739_v58  ;;  %10930 = vmatpush3.bf16.msra.mxu0 %v11795_v26  ;;  %v11802_v24 = vld [vmem:[%s15231_s3 + $0x60] sm:$0xff]   ;;  %v15315_v46 = vld [vmem:[#allocation12_spill] sm:$0xff]  ;;  %v11746_v48 = vld [vmem:[#allocation3 + $0x50] ss:$0 sps:$4 sm:$0x11]  }
 0x2cc   : > { %v14138_v1 = vrot.slane %v5316_v18, 7  ;;  %v6309_v31 = vor.u32 %v6308_v11, %v6304_v9  ;;  %v14140_v43 = vcombine.low %v9617_v16, %v9618_v34  ;;  %v6359_v47 = vshll.u32 %v11741_v57, 16  ;;  %10931 = vmatprep.subr.bf16.mxu0 %v11800_v22  ;;  %v5590_v45 = vld [vmem:[#allocation3 + $0x18] sm:$0xf]  ;;  %v9620_v26 = vld [vmem:[#allocation3 + $0x4c] sm:$0xf] }
 0x2cd   : > { %v5313_v37 = vsel %vm12312_vm2, %v5305_v0, %v5312_v13  ;;  %v5538_v15 = vsel %vm13885_vm3, %v5314_v32, %v5537_v14  ;;  %v4928_v51 = vadd.f32 %v4864_v53, %v13834_v41  ;;  %v4929_v28 = vadd.f32 %v4869_v39, %v15315_v46  ;;  %11398 = vmatpush3.bf16.msra.mxu1 %v11770_v19  ;;  %v11803_v41 = vld [vmem:[%s15231_s3 + $0x90] sm:$0xff]   ;;  %v14165_v19 = vld [vmem:[%s15232_s4] ss:$0 sm:$0xff]  ;;  %v11811_v12 = vld [vmem:[%s15231_s3 + $0x58] sm:$0xff]  }
 0x2ce   : > { %5536 = vst [vmem:[#allocation3 + $0x7c] sm:$0xf] %v5313_v37  ;;  %5539 = vst [vmem:[#allocation3 + $0x80] sm:$0x1] %v5538_v15  ;;  %v5321_v7 = vor.u32 %v5319_v56, %v14138_v1  ;;  %v5322_v59 = vrot.slane %v14138_v1, 4  ;;  %v6314_v9 = vsel %vm2401_vm12, %v6309_v31, %v6313_v23  ;;  %v6352_v0 = vshrl.u32 %v14140_v43, 16  ;;  %11399 = vmatprep.subr.bf16.mxu1 %v11783_v63  ;;  %v14179_v56 = vpop.f32.mrf.mxu0 }
 0x2cf   : > { %7084 = vmatprep.mubr.bf16.mxu1 %v6314_v9  ;;  %v4967_v44 = vmul.f32 %v14165_v19, %v4928_v51  ;;  %v4968_v57 = vmul.f32 %v14165_v19, %v4929_v28  ;;  %v6354_v22 = vshll.u32 %v14140_v43, 16  ;;  %v6361_v30 = vrot.slane %v6359_v47, 1  ;;  %v9619_v23 = vld [vmem:[#allocation3 + $0x48] sm:$0xf]  ;;  %10932 = vmatpush3.bf16.msra.mxu0 %v11801_v5  ;;  %v9586_v39 = vld [vmem:[#allocation3 + $0x34] sm:$0xf] }
 0x2d0   : > { %v11806_v2 = vld [vmem:[%s15231_s3 + $0x20] sm:$0xff]   ;;  %v5541_v58 = vsel %vm13872_vm1, %v5321_v7, %v5540_v40  ;;  %v14175_v34 = vcombine.low %v5590_v45, %v5591_v60  ;;  %v6299_v38 = vshll.u32 %v11744_v61, 16  ;;  %v14177_v14 = vcombine.low %v9619_v23, %v9620_v26  ;;  %v11748_v18 = vld [vmem:[#allocation3 + $0x38] ss:$0 sps:$4 sm:$0x11]   ;;  %10933 = vmatprep.subr.bf16.mxu0 %v11802_v24  ;;  %v11826_v47 = vld [vmem:[%s15231_s3 + $0x88] sm:$0xff]  }
 0x2d1   : > { %5542 = vst [vmem:[#allocation3 + $0x84] sm:$0xf] %v5541_v58  ;;  %v14187_v11 = vld [vmem:[%s15233_s5] ss:$0 sm:$0xff]  ;;  %v6356_v40 = vrot.slane %v6354_v22, 1  ;;  %v6395_v53 = vshll.u32 %v11746_v48, 16  ;;  %11400 = vmatpush3.bf16.msra.mxu1 %v11783_v63  ;;  %v14203_v48 = vpop.f32.mrf.mxu0 }
 0x2d2   : > { %v5006_v13 = vadd.f32 %v14187_v11, %v4967_v44  ;;  %v5007_v32 = vadd.f32 %v14187_v11, %v4968_v57  ;;  %v6292_v16 = vshrl.u32 %v14175_v34, 16  ;;  %v6294_v60 = vshll.u32 %v14175_v34, 16  ;;  %11401 = vmatprep.subr.bf16.mxu1 %v11803_v41  ;;  %v9585_v51 = vld [vmem:[#allocation3 + $0x30] sm:$0xf]  ;;  %v11812_v63 = vld [vmem:[%s15231_s3 + $0x18] sm:$0xff]   ;;  %v11813_v7 = vld [vmem:[%s15231_s3 + $0x50] sm:$0xff]  }
 0x2d3   : > { %v6301_v5 = vrot.slane %v6299_v38, 1  ;;  %v6388_v31 = vshrl.u32 %v14177_v14, 16  ;;  %v6357_v37 = vor.u32 %v6356_v40, %v6352_v0  ;;  %v6390_v15 = vshll.u32 %v14177_v14, 16  ;;  %10934 = vmatpush3.bf16.msra.mxu0 %v11806_v2  ;;  %v9622_v22 = vld [vmem:[#allocation3 + $0x58] sm:$0xf] }
 0x2d4   : > { %v5038_v61 = vmax.f32 %v5006_v13, 0.0  ;;  %v5039_v24 = vmax.f32 %v5007_v32, 0.0  ;;  %v6296_v46 = vrot.slane %v6294_v60, 1  ;;  %v6397_v28 = vrot.slane %v6395_v53, 1  ;;  %10935 = vmatprep.subr.bf16.mxu0 %v11811_v12  ;;  %v14211_v13 = vpop.f32.mrf.mxu1 }
 0x2d5   : > { %v14201_v45 = vcombine.low %v9585_v51, %v9586_v39  ;;  %v6347_v26 = vshll.u32 %v11748_v18, 16  ;;  %v6362_v44 = vsel %vm2401_vm12, %v6357_v37, %v6361_v30  ;;  %v6392_v57 = vrot.slane %v6390_v15, 1  ;;  %11402 = vmatpush3.bf16.msra.mxu1 %v11803_v41  ;;  %v9621_v18 = vld [vmem:[#allocation3 + $0x54] sm:$0xf]  ;;  %v11816_v41 = vld [vmem:[%s15231_s3 + $0x10] sm:$0xff]   ;;  %v14219_v15 = vpop.f32.mrf.mxu0 }
 0x2d6   : > { %v10107_v9 = vpack.c.bf16 %v5038_v61, %v5038_v61  ;;  %v10108_v0 = vpack.c.bf16 %v5039_v24, %v5039_v24  ;;  %11364 = vmatmul.mubr.bf16.gmra.mxu0 %v6362_v44  ;;  %v6297_v23 = vor.u32 %v6296_v46, %v6292_v16  ;;  %v11750_v12 = vld [vmem:[#allocation3 + $0x5c] ss:$0 sps:$4 sm:$0x11]   ;;  %11403 = vmatprep.subr.bf16.mxu1 %v11826_v47  ;;  %v5544_v30 = vld [vmem:[#allocation3 + $0x8c] sm:$0x1]  ;;  %v11823_v51 = vld [vmem:[%s15231_s3 + $0x48] sm:$0xff]  }
 0x2d7   : > { %v6340_v2 = vshrl.u32 %v14201_v45, 16  ;;  %v6342_v58 = vshll.u32 %v14201_v45, 16  ;;  %v6349_v38 = vrot.slane %v6347_v26, 1  ;;  %10936 = vmatpush3.bf16.msra.mxu0 %v11812_v63  ;;  %v5547_v16 = vld [vmem:[#allocation3 + $0x90] sm:$0xf]  ;;  %v6393_v61 = vor.u32 %v6392_v57, %v6388_v31  ;;  %v11836_v63 = vld [vmem:[%s15231_s3 + $0x80] sm:$0xff]  }
 0x2d8   : > { %v5324_v32 = vshrl.u32 %v10107_v9, 16  ;;  %v5327_v40 = vshll.u32 %v10107_v9, 16  ;;  %v5333_v53 = vshrl.u32 %v10108_v0, 16  ;;  %v5336_v39 = vshll.u32 %v10108_v0, 16  ;;  %10937 = vmatprep.subr.bf16.mxu0 %v11813_v7  ;;  %v5593_v44 = vld [vmem:[#allocation3 + $0x28] sm:$0xf] }
 0x2d9   : > { %v6302_v60 = vsel %vm2401_vm12, %v6297_v23, %v6301_v5  ;;  %v6344_v24 = vrot.slane %v6342_v58, 1  ;;  %v10742_v37 = vadd.f32 %v14102_v36, %v14082_v54  ;;  %v10745_v5 = vadd.f32 %v14142_v3, %v14121_v4  ;;  %v11752_v54 = vld [vmem:[#allocation3 + $0x2c] ss:$0 sps:$4 sm:$0x11]   ;;  %11404 = vmatpush3.bf16.msra.mxu1 %v11826_v47  ;;  %v4876_v23 = vpop.f32.mrf.mxu1  ;;  %v11824_v4 = vld [vmem:[%s15231_s3 + $0x8] sm:$0xff]   ;;  %v15316_v47 = vld [vmem:[#allocation13_spill] sm:$0xff] }
 0x2da   : > { %v5326_v46 = vrot.slane %v5324_v32, 7  ;;  %v14227_v26 = vrot.slane %v5333_v53, 7  ;;  %7085 = vmatmul.mubr.bf16.gmra.mxu1 %v6302_v60  ;;  %v14231_v31 = vcombine.low %v9621_v18, %v9622_v22  ;;  %v6398_v36 = vsel %vm2401_vm12, %v6393_v61, %v6397_v28  ;;  %v11754_v57 = vld [vmem:[#allocation3 + $0x44] ss:$0 sps:$4 sm:$0x11]   ;;  %11405 = vmatprep.subr.bf16.mxu1 %v11836_v63 }
 0x2db   : > { %v6345_v7 = vor.u32 %v6344_v24, %v6340_v2  ;;  %v4872_v9 = vadd.f32 %v14108_v35, %v10742_v37  ;;  %v6431_v0 = vshll.u32 %v11750_v12, 16  ;;  %11367 = vmatprep.mubr.bf16.mxu0 %v6398_v36  ;;  %10938 = vmatpush3.bf16.msra.mxu0 %v11816_v41  ;;  %v11843_v35 = vld [vmem:[%s15231_s3 + $0x1f8] sm:$0xff]   ;;  %v4877_v22 = vadd.f32 %v10745_v5, %v4876_v23  ;;  %v14246_v12 = vpop.f32.mrf.mxu0  ;;  %v11756_v36 = vld [vmem:[#allocation3 + $0x68] ss:$0 sps:$4 sm:$0x11]  }
 0x2dc   : > { %v5329_v58 = vor.u32 %v5327_v40, %v5326_v46  ;;  %v5331_v32 = vrot.slane %v5326_v46, 4  ;;  %v5338_v53 = vor.u32 %v5336_v39, %v14227_v26  ;;  %v5339_v60 = vrot.slane %v14227_v26, 4  ;;  %v9588_v18 = vld [vmem:[#allocation3 + $0x40] sm:$0xf]  ;;  %10939 = vmatprep.subr.bf16.mxu0 %v11823_v51  ;;  %v11825_v40 = vld [vmem:[%s15231_s3 + $0x40] sm:$0xff]  }
 0x2dd   : > { %v6350_v3 = vsel %vm2401_vm12, %v6345_v7, %v6349_v38  ;;  %v4930_v28 = vadd.f32 %v4872_v9, %v15316_v47  ;;  %v6424_v2 = vshrl.u32 %v14231_v31, 16  ;;  %v6426_v61 = vshll.u32 %v14231_v31, 16  ;;  %v5592_v24 = vld [vmem:[#allocation3 + $0x24] sm:$0xf]  ;;  %v15317_v51 = vld [vmem:[#allocation14_spill] sm:$0xff]  ;;  %11406 = vmatpush3.bf16.msra.mxu1 %v11836_v63  ;;  %v14280_v47 = vpop.f32.mrf.mxu1 }
 0x2de   : > { %v5330_v39 = vsel %vm12312_vm2, %v5322_v59, %v5329_v58  ;;  %v5545_v38 = vsel %vm13885_vm3, %v5331_v32, %v5544_v30  ;;  %v5548_v41 = vsel %vm13872_vm1, %v5338_v53, %v5547_v16  ;;  %7092 = vmatprep.mubr.bf16.mxu1 %v6350_v3  ;;  %v4931_v1 = vadd.f32 %v4877_v22, %v15317_v51  ;;  %v9587_v59 = vld [vmem:[#allocation3 + $0x3c] sm:$0xf]  ;;  %v11829_v23 = vld [vmem:[%s15231_s3] sm:$0xff]   ;;  %v9624_v63 = vld [vmem:[#allocation3 + $0x64] sm:$0xf]  ;;  %v14273_v53 = vpop.f32.mrf.mxu0 }
 0x2df   : > { %5543 = vst [vmem:[#allocation3 + $0x88] sm:$0xf] %v5330_v39  ;;  %5546 = vst [vmem:[#allocation3 + $0x8c] sm:$0x1] %v5545_v38  ;;  %v4969_v37 = vmul.f32 %v14165_v19, %v4930_v28  ;;  %v6433_v46 = vrot.slane %v6431_v0, 1  ;;  %v14262_v5 = vcombine.low %v5592_v24, %v5593_v44  ;;  %v6428_v30 = vrot.slane %v6426_v61, 1  ;;  %10940 = vmatpush3.bf16.msra.mxu0 %v11824_v4 }
 0x2e0   : > { %5549 = vst [vmem:[#allocation3 + $0x90] sm:$0xf] %v5548_v41  ;;  %v6335_v7 = vshll.u32 %v11752_v54, 16  ;;  %v14264_v16 = vcombine.low %v9587_v59, %v9588_v18  ;;  %v6383_v9 = vshll.u32 %v11754_v57, 16  ;;  %11063 = vmatprep.subr.bf16.mxu1 %v11843_v35  ;;  %v4970_v0 = vmul.f32 %v14165_v19, %v4931_v1  ;;  %10941 = vmatprep.subr.bf16.mxu0 %v11825_v40  ;;  %v11845_v54 = vld [vmem:[%s15231_s3 + $0x238] sm:$0xff]  }
 0x2e1   : > { %v5008_v58 = vadd.f32 %v14187_v11, %v4969_v37  ;;  %v6328_v44 = vshrl.u32 %v14262_v5, 16  ;;  %v6330_v32 = vshll.u32 %v14262_v5, 16  ;;  %v6429_v57 = vor.u32 %v6428_v30, %v6424_v2  ;;  %v9623_v38 = vld [vmem:[#allocation3 + $0x60] sm:$0xf]  ;;  %v5595_v59 = vld [vmem:[#allocation3 + $0x34] sm:$0xf]  ;;  %v14288_v30 = vpop.f32.mrf.mxu0 }
 0x2e2   : > { %v6337_v4 = vrot.slane %v6335_v7, 1  ;;  %v6376_v35 = vshrl.u32 %v14264_v16, 16  ;;  %v6378_v3 = vshll.u32 %v14264_v16, 16  ;;  %v5009_v22 = vadd.f32 %v14187_v11, %v4970_v0  ;;  %v11759_v0 = vld [vmem:[#allocation3 + $0x38] ss:$0 sps:$4 sm:$0x11]  }
 0x2e3   : > { %v5040_v28 = vmax.f32 %v5008_v58, 0.0  ;;  %v6332_v18 = vrot.slane %v6330_v32, 1  ;;  %v6385_v39 = vrot.slane %v6383_v9, 1  ;;  %v6434_v40 = vsel %vm2401_vm12, %v6429_v57, %v6433_v46  ;;  %10942 = vmatpush3.bf16.msra.mxu0 %v11829_v23  ;;  %v5551_v57 = vld [vmem:[#allocation3 + $0x98] sm:$0x1] }
 0x2e4   : > { %v6380_v41 = vrot.slane %v6378_v3, 1  ;;  %v14284_v61 = vcombine.low %v9623_v38, %v9624_v63  ;;  %v6467_v24 = vshll.u32 %v11756_v36, 16  ;;  %v5041_v37 = vmax.f32 %v5009_v22, 0.0  ;;  %11368 = vmatmul.mubr.bf16.gmra.mxu0 %v6434_v40  ;;  %11439 = vmatprep.subr.bf16.mxu0 %v11845_v54  ;;  %v4879_v36 = vpop.f32.mrf.mxu1  ;;  %v10755_v40 = vpop.f32.mrf.mxu0  ;;  %v14478_v21 = vld [vmem:[#allocation3 + $0x80] ss:$0 sps:$4 sm:$0x11]  }
 0x2e5   : > { %v10109_v2 = vpack.c.bf16 %v5040_v28, %v5040_v28  ;;  %v6333_v51 = vor.u32 %v6332_v18, %v6328_v44  ;;  %v10748_v1 = vadd.f32 %v14203_v48, %v14179_v56  ;;  %v10751_v54 = vadd.f32 %v14246_v12, %v14219_v15 }
 0x2e6   : > { %15318 = vst [vmem:[#allocation4_spill] sm:$0xff] %v14284_v61  ;;  %v6381_v7 = vor.u32 %v6380_v41, %v6376_v35  ;;  %v6460_v9 = vshrl.u32 %v14284_v61, 16  ;;  %v6462_v46 = vshll.u32 %v14284_v61, 16  ;;  %v6469_v58 = vrot.slane %v6467_v24, 1  ;;  %v5594_v35 = vld [vmem:[#allocation3 + $0x30] sm:$0xf] }
 0x2e7   : > { %v5341_v23 = vshrl.u32 %v10109_v2, 16  ;;  %v5344_v32 = vshll.u32 %v10109_v2, 16  ;;  %v10110_v63 = vpack.c.bf16 %v5041_v37, %v5041_v37  ;;  %v6338_v44 = vsel %vm2401_vm12, %v6333_v51, %v6337_v4  ;;  %v5554_v41 = vld [vmem:[#allocation3 + $0x9c] sm:$0xf]  ;;  %v9590_v37 = vld [vmem:[#allocation3 + $0x4c] sm:$0xf] }
 0x2e8   : > { %7093 = vmatmul.mubr.bf16.gmra.mxu1 %v6338_v44  ;;  %v6386_v56 = vsel %vm2401_vm12, %v6381_v7, %v6385_v39  ;;  %v6464_v48 = vrot.slane %v6462_v46, 1  ;;  %v4880_v3 = vadd.f32 %v10748_v1, %v4879_v36  ;;  %v14296_v38 = vcombine.low %v5594_v35, %v5595_v59  ;;  %v11761_v51 = vld [vmem:[#allocation3 + $0x50] ss:$0 sps:$4 sm:$0x11]   ;;  %v9625_v35 = vld [vmem:[#allocation3 + $0x6c] sm:$0xf] }
 0x2e9   : > { %v5343_v28 = vrot.slane %v5341_v23, 7  ;;  %v5350_v22 = vshrl.u32 %v10110_v63, 16  ;;  %v5353_v18 = vshll.u32 %v10110_v63, 16  ;;  %7100 = vmatprep.mubr.bf16.mxu1 %v6386_v56  ;;  %v4885_v2 = vadd.f32 %v14211_v13, %v10751_v54  ;;  %v9626_v46 = vld [vmem:[#allocation3 + $0x70] sm:$0xf] }
 0x2ea   : > { %v6465_v24 = vor.u32 %v6464_v48, %v6460_v9  ;;  %v4932_v4 = vadd.f32 %v4880_v3, %v13841_v20  ;;  %v6371_v39 = vshll.u32 %v11759_v0, 16  ;;  %v6364_v12 = vshrl.u32 %v14296_v38, 16  ;;  %v15319_v23 = vld [vmem:[#allocation15_spill] sm:$0xff]  ;;  %v9589_v54 = vld [vmem:[#allocation3 + $0x48] sm:$0xf] }
 0x2eb   : > { %v5346_v1 = vor.u32 %v5344_v32, %v5343_v28  ;;  %v5348_v7 = vrot.slane %v5343_v28, 4  ;;  %v14300_v15 = vrot.slane %v5350_v22, 7  ;;  %v4933_v9 = vadd.f32 %v4885_v2, %v15319_v23  ;;  %v11763_v63 = vld [vmem:[#allocation3 + $0x74] ss:$0 sps:$4 sm:$0x11]  }
 0x2ec   : > { %v6470_v59 = vsel %vm2401_vm12, %v6465_v24, %v6469_v58  ;;  %v4971_v36 = vmul.f32 %v14165_v19, %v4932_v4  ;;  %v6366_v20 = vshll.u32 %v14296_v38, 16  ;;  %v10756_v58 = vpop.f32.mrf.mxu0  ;;  %v6373_v26 = vrot.slane %v6371_v39, 1 }
 0x2ed   : > { %v5347_v13 = vsel %vm12312_vm2, %v5339_v60, %v5346_v1  ;;  %v5552_v0 = vsel %vm13885_vm3, %v5348_v7, %v5551_v57  ;;  %v5355_v32 = vor.u32 %v5353_v18, %v14300_v15  ;;  %11371 = vmatprep.mubr.bf16.mxu0 %v6470_v59  ;;  %v4972_v48 = vmul.f32 %v14165_v19, %v4933_v9  ;;  %v11765_v1 = vld [vmem:[#allocation3 + $0x44] ss:$0 sps:$4 sm:$0x11]   ;;  %v14331_v9 = vpop.f32.mrf.mxu1 }
 0x2ee   : > { %5550 = vst [vmem:[#allocation3 + $0x94] sm:$0xf] %v5347_v13  ;;  %5553 = vst [vmem:[#allocation3 + $0x98] sm:$0x1] %v5552_v0  ;;  %v5010_v56 = vadd.f32 %v14187_v11, %v4971_v36  ;;  %v6368_v3 = vrot.slane %v6366_v20, 1  ;;  %v14319_v57 = vcombine.low %v9589_v54, %v9590_v37  ;;  %v6419_v28 = vshll.u32 %v11761_v51, 16 }
 0x2ef   : > { %v5555_v60 = vsel %vm13872_vm1, %v5355_v32, %v5554_v41  ;;  %v14321_v22 = vcombine.low %v9625_v35, %v9626_v46  ;;  %v5011_v24 = vadd.f32 %v14187_v11, %v4972_v48  ;;  %v6503_v2 = vshll.u32 %v11763_v63, 16  ;;  %v14327_v41 = vpop.f32.mrf.mxu0  ;;  %v5596_v54 = vld [vmem:[#allocation3 + $0x3c] sm:$0xf]  ;;  %v5558_v35 = vld [vmem:[#allocation3 + $0xa4] sm:$0x1]  ;;  %v4892_v44 = vpop.f32.mrf.mxu1 }
 0x2f0   : > { %5556 = vst [vmem:[#allocation3 + $0x9c] sm:$0xf] %v5555_v60  ;;  %v5042_v18 = vmax.f32 %v5010_v56, 0.0  ;;  %v6369_v4 = vor.u32 %v6368_v3, %v6364_v12  ;;  %v6412_v7 = vshrl.u32 %v14319_v57, 16  ;;  %v6414_v39 = vshll.u32 %v14319_v57, 16 }
 0x2f1   : > { %15320 = vst [vmem:[#allocation5_spill] sm:$0xff] %v14321_v22  ;;  %v6421_v59 = vrot.slane %v6419_v28, 1  ;;  %v6496_v36 = vshrl.u32 %v14321_v22, 16  ;;  %v5043_v51 = vmax.f32 %v5011_v24, 0.0  ;;  %v6498_v23 = vshll.u32 %v14321_v22, 16  ;;  %v10759_v24 = vpop.f32.mrf.mxu0 }
 0x2f2   : > { %v10111_v37 = vpack.c.bf16 %v5042_v18, %v5042_v18  ;;  %v6374_v46 = vsel %vm2401_vm12, %v6369_v4, %v6373_v26  ;;  %v5597_v12 = vld [vmem:[#allocation3 + $0x40] sm:$0xf]  ;;  %v6416_v20 = vrot.slane %v6414_v39, 1  ;;  %v6505_v63 = vrot.slane %v6503_v2, 1 }
 0x2f3   : > { %7101 = vmatmul.mubr.bf16.gmra.mxu1 %v6374_v46  ;;  %v10754_v13 = vadd.f32 %v14288_v30, %v14273_v53  ;;  %v10757_v0 = vadd.f32 %v10756_v58, %v10755_v40  ;;  %v10112_v48 = vpack.c.bf16 %v5043_v51, %v5043_v51  ;;  %v6500_v3 = vrot.slane %v6498_v23, 1  ;;  %v11767_v53 = vld [vmem:[#allocation3 + $0x5c] ss:$0 sps:$4 sm:$0x11]  }
 0x2f4   : > { %v5358_v32 = vshrl.u32 %v10111_v37, 16  ;;  %v5361_v56 = vshll.u32 %v10111_v37, 16  ;;  %v6417_v60 = vor.u32 %v6416_v20, %v6412_v7  ;;  %v14336_v28 = vcombine.low %v5596_v54, %v5597_v12  ;;  %v15321_v40 = vld [vmem:[#allocation16_spill] sm:$0xff]  ;;  %v11769_v51 = vld [vmem:[#allocation3 + $0x80] ss:$0 sps:$4 sm:$0x11]   ;;  %v10761_v54 = vpop.f32.mrf.mxu0 }
 0x2f5   : > { %v4888_v26 = vadd.f32 %v14280_v47, %v10754_v13  ;;  %v6407_v18 = vshll.u32 %v11765_v1, 16  ;;  %v5367_v39 = vshrl.u32 %v10112_v48, 16  ;;  %v5370_v2 = vshll.u32 %v10112_v48, 16  ;;  %v9592_v20 = vld [vmem:[#allocation3 + $0x58] sm:$0xf] }
 0x2f6   : > { %v5360_v4 = vrot.slane %v5358_v32, 7  ;;  %v6501_v46 = vor.u32 %v6500_v3, %v6496_v36  ;;  %v6422_v30 = vsel %vm2401_vm12, %v6417_v60, %v6421_v59  ;;  %v6400_v37 = vshrl.u32 %v14336_v28, 16  ;;  %v5561_v36 = vld [vmem:[#allocation3 + $0xa8] sm:$0xf]  ;;  %v9628_v3 = vld [vmem:[#allocation3 + $0x7c] sm:$0xf] }
 0x2f7   : > { %v4934_v58 = vadd.f32 %v4888_v26, %v15321_v40  ;;  %v6402_v7 = vshll.u32 %v14336_v28, 16  ;;  %v14342_v12 = vrot.slane %v5367_v39, 7  ;;  %7108 = vmatprep.mubr.bf16.mxu1 %v6422_v30  ;;  %v6409_v32 = vrot.slane %v6407_v18, 1  ;;  %v9591_v39 = vld [vmem:[#allocation3 + $0x54] sm:$0xf] }
 0x2f8   : > { %v5363_v47 = vor.u32 %v5361_v56, %v5360_v4  ;;  %v5365_v23 = vrot.slane %v5360_v4, 4  ;;  %v6506_v1 = vsel %vm2401_vm12, %v6501_v46, %v6505_v63  ;;  %v4893_v48 = vadd.f32 %v10757_v0, %v4892_v44  ;;  %v14354_v46 = vpop.f32.mrf.mxu1  ;;  %v9627_v30 = vld [vmem:[#allocation3 + $0x78] sm:$0xf]  ;;  %v5565_v4 = vld [vmem:[#allocation3 + $0xb0] sm:$0x1] }
 0x2f9   : > { %11372 = vmatmul.mubr.bf16.gmra.mxu0 %v6506_v1  ;;  %v4973_v13 = vmul.f32 %v14165_v19, %v4934_v58  ;;  %v6404_v59 = vrot.slane %v6402_v7, 1  ;;  %v15322_v60 = vrot.slane %v14300_v15, 4  ;;  %v5372_v63 = vor.u32 %v5370_v2, %v14342_v12  ;;  %v10762_v1 = vpop.f32.mrf.mxu0 }
 0x2fa   : > { %v5559_v26 = vsel %vm13885_vm3, %v5365_v23, %v5558_v35  ;;  %v4935_v15 = vadd.f32 %v4893_v48, %v13794_v62  ;;  %v14358_v18 = vcombine.low %v9591_v39, %v9592_v20  ;;  %v6455_v40 = vshll.u32 %v11767_v53, 16  ;;  %v5599_v62 = vld [vmem:[#allocation3 + $0x4c] sm:$0xf] }
 0x2fb   : > { %v5364_v56 = vsel %vm12312_vm2, %v15322_v60, %v5363_v47  ;;  %5560 = vst [vmem:[#allocation3 + $0xa4] sm:$0x1] %v5559_v26  ;;  %v5012_v44 = vadd.f32 %v14187_v11, %v4973_v13  ;;  %v6405_v0 = vor.u32 %v6404_v59, %v6400_v37  ;;  %v5562_v35 = vsel %vm13872_vm1, %v5372_v63, %v5561_v36  ;;  %v4895_v59 = vpop.f32.mrf.mxu1  ;;  %v5598_v60 = vld [vmem:[#allocation3 + $0x48] sm:$0xf] }
 0x2fc   : > { %5557 = vst [vmem:[#allocation3 + $0xa0] sm:$0xf] %v5364_v56  ;;  %v14362_v2 = vcombine.low %v9627_v30, %v9628_v3  ;;  %v6539_v58 = vshll.u32 %v11769_v51, 16  ;;  %5563 = vst [vmem:[#allocation3 + $0xa8] sm:$0xf] %v5562_v35  ;;  %v4974_v23 = vmul.f32 %v14165_v19, %v4935_v15  ;;  %v6448_v37 = vshrl.u32 %v14358_v18, 16 }
 0x2fd   : > { %v5044_v7 = vmax.f32 %v5012_v44, 0.0  ;;  %v6410_v47 = vsel %vm2401_vm12, %v6405_v0, %v6409_v32  ;;  %v6450_v20 = vshll.u32 %v14358_v18, 16  ;;  %v6457_v13 = vrot.slane %v6455_v40, 1  ;;  %v11772_v44 = vld [vmem:[#allocation3 + $0x50] ss:$0 sps:$4 sm:$0x11]  }
 0x2fe   : > { %15323 = vst [vmem:[#allocation6_spill] sm:$0xff] %v14362_v2  ;;  %7109 = vmatmul.mubr.bf16.gmra.mxu1 %v6410_v47  ;;  %v6532_v36 = vshrl.u32 %v14362_v2, 16  ;;  %v6534_v53 = vshll.u32 %v14362_v2, 16  ;;  %v5013_v48 = vadd.f32 %v14187_v11, %v4974_v23  ;;  %v6541_v3 = vrot.slane %v6539_v58, 1  ;;  %v14542_v2 = vld [vmem:[#allocation3 + $0x94] sm:$0xf] }
 0x2ff   : > { %v10113_v51 = vpack.c.bf16 %v5044_v7, %v5044_v7  ;;  %v10760_v32 = vadd.f32 %v10759_v24, %v14327_v41  ;;  %v6452_v56 = vrot.slane %v6450_v20, 1  ;;  %v10763_v63 = vadd.f32 %v10762_v1, %v10761_v54 }
 0x300   : > { %v6536_v26 = vrot.slane %v6534_v53, 1  ;;  %v14372_v39 = vcombine.low %v5598_v60, %v5599_v62  ;;  %v5045_v30 = vmax.f32 %v5013_v48, 0.0  ;;  %v6443_v53 = vshll.u32 %v11772_v44, 16 }
 0x301   : > { %v5375_v0 = vshrl.u32 %v10113_v51, 16  ;;  %v5378_v15 = vshll.u32 %v10113_v51, 16  ;;  %v4896_v35 = vadd.f32 %v10760_v32, %v4895_v59  ;;  %v6453_v40 = vor.u32 %v6452_v56, %v6448_v37  ;;  %v9594_v37 = vld [vmem:[#allocation3 + $0x64] sm:$0xf]  ;;  %v10764_v32 = vpop.f32.mrf.mxu0 }
 0x302   : > { %15324 = vst [vmem:[#allocation7_spill] sm:$0xff] %v14372_v39  ;;  %v6537_v47 = vor.u32 %v6536_v26, %v6532_v36  ;;  %v4901_v7 = vadd.f32 %v14331_v9, %v10763_v63  ;;  %v6436_v23 = vshrl.u32 %v14372_v39, 16  ;;  %v10114_v41 = vpack.c.bf16 %v5045_v30, %v5045_v30  ;;  %v11774_v36 = vld [vmem:[#allocation3 + $0x68] ss:$0 sps:$4 sm:$0x11]  }
 0x303   : > { %v5377_v58 = vrot.slane %v5375_v0, 7  ;;  %v4936_v24 = vadd.f32 %v4896_v35, %v13856_v27  ;;  %v6438_v54 = vshll.u32 %v14372_v39, 16  ;;  %v6458_v1 = vsel %vm2401_vm12, %v6453_v40, %v6457_v13  ;;  %v9593_v26 = vld [vmem:[#allocation3 + $0x60] sm:$0xf]  ;;  %v5568_v0 = vld [vmem:[#allocation3 + $0xb4] sm:$0xf] }
 0x304   : > { %v6542_v62 = vsel %vm2401_vm12, %v6537_v47, %v6541_v3  ;;  %v4937_v20 = vadd.f32 %v4901_v7, %v13789_v8  ;;  %v5384_v51 = vshrl.u32 %v10114_v41, 16  ;;  %v5387_v48 = vshll.u32 %v10114_v41, 16  ;;  %7116 = vmatprep.mubr.bf16.mxu1 %v6458_v1  ;;  %v11776_v30 = vld [vmem:[#allocation3 + $0x8c] ss:$0 sps:$4 sm:$0x11]  }
 0x305   : > { %v5380_v59 = vor.u32 %v5378_v15, %v5377_v58  ;;  %v5382_v9 = vrot.slane %v5377_v58, 4  ;;  %11375 = vmatprep.mubr.bf16.mxu0 %v6542_v62  ;;  %v4975_v27 = vmul.f32 %v14165_v19, %v4936_v24  ;;  %v6440_v56 = vrot.slane %v6438_v54, 1  ;;  %v9630_v7 = vld [vmem:[#allocation3 + $0x88] sm:$0xf]  ;;  %v10765_v54 = vpop.f32.mrf.mxu0  ;;  %v5601_v1 = vld [vmem:[#allocation3 + $0x58] sm:$0xf] }
 0x306   : > { %v4976_v60 = vmul.f32 %v14165_v19, %v4937_v20  ;;  %v6445_v13 = vrot.slane %v6443_v53, 1  ;;  %v15325_v3 = vrot.slane %v14342_v12, 4  ;;  %v14389_v44 = vrot.slane %v5384_v51, 7 }
 0x307   : > { %v5566_v63 = vsel %vm13885_vm3, %v5382_v9, %v5565_v4  ;;  %v14391_v15 = vcombine.low %v9593_v26, %v9594_v37  ;;  %v5014_v35 = vadd.f32 %v14187_v11, %v4975_v27  ;;  %v6441_v47 = vor.u32 %v6440_v56, %v6436_v23 }
 0x308   : > { %v5381_v8 = vsel %vm12312_vm2, %v15325_v3, %v5380_v59  ;;  %5567 = vst [vmem:[#allocation3 + $0xb0] sm:$0x1] %v5566_v63  ;;  %v5015_v40 = vadd.f32 %v14187_v11, %v4976_v60  ;;  %v6491_v12 = vshll.u32 %v11774_v36, 16  ;;  %v5389_v58 = vor.u32 %v5387_v48, %v14389_v44  ;;  %v9629_v59 = vld [vmem:[#allocation3 + $0x84] sm:$0xf] }
 0x309   : > { %15326 = vst [vmem:[#allocation8_spill] sm:$0xff] %v14391_v15  ;;  %5564 = vst [vmem:[#allocation3 + $0xac] sm:$0xf] %v5381_v8  ;;  %v5390_v41 = vrot.slane %v14389_v44, 4  ;;  %v6484_v4 = vshrl.u32 %v14391_v15, 16  ;;  %v6486_v24 = vshll.u32 %v14391_v15, 16  ;;  %v6446_v53 = vsel %vm2401_vm12, %v6441_v47, %v6445_v13 }
 0x30a   : > { %v5046_v62 = vmax.f32 %v5014_v35, 0.0  ;;  %v5047_v20 = vmax.f32 %v5015_v40, 0.0  ;;  %v6493_v37 = vrot.slane %v6491_v12, 1  ;;  %v5569_v23 = vsel %vm13872_vm1, %v5389_v58, %v5568_v0  ;;  %7117 = vmatmul.mubr.bf16.gmra.mxu1 %v6446_v53  ;;  %v5600_v48 = vld [vmem:[#allocation3 + $0x54] sm:$0xf] }
 0x30b   : > { %v6488_v36 = vrot.slane %v6486_v24, 1  ;;  %v14402_v9 = vcombine.low %v9629_v59, %v9630_v7  ;;  %v6575_v51 = vshll.u32 %v11776_v30, 16  ;;  %5570 = vst [vmem:[#allocation3 + $0xb4] sm:$0xf] %v5569_v23  ;;  %v10766_v56 = vadd.f32 %v10765_v54, %v10764_v32  ;;  %v9596_v30 = vld [vmem:[#allocation3 + $0x70] sm:$0xf] }
 0x30c   : > { %v10115_v27 = vpack.c.bf16 %v5046_v62, %v5046_v62  ;;  %v10116_v60 = vpack.c.bf16 %v5047_v20, %v5047_v20  ;;  %v14404_v26 = vcombine.low %v5600_v48, %v5601_v1  ;;  %v11778_v3 = vld [vmem:[#allocation3 + $0x5c] ss:$0 sps:$4 sm:$0x11]   ;;  %v11780_v0 = vld [vmem:[#allocation3 + $0x74] ss:$0 sps:$4 sm:$0x11]  }
 0x30d   : > { %15327 = vst [vmem:[#allocation9_spill] sm:$0xff] %v14402_v9  ;;  %v6489_v8 = vor.u32 %v6488_v36, %v6484_v4  ;;  %v6568_v13 = vshrl.u32 %v14402_v9, 16  ;;  %v6570_v63 = vshll.u32 %v14402_v9, 16  ;;  %v6577_v44 = vrot.slane %v6575_v51, 1  ;;  %v5572_v7 = vld [vmem:[#allocation3 + $0xbc] sm:$0x1] }
 0x30e   : > { %15328 = vst [vmem:[#allocation10_spill] sm:$0xff] %v14404_v26  ;;  %v5392_v35 = vshrl.u32 %v10115_v27, 16  ;;  %v5395_v40 = vshll.u32 %v10115_v27, 16  ;;  %v5401_v47 = vshrl.u32 %v10116_v60, 16  ;;  %v5404_v12 = vshll.u32 %v10116_v60, 16 }
 0x30f   : > { %v5575_v58 = vld [vmem:[#allocation3 + $0xc0] sm:$0xf]  ;;  %v6494_v24 = vsel %vm2401_vm12, %v6489_v8, %v6493_v37  ;;  %v6572_v32 = vrot.slane %v6570_v63, 1  ;;  %v4904_v54 = vadd.f32 %v14354_v46, %v10766_v56  ;;  %v6472_v4 = vshrl.u32 %v14404_v26, 16  ;;  %v9595_v59 = vld [vmem:[#allocation3 + $0x6c] sm:$0xf] }
 0x310   : > { %v5394_v1 = vrot.slane %v5392_v35, 7  ;;  %v14411_v62 = vrot.slane %v5401_v47, 7  ;;  %7124 = vmatprep.mubr.bf16.mxu1 %v6494_v24  ;;  %v6474_v20 = vshll.u32 %v14404_v26, 16  ;;  %v6479_v53 = vshll.u32 %v11778_v3, 16  ;;  %v5602_v24 = vld [vmem:[#allocation3 + $0x60] sm:$0xf] }
 0x311   : > { %v6573_v23 = vor.u32 %v6572_v32, %v6568_v13  ;;  %v4938_v36 = vadd.f32 %v4904_v54, %v13802_v49  ;;  %v14415_v51 = vcombine.low %v9595_v59, %v9596_v30  ;;  %v6527_v48 = vshll.u32 %v11780_v0, 16  ;;  %v11785_v37 = vld [vmem:[#allocation3 + $0x68] ss:$0 sps:$4 sm:$0x11]   ;;  %v9632_v13 = vld [vmem:[#allocation3 + $0x94] sm:$0xf] }
 0x312   : > { %v5397_v27 = vor.u32 %v5395_v40, %v5394_v1  ;;  %v5399_v60 = vrot.slane %v5394_v1, 4  ;;  %v5406_v46 = vor.u32 %v5404_v12, %v14411_v62  ;;  %v11782_v8 = vld [vmem:[#allocation3 + $0x98] ss:$0 sps:$4 sm:$0x11]   ;;  %v6476_v3 = vrot.slane %v6474_v20, 1 }
 0x313   : > { %15329 = vst [vmem:[#allocation11_spill] sm:$0xff] %v14415_v51  ;;  %v6578_v63 = vsel %vm2401_vm12, %v6573_v23, %v6577_v44  ;;  %v4977_v35 = vmul.f32 %v14165_v19, %v4938_v36  ;;  %v6481_v47 = vrot.slane %v6479_v53, 1  ;;  %v5603_v49 = vld [vmem:[#allocation3 + $0x64] sm:$0xf]  ;;  %v6520_v30 = vshrl.u32 %v14415_v51, 16 }
 0x314   : > { %v5398_v0 = vsel %vm12312_vm2, %v5390_v41, %v5397_v27  ;;  %v5573_v40 = vsel %vm13885_vm3, %v5399_v60, %v5572_v7  ;;  %v5576_v12 = vsel %vm13872_vm1, %v5406_v46, %v5575_v58  ;;  %11376 = vmatmul.mubr.bf16.gmra.mxu0 %v6578_v63  ;;  %v9598_v44 = vld [vmem:[#allocation3 + $0x7c] sm:$0xf]  ;;  %v6477_v32 = vor.u32 %v6476_v3, %v6472_v4  ;;  %v9631_v41 = vld [vmem:[#allocation3 + $0x90] sm:$0xf]  ;;  %v9597_v20 = vld [vmem:[#allocation3 + $0x78] sm:$0xf] }
 0x315   : > { %5571 = vst [vmem:[#allocation3 + $0xb8] sm:$0xf] %v5398_v0  ;;  %5574 = vst [vmem:[#allocation3 + $0xbc] sm:$0x1] %v5573_v40  ;;  %v5016_v19 = vadd.f32 %v14187_v11, %v4977_v35  ;;  %v6522_v54 = vshll.u32 %v14415_v51, 16  ;;  %v6529_v1 = vrot.slane %v6527_v48, 1  ;;  %v14430_v53 = vcombine.low %v9631_v41, %v9632_v13 }
 0x316   : > { %5577 = vst [vmem:[#allocation3 + $0xc0] sm:$0xf] %v5576_v12  ;;  %v6611_v7 = vshll.u32 %v11782_v8, 16  ;;  %v14432_v17 = vcombine.low %v5602_v24, %v5603_v49  ;;  %v6515_v58 = vshll.u32 %v11785_v37, 16  ;;  %v6482_v36 = vsel %vm2401_vm12, %v6477_v32, %v6481_v47  ;;  %v9634_v63 = vld [vmem:[#allocation3 + $0xa0] sm:$0xf] }
 0x317   : > { %15330 = vst [vmem:[#allocation12_spill] sm:$0xff] %v14430_v53  ;;  %v11787_v59 = vld [vmem:[#allocation3 + $0x80] ss:$0 sps:$4 sm:$0x11]   ;;  %v5048_v23 = vmax.f32 %v5016_v19, 0.0  ;;  %v6524_v27 = vrot.slane %v6522_v54, 1  ;;  %v14435_v60 = vcombine.low %v9597_v20, %v9598_v44  ;;  %7125 = vmatmul.mubr.bf16.gmra.mxu1 %v6482_v36 }
 0x318   : > { %15331 = vst [vmem:[#allocation13_spill] sm:$0xff] %v14432_v17  ;;  %v6604_v11 = vshrl.u32 %v14430_v53, 16  ;;  %v6606_v4 = vshll.u32 %v14430_v53, 16  ;;  %v6613_v48 = vrot.slane %v6611_v7, 1  ;;  %v6508_v46 = vshrl.u32 %v14432_v17, 16 }
 0x319   : > { %15332 = vst [vmem:[#allocation14_spill] sm:$0xff] %v14435_v60  ;;  %v10117_v8 = vpack.c.bf16 %v5048_v23, %v5048_v23  ;;  %v6525_v35 = vor.u32 %v6524_v27, %v6520_v30  ;;  %v6510_v37 = vshll.u32 %v14432_v17, 16  ;;  %v6517_v3 = vrot.slane %v6515_v58, 1  ;;  %v11790_v13 = vld [vmem:[#allocation3 + $0xa4] ss:$0 sps:$4 sm:$0x11]  }
 0x31a   : > { %v6608_v24 = vrot.slane %v6606_v4, 1  ;;  %v6556_v47 = vshrl.u32 %v14435_v60, 16  ;;  %v6558_v49 = vshll.u32 %v14435_v60, 16  ;;  %v6563_v0 = vshll.u32 %v11787_v59, 16  ;;  %v5604_v40 = vld [vmem:[#allocation3 + $0x6c] sm:$0xf] }
 0x31b   : > { %v5605_v12 = vld [vmem:[#allocation3 + $0x70] sm:$0xf]  ;;  %v5409_v44 = vshrl.u32 %v10117_v8, 16  ;;  %v5412_v19 = vshll.u32 %v10117_v8, 16  ;;  %v6530_v32 = vsel %vm2401_vm12, %v6525_v35, %v6529_v1  ;;  %v6512_v54 = vrot.slane %v6510_v37, 1 }
 0x31c   : > { %v9633_v41 = vld [vmem:[#allocation3 + $0x9c] sm:$0xf]  ;;  %v11794_v20 = vld [vmem:[#allocation3 + $0x74] ss:$0 sps:$4 sm:$0x11]   ;;  %7132 = vmatprep.mubr.bf16.mxu1 %v6530_v32  ;;  %v6609_v7 = vor.u32 %v6608_v24, %v6604_v11  ;;  %v6560_v58 = vrot.slane %v6558_v49, 1  ;;  %v14448_v60 = vcombine.low %v5604_v40, %v5605_v12 }
 0x31d   : > { %v5579_v30 = vld [vmem:[#allocation3 + $0xc8] sm:$0x1]  ;;  %v6565_v23 = vrot.slane %v6563_v0, 1  ;;  %v14444_v36 = vcombine.low %v9633_v41, %v9634_v63  ;;  %v5411_v4 = vrot.slane %v5409_v44, 7  ;;  %v6513_v59 = vor.u32 %v6512_v54, %v6508_v46  ;;  %v9599_v24 = vld [vmem:[#allocation3 + $0x84] sm:$0xf] }
 0x31e   : > { %v14446_v27 = vld [vmem:[#allocation3 + $0x88] sm:$0xf]  ;;  %v6647_v56 = vshll.u32 %v11790_v13, 16  ;;  %15334 = vst [vmem:[#allocation16_spill] sm:$0xff] %v14448_v60  ;;  %v6614_v1 = vsel %vm2401_vm12, %v6609_v7, %v6613_v48  ;;  %v6561_v35 = vor.u32 %v6560_v58, %v6556_v47  ;;  %v14458_v40 = vld [vmem:[#allocation3 + $0xac] sm:$0xf] }
 0x31f   : > { %15333 = vst [vmem:[#allocation15_spill] sm:$0xff] %v14444_v36  ;;  %v14450_v8 = vld [vmem:[#allocation3 + $0x8c] ss:$0 sps:$4 sm:$0x11]   ;;  %v6640_v37 = vshrl.u32 %v14444_v36, 16  ;;  %v6642_v11 = vshll.u32 %v14444_v36, 16  ;;  %v5414_v63 = vor.u32 %v5412_v19, %v5411_v4  ;;  %11379 = vmatprep.mubr.bf16.mxu0 %v6614_v1  ;;  %v6518_v46 = vsel %vm2401_vm12, %v6513_v59, %v6517_v3 }
 0x320   : > { %v14455_v49 = vld [vmem:[#allocation3 + $0xb0] ss:$0 sps:$4 sm:$0x11]   ;;  %v5416_v0 = vrot.slane %v5411_v4, 4  ;;  %v6649_v13 = vrot.slane %v6647_v56, 1  ;;  %7133 = vmatmul.mubr.bf16.gmra.mxu1 %v6518_v46  ;;  %v6566_v12 = vsel %vm2401_vm12, %v6561_v35, %v6565_v23  ;;  %v6544_v47 = vshrl.u32 %v14448_v60, 16 }
 0x321   : > { %v6644_v48 = vrot.slane %v6642_v11, 1  ;;  %v6546_v44 = vshll.u32 %v14448_v60, 16  ;;  %v14463_v32 = vld [vmem:[#allocation3 + $0x7c] sm:$0xf]  ;;  %v15335_v54 = vrot.slane %v14411_v62, 4  ;;  %7140 = vmatprep.mubr.bf16.mxu1 %v6566_v12  ;;  %v6551_v3 = vshll.u32 %v11794_v20, 16 }
 0x322   : > { %v5580_v56 = vsel %vm13885_vm3, %v5416_v0, %v5579_v30  ;;  %v14472_v41 = vcombine.low %v9599_v24, %v14446_v27  ;;  %v9635_v7 = vld [vmem:[#allocation3 + $0xa8] sm:$0xf]  ;;  %v6599_v4 = vshll.u32 %v14450_v8, 16  ;;  %v6683_v30 = vshll.u32 %v14455_v49, 16  ;;  %v5606_v20 = vld [vmem:[#allocation3 + $0x78] sm:$0xf] }
 0x323   : > { %v5415_v19 = vsel %vm12312_vm2, %v15335_v54, %v5414_v63  ;;  %5581 = vst [vmem:[#allocation3 + $0xc8] sm:$0x1] %v5580_v56  ;;  %v6645_v58 = vor.u32 %v6644_v48, %v6640_v37  ;;  %v6548_v23 = vrot.slane %v6546_v44, 1  ;;  %v14476_v62 = vcombine.low %v9635_v7, %v14458_v40  ;;  %v14482_v59 = vld [vmem:[#allocation3 + $0x94] sm:$0xf] }
 0x324   : > { %15336 = vst [vmem:[#allocation17_spill] sm:$0xff] %v14472_v41  ;;  %5578 = vst [vmem:[#allocation3 + $0xc4] sm:$0xf] %v5415_v19  ;;  %v6594_v29 = vshll.u32 %v14472_v41, 16  ;;  %v6553_v11 = vrot.slane %v6551_v3, 1  ;;  %v6592_v63 = vshrl.u32 %v14472_v41, 16  ;;  %v14490_v12 = vcombine.low %v5606_v20, %v14463_v32 }
 0x325   : > { %15337 = vst [vmem:[#allocation18_spill] sm:$0xff] %v14476_v62  ;;  %v6650_v1 = vsel %vm2401_vm12, %v6645_v58, %v6649_v13  ;;  %v6549_v35 = vor.u32 %v6548_v23, %v6544_v47  ;;  %v9601_v37 = vld [vmem:[#allocation3 + $0x90] sm:$0xf]  ;;  %v14485_v24 = vld [vmem:[#allocation3 + $0x98] ss:$0 sps:$4 sm:$0x11]  }
 0x326   : > { %11380 = vmatmul.mubr.bf16.gmra.mxu0 %v6650_v1  ;;  %v6596_v0 = vrot.slane %v6594_v29, 1  ;;  %v6678_v46 = vshll.u32 %v14476_v62, 16  ;;  %15338 = vst [vmem:[#allocation19_spill] sm:$0xff] %v14490_v12  ;;  %v14492_v48 = vld [vmem:[#allocation3 + $0xb8] sm:$0xf]  ;;  %v6601_v54 = vrot.slane %v6599_v4, 1  ;;  %v14498_v19 = vcombine.low %v9601_v37, %v14482_v59 }
 0x327   : > { %v14494_v44 = vld [vmem:[#allocation3 + $0x88] sm:$0xf]  ;;  %v6676_v13 = vshrl.u32 %v14476_v62, 16  ;;  %v6685_v47 = vrot.slane %v6683_v30, 1  ;;  %v6554_v3 = vsel %vm2401_vm12, %v6549_v35, %v6553_v11  ;;  %v6582_v23 = vshll.u32 %v14490_v12, 16 }
 0x328   : > { %15339 = vst [vmem:[#allocation20_spill] sm:$0xff] %v14498_v19  ;;  %v14500_v56 = vld [vmem:[#allocation3 + $0xbc] ss:$0 sps:$4 sm:$0x11]   ;;  %v6597_v7 = vor.u32 %v6596_v0, %v6592_v63  ;;  %v6680_v58 = vrot.slane %v6678_v46, 1  ;;  %7141 = vmatmul.mubr.bf16.gmra.mxu1 %v6554_v3  ;;  %v6580_v4 = vshrl.u32 %v14490_v12, 16 }
 0x329   : > { %v5608_v29 = vld [vmem:[#allocation3 + $0x84] sm:$0xf]  ;;  %v14504_v20 = vld [vmem:[#allocation3 + $0x8c] ss:$0 sps:$4 sm:$0x11]   ;;  %v6587_v1 = vshll.u32 %v14478_v21, 16 }
 0x32a   : > { %v6630_v30 = vshll.u32 %v14498_v19, 16  ;;  %v6635_v37 = vshll.u32 %v14485_v24, 16  ;;  %v9637_v41 = vld [vmem:[#allocation3 + $0xb4] sm:$0xf]  ;;  %v6602_v60 = vsel %vm2401_vm12, %v6597_v7, %v6601_v54  ;;  %v6681_v35 = vor.u32 %v6680_v58, %v6676_v13  ;;  %v14514_v0 = vld [vmem:[#allocation3 + $0xa0] sm:$0xf] }
 0x32b   : > { %v6584_v11 = vrot.slane %v6582_v23, 1  ;;  %v14512_v63 = vcombine.low %v9637_v41, %v14492_v48  ;;  %7148 = vmatprep.mubr.bf16.mxu1 %v6602_v60  ;;  %v6628_v46 = vshrl.u32 %v14498_v19, 16  ;;  %v6719_v12 = vshll.u32 %v14500_v56, 16  ;;  %v9603_v36 = vld [vmem:[#allocation3 + $0x9c] sm:$0xf] }
 0x32c   : > { %v6632_v3 = vrot.slane %v6630_v30, 1  ;;  %v14519_v62 = vcombine.low %v5608_v29, %v14494_v44  ;;  %v14521_v17 = vld [vmem:[#allocation3 + $0xa4] ss:$0 sps:$4 sm:$0x11]   ;;  %v6686_v54 = vsel %vm2401_vm12, %v6681_v35, %v6685_v47  ;;  %v6589_v60 = vrot.slane %v6587_v1, 1 }
 0x32d   : > { %15340 = vst [vmem:[#allocation21_spill] sm:$0xff] %v14512_v63  ;;  %v6585_v13 = vor.u32 %v6584_v11, %v6580_v4  ;;  %v6714_v41 = vshll.u32 %v14512_v63, 16  ;;  %v14525_v7 = vld [vmem:[#allocation3 + $0xc4] sm:$0xf]  ;;  %11383 = vmatprep.mubr.bf16.mxu0 %v6686_v54  ;;  %v6637_v23 = vrot.slane %v6635_v37, 1  ;;  %v6712_v9 = vshrl.u32 %v14512_v63, 16 }
 0x32e   : > { %15341 = vst [vmem:[#allocation22_spill] sm:$0xff] %v14519_v62  ;;  %v6633_v58 = vor.u32 %v6632_v3, %v6628_v46  ;;  %v6618_v30 = vshll.u32 %v14519_v62, 16  ;;  %v14528_v19 = vld [vmem:[#allocation3 + $0xc8] ss:$0 sps:$4 sm:$0x11]   ;;  %v6623_v47 = vshll.u32 %v14504_v20, 16  ;;  %v14533_v4 = vcombine.low %v9603_v36, %v14514_v0 }
 0x32f   : > { %v9641_v29 = vld [vmem:[#allocation3 + $0xcc] sm:$0xf]  ;;  %v9642_v53 = vld [vmem:[#allocation3 + $0xd0] sm:$0xf]  ;;  %v6716_v51 = vrot.slane %v6714_v41, 1  ;;  %v6721_v11 = vrot.slane %v6719_v12, 1  ;;  %v6590_v54 = vsel %vm2401_vm12, %v6585_v13, %v6589_v60 }
 0x330   : > { %15342 = vst [vmem:[#allocation23_spill] sm:$0xff] %v14533_v4  ;;  %v9639_v35 = vld [vmem:[#allocation3 + $0xc0] sm:$0xf]  ;;  %v6616_v1 = vshrl.u32 %v14519_v62, 16  ;;  %v6620_v46 = vrot.slane %v6618_v30, 1  ;;  %v6638_v26 = vsel %vm2401_vm12, %v6633_v58, %v6637_v23  ;;  %v6666_v41 = vshll.u32 %v14533_v4, 16  ;;  %7149 = vmatmul.mubr.bf16.gmra.mxu1 %v6590_v54 }
 0x331   : > { %v14537_v37 = vcombine.low %v9639_v35, %v14525_v7  ;;  %v11822_v3 = vld [vmem:[#allocation3 + $0xd4] ss:$0 sps:$4 sm:$0x11]   ;;  %v6717_v63 = vor.u32 %v6716_v51, %v6712_v9  ;;  %v6664_v36 = vshrl.u32 %v14533_v4, 16  ;;  %v6671_v12 = vshll.u32 %v14521_v17, 16  ;;  %7156 = vmatprep.mubr.bf16.mxu1 %v6638_v26 }
 0x332   : > { %v6755_v35 = vshll.u32 %v14528_v19, 16  ;;  %v6621_v13 = vor.u32 %v6620_v46, %v6616_v1  ;;  %v6668_v60 = vrot.slane %v6666_v41, 1  ;;  %v14549_v58 = vcombine.low %v9641_v29, %v9642_v53  ;;  %v5610_v9 = vld [vmem:[#allocation3 + $0x90] sm:$0xf]  ;;  %v14555_v22 = vld [vmem:[#allocation3 + $0xac] sm:$0xf] }
 0x333   : > { %15343 = vst [vmem:[#allocation24_spill] sm:$0xff] %v14537_v37  ;;  %v6750_v30 = vshll.u32 %v14537_v37, 16  ;;  %v6722_v62 = vsel %vm2401_vm12, %v6717_v63, %v6721_v11  ;;  %v6748_v51 = vshrl.u32 %v14537_v37, 16  ;;  %v6791_v54 = vshll.u32 %v11822_v3, 16  ;;  %v9605_v46 = vld [vmem:[#allocation3 + $0xa8] sm:$0xf] }
 0x334   : > { %15344 = vst [vmem:[#allocation25_spill] sm:$0xff] %v14549_v58  ;;  %11384 = vmatmul.mubr.bf16.gmra.mxu0 %v6722_v62  ;;  %v14553_v4 = vcombine.low %v5610_v9, %v14542_v2  ;;  %v6625_v15 = vrot.slane %v6623_v47, 1  ;;  %v6784_v26 = vshrl.u32 %v14549_v58, 16  ;;  %v6786_v63 = vshll.u32 %v14549_v58, 16  ;;  %v14562_v41 = vld [vmem:[#allocation3 + $0xa0] sm:$0xf] }
 0x335   : > { %v6752_v23 = vrot.slane %v6750_v30, 1  ;;  %v14559_v11 = vld [vmem:[#allocation3 + $0x98] ss:$0 sps:$4 sm:$0x11]   ;;  %v6669_v53 = vor.u32 %v6668_v60, %v6664_v36  ;;  %v6757_v1 = vrot.slane %v6755_v35, 1  ;;  %v6793_v30 = vrot.slane %v6791_v54, 1 }
 0x336   : > { %15345 = vst [vmem:[#allocation26_spill] sm:$0xff] %v14553_v4  ;;  %v6654_v62 = vshll.u32 %v14553_v4, 16  ;;  %v6788_v3 = vrot.slane %v6786_v63, 1  ;;  %v14565_v9 = vcombine.low %v9605_v46, %v14555_v22  ;;  %v5612_v47 = vld [vmem:[#allocation3 + $0x9c] sm:$0xf]  ;;  %v6626_v37 = vsel %vm2401_vm12, %v6621_v13, %v6625_v15 }
 0x337   : > { %v6753_v29 = vor.u32 %v6752_v23, %v6748_v51  ;;  %v6673_v39 = vrot.slane %v6671_v12, 1  ;;  %v14569_v61 = vld [vmem:[#allocation3 + $0xb0] ss:$0 sps:$4 sm:$0x11]   ;;  %v14571_v36 = vld [vmem:[#allocation3 + $0xb8] sm:$0xf]  ;;  %v14575_v23 = vcombine.low %v5612_v47, %v14562_v41 }
 0x338   : > { %15346 = vst [vmem:[#allocation27_spill] sm:$0xff] %v14565_v9  ;;  %v6789_v35 = vor.u32 %v6788_v3, %v6784_v26  ;;  %v6656_v60 = vrot.slane %v6654_v62, 1  ;;  %v6702_v51 = vshll.u32 %v14565_v9, 16  ;;  %7157 = vmatmul.mubr.bf16.gmra.mxu1 %v6626_v37  ;;  %v6659_v15 = vshll.u32 %v14559_v11, 16  ;;  %v9607_v12 = vld [vmem:[#allocation3 + $0xb4] sm:$0xf] }
 0x339   : > { %v6758_v58 = vsel %vm2401_vm12, %v6753_v29, %v6757_v1  ;;  %15347 = vst [vmem:[#allocation28_spill] sm:$0xff] %v14575_v23  ;;  %v6674_v54 = vsel %vm2401_vm12, %v6669_v53, %v6673_v39  ;;  %v6652_v63 = vshrl.u32 %v14553_v4, 16  ;;  %v6700_v26 = vshrl.u32 %v14565_v9, 16  ;;  %v14589_v46 = vld [vmem:[#allocation3 + $0xac] sm:$0xf] }
 0x33a   : > { %11387 = vmatprep.mubr.bf16.mxu0 %v6758_v58  ;;  %7164 = vmatprep.mubr.bf16.mxu1 %v6674_v54  ;;  %v6794_v13 = vsel %vm2401_vm12, %v6789_v35, %v6793_v30  ;;  %v6704_v29 = vrot.slane %v6702_v51, 1  ;;  %v14582_v58 = vcombine.low %v9607_v12, %v14571_v36  ;;  %v6707_v1 = vshll.u32 %v14569_v61, 16  ;;  %v14591_v30 = vld [vmem:[#allocation3 + $0xa4] ss:$0 sps:$4 sm:$0x11]  }
 0x33b   : > { %v6657_v39 = vor.u32 %v6656_v60, %v6652_v63  ;;  %v6690_v37 = vshll.u32 %v14575_v23, 16  ;;  %v6661_v3 = vrot.slane %v6659_v15, 1  ;;  %v14593_v47 = vld [vmem:[#allocation3 + $0xc4] sm:$0xf]  ;;  %v5614_v54 = vld [vmem:[#allocation3 + $0xa8] sm:$0xf] }
 0x33c   : > { %15348 = vst [vmem:[#allocation29_spill] sm:$0xff] %v14582_v58  ;;  %11388 = vmatmul.mubr.bf16.gmra.mxu0 %v6794_v13  ;;  %v6705_v53 = vor.u32 %v6704_v29, %v6700_v26  ;;  %v6738_v62 = vshll.u32 %v14582_v58, 16  ;;  %v6709_v35 = vrot.slane %v6707_v1, 1  ;;  %v14595_v51 = vld [vmem:[#allocation3 + $0xbc] ss:$0 sps:$4 sm:$0x11]   ;;  %v14599_v60 = vcombine.low %v5614_v54, %v14589_v46 }
 0x33d   : > { %7534 = vmatprep.mubr.bf16.mxu0 %v14027_v10  ;;  %v6662_v12 = vsel %vm2401_vm12, %v6657_v39, %v6661_v3  ;;  %v6692_v10 = vrot.slane %v6690_v37, 1  ;;  %v9609_v13 = vld [vmem:[#allocation3 + $0xc0] sm:$0xf]  ;;  %v11850_v26 = vld [vmem:[%s15231_s3 + $0x230] sm:$0xff]   ;;  %v6688_v1 = vshrl.u32 %v14575_v23, 16  ;;  %v6695_v39 = vshll.u32 %v14591_v30, 16 }
 0x33e   : > { %v6710_v63 = vsel %vm2401_vm12, %v6705_v53, %v6709_v35  ;;  %v6740_v29 = vrot.slane %v6738_v62, 1  ;;  %v14603_v15 = vcombine.low %v9609_v13, %v14593_v47  ;;  %v6736_v37 = vshrl.u32 %v14582_v58, 16  ;;  %v12011_v35 = vld [vmem:[%s15231_s3 + $0x238] sm:$0xff]   ;;  %v14619_v13 = vld [vmem:[#allocation3 + $0xb8] sm:$0xf] }
 0x33f   : > { %v6743_v3 = vshll.u32 %v14595_v51, 16  ;;  %v6693_v53 = vor.u32 %v6692_v10, %v6688_v1  ;;  %v6726_v62 = vshll.u32 %v14599_v60, 16  ;;  %v14626_v1 = vld [vmem:[#allocation3 + $0xc8] ss:$0 sps:$4 sm:$0x11]  }
 0x340   : > { %7165 = vmatmul.mubr.bf16.gmra.mxu1 %v6662_v12  ;;  %v6741_v54 = vor.u32 %v6740_v29, %v6736_v37  ;;  %v6774_v12 = vshll.u32 %v14603_v15, 16  ;;  %v5616_v58 = vld [vmem:[#allocation3 + $0xb4] sm:$0xf] }
 0x341   : > { %7172 = vmatprep.mubr.bf16.mxu1 %v6710_v63  ;;  %v6697_v63 = vrot.slane %v6695_v39, 1  ;;  %v6745_v10 = vrot.slane %v6743_v3, 1  ;;  %v14630_v29 = vcombine.low %v5616_v58, %v14619_v13  ;;  %v11860_v39 = vld [vmem:[%s15231_s3 + $0x220] sm:$0xff]   ;;  %v6724_v3 = vshrl.u32 %v14599_v60, 16 }
 0x342   : > { %v6776_v9 = vrot.slane %v6774_v12, 1  ;;  %v6772_v58 = vshrl.u32 %v14603_v15, 16 }
 0x343   : > { %v6698_v23 = vsel %vm2401_vm12, %v6693_v53, %v6697_v63  ;;  %v6746_v37 = vsel %vm2401_vm12, %v6741_v54, %v6745_v10  ;;  %v6762_v53 = vshll.u32 %v14630_v29, 16  ;;  %v11866_v54 = vld [vmem:[%s15231_s3 + $0x218] sm:$0xff]   ;;  %v14646_v63 = vld [vmem:[#allocation3 + $0xbc] ss:$0 sps:$4 sm:$0x11]  }
 0x344   : > { %7535 = vmatmul.mubr.bf16.vlgmr.msra.gmra.mxu0 %v13780_v55  ;;  %v11855_v55 = vld [vmem:[%s15231_s3 + $0x228] sm:$0xff]  }
 0x345   : > { %7542 = vmatprep.mubr.bf16.mxu0 %v14042_v52  ;;  %11440 = vmatpush3.bf16.msra.mxu0 %v12011_v35  ;;  %v14624_v52 = vld [vmem:[#allocation3 + $0xb0] ss:$0 sps:$4 sm:$0x11]   ;;  %v6728_v35 = vrot.slane %v6726_v62, 1  ;;  %v6777_v62 = vor.u32 %v6776_v9, %v6772_v58  ;;  %v11871_v9 = vld [vmem:[%s15231_s3 + $0x210] sm:$0xff]  }
 0x346   : > { %11441 = vmatprep.subr.bf16.mxu0 %v11850_v26  ;;  %v6731_v4 = vshll.u32 %v14624_v52, 16 }
 0x348   : > { %7173 = vmatmul.mubr.bf16.gmra.mxu1 %v6698_v23  ;;  %v6729_v23 = vor.u32 %v6728_v35, %v6724_v3  ;;  %v6733_v12 = vrot.slane %v6731_v4, 1  ;;  %v6767_v4 = vshll.u32 %v14646_v63, 16 }
 0x349   : > { %11442 = vmatpush3.bf16.msra.mxu0 %v11850_v26  ;;  %7180 = vmatprep.mubr.bf16.mxu1 %v6746_v37  ;;  %v6779_v26 = vshll.u32 %v14626_v1, 16  ;;  %v6764_v37 = vrot.slane %v6762_v53, 1  ;;  %v9895_v53 = vld [vmem:[#allocation3 + $0xa8] sm:$0xe] }
 0x34a   : > { %11443 = vmatprep.subr.bf16.mxu0 %v11855_v55  ;;  %v6734_v10 = vsel %vm2401_vm12, %v6729_v23, %v6733_v12  ;;  %v6769_v3 = vrot.slane %v6767_v4, 1  ;;  %v9877_v23 = vld [vmem:[#allocation3 + $0x84] sm:$0xe]  ;;  %v7834_v12 = vld [vmem:[#allocation3 + $0x78] sm:$0xe] }
 0x34b   : > { %v9897_v4 = vld [vmem:[#allocation3 + $0xc0] sm:$0xe] }
 0x34c   : > { %7543 = vmatmul.mubr.bf16.gmra.mxu0 %v14068_v6  ;;  %v6781_v6 = vrot.slane %v6779_v26, 1  ;;  %v11876_v26 = vld [vmem:[%s15231_s3 + $0x200] sm:$0xff]  }
 0x34d   : > { %7550 = vmatprep.mubr.bf16.mxu0 %v14110_v25  ;;  %11444 = vmatpush3.bf16.msra.mxu0 %v11855_v55  ;;  %v6760_v55 = vshrl.u32 %v14630_v29, 16 }
 0x34e   : > { %11445 = vmatprep.subr.bf16.mxu0 %v11860_v39  ;;  %v6782_v25 = vsel %vm2401_vm12, %v6777_v62, %v6781_v6  ;;  %v9943_v62 = vcombine.low %v9895_v53, %v14458_v40  ;;  %v11851_v40 = vld [vmem:[%s15231_s3 + $0x1e0] sm:$0xff]  }
 0x34f   : > { %v6765_v35 = vor.u32 %v6764_v37, %v6760_v55  ;;  %v8120_v37 = vrot.slane %v14485_v24, 1  ;;  %v8141_v55 = vrot.slane %v14500_v56, 1  ;;  %v9879_v24 = vld [vmem:[#allocation3 + $0x9c] sm:$0xe] }
 0x350   : > { %7181 = vmatmul.mubr.bf16.gmra.mxu1 %v6734_v10  ;;  %v8131_v6 = vrot.slane %v9943_v62, 1  ;;  %v9878_v10 = vld [vmem:[#allocation3 + $0x90] sm:$0xe]  ;;  %v9927_v56 = vcombine.low %v9879_v24, %v14514_v0  ;;  %v7837_v62 = vld [vmem:[#allocation3 + $0x9c] sm:$0xe]  ;;  %v11861_v24 = vld [vmem:[%s15231_s3 + $0x1c0] sm:$0xff]  }
 0x351   : > { %11446 = vmatpush3.bf16.msra.mxu0 %v11860_v39  ;;  %7188 = vmatprep.mubr.bf16.mxu1 %v6782_v25  ;;  %v11874_v39 = vld [vmem:[%s15231_s3 + $0x208] sm:$0xff]   ;;  %v6770_v58 = vsel %vm2401_vm12, %v6765_v35, %v6769_v3  ;;  %v7835_v35 = vld [vmem:[#allocation3 + $0x84] sm:$0xe]  ;;  %v9945_v3 = vcombine.low %v9897_v4, %v14525_v7  ;;  %v15349_v4 = vld [vmem:[#allocation4_spill] sm:$0xff] }
 0x352   : > { %11447 = vmatprep.subr.bf16.mxu0 %v11866_v54  ;;  %v8128_v0 = vrot.slane %v9927_v56, 1  ;;  %v11862_v56 = vld [vmem:[%s15231_s3 + $0x180] sm:$0xff]  }
 0x353   : > { %v8149_v7 = vrot.slane %v9945_v3, 1  ;;  %v15351_v3 = vld [vmem:[#allocation8_spill] sm:$0xff] }
 0x354   : > { %7551 = vmatmul.mubr.bf16.gmra.mxu0 %v14175_v34  ;;  %v11844_v34 = vld [vmem:[%s15231_s3 + $0x1b8] sm:$0xff]  }
 0x355   : > { %7558 = vmatprep.mubr.bf16.mxu0 %v14201_v45  ;;  %11448 = vmatpush3.bf16.msra.mxu0 %v11866_v54  ;;  %v11846_v45 = vld [vmem:[%s15231_s3 + $0x1f0] sm:$0xff]   ;;  %v8132_v54 = vrot.slane %v14455_v49, 1  ;;  %v9926_v49 = vcombine.low %v9878_v10, %v14482_v59  ;;  %v9910_v59 = vcombine.low %v7835_v35, %v14494_v44  ;;  %v9882_v10 = vld [vmem:[#allocation3 + $0xc0] sm:$0xe]  ;;  %v15350_v35 = vld [vmem:[#allocation7_spill] sm:$0xff] }
 0x356   : > { %11449 = vmatprep.subr.bf16.mxu0 %v11871_v9 }
 0x358   : > { %7189 = vmatmul.mubr.bf16.gmra.mxu1 %v6770_v58  ;;  %v8150_v58 = vrot.slane %v14528_v19, 1  ;;  %v11852_v19 = vld [vmem:[%s15231_s3 + $0x1a0] sm:$0xff]  }
 0x359   : > { %11450 = vmatpush3.bf16.msra.mxu0 %v11871_v9  ;;  %11407 = vmatprep.mubr.bf16.mxu1 %v13999_v33  ;;  %v11847_v33 = vld [vmem:[%s15231_s3 + $0x1b0] sm:$0xff]  }
 0x35a   : > { %11451 = vmatprep.subr.bf16.mxu0 %v11874_v39 }
 0x35c   : > { %7559 = vmatmul.mubr.bf16.gmra.mxu0 %v14262_v5  ;;  %v9925_v5 = vcombine.low %v9877_v23, %v14446_v27  ;;  %v9909_v27 = vcombine.low %v7834_v12, %v14463_v32  ;;  %v9896_v32 = vld [vmem:[#allocation3 + $0xb4] sm:$0xe]  ;;  %v7836_v23 = vld [vmem:[#allocation3 + $0x90] sm:$0xe]  ;;  %v7838_v12 = vld [vmem:[#allocation3 + $0xa8] sm:$0xe] }
 0x35d   : > { %7566 = vmatprep.mubr.bf16.mxu0 %v14264_v16  ;;  %11452 = vmatpush3.bf16.msra.mxu0 %v11874_v39  ;;  %v8111_v16 = vrot.slane %v14450_v8, 1  ;;  %v8108_v8 = vrot.slane %v14478_v21, 1  ;;  %v14701_v21 = vsel %vm4199_vm13, %v8131_v6, %v8132_v54  ;;  %v9944_v9 = vcombine.low %v9896_v32, %v14492_v48  ;;  %v11854_v6 = vld [vmem:[%s15231_s3 + $0x198] sm:$0xff]   ;;  %v7839_v32 = vld [vmem:[#allocation3 + $0xb4] sm:$0xe] }
 0x35e   : > { %11453 = vmatprep.subr.bf16.mxu0 %v11876_v26  ;;  %v8107_v25 = vrot.slane %v9909_v27, 1  ;;  %v8119_v39 = vrot.slane %v9926_v49, 1  ;;  %v8117_v48 = vrot.slane %v14504_v20, 1  ;;  %v8135_v54 = vrot.slane %v14591_v30, 1 }
 0x35f   : > { %v9930_v49 = vcombine.low %v9882_v10, %v14593_v47  ;;  %v11857_v47 = vld [vmem:[%s15231_s3 + $0x190] sm:$0xff]  }
 0x360   : > { %11408 = vmatmul.mubr.bf16.vlgmr.msra.gmra.mxu1 %v14059_v50  ;;  %v11848_v50 = vld [vmem:[%s15231_s3 + $0x1e8] sm:$0xff]   ;;  %v14719_v44 = vsel %vm4199_vm13, %v8119_v39, %v8120_v37 }
 0x361   : > { %11454 = vmatpush3.bf16.msra.mxu0 %v11876_v26  ;;  %11064 = vmatpush3.bf16.msra.mxu1 %v11844_v34  ;;  %v14710_v26 = vsel %vm4199_vm13, %v8107_v25, %v8108_v8  ;;  %v8140_v34 = vrot.slane %v9944_v9, 1  ;;  %v9913_v8 = vcombine.low %v7838_v12, %v14589_v46  ;;  %v8156_v46 = vrot.slane %v14626_v1, 1  ;;  %v15362_v12 = vld [vmem:[#allocation16_spill] sm:$0xff] }
 0x362   : > { %11411 = vmatprep.mubr.bf16.mxu1 %v14092_v42  ;;  %11065 = vmatprep.subr.bf16.mxu1 %v11846_v45  ;;  %v8110_v42 = vrot.slane %v9925_v5, 1  ;;  %v8129_v45 = vrot.slane %v14521_v17, 1  ;;  %v8126_v5 = vrot.slane %v14559_v11, 1  ;;  %v14733_v17 = vsel %vm4199_vm13, %v8149_v7, %v8150_v58  ;;  %v15355_v7 = vld [vmem:[#allocation11_spill] sm:$0xff] }
 0x363   : > { %v14727_v20 = vsel %vm4199_vm13, %v8140_v34, %v8141_v55  ;;  %v9912_v11 = vcombine.low %v7837_v62, %v14562_v41  ;;  %v11856_v41 = vld [vmem:[%s15231_s3 + $0x1d0] sm:$0xff]   ;;  %v8143_v37 = vrot.slane %v9913_v8, 1  ;;  %v8155_v9 = vrot.slane %v9930_v49, 1  ;;  %v15352_v34 = vld [vmem:[#allocation5_spill] sm:$0xff]  ;;  %v12012_v49 = vld [vmem:[#allocation3 + $0x10] sm:$0xf] }
 0x364   : > { %7567 = vmatmul.mubr.bf16.gmra.mxu0 %v14296_v38  ;;  %v11849_v38 = vld [vmem:[%s15231_s3 + $0x1a8] sm:$0xff]   ;;  %v9914_v55 = vcombine.low %v7839_v32, %v14619_v13 }
 0x365   : > { %7574 = vmatprep.mubr.bf16.mxu0 %v14319_v57  ;;  %11066 = vmatpush3.bf16.msra.mxu1 %v11847_v33  ;;  %v14696_v57 = vsel %vm4199_vm13, %v8110_v42, %v8111_v16  ;;  %v9911_v33 = vcombine.low %v7836_v23, %v14542_v2  ;;  %v9880_v16 = vld [vmem:[#allocation3 + $0xa8] sm:$0xe]  ;;  %v14741_v42 = vsel %vm4199_vm13, %v8128_v0, %v8129_v45  ;;  %v11858_v13 = vld [vmem:[%s15231_s3 + $0x1c8] sm:$0xff]   ;;  %v15357_v23 = vld [vmem:[#allocation12_spill] sm:$0xff] }
 0x366   : > { %11067 = vmatprep.subr.bf16.mxu1 %v11848_v50  ;;  %v9928_v53 = vcombine.low %v9880_v16, %v14555_v22  ;;  %v8138_v50 = vrot.slane %v14569_v61, 1  ;;  %v8147_v61 = vrot.slane %v14595_v51, 1  ;;  %v8152_v39 = vrot.slane %v9914_v55, 1  ;;  %v7824_v55 = vld [vmem:[#allocation3] sm:$0xe] }
 0x367   : > { %v8125_v2 = vrot.slane %v9911_v33, 1  ;;  %v15359_v33 = vld [vmem:[#allocation14_spill] sm:$0xff] }
 0x368   : > { %11412 = vmatmul.mubr.bf16.gmra.mxu1 %v14140_v43  ;;  %v8116_v43 = vrot.slane %v9910_v59, 1  ;;  %v8137_v27 = vrot.slane %v9928_v53, 1  ;;  %v11859_v59 = vld [vmem:[%s15231_s3 + $0x188] sm:$0xff]  }
 0x369   : > { %11415 = vmatprep.mubr.bf16.mxu1 %v14177_v14  ;;  %11068 = vmatpush3.bf16.msra.mxu1 %v11849_v38  ;;  %v11853_v14 = vld [vmem:[%s15231_s3 + $0x1d8] sm:$0xff]   ;;  %v14755_v30 = vsel %vm4199_vm13, %v8125_v2, %v8126_v5  ;;  %v8134_v38 = vrot.slane %v9912_v11, 1  ;;  %v15360_v2 = vld [vmem:[#allocation15_spill] sm:$0xff]  ;;  %v15361_v11 = vld [vmem:[#allocation18_spill] sm:$0xff] }
 0x36a   : > { %11069 = vmatprep.subr.bf16.mxu1 %v11851_v40  ;;  %v8144_v40 = vrot.slane %v14624_v52, 1  ;;  %v8153_v52 = vrot.slane %v14646_v63, 1  ;;  %v14784_v63 = vsel %vm4199_vm13, %v8155_v9, %v8156_v46  ;;  %v15365_v46 = vld [vmem:[#allocation24_spill] sm:$0xff]  ;;  %v15366_v9 = vld [vmem:[#allocation19_spill] sm:$0xff] }
 0x36b   : > { %v14765_v25 = vsel %vm4199_vm13, %v8134_v38, %v8135_v54 }
 0x36c   : > { %7575 = vmatmul.mubr.bf16.gmra.mxu0 %v14336_v28  ;;  %v14736_v28 = vsel %vm4199_vm13, %v8116_v43, %v8117_v48  ;;  %v14788_v58 = vsel %vm4199_vm13, %v8152_v39, %v8153_v52  ;;  %v15353_v48 = vld [vmem:[#allocation6_spill] sm:$0xff]  ;;  %v15356_v43 = vld [vmem:[#allocation9_spill] sm:$0xff] }
 0x36d   : > { %7582 = vmatprep.mubr.bf16.mxu0 %v14358_v18  ;;  %v9881_v18 = vld [vmem:[#allocation3 + $0xb4] sm:$0xe]  ;;  %11070 = vmatpush3.bf16.msra.mxu1 %v11852_v19  ;;  %v15354_v19 = vld [vmem:[#allocation10_spill] sm:$0xff]  ;;  %v12014_v39 = vld [vmem:[#allocation3 + $0x4] sm:$0xf] }
 0x36e   : > { %v9929_v22 = vcombine.low %v9881_v18, %v14571_v36  ;;  %11071 = vmatprep.subr.bf16.mxu1 %v11853_v14  ;;  %v14760_v36 = vsel %vm4199_vm13, %v8137_v27, %v8138_v50  ;;  %v15358_v14 = vld [vmem:[#allocation13_spill] sm:$0xff] }
 0x36f   : > { %v15363_v27 = vld [vmem:[#allocation17_spill] sm:$0xff] }
 0x370   : > { %v8146_v51 = vrot.slane %v9929_v22, 1  ;;  %11416 = vmatmul.mubr.bf16.gmra.mxu1 %v14231_v31  ;;  %v14777_v31 = vsel %vm4199_vm13, %v8143_v37, %v8144_v40  ;;  %v15364_v40 = vld [vmem:[#allocation21_spill] sm:$0xff] }
 0x371   : > { %11419 = vmatprep.mubr.bf16.mxu1 %v15349_v4  ;;  %11072 = vmatpush3.bf16.msra.mxu1 %v11854_v6  ;;  %v15367_v4 = vld [vmem:[#allocation20_spill] sm:$0xff] }
 0x372   : > { %v14774_v1 = vsel %vm4199_vm13, %v8146_v51, %v8147_v61  ;;  %11073 = vmatprep.subr.bf16.mxu1 %v11856_v41  ;;  %v9867_v41 = vld [vmem:[#allocation3 + $0xc] sm:$0xe] }
 0x373   : > { %v9915_v51 = vcombine.low %v9867_v41, %v12012_v49 }
 0x374   : > { %7583 = vmatmul.mubr.bf16.gmra.mxu0 %v15350_v35  ;;  %v12013_v35 = vld [vmem:[#allocation3 + $0x14] ss:$0 sps:$4 sm:$0x11]  }
 0x375   : > { %7590 = vmatprep.mubr.bf16.mxu0 %v15351_v3  ;;  %11074 = vmatpush3.bf16.msra.mxu1 %v11857_v47  ;;  %v8020_v47 = vrot.slane %v9915_v51, 1  ;;  %v9899_v3 = vcombine.low %v7824_v55, %v12014_v39 }
 0x376   : > { %11075 = vmatprep.subr.bf16.mxu1 %v11858_v13  ;;  %v8021_v13 = vrot.slane %v12013_v35, 1 }
 0x378   : > { %11420 = vmatmul.mubr.bf16.gmra.mxu1 %v15352_v34  ;;  %v15368_v34 = vld [vmem:[#allocation25_spill] sm:$0xff] }
 0x379   : > { %11423 = vmatprep.mubr.bf16.mxu1 %v15353_v48  ;;  %11076 = vmatpush3.bf16.msra.mxu1 %v11859_v59  ;;  %v8022_v48 = vsel %vm4199_vm13, %v8020_v47, %v8021_v13  ;;  %v12021_v47 = vld [vmem:[#allocation3 + $0x2c] ss:$0 sps:$4 sm:$0x11]   ;;  %v7826_v13 = vld [vmem:[#allocation3 + $0x18] sm:$0xe] }
 0x37a   : > { %11077 = vmatprep.subr.bf16.mxu1 %v11861_v24  ;;  %v9868_v24 = vld [vmem:[#allocation3 + $0x18] sm:$0xe]  ;;  %v8039_v35 = vrot.slane %v12021_v47, 1 }
 0x37c   : > { %7591 = vmatmul.mubr.bf16.gmra.mxu0 %v15354_v19 }
 0x37d   : > { %7598 = vmatprep.mubr.bf16.mxu0 %v15355_v7  ;;  %11078 = vmatpush3.bf16.msra.mxu1 %v11862_v56  ;;  %v12015_v56 = vld [vmem:[#allocation3 + $0x1c] sm:$0xf]  ;;  %v8017_v7 = vrot.slane %v9899_v3, 1 }
 0x37e   : > { %v9916_v19 = vcombine.low %v9868_v24, %v12015_v56  ;;  %v12022_v3 = vld [vmem:[#allocation3 + $0x1c] sm:$0xf] }
 0x37f   : > { %v10807_v45 = vpop.f32.mrf.mxu1  ;;  %v9901_v24 = vcombine.low %v7826_v13, %v12022_v3  ;;  %v12029_v13 = vld [vmem:[#allocation3 + $0x2c] ss:$0 sps:$4 sm:$0x11]  }
 0x380   : > { %11424 = vmatmul.mubr.bf16.gmra.mxu1 %v15356_v43  ;;  %v12016_v43 = vld [vmem:[#allocation3 + $0x8] ss:$0 sps:$4 sm:$0x11]  }
 0x381   : > { %11427 = vmatprep.mubr.bf16.mxu1 %v15357_v23  ;;  %v10808_v0 = vpop.f32.mrf.mxu1  ;;  %v15369_v23 = vld [vmem:[#allocation22_spill] sm:$0xff] }
 0x382   : > { %v10809_v5 = vadd.f32 %v10808_v0, %v10807_v45  ;;  %v8018_v45 = vrot.slane %v12016_v43, 1 }
 0x383   : > { %v10810_v16 = vpop.f32.mrf.mxu1 }
 0x384   : > { %7599 = vmatmul.mubr.bf16.gmra.mxu0 %v15358_v14 }
 0x385   : > { %7606 = vmatprep.mubr.bf16.mxu0 %v15359_v33  ;;  %v10811_v53 = vpop.f32.mrf.mxu1  ;;  %v15370_v33 = vld [vmem:[#allocation23_spill] sm:$0xff] }
 0x386   : > { %v14807_v50 = vadd.f32 %v10811_v53, %v10810_v16  ;;  %v11361_v62 = vpop.f32.mrf.mxu0  ;;  %v12017_v16 = vld [vmem:[#allocation3 + $0x20] ss:$0 sps:$4 sm:$0x11]  }
 0x387   : > { %v8030_v53 = vrot.slane %v12017_v16, 1 }
 0x388   : > { %11428 = vmatmul.mubr.bf16.gmra.mxu1 %v15360_v2  ;;  %v10813_v54 = vpop.f32.mrf.mxu1  ;;  %v7231_v18 = vpop.f32.mrf.mxu0  ;;  %v8019_v2 = vsel %vm4199_vm13, %v8017_v7, %v8018_v45  ;;  %v15373_v45 = vld [vmem:[#allocation28_spill] sm:$0xff] }
 0x389   : > { %11431 = vmatprep.mubr.bf16.mxu1 %v15361_v11  ;;  %v14812_v6 = vadd.f32 %v10809_v5, %v7231_v18  ;;  %v8029_v5 = vrot.slane %v9916_v19, 1  ;;  %v12023_v19 = vld [vmem:[#allocation3 + $0x34] sm:$0xf] }
 0x38a   : > { %v10814_v22 = vpop.f32.mrf.mxu1  ;;  %v11362_v32 = vpop.f32.mrf.mxu0 }
 0x38b   : > { %v10815_v61 = vadd.f32 %v10814_v22, %v10813_v54  ;;  %v7825_v54 = vld [vmem:[#allocation3 + $0xc] sm:$0xe]  ;;  %v8031_v41 = vsel %vm4199_vm13, %v8029_v5, %v8030_v53  ;;  %v12024_v5 = vld [vmem:[#allocation3 + $0x20] ss:$0 sps:$4 sm:$0x11]  }
 0x38c   : > { %7607 = vmatmul.mubr.bf16.gmra.mxu0 %v15362_v12  ;;  %v10816_v8 = vpop.f32.mrf.mxu1  ;;  %v14823_v59 = vpop.f32.mrf.mxu0  ;;  %v8036_v16 = vrot.slane %v12024_v5, 1  ;;  %v12032_v5 = vld [vmem:[#allocation3 + $0x34] sm:$0xf] }
 0x38d   : > { %7614 = vmatprep.mubr.bf16.mxu0 %v15363_v27  ;;  %v14815_v10 = vadd.f32 %v11361_v62, %v10815_v61  ;;  %v12018_v27 = vld [vmem:[#allocation3 + $0x10] sm:$0xf]  ;;  %v9869_v61 = vld [vmem:[#allocation3 + $0x24] sm:$0xe] }
 0x38e   : > { %v10817_v38 = vpop.f32.mrf.mxu1  ;;  %v9900_v22 = vcombine.low %v7825_v54, %v12018_v27  ;;  %v7827_v27 = vld [vmem:[#allocation3 + $0x24] sm:$0xe] }
 0x38f   : > { %v10818_v37 = vadd.f32 %v10817_v38, %v10816_v8  ;;  %v12019_v38 = vld [vmem:[#allocation3 + $0x28] sm:$0xf] }
 0x390   : > { %11432 = vmatmul.mubr.bf16.gmra.mxu1 %v15364_v40  ;;  %v9917_v40 = vcombine.low %v9869_v61, %v12019_v38  ;;  %v12026_v38 = vld [vmem:[#allocation3 + $0x28] sm:$0xf] }
 0x391   : > { %11435 = vmatprep.mubr.bf16.mxu1 %v15365_v46  ;;  %v14820_v52 = vadd.f32 %v11362_v32, %v10818_v37  ;;  %v15371_v37 = vld [vmem:[#allocation26_spill] sm:$0xff]  ;;  %v15372_v46 = vld [vmem:[#allocation27_spill] sm:$0xff]  ;;  %v8026_v32 = vrot.slane %v9900_v22, 1 }
 0x394   : > { %7615 = vmatmul.mubr.bf16.gmra.mxu0 %v15366_v9  ;;  %v12020_v9 = vld [vmem:[#allocation3 + $0x14] ss:$0 sps:$4 sm:$0x11]  }
 0x395   : > { %7622 = vmatprep.mubr.bf16.mxu0 %v15367_v4  ;;  %v8027_v55 = vrot.slane %v12020_v9, 1  ;;  %v8038_v4 = vrot.slane %v9917_v40, 1  ;;  %v9902_v40 = vcombine.low %v7827_v27, %v12026_v38  ;;  %v9884_v27 = vld [vmem:[#allocation3 + $0x24] sm:$0xe]  ;;  %v9885_v38 = vld [vmem:[#allocation3 + $0x30] sm:$0xe] }
 0x396   : > { %v11365_v14 = vpop.f32.mrf.mxu0 }
 0x397   : > { %v8028_v39 = vsel %vm4199_vm13, %v8026_v32, %v8027_v55  ;;  %v8040_v56 = vsel %vm4199_vm13, %v8038_v4, %v8039_v35  ;;  %v12027_v32 = vld [vmem:[#allocation3 + $0x40] sm:$0xf]  ;;  %v9883_v55 = vld [vmem:[#allocation3 + $0x18] sm:$0xe]  ;;  %v8044_v35 = vrot.slane %v9902_v40, 1 }
 0x398   : > { %11436 = vmatmul.mubr.bf16.gmra.mxu1 %v15368_v34  ;;  %v7247_v18 = vpop.f32.mrf.mxu0  ;;  %v9870_v34 = vld [vmem:[#allocation3 + $0x30] sm:$0xe] }
 0x399   : > { %8434 = vmatprep.mubr.bf16.mxu1 %v8022_v48  ;;  %v9918_v7 = vcombine.low %v9870_v34, %v12023_v19 }
 0x39a   : > { %v10819_v0 = vpop.f32.mrf.mxu1  ;;  %v11366_v48 = vpop.f32.mrf.mxu0 }
 0x39c   : > { %7623 = vmatmul.mubr.bf16.gmra.mxu0 %v15369_v23  ;;  %v10820_v62 = vpop.f32.mrf.mxu1  ;;  %v14841_v53 = vpop.f32.mrf.mxu0 }
 0x39d   : > { %7630 = vmatprep.mubr.bf16.mxu0 %v15370_v33  ;;  %v10821_v11 = vadd.f32 %v10820_v62, %v10819_v0  ;;  %v15374_v0 = vld [vmem:[#allocation29_spill] sm:$0xff]  ;;  %v8035_v33 = vrot.slane %v9901_v24, 1 }
 0x39e   : > { %v10822_v12 = vpop.f32.mrf.mxu1 }
 0x39f   : > { %v14830_v8 = vadd.f32 %v10821_v11, %v7247_v18  ;;  %v12025_v11 = vld [vmem:[#allocation3 + $0x38] ss:$0 sps:$4 sm:$0x11]   ;;  %v8037_v61 = vsel %vm4199_vm13, %v8035_v33, %v8036_v16  ;;  %v9872_v16 = vld [vmem:[#allocation3 + $0x48] sm:$0xe] }
 0x3a0   : > { %8435 = vmatmul.mubr.bf16.vlgmr.msra.gmra.mxu1 %v8019_v2  ;;  %v10823_v49 = vpop.f32.mrf.mxu1  ;;  %v8047_v2 = vrot.slane %v9918_v7, 1  ;;  %v8048_v54 = vrot.slane %v12025_v11, 1  ;;  %v12033_v11 = vld [vmem:[#allocation3 + $0x4c] sm:$0xf] }
 0x3a1   : > { %8442 = vmatprep.mubr.bf16.mxu1 %v8031_v41  ;;  %v14833_v51 = vadd.f32 %v10823_v49, %v10822_v12  ;;  %v9871_v49 = vld [vmem:[#allocation3 + $0x3c] sm:$0xe] }
 0x3a2   : > { %v9919_v9 = vcombine.low %v9871_v49, %v12027_v32 }
 0x3a4   : > { %7631 = vmatmul.mubr.bf16.gmra.mxu0 %v15371_v37  ;;  %v14846_v41 = vpop.f32.mrf.mxu0  ;;  %v8056_v34 = vrot.slane %v9919_v9, 1 }
 0x3a5   : > { %7638 = vmatprep.mubr.bf16.mxu0 %v15372_v46  ;;  %v8049_v46 = vsel %vm4199_vm13, %v8047_v2, %v8048_v54  ;;  %v9920_v54 = vcombine.low %v9872_v16, %v12033_v11 }
 0x3a6   : > { %v7263_v3 = vpop.f32.mrf.mxu0 }
 0x3a8   : > { %8443 = vmatmul.mubr.bf16.gmra.mxu1 %v8028_v39  ;;  %v10825_v43 = vpop.f32.mrf.mxu1  ;;  %v8045_v39 = vrot.slane %v12029_v13, 1  ;;  %v14854_v33 = vpop.f32.mrf.mxu0  ;;  %v12037_v13 = vld [vmem:[#allocation3 + $0x50] ss:$0 sps:$4 sm:$0x11]  }
 0x3a9   : > { %8450 = vmatprep.mubr.bf16.mxu1 %v8040_v56  ;;  %v12030_v56 = vld [vmem:[#allocation3 + $0x44] ss:$0 sps:$4 sm:$0x11]  }
 0x3aa   : > { %v10826_v23 = vpop.f32.mrf.mxu1  ;;  %v8057_v19 = vrot.slane %v12030_v56, 1  ;;  %v7266_v9 = vpop.f32.mrf.mxu0 }
 0x3ab   : > { %v10827_v62 = vadd.f32 %v10826_v23, %v10825_v43 }
 0x3ac   : > { %7639 = vmatmul.mubr.bf16.gmra.mxu0 %v15373_v45  ;;  %v10828_v18 = vpop.f32.mrf.mxu1  ;;  %v12031_v45 = vld [vmem:[#allocation3 + $0x20] ss:$0 sps:$4 sm:$0x11]   ;;  %v8058_v2 = vsel %vm4199_vm13, %v8056_v34, %v8057_v19  ;;  %v12038_v34 = vld [vmem:[#allocation3 + $0x2c] ss:$0 sps:$4 sm:$0x11]  }
 0x3ad   : > { %7646 = vmatprep.mubr.bf16.mxu0 %v15374_v0  ;;  %v14843_v12 = vadd.f32 %v11365_v14, %v10827_v62  ;;  %v12028_v14 = vld [vmem:[#allocation3 + $0x1c] sm:$0xf]  ;;  %v8024_v23 = vrot.slane %v12031_v45, 1  ;;  %v8033_v56 = vrot.slane %v12038_v34, 1 }
 0x3ae   : > { %v10829_v22 = vpop.f32.mrf.mxu1  ;;  %v9931_v47 = vcombine.low %v9883_v55, %v12028_v14  ;;  %v12036_v14 = vld [vmem:[#allocation3 + $0x38] ss:$0 sps:$4 sm:$0x11]   ;;  %v7829_v45 = vld [vmem:[#allocation3 + $0x3c] sm:$0xe] }
 0x3af   : > { %v10830_v37 = vadd.f32 %v10829_v22, %v10828_v18  ;;  %v12034_v22 = vld [vmem:[#allocation3 + $0x28] sm:$0xf] }
 0x3b0   : > { %8451 = vmatmul.mubr.bf16.gmra.mxu1 %v8037_v61  ;;  %v8023_v43 = vrot.slane %v9931_v47, 1  ;;  %v9932_v61 = vcombine.low %v9884_v27, %v12034_v22  ;;  %v8054_v47 = vrot.slane %v12036_v14, 1  ;;  %v12042_v27 = vld [vmem:[#allocation3 + $0x40] sm:$0xf] }
 0x3b1   : > { %8458 = vmatprep.mubr.bf16.mxu1 %v8049_v46  ;;  %v14849_v4 = vadd.f32 %v11366_v48, %v10830_v37  ;;  %v7828_v48 = vld [vmem:[#allocation3 + $0x30] sm:$0xe]  ;;  %v12035_v37 = vld [vmem:[#allocation3 + $0x34] sm:$0xf] }
 0x3b2   : > { %v8025_v49 = vsel %vm4199_vm13, %v8023_v43, %v8024_v23  ;;  %v9933_v46 = vcombine.low %v9885_v38, %v12035_v37 }
 0x3b3   : > { %v10831_v24 = vpop.f32.mrf.mxu1 }
 0x3b4   : > { %7647 = vmatmul.mubr.bf16.gmra.mxu0 %v14599_v60  ;;  %v8046_v60 = vsel %vm4199_vm13, %v8044_v35, %v8045_v39  ;;  %v8065_v35 = vrot.slane %v9920_v54, 1  ;;  %v8066_v39 = vrot.slane %v12037_v13, 1  ;;  %v8041_v19 = vrot.slane %v9933_v46, 1 }
 0x3b5   : > { %7654 = vmatprep.mubr.bf16.mxu0 %v14603_v15  ;;  %v10832_v7 = vpop.f32.mrf.mxu1  ;;  %v9903_v15 = vcombine.low %v7828_v48, %v12032_v5  ;;  %v12040_v48 = vld [vmem:[#allocation3 + $0x40] sm:$0xf] }
 0x3b6   : > { %v10833_v0 = vadd.f32 %v10832_v7, %v10831_v24  ;;  %v8032_v24 = vrot.slane %v9932_v61, 1  ;;  %v8067_v5 = vsel %vm4199_vm13, %v8065_v35, %v8066_v39  ;;  %v9887_v61 = vld [vmem:[#allocation3 + $0x48] sm:$0xe] }
 0x3b7   : > { %v10834_v62 = vpop.f32.mrf.mxu1  ;;  %v8053_v55 = vrot.slane %v9903_v15, 1  ;;  %v12041_v15 = vld [vmem:[#allocation3 + $0x58] sm:$0xf] }
 0x3b8   : > { %8459 = vmatmul.mubr.bf16.gmra.mxu1 %v8046_v60  ;;  %v14857_v18 = vadd.f32 %v10833_v0, %v7263_v3  ;;  %v9904_v0 = vcombine.low %v7829_v45, %v12040_v48  ;;  %v9873_v60 = vld [vmem:[#allocation3 + $0x54] sm:$0xe]  ;;  %v8034_v11 = vsel %vm4199_vm13, %v8032_v24, %v8033_v56  ;;  %v12046_v24 = vld [vmem:[#allocation3 + $0x44] ss:$0 sps:$4 sm:$0x11]  }
 0x3b9   : > { %8466 = vmatprep.mubr.bf16.mxu1 %v8058_v2  ;;  %v10835_v40 = vpop.f32.mrf.mxu1  ;;  %v8055_v23 = vsel %vm4199_vm13, %v8053_v55, %v8054_v47  ;;  %v9921_v16 = vcombine.low %v9873_v60, %v12041_v15  ;;  %v9886_v2 = vld [vmem:[#allocation3 + $0x3c] sm:$0xe]  ;;  %v12045_v47 = vld [vmem:[#allocation3 + $0x5c] ss:$0 sps:$4 sm:$0x11]   ;;  %v8051_v34 = vrot.slane %v12046_v24, 1  ;;  %v14870_v45 = vpop.f32.mrf.mxu0 }
 0x3ba   : > { %v10836_v32 = vadd.f32 %v10835_v40, %v10834_v62  ;;  %v9934_v22 = vcombine.low %v9886_v2, %v12042_v27  ;;  %v8062_v46 = vrot.slane %v9904_v0, 1  ;;  %v8075_v35 = vrot.slane %v12045_v47, 1  ;;  %v9874_v60 = vld [vmem:[#allocation3 + $0x60] sm:$0xe]  ;;  %v12049_v15 = vld [vmem:[#allocation3 + $0x64] sm:$0xf] }
 0x3bb   : > { %v8074_v14 = vrot.slane %v9921_v16, 1  ;;  %v9922_v16 = vcombine.low %v9874_v60, %v12049_v15  ;;  %v9889_v27 = vld [vmem:[#allocation3 + $0x60] sm:$0xe]  ;;  %v9875_v60 = vld [vmem:[#allocation3 + $0x6c] sm:$0xe] }
 0x3bc   : > { %7655 = vmatmul.mubr.bf16.gmra.mxu0 %v14630_v29  ;;  %v14861_v3 = vadd.f32 %v10836_v32, %v7266_v9  ;;  %v12039_v29 = vld [vmem:[#allocation3 + $0x38] ss:$0 sps:$4 sm:$0x11]   ;;  %v12044_v32 = vld [vmem:[#allocation3 + $0x44] ss:$0 sps:$4 sm:$0x11]  }
 0x3bd   : > { %11455 = vmatprep.mubr.bf16.mxu0 %v8025_v49  ;;  %v8042_v7 = vrot.slane %v12039_v29, 1  ;;  %v12043_v49 = vld [vmem:[#allocation3 + $0x4c] sm:$0xf]  ;;  %v8063_v9 = vrot.slane %v12044_v32, 1  ;;  %v8050_v39 = vrot.slane %v9934_v22, 1  ;;  %v8083_v32 = vrot.slane %v9922_v16, 1 }
 0x3be   : > { %v10837_v43 = vpop.f32.mrf.mxu1  ;;  %v9935_v37 = vcombine.low %v9887_v61, %v12043_v49  ;;  %v12057_v16 = vld [vmem:[#allocation3 + $0x70] sm:$0xf] }
 0x3bf   : > { %v8043_v38 = vsel %vm4199_vm13, %v8041_v19, %v8042_v7  ;;  %v12047_v19 = vld [vmem:[#allocation3 + $0x50] ss:$0 sps:$4 sm:$0x11]   ;;  %v8052_v2 = vsel %vm4199_vm13, %v8050_v39, %v8051_v34 }
 0x3c0   : > { %8467 = vmatmul.mubr.bf16.gmra.mxu1 %v8055_v23  ;;  %v10838_v62 = vpop.f32.mrf.mxu1  ;;  %v8059_v29 = vrot.slane %v9935_v37, 1  ;;  %v8060_v7 = vrot.slane %v12047_v19, 1  ;;  %v8064_v23 = vsel %vm4199_vm13, %v8062_v46, %v8063_v9  ;;  %v12052_v37 = vld [vmem:[#allocation3 + $0x50] ss:$0 sps:$4 sm:$0x11]  }
 0x3c1   : > { %8474 = vmatprep.mubr.bf16.mxu1 %v8067_v5  ;;  %v10839_v54 = vadd.f32 %v10838_v62, %v10837_v43  ;;  %v7830_v43 = vld [vmem:[#allocation3 + $0x48] sm:$0xe]  ;;  %v8076_v5 = vsel %vm4199_vm13, %v8074_v14, %v8075_v35  ;;  %v9888_v62 = vld [vmem:[#allocation3 + $0x54] sm:$0xe]  ;;  %v8072_v46 = vrot.slane %v12052_v37, 1 }
 0x3c2   : > { %v10840_v40 = vpop.f32.mrf.mxu1  ;;  %v8061_v22 = vsel %vm4199_vm13, %v8059_v29, %v8060_v7  ;;  %v12053_v9 = vld [vmem:[#allocation3 + $0x68] ss:$0 sps:$4 sm:$0x11]   ;;  %v7831_v29 = vld [vmem:[#allocation3 + $0x54] sm:$0xe] }
 0x3c3   : > { %v14868_v55 = vadd.f32 %v14846_v41, %v10839_v54  ;;  %v12048_v41 = vld [vmem:[#allocation3 + $0x4c] sm:$0xf]  ;;  %v8084_v14 = vrot.slane %v12053_v9, 1 }
 0x3c4   : > { %11456 = vmatmul.mubr.bf16.vlgmr.msra.gmra.mxu0 %v8034_v11  ;;  %v10841_v13 = vpop.f32.mrf.mxu1  ;;  %v9905_v0 = vcombine.low %v7830_v43, %v12048_v41  ;;  %v12050_v11 = vld [vmem:[#allocation3 + $0x58] sm:$0xf] }
 0x3c5   : > { %11459 = vmatprep.mubr.bf16.mxu0 %v8043_v38  ;;  %v10842_v56 = vadd.f32 %v10841_v13, %v10840_v40  ;;  %v9936_v54 = vcombine.low %v9888_v62, %v12050_v11  ;;  %v7279_v38 = vpop.f32.mrf.mxu0  ;;  %v12054_v13 = vld [vmem:[#allocation3 + $0x5c] ss:$0 sps:$4 sm:$0x11]   ;;  %v12056_v41 = vld [vmem:[#allocation3 + $0x58] sm:$0xf]  ;;  %v9923_v62 = vcombine.low %v9875_v60, %v12057_v16 }
 0x3c6   : > { %v8071_v49 = vrot.slane %v9905_v0, 1  ;;  %v8069_v39 = vrot.slane %v12054_v13, 1  ;;  %v9906_v0 = vcombine.low %v7831_v29, %v12056_v41  ;;  %v12061_v13 = vld [vmem:[#allocation3 + $0x74] ss:$0 sps:$4 sm:$0x11]  }
 0x3c7   : > { %v14874_v48 = vadd.f32 %v14854_v33, %v10842_v56  ;;  %v12051_v33 = vld [vmem:[#allocation3 + $0x64] sm:$0xf]  ;;  %v8068_v35 = vrot.slane %v9936_v54, 1  ;;  %v12055_v56 = vld [vmem:[#allocation3 + $0x68] ss:$0 sps:$4 sm:$0x11]   ;;  %v14879_v7 = vpop.f32.mrf.mxu0 }
 0x3c8   : > { %8475 = vmatmul.mubr.bf16.gmra.mxu1 %v8064_v23  ;;  %v9937_v61 = vcombine.low %v9889_v27, %v12051_v33  ;;  %v8078_v19 = vrot.slane %v12055_v56, 1  ;;  %v8073_v43 = vsel %vm4199_vm13, %v8071_v49, %v8072_v46  ;;  %v12058_v27 = vld [vmem:[#allocation3 + $0x70] sm:$0xf]  ;;  %v9891_v33 = vld [vmem:[#allocation3 + $0x78] sm:$0xe] }
 0x3c9   : > { %8482 = vmatprep.mubr.bf16.mxu1 %v8076_v5  ;;  %v8085_v5 = vsel %vm4199_vm13, %v8083_v32, %v8084_v14  ;;  %v8070_v11 = vsel %vm4199_vm13, %v8068_v35, %v8069_v39  ;;  %v12059_v49 = vld [vmem:[#allocation3 + $0x7c] sm:$0xf]  ;;  %v7282_v46 = vpop.f32.mrf.mxu0  ;;  %v8093_v35 = vrot.slane %v12061_v13, 1  ;;  %v12064_v60 = vld [vmem:[#allocation3 + $0x64] sm:$0xf] }
 0x3ca   : > { %v10843_v40 = vpop.f32.mrf.mxu1  ;;  %v8077_v34 = vrot.slane %v9937_v61, 1  ;;  %v9939_v37 = vcombine.low %v9891_v33, %v12059_v49  ;;  %v12060_v32 = vld [vmem:[#allocation3 + $0x5c] ss:$0 sps:$4 sm:$0x11]  }
 0x3cb   : > { %v8081_v9 = vrot.slane %v12060_v32, 1 }
 0x3cc   : > { %11460 = vmatmul.mubr.bf16.gmra.mxu0 %v8052_v2  ;;  %v10844_v47 = vpop.f32.mrf.mxu1  ;;  %v9890_v2 = vld [vmem:[#allocation3 + $0x6c] sm:$0xe]  ;;  %v8079_v61 = vsel %vm4199_vm13, %v8077_v34, %v8078_v19  ;;  %v8095_v29 = vrot.slane %v9939_v37, 1  ;;  %v7832_v34 = vld [vmem:[#allocation3 + $0x60] sm:$0xe] }
 0x3cd   : > { %11463 = vmatprep.mubr.bf16.mxu0 %v8061_v22  ;;  %v10845_v24 = vadd.f32 %v10844_v47, %v10843_v40  ;;  %v9938_v22 = vcombine.low %v9890_v2, %v12058_v27  ;;  %v8092_v47 = vrot.slane %v9923_v62, 1  ;;  %v12065_v2 = vld [vmem:[#allocation3 + $0x7c] sm:$0xf]  ;;  %v12067_v37 = vld [vmem:[#allocation3 + $0x94] sm:$0xf] }
 0x3ce   : > { %v10846_v23 = vpop.f32.mrf.mxu1 }
 0x3cf   : > { %v14883_v15 = vadd.f32 %v10845_v24, %v7279_v38  ;;  %v8080_v38 = vrot.slane %v9906_v0, 1  ;;  %v8086_v39 = vrot.slane %v9938_v22, 1  ;;  %v12062_v24 = vld [vmem:[#allocation3 + $0x74] ss:$0 sps:$4 sm:$0x11]   ;;  %v9907_v0 = vcombine.low %v7832_v34, %v12064_v60 }
 0x3d0   : > { %8483 = vmatmul.mubr.bf16.gmra.mxu1 %v8073_v43  ;;  %v10847_v54 = vpop.f32.mrf.mxu1  ;;  %v8087_v56 = vrot.slane %v12062_v24, 1  ;;  %v12063_v43 = vld [vmem:[#allocation3 + $0x80] ss:$0 sps:$4 sm:$0x11]   ;;  %v8094_v62 = vsel %vm4199_vm13, %v8092_v47, %v8093_v35  ;;  %v12066_v22 = vld [vmem:[#allocation3 + $0x88] sm:$0xf] }
 0x3d1   : > { %8490 = vmatprep.mubr.bf16.mxu1 %v8085_v5  ;;  %v10848_v40 = vadd.f32 %v10847_v54, %v10846_v23  ;;  %v8096_v41 = vrot.slane %v12063_v43, 1  ;;  %v8082_v23 = vsel %vm4199_vm13, %v8080_v38, %v8081_v9  ;;  %v9876_v5 = vld [vmem:[#allocation3 + $0x78] sm:$0xe]  ;;  %v9892_v54 = vld [vmem:[#allocation3 + $0x84] sm:$0xe]  ;;  %v8089_v9 = vrot.slane %v9907_v0, 1 }
 0x3d2   : > { %v8088_v27 = vsel %vm4199_vm13, %v8086_v39, %v8087_v56  ;;  %v9940_v33 = vcombine.low %v9892_v54, %v12066_v22  ;;  %v12068_v47 = vld [vmem:[#allocation3 + $0x68] ss:$0 sps:$4 sm:$0x11]   ;;  %v12069_v43 = vld [vmem:[#allocation3 + $0x80] ss:$0 sps:$4 sm:$0x11]  }
 0x3d3   : > { %v14887_v14 = vadd.f32 %v10848_v40, %v7282_v46  ;;  %v8097_v49 = vsel %vm4199_vm13, %v8095_v29, %v8096_v41  ;;  %v8090_v13 = vrot.slane %v12068_v47, 1  ;;  %v8102_v34 = vrot.slane %v12069_v43, 1  ;;  %v12071_v41 = vld [vmem:[#allocation3 + $0x98] ss:$0 sps:$4 sm:$0x11]  }
 0x3d4   : > { %11464 = vmatmul.mubr.bf16.gmra.mxu0 %v8070_v11  ;;  %v14889_v19 = vpop.f32.mrf.mxu0  ;;  %v9924_v11 = vcombine.low %v9876_v5, %v12065_v2  ;;  %v8104_v56 = vrot.slane %v9940_v33, 1  ;;  %v7833_v2 = vld [vmem:[#allocation3 + $0x6c] sm:$0xe] }
 0x3d5   : > { %11467 = vmatprep.mubr.bf16.mxu0 %v8079_v61  ;;  %v9893_v61 = vld [vmem:[#allocation3 + $0x90] sm:$0xe]  ;;  %v8091_v0 = vsel %vm4199_vm13, %v8089_v9, %v8090_v13 }
 0x3d6   : > { %v9941_v46 = vcombine.low %v9893_v61, %v12067_v37  ;;  %v7295_v38 = vpop.f32.mrf.mxu0  ;;  %v8101_v24 = vrot.slane %v9924_v11, 1 }
 0x3d7   : > { %v10849_v16 = vpop.f32.mrf.mxu1 }
 0x3d8   : > { %8491 = vmatmul.mubr.bf16.gmra.mxu1 %v8082_v23  ;;  %v12070_v23 = vld [vmem:[#allocation3 + $0x8c] ss:$0 sps:$4 sm:$0x11]   ;;  %v8113_v29 = vrot.slane %v9941_v46, 1  ;;  %v8103_v61 = vsel %vm4199_vm13, %v8101_v24, %v8102_v34 }
 0x3d9   : > { %8498 = vmatprep.mubr.bf16.mxu1 %v8094_v62  ;;  %v10850_v40 = vpop.f32.mrf.mxu1  ;;  %v8105_v60 = vrot.slane %v12070_v23, 1  ;;  %v8114_v62 = vrot.slane %v12071_v41, 1 }
 0x3da   : > { %v10851_v32 = vadd.f32 %v10850_v40, %v10849_v16  ;;  %v11378_v16 = vpop.f32.mrf.mxu0 }
 0x3db   : > { %v10852_v35 = vpop.f32.mrf.mxu1  ;;  %v8106_v40 = vsel %vm4199_vm13, %v8104_v56, %v8105_v60 }
 0x3dc   : > { %11468 = vmatmul.mubr.bf16.gmra.mxu0 %v8088_v27  ;;  %v14896_v39 = vadd.f32 %v14870_v45, %v10851_v32  ;;  %v12072_v27 = vld [vmem:[#allocation3 + $0x70] sm:$0xf]  ;;  %v9894_v45 = vld [vmem:[#allocation3 + $0x9c] sm:$0xe]  ;;  %v8115_v32 = vsel %vm4199_vm13, %v8113_v29, %v8114_v62  ;;  %v7298_v9 = vpop.f32.mrf.mxu0 }
 0x3dd   : > { %11471 = vmatprep.mubr.bf16.mxu0 %v8097_v49  ;;  %v10853_v5 = vpop.f32.mrf.mxu1  ;;  %v9908_v22 = vcombine.low %v7833_v2, %v12072_v27  ;;  %v12073_v49 = vld [vmem:[#allocation3 + $0xa0] sm:$0xf] }
 0x3de   : > { %v10854_v54 = vadd.f32 %v10853_v5, %v10852_v35  ;;  %v9942_v37 = vcombine.low %v9894_v45, %v12073_v49  ;;  %v12074_v35 = vld [vmem:[#allocation3 + $0x74] ss:$0 sps:$4 sm:$0x11]   ;;  %v12075_v5 = vld [vmem:[#allocation3 + $0xa4] ss:$0 sps:$4 sm:$0x11]  }
 0x3df   : > { %v8098_v13 = vrot.slane %v9908_v22, 1  ;;  %v8099_v43 = vrot.slane %v12074_v35, 1  ;;  %v8123_v41 = vrot.slane %v12075_v5, 1  ;;  %v12077_v35 = vld [vmem:[#allocation3 + $0xd4] ss:$0 sps:$4 sm:$0x11]  }
 0x3e0   : > { %v10855_v11 = vpop.f32.mrf.mxu1  ;;  %8499 = vmatmul.mubr.bf16.gmra.mxu1 %v8091_v0  ;;  %v14901_v33 = vadd.f32 %v14879_v7, %v10854_v54  ;;  %v8122_v23 = vrot.slane %v9942_v37, 1  ;;  %v12076_v37 = vld [vmem:[#allocation3 + $0xd0] sm:$0xf] }
 0x3e1   : > { %8506 = vmatprep.mubr.bf16.mxu1 %v8103_v61  ;;  %v8100_v2 = vsel %vm4199_vm13, %v8098_v13, %v8099_v43  ;;  %v9898_v61 = vld [vmem:[#allocation3 + $0xcc] sm:$0xe]  ;;  %v8159_v43 = vrot.slane %v12077_v35, 1 }
 0x3e2   : > { %v10856_v46 = vpop.f32.mrf.mxu1  ;;  %v8124_v62 = vsel %vm4199_vm13, %v8122_v23, %v8123_v41 }
 0x3e3   : > { %v10857_v47 = vadd.f32 %v10856_v46, %v10855_v11  ;;  %v9946_v46 = vcombine.low %v9898_v61, %v12076_v37 }
 0x3e4   : > { %11472 = vmatmul.mubr.bf16.gmra.mxu0 %v8106_v40  ;;  %v10858_v24 = vpop.f32.mrf.mxu1 }
 0x3e5   : > { %11475 = vmatprep.mubr.bf16.mxu0 %v8115_v32  ;;  %v14905_v34 = vadd.f32 %v10857_v47, %v7295_v38 }
 0x3e6   : > { %v11381_v7 = vpop.f32.mrf.mxu0  ;;  %v10859_v56 = vpop.f32.mrf.mxu1 }
 0x3e7   : > { %v10860_v60 = vadd.f32 %v10859_v56, %v10858_v24 }
 0x3e8   : > { %v7311_v54 = vpop.f32.mrf.mxu0  ;;  %v10861_v0 = vpop.f32.mrf.mxu1  ;;  %8507 = vmatmul.mubr.bf16.gmra.mxu1 %v8100_v2 }
 0x3e9   : > { %v14908_v29 = vadd.f32 %v10860_v60, %v7298_v9  ;;  %8514 = vmatprep.mubr.bf16.mxu1 %v14696_v57 }
 0x3ea   : > { %v10862_v27 = vpop.f32.mrf.mxu1  ;;  %v11382_v22 = vpop.f32.mrf.mxu0 }
 0x3eb   : > { %v10863_v38 = vadd.f32 %v10862_v27, %v10861_v0 }
 0x3ec   : > { %11476 = vmatmul.mubr.bf16.gmra.mxu0 %v8124_v62  ;;  %v10864_v11 = vpop.f32.mrf.mxu1  ;;  %v7314_v32 = vpop.f32.mrf.mxu0 }
 0x3ed   : > { %11479 = vmatprep.mubr.bf16.mxu0 %v14701_v21  ;;  %v14914_v45 = vadd.f32 %v14889_v19, %v10863_v38  ;;  %v8158_v19 = vrot.slane %v9946_v46, 1 }
 0x3ee   : > { %v10865_v40 = vpop.f32.mrf.mxu1 }
 0x3ef   : > { %v10866_v49 = vadd.f32 %v10865_v40, %v10864_v11  ;;  %v8160_v56 = vsel %vm4199_vm13, %v8158_v19, %v8159_v43 }
 0x3f0   : > { %v10867_v9 = vpop.f32.mrf.mxu1  ;;  %8515 = vmatmul.mubr.bf16.gmra.mxu1 %v14710_v26 }
 0x3f1   : > { %v14917_v57 = vadd.f32 %v11378_v16, %v10866_v49  ;;  %8522 = vmatprep.mubr.bf16.mxu1 %v14719_v44 }
 0x3f2   : > { %v10868_v47 = vpop.f32.mrf.mxu1 }
 0x3f3   : > { %v10869_v13 = vadd.f32 %v10868_v47, %v10867_v9 }
 0x3f4   : > { %v11385_v21 = vpop.f32.mrf.mxu0  ;;  %11480 = vmatmul.mubr.bf16.gmra.mxu0 %v14727_v20  ;;  %v10870_v24 = vpop.f32.mrf.mxu1 }
 0x3f5   : > { %11483 = vmatprep.mubr.bf16.mxu0 %v14733_v17  ;;  %v14922_v5 = vadd.f32 %v10869_v13, %v7311_v54 }
 0x3f6   : > { %v7327_v23 = vpop.f32.mrf.mxu0  ;;  %v10871_v41 = vpop.f32.mrf.mxu1 }
 0x3f7   : > { %v10872_v16 = vadd.f32 %v10871_v41, %v10870_v24 }
 0x3f8   : > { %v11386_v26 = vpop.f32.mrf.mxu0  ;;  %v10873_v44 = vpop.f32.mrf.mxu1  ;;  %8523 = vmatmul.mubr.bf16.gmra.mxu1 %v14736_v28 }
 0x3f9   : > { %v14926_v20 = vadd.f32 %v10872_v16, %v7314_v32  ;;  %8530 = vmatprep.mubr.bf16.mxu1 %v14741_v42 }
 0x3fa   : > { %v7330_v60 = vpop.f32.mrf.mxu0  ;;  %v10874_v17 = vpop.f32.mrf.mxu1 }
 0x3fb   : > { %v10875_v0 = vadd.f32 %v10874_v17, %v10873_v44 }
 0x3fc   : > { %v14929_v2 = vpop.f32.mrf.mxu0  ;;  %11484 = vmatmul.mubr.bf16.gmra.mxu0 %v8160_v56  ;;  %v10876_v54 = vpop.f32.mrf.mxu1 }
 0x3fd   : > { %v14931_v27 = vadd.f32 %v11381_v7, %v10875_v0 }
 0x3fe   : > { %v7343_v62 = vpop.f32.mrf.mxu0  ;;  %v10877_v38 = vpop.f32.mrf.mxu1 }
 0x3ff   : > { %v10878_v61 = vadd.f32 %v10877_v38, %v10876_v54 }
 0x400   : > { %v14933_v11 = vpop.f32.mrf.mxu0  ;;  %v10879_v40 = vpop.f32.mrf.mxu1  ;;  %8531 = vmatmul.mubr.bf16.gmra.mxu1 %v14755_v30 }
 0x401   : > { %v14936_v49 = vadd.f32 %v11382_v22, %v10878_v61  ;;  %8538 = vmatprep.mubr.bf16.mxu1 %v14760_v36  ;;  %v7235_v36 = vadd.f32 %v14807_v50, %v14823_v59 }
 0x402   : > { %v7346_v28 = vpop.f32.mrf.mxu0  ;;  %v10880_v42 = vpop.f32.mrf.mxu1 }
 0x403   : > { %v10881_v46 = vadd.f32 %v10880_v42, %v10879_v40 }
 0x404   : > { %v10943_v37 = vpop.f32.mrf.mxu0  ;;  %v10882_v32 = vpop.f32.mrf.mxu1 }
 0x405   : > { %v14939_v47 = vadd.f32 %v10881_v46, %v7327_v23 }
 0x406   : > { %v10944_v9 = vpop.f32.mrf.mxu0  ;;  %v10883_v13 = vpop.f32.mrf.mxu1 }
 0x407   : > { %v10945_v7 = vadd.f32 %v10944_v9, %v10943_v37  ;;  %v10884_v35 = vadd.f32 %v10883_v13, %v10882_v32 }
 0x408   : > { %v10946_v19 = vpop.f32.mrf.mxu0  ;;  %v10885_v30 = vpop.f32.mrf.mxu1  ;;  %8539 = vmatmul.mubr.bf16.gmra.mxu1 %v14765_v25 }
 0x409   : > { %v14942_v43 = vadd.f32 %v10945_v7, %v14812_v6  ;;  %v14947_v24 = vadd.f32 %v10884_v35, %v7330_v60  ;;  %8546 = vmatprep.mubr.bf16.mxu1 %v14774_v1 }
 0x40a   : > { %v10947_v22 = vpop.f32.mrf.mxu0  ;;  %v10886_v23 = vpop.f32.mrf.mxu1 }
 0x40b   : > { %v10948_v41 = vadd.f32 %v10947_v22, %v10946_v19  ;;  %v10887_v56 = vadd.f32 %v10886_v23, %v10885_v30 }
 0x40c   : > { %v10949_v16 = vpop.f32.mrf.mxu0  ;;  %v10888_v17 = vpop.f32.mrf.mxu1 }
 0x40d   : > { %v7540_v44 = vadd.f32 %v10948_v41, %v7235_v36  ;;  %v14950_v6 = vadd.f32 %v11385_v21, %v10887_v56 }
 0x40e   : > { %v10950_v0 = vpop.f32.mrf.mxu0  ;;  %v10889_v38 = vpop.f32.mrf.mxu1 }
 0x40f   : > { %v10951_v54 = vadd.f32 %v10950_v0, %v10949_v16  ;;  %v10890_v61 = vadd.f32 %v10889_v38, %v10888_v17 }
 0x410   : > { %v10952_v25 = vpop.f32.mrf.mxu0  ;;  %v10891_v50 = vpop.f32.mrf.mxu1  ;;  %8547 = vmatmul.mubr.bf16.gmra.mxu1 %v14777_v31 }
 0x411   : > { %v7545_v40 = vadd.f32 %v10951_v54, %v14815_v10  ;;  %v14954_v60 = vadd.f32 %v11386_v26, %v10890_v61  ;;  %8554 = vmatprep.mubr.bf16.mxu1 %v14784_v63  ;;  %v7251_v63 = vadd.f32 %v14833_v51, %v14841_v53 }
 0x412   : > { %v10953_v59 = vpop.f32.mrf.mxu0  ;;  %v10892_v42 = vpop.f32.mrf.mxu1 }
 0x413   : > { %v10954_v1 = vadd.f32 %v10953_v59, %v10952_v25  ;;  %v10893_v46 = vadd.f32 %v10892_v42, %v10891_v50 }
 0x414   : > { %v10955_v37 = vpop.f32.mrf.mxu0  ;;  %v10894_v32 = vpop.f32.mrf.mxu1 }
 0x415   : > { %v7548_v21 = vadd.f32 %v10954_v1, %v14820_v52  ;;  %v14958_v7 = vadd.f32 %v10893_v46, %v7343_v62 }
 0x416   : > { %v10956_v9 = vpop.f32.mrf.mxu0  ;;  %v10895_v10 = vpop.f32.mrf.mxu1 }
 0x417   : > { %v10957_v13 = vadd.f32 %v10956_v9, %v10955_v37  ;;  %v10896_v35 = vadd.f32 %v10895_v10, %v10894_v32 }
 0x418   : > { %v10958_v19 = vpop.f32.mrf.mxu0  ;;  %v10897_v26 = vpop.f32.mrf.mxu1  ;;  %8555 = vmatmul.mubr.bf16.gmra.mxu1 %v14788_v58 }
 0x419   : > { %v7553_v31 = vadd.f32 %v10957_v13, %v14830_v8  ;;  %v14964_v22 = vadd.f32 %v10896_v35, %v7346_v28 }
 0x41a   : > { %v10959_v30 = vpop.f32.mrf.mxu0  ;;  %v10898_v36 = vpop.f32.mrf.mxu1 }
 0x41b   : > { %v10960_v52 = vadd.f32 %v10959_v30, %v10958_v19  ;;  %v10899_v62 = vadd.f32 %v10898_v36, %v10897_v26 }
 0x41c   : > { %v10961_v41 = vpop.f32.mrf.mxu0  ;;  %v10900_v16 = vpop.f32.mrf.mxu1 }
 0x41d   : > { %v7556_v23 = vadd.f32 %v10960_v52, %v7251_v63  ;;  %v14967_v17 = vadd.f32 %v14929_v2, %v10899_v62 }
 0x41e   : > { %v10962_v56 = vpop.f32.mrf.mxu0  ;;  %v10901_v0 = vpop.f32.mrf.mxu1 }
 0x41f   : > { %v10963_v8 = vadd.f32 %v10962_v56, %v10961_v41  ;;  %v10902_v58 = vadd.f32 %v10901_v0, %v10900_v16 }
 0x420   : > { %v10964_v54 = vpop.f32.mrf.mxu0  ;;  %v11409_v25 = vpop.f32.mrf.mxu1 }
 0x421   : > { %v7561_v38 = vadd.f32 %v10963_v8, %v14843_v12  ;;  %v14971_v53 = vadd.f32 %v14933_v11, %v10902_v58  ;;  %v14973_v28 = vadd.f32 %v11409_v25, %v7545_v40 }
 0x422   : > { %v10965_v51 = vpop.f32.mrf.mxu0  ;;  %v7697_v50 = vpop.f32.mrf.mxu1 }
 0x423   : > { %v10966_v61 = vadd.f32 %v10965_v51, %v10964_v54  ;;  %v14976_v1 = vadd.f32 %v7697_v50, %v14942_v43 }
 0x424   : > { %v10967_v59 = vpop.f32.mrf.mxu0  ;;  %v11410_v42 = vpop.f32.mrf.mxu1 }
 0x425   : > { %v7564_v2 = vadd.f32 %v10966_v61, %v14849_v4  ;;  %v14979_v46 = vadd.f32 %v11410_v42, %v7548_v21 }
 0x426   : > { %v10968_v37 = vpop.f32.mrf.mxu0  ;;  %v7700_v32 = vpop.f32.mrf.mxu1 }
 0x427   : > { %v10969_v12 = vadd.f32 %v10968_v37, %v10967_v59  ;;  %v14981_v13 = vadd.f32 %v7700_v32, %v7540_v44 }
 0x428   : > { %v10970_v9 = vpop.f32.mrf.mxu0  ;;  %v11413_v40 = vpop.f32.mrf.mxu1 }
 0x429   : > { %v7569_v11 = vadd.f32 %v10969_v12, %v14857_v18  ;;  %v14984_v19 = vadd.f32 %v11413_v40, %v7561_v38 }
 0x42a   : > { %v10971_v10 = vpop.f32.mrf.mxu0  ;;  %v7713_v43 = vpop.f32.mrf.mxu1 }
 0x42b   : > { %v10972_v35 = vadd.f32 %v10971_v10, %v10970_v9  ;;  %v14986_v30 = vadd.f32 %v7713_v43, %v7553_v31 }
 0x42c   : > { %v10973_v26 = vpop.f32.mrf.mxu0  ;;  %v11414_v21 = vpop.f32.mrf.mxu1 }
 0x42d   : > { %v7572_v4 = vadd.f32 %v10972_v35, %v14861_v3  ;;  %v14989_v52 = vadd.f32 %v11414_v21, %v7564_v2 }
 0x42e   : > { %v10974_v63 = vpop.f32.mrf.mxu0  ;;  %v7716_v44 = vpop.f32.mrf.mxu1 }
 0x42f   : > { %v10975_v36 = vadd.f32 %v10974_v63, %v10973_v26  ;;  %v14991_v62 = vadd.f32 %v7716_v44, %v7556_v23 }
 0x430   : > { %v10976_v41 = vpop.f32.mrf.mxu0  ;;  %v11417_v16 = vpop.f32.mrf.mxu1 }
 0x431   : > { %v7577_v18 = vadd.f32 %v10975_v36, %v14868_v55 }
 0x432   : > { %v10977_v56 = vpop.f32.mrf.mxu0  ;;  %v7729_v31 = vpop.f32.mrf.mxu1 }
 0x433   : > { %v14994_v8 = vadd.f32 %v11417_v16, %v7577_v18  ;;  %v10978_v0 = vadd.f32 %v10977_v56, %v10976_v41  ;;  %v14996_v58 = vadd.f32 %v7729_v31, %v7569_v11 }
 0x434   : > { %v10979_v54 = vpop.f32.mrf.mxu0  ;;  %v11418_v38 = vpop.f32.mrf.mxu1 }
 0x435   : > { %v7580_v3 = vadd.f32 %v10978_v0, %v14874_v48 }
 0x436   : > { %v10980_v25 = vpop.f32.mrf.mxu0  ;;  %v7732_v23 = vpop.f32.mrf.mxu1 }
 0x437   : > { %v14999_v51 = vadd.f32 %v11418_v38, %v7580_v3  ;;  %v10981_v61 = vadd.f32 %v10980_v25, %v10979_v54  ;;  %v15001_v59 = vadd.f32 %v7732_v23, %v7572_v4 }
 0x438   : > { %v10982_v50 = vpop.f32.mrf.mxu0  ;;  %v11421_v2 = vpop.f32.mrf.mxu1 }
 0x439   : > { %v7585_v55 = vadd.f32 %v10981_v61, %v14883_v15 }
 0x43a   : > { %v10983_v42 = vpop.f32.mrf.mxu0  ;;  %v7745_v12 = vpop.f32.mrf.mxu1 }
 0x43b   : > { %v10984_v37 = vadd.f32 %v10983_v42, %v10982_v50  ;;  %v15004_v9 = vadd.f32 %v7745_v12, %v7585_v55 }
 0x43c   : > { %v10985_v32 = vpop.f32.mrf.mxu0  ;;  %v11422_v11 = vpop.f32.mrf.mxu1 }
 0x43d   : > { %v7588_v48 = vadd.f32 %v10984_v37, %v14887_v14 }
 0x43e   : > { %v10986_v40 = vpop.f32.mrf.mxu0  ;;  %v7748_v35 = vpop.f32.mrf.mxu1 }
 0x43f   : > { %v10987_v10 = vadd.f32 %v10986_v40, %v10985_v32  ;;  %v15008_v4 = vadd.f32 %v7748_v35, %v7588_v48 }
 0x440   : > { %v10988_v43 = vpop.f32.mrf.mxu0  ;;  %v11425_v21 = vpop.f32.mrf.mxu1 }
 0x441   : > { %v7593_v26 = vadd.f32 %v10987_v10, %v14896_v39 }
 0x442   : > { %v10989_v15 = vpop.f32.mrf.mxu0  ;;  %v7761_v44 = vpop.f32.mrf.mxu1 }
 0x443   : > { %v10990_v63 = vadd.f32 %v10989_v15, %v10988_v43  ;;  %v15010_v36 = vadd.f32 %v11421_v2, %v7593_v26 }
 0x444   : > { %v10991_v41 = vpop.f32.mrf.mxu0  ;;  %v11426_v16 = vpop.f32.mrf.mxu1 }
 0x445   : > { %v7596_v18 = vadd.f32 %v10990_v63, %v14901_v33 }
 0x446   : > { %v10992_v14 = vpop.f32.mrf.mxu0  ;;  %v7764_v31 = vpop.f32.mrf.mxu1 }
 0x447   : > { %v10993_v56 = vadd.f32 %v10992_v14, %v10991_v41  ;;  %v15013_v0 = vadd.f32 %v11422_v11, %v7596_v18 }
 0x448   : > { %v10994_v54 = vpop.f32.mrf.mxu0  ;;  %v11429_v3 = vpop.f32.mrf.mxu1 }
 0x449   : > { %v7601_v39 = vadd.f32 %v10993_v56, %v14905_v34 }
 0x44a   : > { %v10995_v38 = vpop.f32.mrf.mxu0  ;;  %v7777_v23 = vpop.f32.mrf.mxu1 }
 0x44b   : > { %v10996_v25 = vadd.f32 %v10995_v38, %v10994_v54  ;;  %v15016_v61 = vadd.f32 %v7761_v44, %v7601_v39 }
 0x44c   : > { %v10997_v50 = vpop.f32.mrf.mxu0  ;;  %v11430_v2 = vpop.f32.mrf.mxu1 }
 0x44d   : > { %v7604_v55 = vadd.f32 %v10996_v25, %v14908_v29 }
 0x44e   : > { %v10998_v33 = vpop.f32.mrf.mxu0  ;;  %v7780_v12 = vpop.f32.mrf.mxu1 }
 0x44f   : > { %v10999_v42 = vadd.f32 %v10998_v33, %v10997_v50  ;;  %v15019_v37 = vadd.f32 %v7764_v31, %v7604_v55 }
 0x450   : > { %v11000_v32 = vpop.f32.mrf.mxu0  ;;  %v11433_v11 = vpop.f32.mrf.mxu1 }
 0x451   : > { %v7609_v48 = vadd.f32 %v10999_v42, %v14914_v45 }
 0x452   : > { %v11001_v34 = vpop.f32.mrf.mxu0  ;;  %v7793_v35 = vpop.f32.mrf.mxu1 }
 0x453   : > { %v15022_v40 = vadd.f32 %v11425_v21, %v7609_v48  ;;  %v11002_v10 = vadd.f32 %v11001_v34, %v11000_v32 }
 0x454   : > { %v11003_v43 = vpop.f32.mrf.mxu0  ;;  %v11434_v15 = vpop.f32.mrf.mxu1 }
 0x455   : > { %v7612_v26 = vadd.f32 %v11002_v10, %v14917_v57 }
 0x456   : > { %v11004_v29 = vpop.f32.mrf.mxu0  ;;  %v7796_v41 = vpop.f32.mrf.mxu1 }
 0x457   : > { %v15025_v63 = vadd.f32 %v11426_v16, %v7612_v26  ;;  %v11005_v44 = vadd.f32 %v11004_v29, %v11003_v43 }
 0x458   : > { %v11006_v18 = vpop.f32.mrf.mxu0  ;;  %v15028_v56 = vpop.f32.mrf.mxu1 }
 0x459   : > { %v7617_v14 = vadd.f32 %v11005_v44, %v14922_v5 }
 0x45a   : > { %v11007_v45 = vpop.f32.mrf.mxu0  ;;  %v7809_v54 = vpop.f32.mrf.mxu1 }
 0x45b   : > { %v15030_v31 = vadd.f32 %v7777_v23, %v7617_v14  ;;  %v11008_v21 = vadd.f32 %v11007_v45, %v11006_v18 }
 0x45c   : > { %v11009_v39 = vpop.f32.mrf.mxu0  ;;  %v15033_v57 = vpop.f32.mrf.mxu1 }
 0x45d   : > { %v7620_v38 = vadd.f32 %v11008_v21, %v14926_v20 }
 0x45e   : > { %v11010_v25 = vpop.f32.mrf.mxu0  ;;  %v7812_v55 = vpop.f32.mrf.mxu1 }
 0x45f   : > { %v15035_v16 = vadd.f32 %v7780_v12, %v7620_v38  ;;  %v11011_v50 = vadd.f32 %v11010_v25, %v11009_v39 }
 0x460   : > { %v11012_v33 = vpop.f32.mrf.mxu0  ;;  %v15038_v42 = vpop.f32.mrf.mxu1 }
 0x461   : > { %v7625_v5 = vadd.f32 %v11011_v50, %v14931_v27 }
 0x462   : > { %v11013_v32 = vpop.f32.mrf.mxu0  ;;  %v11080_v34 = vpop.f32.mrf.mxu1 }
 0x463   : > { %v15040_v23 = vadd.f32 %v11429_v3, %v7625_v5  ;;  %v11014_v48 = vadd.f32 %v11013_v32, %v11012_v33 }
 0x464   : > { %v11015_v10 = vpop.f32.mrf.mxu0  ;;  %v15043_v43 = vpop.f32.mrf.mxu1 }
 0x465   : > { %v7628_v20 = vadd.f32 %v11014_v48, %v14936_v49 }
 0x466   : > { %v11016_v26 = vpop.f32.mrf.mxu0  ;;  %v15047_v44 = vpop.f32.mrf.mxu1 }
 0x467   : > { %v15045_v12 = vadd.f32 %v11430_v2, %v7628_v20  ;;  %v11017_v29 = vadd.f32 %v11016_v26, %v11015_v10 }
 0x468   : > { %v11018_v18 = vpop.f32.mrf.mxu0  ;;  %v11085_v14 = vpop.f32.mrf.mxu1 }
 0x469   : > { %v7633_v27 = vadd.f32 %v11017_v29, %v14939_v47 }
 0x46a   : > { %v11019_v45 = vpop.f32.mrf.mxu0  ;;  %v11086_v39 = vpop.f32.mrf.mxu1 }
 0x46b   : > { %v15050_v3 = vadd.f32 %v7793_v35, %v7633_v27  ;;  %v11020_v21 = vadd.f32 %v11019_v45, %v11018_v18 }
 0x46c   : > { %v11021_v38 = vpop.f32.mrf.mxu0  ;;  %v11088_v25 = vpop.f32.mrf.mxu1 }
 0x46d   : > { %v7636_v49 = vadd.f32 %v11020_v21, %v14947_v24 }
 0x46e   : > { %v11022_v50 = vpop.f32.mrf.mxu0  ;;  %v11089_v5 = vpop.f32.mrf.mxu1 }
 0x46f   : > { %v15053_v33 = vadd.f32 %v7796_v41, %v7636_v49  ;;  %v11023_v2 = vadd.f32 %v11022_v50, %v11021_v38 }
 0x470   : > { %v11024_v32 = vpop.f32.mrf.mxu0  ;;  %v11091_v10 = vpop.f32.mrf.mxu1 }
 0x471   : > { %15375 = vst [vmem:[#allocation4_spill] sm:$0xff] %v15053_v33  ;;  %v7641_v48 = vadd.f32 %v11023_v2, %v14950_v6 }
 0x472   : > { %v11025_v47 = vpop.f32.mrf.mxu0  ;;  %v11092_v26 = vpop.f32.mrf.mxu1 }
 0x473   : > { %v15056_v20 = vadd.f32 %v11433_v11, %v7641_v48  ;;  %v11026_v35 = vadd.f32 %v11025_v47, %v11024_v32 }
 0x474   : > { %v11027_v29 = vpop.f32.mrf.mxu0  ;;  %v15059_v27 = vpop.f32.mrf.mxu1 }
 0x475   : > { %15376 = vst [vmem:[#allocation7_spill] sm:$0xff] %v15056_v20  ;;  %v7644_v18 = vadd.f32 %v11026_v35, %v14954_v60 }
 0x476   : > { %v11028_v24 = vpop.f32.mrf.mxu0  ;;  %v11095_v21 = vpop.f32.mrf.mxu1 }
 0x477   : > { %v15061_v45 = vadd.f32 %v11434_v15, %v7644_v18  ;;  %v11029_v41 = vadd.f32 %v11028_v24, %v11027_v29 }
 0x478   : > { %v11030_v38 = vpop.f32.mrf.mxu0  ;;  %v11097_v6 = vpop.f32.mrf.mxu1 }
 0x479   : > { %v7649_v49 = vadd.f32 %v11029_v41, %v14958_v7  ;;  %v11087_v41 = vadd.f32 %v11086_v39, %v11085_v14  ;;  %v11090_v14 = vadd.f32 %v11089_v5, %v11088_v25  ;;  %v15097_v25 = vld [vmem:[%s15235_s7] ss:$0 sm:$0xff] }
 0x47a   : > { %v11031_v50 = vpop.f32.mrf.mxu0  ;;  %v11098_v32 = vpop.f32.mrf.mxu1 }
 0x47b   : > { %v11032_v2 = vadd.f32 %v11031_v50, %v11030_v38  ;;  %v15064_v11 = vadd.f32 %v7809_v54, %v7649_v49 }
 0x47c   : > { %v11033_v48 = vpop.f32.mrf.mxu0  ;;  %v11100_v60 = vpop.f32.mrf.mxu1 }
 0x47d   : > { %v7652_v47 = vadd.f32 %v11032_v2, %v14964_v22  ;;  %v11081_v22 = vadd.f32 %v11080_v34, %v15038_v42 }
 0x47e   : > { %v11034_v35 = vpop.f32.mrf.mxu0  ;;  %v11101_v15 = vpop.f32.mrf.mxu1 }
 0x47f   : > { %v11035_v20 = vadd.f32 %v11034_v35, %v11033_v48  ;;  %v15067_v33 = vadd.f32 %v7812_v55, %v7652_v47  ;;  %v15080_v48 = vld [vmem:[%s15234_s6] ss:$0 sm:$0xff] }
 0x480   : > { %v11036_v29 = vpop.f32.mrf.mxu0  ;;  %v15070_v24 = vpop.f32.mrf.mxu1 }
 0x481   : > { %v7657_v18 = vadd.f32 %v11035_v20, %v14967_v17 }
 0x482   : > { %v11037_v7 = vpop.f32.mrf.mxu0  ;;  %v11104_v49 = vpop.f32.mrf.mxu1 }
 0x483   : > { %v15073_v54 = vadd.f32 %v15028_v56, %v7657_v18  ;;  %v11038_v38 = vadd.f32 %v11037_v7, %v11036_v29 }
 0x484   : > { %v11457_v50 = vpop.f32.mrf.mxu0  ;;  %v15082_v17 = vpop.f32.mrf.mxu1 }
 0x485   : > { %v7660_v2 = vadd.f32 %v11038_v38, %v14971_v53  ;;  %v8606_v55 = vadd.f32 %v11457_v50, %v11087_v41  ;;  %v11084_v53 = vadd.f32 %v15047_v44, %v15043_v43  ;;  %v11099_v38 = vadd.f32 %v11098_v32, %v11097_v6 }
 0x486   : > { %v8597_v20 = vpop.f32.mrf.mxu0  ;;  %v15088_v35 = vpop.f32.mrf.mxu1  ;;  %v11093_v44 = vadd.f32 %v11092_v26, %v11091_v10  ;;  %v11096_v32 = vadd.f32 %v11095_v21, %v15059_v27  ;;  %v11102_v10 = vadd.f32 %v11101_v15, %v11100_v60 }
 0x487   : > { %v15085_v56 = vadd.f32 %v15033_v57, %v7660_v2  ;;  %v8726_v39 = vadd.f32 %v8606_v55, %v14973_v28  ;;  %v8598_v47 = vadd.f32 %v11081_v22, %v8597_v20 }
 0x488   : > { %v11458_v42 = vpop.f32.mrf.mxu0  ;;  %v11109_v57 = vpop.f32.mrf.mxu1 }
 0x489   : > { %v8765_v34 = vmul.f32 %v15080_v48, %v8726_v39  ;;  %v8724_v29 = vadd.f32 %v8598_v47, %v14976_v1  ;;  %v8609_v18 = vadd.f32 %v11458_v42, %v11090_v14 }
 0x48a   : > { %v8600_v5 = vpop.f32.mrf.mxu0  ;;  %v11110_v50 = vpop.f32.mrf.mxu1 }
 0x48b   : > { %v8763_v28 = vmul.f32 %v15080_v48, %v8724_v29  ;;  %v8727_v7 = vadd.f32 %v8609_v18, %v14979_v46  ;;  %v8601_v41 = vadd.f32 %v11084_v53, %v8600_v5  ;;  %v8804_v22 = vadd.f32 %v15097_v25, %v8765_v34 }
 0x48c   : > { %v11461_v43 = vpop.f32.mrf.mxu0  ;;  %v11112_v14 = vpop.f32.mrf.mxu1 }
 0x48d   : > { %v8766_v1 = vmul.f32 %v15080_v48, %v8727_v7  ;;  %v8725_v2 = vadd.f32 %v8601_v41, %v14981_v13  ;;  %v8802_v55 = vadd.f32 %v15097_v25, %v8763_v28  ;;  %v8622_v20 = vadd.f32 %v11461_v43, %v11099_v38 }
 0x48e   : > { %v8613_v39 = vpop.f32.mrf.mxu0  ;;  %v11113_v42 = vpop.f32.mrf.mxu1  ;;  %v8836_v34 = vmax.f32 %v8804_v22, 0.0  ;;  %v11105_v22 = vadd.f32 %v11104_v49, %v15070_v24 }
 0x48f   : > { %v8805_v47 = vadd.f32 %v15097_v25, %v8766_v1  ;;  %v8764_v46 = vmul.f32 %v15080_v48, %v8725_v2  ;;  %v8614_v6 = vadd.f32 %v11093_v44, %v8613_v39  ;;  %v8730_v26 = vadd.f32 %v8622_v20, %v14984_v19 }
 0x490   : > { %v11462_v53 = vpop.f32.mrf.mxu0  ;;  %v8834_v5 = vmax.f32 %v8802_v55, 0.0  ;;  %v11115_v19 = vpop.f32.mrf.mxu1 }
 0x491   : > { %v8837_v13 = vmax.f32 %v8805_v47, 0.0  ;;  %v8803_v29 = vadd.f32 %v15097_v25, %v8764_v46  ;;  %v8728_v18 = vadd.f32 %v8614_v6, %v14986_v30  ;;  %v8769_v27 = vmul.f32 %v15080_v48, %v8730_v26 }
 0x492   : > { %v8625_v21 = vadd.f32 %v11462_v53, %v11102_v10  ;;  %v8616_v60 = vpop.f32.mrf.mxu0  ;;  %v11111_v30 = vadd.f32 %v11110_v50, %v11109_v57  ;;  %v11116_v43 = vpop.f32.mrf.mxu1  ;;  %v11114_v57 = vadd.f32 %v11113_v42, %v11112_v14  ;;  %v11108_v10 = vadd.f32 %v15088_v35, %v15082_v17 }
 0x493   : > { %v10270_v15 = vpack.c.bf16 %v8837_v13, %v8836_v34  ;;  %v8835_v28 = vmax.f32 %v8803_v29, 0.0  ;;  %v8767_v7 = vmul.f32 %v15080_v48, %v8728_v18  ;;  %v8617_v41 = vadd.f32 %v11096_v32, %v8616_v60 }
 0x494   : > { %v8731_v38 = vadd.f32 %v8625_v21, %v14989_v52  ;;  %v11465_v44 = vpop.f32.mrf.mxu0  ;;  %v8808_v55 = vadd.f32 %v15097_v25, %v8769_v27  ;;  %v11118_v46 = vpop.f32.mrf.mxu1 }
 0x495   : > { %10368 = vst [vmem:[%s15116_s23 + $0x8] sm:$0xff] %v10270_v15   ;;  %v10265_v1 = vpack.c.bf16 %v8835_v28, %v8834_v5  ;;  %v8729_v2 = vadd.f32 %v8617_v41, %v14991_v62  ;;  %v8806_v20 = vadd.f32 %v15097_v25, %v8767_v7  ;;  %v8638_v47 = vadd.f32 %v11465_v44, %v11111_v30 }
 0x496   : > { %v8770_v39 = vmul.f32 %v15080_v48, %v8731_v38  ;;  %v8629_v6 = vpop.f32.mrf.mxu0  ;;  %v11119_v32 = vpop.f32.mrf.mxu1  ;;  %v8840_v13 = vmax.f32 %v8808_v55, 0.0  ;;  %v11117_v7 = vadd.f32 %v11116_v43, %v11115_v19 }
 0x497   : > { %10266 = vst [vmem:[%s15116_s23] sm:$0xff] %v10265_v1   ;;  %v8768_v52 = vmul.f32 %v15080_v48, %v8729_v2  ;;  %v8630_v50 = vadd.f32 %v11105_v22, %v8629_v6  ;;  %v8734_v49 = vadd.f32 %v8638_v47, %v14994_v8  ;;  %v8838_v29 = vmax.f32 %v8806_v20, 0.0 }
 0x498   : > { %v8809_v24 = vadd.f32 %v15097_v25, %v8770_v39  ;;  %v11466_v62 = vpop.f32.mrf.mxu0  ;;  %v11121_v18 = vpop.f32.mrf.mxu1 }
 0x499   : > { %v8807_v26 = vadd.f32 %v15097_v25, %v8768_v52  ;;  %v8732_v53 = vadd.f32 %v8630_v50, %v14996_v58  ;;  %v8641_v34 = vadd.f32 %v11466_v62, %v11114_v57  ;;  %v8773_v42 = vmul.f32 %v15080_v48, %v8734_v49 }
 0x49a   : > { %v8841_v14 = vmax.f32 %v8809_v24, 0.0  ;;  %v8632_v5 = vpop.f32.mrf.mxu0  ;;  %v11122_v58 = vpop.f32.mrf.mxu1  ;;  %v11120_v52 = vadd.f32 %v11119_v32, %v11118_v46 }
 0x49b   : > { %v8839_v27 = vmax.f32 %v8807_v26, 0.0  ;;  %v8771_v8 = vmul.f32 %v15080_v48, %v8732_v53  ;;  %v8735_v21 = vadd.f32 %v8641_v34, %v14999_v51  ;;  %v8633_v17 = vadd.f32 %v11108_v10, %v8632_v5 }
 0x49c   : > { %v10280_v35 = vpack.c.bf16 %v8841_v14, %v8840_v13  ;;  %v8812_v60 = vadd.f32 %v15097_v25, %v8773_v42  ;;  %v11469_v15 = vpop.f32.mrf.mxu0  ;;  %v11123_v38 = vadd.f32 %v11122_v58, %v11121_v18  ;;  %v11124_v44 = vpop.f32.mrf.mxu1 }
 0x49d   : > { %v10275_v28 = vpack.c.bf16 %v8839_v27, %v8838_v29  ;;  %v8774_v41 = vmul.f32 %v15080_v48, %v8735_v21  ;;  %v8733_v30 = vadd.f32 %v8633_v17, %v15001_v59  ;;  %v8810_v1 = vadd.f32 %v15097_v25, %v8771_v8 }
 0x49e   : > { %10370 = vst [vmem:[%s15116_s23 + $0x18] sm:$0xff] %v10280_v35   ;;  %v8645_v22 = vpop.f32.mrf.mxu0  ;;  %v8844_v20 = vmax.f32 %v8812_v60, 0.0  ;;  %v8654_v39 = vadd.f32 %v11469_v15, %v11123_v38  ;;  %v11125_v47 = vpop.f32.mrf.mxu1 }
 0x49f   : > { %10369 = vst [vmem:[%s15116_s23 + $0x10] sm:$0xff] %v10275_v28   ;;  %v8813_v51 = vadd.f32 %v15097_v25, %v8774_v41  ;;  %v8772_v2 = vmul.f32 %v15080_v48, %v8733_v30  ;;  %v8646_v55 = vadd.f32 %v11117_v7, %v8645_v22  ;;  %v11126_v57 = vadd.f32 %v11125_v47, %v11124_v44 }
 0x4a0   : > { %v11470_v19 = vpop.f32.mrf.mxu0  ;;  %v8738_v50 = vadd.f32 %v8654_v39, %v15010_v36  ;;  %v11127_v24 = vpop.f32.mrf.mxu1  ;;  %v8842_v62 = vmax.f32 %v8810_v1, 0.0 }
 0x4a1   : > { %v8845_v43 = vmax.f32 %v8813_v51, 0.0  ;;  %v8811_v6 = vadd.f32 %v15097_v25, %v8772_v2  ;;  %v8736_v59 = vadd.f32 %v8646_v55, %v15004_v9  ;;  %v8657_v53 = vadd.f32 %v11470_v19, %v11126_v57 }
 0x4a2   : > { %v8648_v49 = vpop.f32.mrf.mxu0  ;;  %v8777_v34 = vmul.f32 %v15080_v48, %v8738_v50  ;;  %v11128_v14 = vpop.f32.mrf.mxu1 }
 0x4a3   : > { %v10290_v10 = vpack.c.bf16 %v8845_v43, %v8844_v20  ;;  %v8843_v26 = vmax.f32 %v8811_v6, 0.0  ;;  %v8775_v13 = vmul.f32 %v15080_v48, %v8736_v59  ;;  %v8649_v29 = vadd.f32 %v11120_v52, %v8648_v49 }
 0x4a4   : > { %v11473_v42 = vpop.f32.mrf.mxu0  ;;  %v8739_v46 = vadd.f32 %v8657_v53, %v15013_v0  ;;  %v11129_v32 = vadd.f32 %v11128_v14, %v11127_v24  ;;  %v11130_v18 = vpop.f32.mrf.mxu1  ;;  %v8816_v27 = vadd.f32 %v15097_v25, %v8777_v34 }
 0x4a5   : > { %10372 = vst [vmem:[%s15116_s23 + $0x28] sm:$0xff] %v10290_v10   ;;  %v10285_v9 = vpack.c.bf16 %v8843_v26, %v8842_v62  ;;  %v8737_v36 = vadd.f32 %v8649_v29, %v15008_v4  ;;  %v8814_v17 = vadd.f32 %v15097_v25, %v8775_v13 }
 0x4a6   : > { %v8661_v5 = vpop.f32.mrf.mxu0  ;;  %v8778_v8 = vmul.f32 %v15080_v48, %v8739_v46  ;;  %v11131_v60 = vpop.f32.mrf.mxu1  ;;  %v8848_v30 = vmax.f32 %v8816_v27, 0.0 }
 0x4a7   : > { %10371 = vst [vmem:[%s15116_s23 + $0x20] sm:$0xff] %v10285_v9   ;;  %v8662_v21 = vadd.f32 %v11129_v32, %v8661_v5  ;;  %v8776_v35 = vmul.f32 %v15080_v48, %v8737_v36  ;;  %v11132_v28 = vadd.f32 %v11131_v60, %v11130_v18  ;;  %v8846_v1 = vmax.f32 %v8814_v17, 0.0 }
 0x4a8   : > { %v11474_v58 = vpop.f32.mrf.mxu0  ;;  %v8817_v15 = vadd.f32 %v15097_v25, %v8778_v8  ;;  %v11133_v7 = vpop.f32.mrf.mxu1 }
 0x4a9   : > { %v8740_v0 = vadd.f32 %v8662_v21, %v15016_v61  ;;  %v8815_v4 = vadd.f32 %v15097_v25, %v8776_v35 }
 0x4aa   : > { %v8664_v41 = vpop.f32.mrf.mxu0  ;;  %v8849_v38 = vmax.f32 %v8817_v15, 0.0  ;;  %v11134_v2 = vpop.f32.mrf.mxu1 }
 0x4ab   : > { %v8779_v44 = vmul.f32 %v15080_v48, %v8740_v0  ;;  %v8665_v22 = vadd.f32 %v11132_v28, %v8664_v41  ;;  %v8847_v51 = vmax.f32 %v8815_v4, 0.0  ;;  %v11135_v39 = vadd.f32 %v11134_v2, %v11133_v7 }
 0x4ac   : > { %v10300_v55 = vpack.c.bf16 %v8849_v38, %v8848_v30  ;;  %v11477_v47 = vpop.f32.mrf.mxu0  ;;  %v11136_v19 = vpop.f32.mrf.mxu1 }
 0x4ad   : > { %v8741_v20 = vadd.f32 %v8665_v22, %v15019_v37  ;;  %v10295_v61 = vpack.c.bf16 %v8847_v51, %v8846_v1  ;;  %v8818_v43 = vadd.f32 %v15097_v25, %v8779_v44  ;;  %v8670_v59 = vadd.f32 %v11473_v42, %v11135_v39 }
 0x4ae   : > { %10374 = vst [vmem:[%s15116_s23 + $0x38] sm:$0xff] %v10300_v55   ;;  %v11137_v57 = vpop.f32.mrf.mxu1  ;;  %v8677_v49 = vpop.f32.mrf.mxu0 }
 0x4af   : > { %v8780_v6 = vmul.f32 %v15080_v48, %v8741_v20  ;;  %10373 = vst [vmem:[%s15116_s23 + $0x30] sm:$0xff] %v10295_v61   ;;  %v8742_v50 = vadd.f32 %v8670_v59, %v15022_v40  ;;  %v11138_v24 = vadd.f32 %v11137_v57, %v11136_v19  ;;  %v8850_v62 = vmax.f32 %v8818_v43, 0.0 }
 0x4b0   : > { %v11139_v37 = vpop.f32.mrf.mxu1  ;;  %v11478_v42 = vpop.f32.mrf.mxu0 }
 0x4b1   : > { %v8819_v52 = vadd.f32 %v15097_v25, %v8780_v6  ;;  %v8781_v26 = vmul.f32 %v15080_v48, %v8742_v50  ;;  %v8673_v53 = vadd.f32 %v11474_v58, %v11138_v24 }
 0x4b2   : > { %v11140_v34 = vpop.f32.mrf.mxu1  ;;  %v8680_v8 = vpop.f32.mrf.mxu0 }
 0x4b3   : > { %v8851_v10 = vmax.f32 %v8819_v52, 0.0  ;;  %v8743_v29 = vadd.f32 %v8673_v53, %v15025_v63  ;;  %v11141_v14 = vadd.f32 %v11140_v34, %v11139_v37  ;;  %v8820_v46 = vadd.f32 %v15097_v25, %v8781_v26 }
 0x4b4   : > { %v11142_v9 = vpop.f32.mrf.mxu1  ;;  %v11481_v4 = vpop.f32.mrf.mxu0 }
 0x4b5   : > { %v10305_v13 = vpack.c.bf16 %v8851_v10, %v8850_v62  ;;  %v8782_v40 = vmul.f32 %v15080_v48, %v8743_v29  ;;  %v8678_v32 = vadd.f32 %v11141_v14, %v8677_v49  ;;  %v8852_v17 = vmax.f32 %v8820_v46, 0.0 }
 0x4b6   : > { %v11143_v36 = vpop.f32.mrf.mxu1  ;;  %v8693_v51 = vpop.f32.mrf.mxu0 }
 0x4b7   : > { %10375 = vst [vmem:[%s15116_s23 + $0x40] sm:$0xff] %v10305_v13   ;;  %v8821_v18 = vadd.f32 %v15097_v25, %v8782_v40  ;;  %v8744_v5 = vadd.f32 %v8678_v32, %v15030_v31  ;;  %v11144_v27 = vadd.f32 %v11143_v36, %v11142_v9 }
 0x4b8   : > { %v11145_v21 = vpop.f32.mrf.mxu1 }
 0x4b9   : > { %v8853_v63 = vmax.f32 %v8821_v18, 0.0  ;;  %v8783_v35 = vmul.f32 %v15080_v48, %v8744_v5  ;;  %v8681_v60 = vadd.f32 %v11144_v27, %v8680_v8  ;;  %v15378_v8 = vld [vmem:[#allocation7_spill] sm:$0xff] }
 0x4ba   : > { %v11146_v58 = vpop.f32.mrf.mxu1 }
 0x4bb   : > { %v10310_v15 = vpack.c.bf16 %v8853_v63, %v8852_v17  ;;  %v8745_v0 = vadd.f32 %v8681_v60, %v15035_v16  ;;  %v11147_v28 = vadd.f32 %v11146_v58, %v11145_v21  ;;  %v8822_v41 = vadd.f32 %v15097_v25, %v8783_v35 }
 0x4bc   : > { %v11148_v7 = vpop.f32.mrf.mxu1 }
 0x4bd   : > { %10376 = vst [vmem:[%s15116_s23 + $0x48] sm:$0xff] %v10310_v15   ;;  %v8784_v31 = vmul.f32 %v15080_v48, %v8745_v0  ;;  %v8686_v30 = vadd.f32 %v11477_v47, %v11147_v28  ;;  %v8854_v55 = vmax.f32 %v8822_v41, 0.0  ;;  %v11482_v47 = vpop.f32.mrf.mxu0 }
 0x4be   : > { %v11149_v38 = vpop.f32.mrf.mxu1 }
 0x4bf   : > { %v8823_v44 = vadd.f32 %v15097_v25, %v8784_v31  ;;  %v8746_v22 = vadd.f32 %v8686_v30, %v15040_v23  ;;  %v11150_v1 = vadd.f32 %v11149_v38, %v11148_v7  ;;  %v8696_v62 = vpop.f32.mrf.mxu0 }
 0x4c0   : > { %v11151_v2 = vpop.f32.mrf.mxu1 }
 0x4c1   : > { %v8855_v16 = vmax.f32 %v8823_v44, 0.0  ;;  %v8785_v20 = vmul.f32 %v15080_v48, %v8746_v22  ;;  %v8689_v39 = vadd.f32 %v11478_v42, %v11150_v1  ;;  %v11485_v29 = vpop.f32.mrf.mxu0  ;;  %v15377_v42 = vld [vmem:[#allocation4_spill] sm:$0xff] }
 0x4c2   : > { %v11152_v61 = vpop.f32.mrf.mxu1 }
 0x4c3   : > { %v10315_v19 = vpack.c.bf16 %v8855_v16, %v8854_v55  ;;  %v8747_v43 = vadd.f32 %v8689_v39, %v15045_v12  ;;  %v11153_v6 = vadd.f32 %v11152_v61, %v11151_v2  ;;  %v8824_v57 = vadd.f32 %v15097_v25, %v8785_v20  ;;  %v8709_v5 = vpop.f32.mrf.mxu0 }
 0x4c4   : > { %v11154_v59 = vpop.f32.mrf.mxu1 }
 0x4c5   : > { %10377 = vst [vmem:[%s15116_s23 + $0x50] sm:$0xff] %v10315_v19   ;;  %v8786_v23 = vmul.f32 %v15080_v48, %v8747_v43  ;;  %v8694_v52 = vadd.f32 %v11153_v6, %v8693_v51  ;;  %v8856_v26 = vmax.f32 %v8824_v57, 0.0  ;;  %v11486_v28 = vpop.f32.mrf.mxu0 }
 0x4c6   : > { %v11155_v50 = vpop.f32.mrf.mxu1 }
 0x4c7   : > { %v8825_v24 = vadd.f32 %v15097_v25, %v8786_v23  ;;  %v8748_v49 = vadd.f32 %v8694_v52, %v15050_v3  ;;  %v11156_v37 = vadd.f32 %v11155_v50, %v11154_v59  ;;  %v8712_v1 = vpop.f32.mrf.mxu0 }
 0x4c8   : > { %v11157_v10 = vpop.f32.mrf.mxu1 }
 0x4c9   : > { %v8857_v12 = vmax.f32 %v8825_v24, 0.0  ;;  %v8787_v53 = vmul.f32 %v15080_v48, %v8748_v49  ;;  %v8697_v34 = vadd.f32 %v11156_v37, %v8696_v62 }
 0x4ca   : > { %v11158_v13 = vpop.f32.mrf.mxu1 }
 0x4cb   : > { %v10320_v14 = vpack.c.bf16 %v8857_v12, %v8856_v26  ;;  %v8749_v9 = vadd.f32 %v8697_v34, %v15377_v42  ;;  %v11159_v46 = vadd.f32 %v11158_v13, %v11157_v10  ;;  %v8826_v32 = vadd.f32 %v15097_v25, %v8787_v53 }
 0x4cc   : > { %v11160_v40 = vpop.f32.mrf.mxu1 }
 0x4cd   : > { %10378 = vst [vmem:[%s15116_s23 + $0x58] sm:$0xff] %v10320_v14   ;;  %v8788_v3 = vmul.f32 %v15080_v48, %v8749_v9  ;;  %v8702_v36 = vadd.f32 %v11481_v4, %v11159_v46  ;;  %v8858_v35 = vmax.f32 %v8826_v32, 0.0 }
 0x4ce   : > { %v11161_v18 = vpop.f32.mrf.mxu1 }
 0x4cf   : > { %v8827_v27 = vadd.f32 %v15097_v25, %v8788_v3  ;;  %v8750_v21 = vadd.f32 %v8702_v36, %v15378_v8  ;;  %v11162_v17 = vadd.f32 %v11161_v18, %v11160_v40 }
 0x4d0   : > { %v11163_v63 = vpop.f32.mrf.mxu1 }
 0x4d1   : > { %v8859_v60 = vmax.f32 %v8827_v27, 0.0  ;;  %v8789_v58 = vmul.f32 %v15080_v48, %v8750_v21  ;;  %v8705_v15 = vadd.f32 %v11482_v47, %v11162_v17 }
 0x4d2   : > { %v11164_v0 = vpop.f32.mrf.mxu1 }
 0x4d3   : > { %v10325_v7 = vpack.c.bf16 %v8859_v60, %v8858_v35  ;;  %v8751_v41 = vadd.f32 %v8705_v15, %v15061_v45  ;;  %v11165_v4 = vadd.f32 %v11164_v0, %v11163_v63  ;;  %v8828_v30 = vadd.f32 %v15097_v25, %v8789_v58 }
 0x4d4   : > { %v11166_v31 = vpop.f32.mrf.mxu1 }
 0x4d5   : > { %10379 = vst [vmem:[%s15116_s23 + $0x60] sm:$0xff] %v10325_v7   ;;  %v8790_v38 = vmul.f32 %v15080_v48, %v8751_v41  ;;  %v8710_v44 = vadd.f32 %v11165_v4, %v8709_v5  ;;  %v8860_v20 = vmax.f32 %v8828_v30, 0.0 }
 0x4d6   : > { %v11167_v22 = vpop.f32.mrf.mxu1 }
 0x4d7   : > { %v8829_v51 = vadd.f32 %v15097_v25, %v8790_v38  ;;  %v8752_v2 = vadd.f32 %v8710_v44, %v15064_v11  ;;  %v11168_v55 = vadd.f32 %v11167_v22, %v11166_v31 }
 0x4d8   : > { %v11169_v16 = vpop.f32.mrf.mxu1 }
 0x4d9   : > { %v8861_v39 = vmax.f32 %v8829_v51, 0.0  ;;  %v8791_v45 = vmul.f32 %v15080_v48, %v8752_v2  ;;  %v8713_v61 = vadd.f32 %v11168_v55, %v8712_v1 }
 0x4da   : > { %v11170_v19 = vpop.f32.mrf.mxu1 }
 0x4db   : > { %v10330_v43 = vpack.c.bf16 %v8861_v39, %v8860_v20  ;;  %v8753_v6 = vadd.f32 %v8713_v61, %v15067_v33  ;;  %v11171_v47 = vadd.f32 %v11170_v19, %v11169_v16  ;;  %v8830_v57 = vadd.f32 %v15097_v25, %v8791_v45 }
 0x4dc   : > { %v11172_v59 = vpop.f32.mrf.mxu1 }
 0x4dd   : > { %10380 = vst [vmem:[%s15116_s23 + $0x68] sm:$0xff] %v10330_v43   ;;  %v8792_v23 = vmul.f32 %v15080_v48, %v8753_v6  ;;  %v8718_v11 = vadd.f32 %v11485_v29, %v11171_v47  ;;  %v8862_v37 = vmax.f32 %v8830_v57, 0.0 }
 0x4de   : > { %v11173_v52 = vpop.f32.mrf.mxu1 }
 0x4df   : > { %v8831_v50 = vadd.f32 %v15097_v25, %v8792_v23  ;;  %v8754_v24 = vadd.f32 %v8718_v11, %v15073_v54  ;;  %v11174_v49 = vadd.f32 %v11173_v52, %v11172_v59 }
 0x4e1   : > { %v8863_v62 = vmax.f32 %v8831_v50, 0.0  ;;  %v8793_v33 = vmul.f32 %v15080_v48, %v8754_v24  ;;  %v8721_v10 = vadd.f32 %v11486_v28, %v11174_v49 }
 0x4e3   : > { %v10335_v26 = vpack.c.bf16 %v8863_v62, %v8862_v37  ;;  %v8755_v12 = vadd.f32 %v8721_v10, %v15085_v56  ;;  %v8832_v53 = vadd.f32 %v15097_v25, %v8793_v33 }
 0x4e5   : > { %10381 = vst [vmem:[%s15116_s23 + $0x70] sm:$0xff] %v10335_v26   ;;  %v8794_v34 = vmul.f32 %v15080_v48, %v8755_v12  ;;  %v8864_v29 = vmax.f32 %v8832_v53, 0.0 }
 0x4e7   : > { %v8833_v13 = vadd.f32 %v15097_v25, %v8794_v34 }
 0x4e9   : > { %v8865_v14 = vmax.f32 %v8833_v13, 0.0 }
 0x4eb   : > { %v10340_v42 = vpack.c.bf16 %v8865_v14, %v8864_v29 }
 0x4ed   : > { %10382 = vst [vmem:[%s15116_s23 + $0x78] sm:$0xff] %v10340_v42  }
 0x4ee PF: > { %s18_s29 = sadd.s32 1, %s12100_s29   ;;  %s15379_s27 = smov %s12096_s28 }
 0x4ef   : > { %p15_p5 = scmp.ge.s32.totalorder %s18_s29, 4   ;;  %s15380_s28 = smov %s15382_s30 }
 0x4f1   :  { %17 = sbr.rel (!%p15_p5) target bundleno = 2 (0x2), region = 120 }

</bundles_post_ra>
